<compile_context>
chip_gen: v7x
topology: tpu7x:2x2x1
jax: 0.10.0
libtpu: 0.0.40
codegen_flags: <defaults>
</compile_context>

<pallas_src>
import functools

import numpy as np
import jax
import jax.numpy as jnp
from jax import lax
from jax.experimental import pallas as pl
from jax.experimental.pallas import tpu as pltpu

CONV_CHANNELS = [16, 16, 16]
FC_CHANNELS = [288, 144, 2]
GROUPS = 4


# ----------------------------------------------------------------------------- kernel

def fused_dann2_kernel(
        # input activation (padded, row = (n, h_pad), lane = w_pad*Cin + c)
        a1_ref,
        # conv block 1 (constants in VMEM via BlockSpec prologue)
        bw1_ref, cb1_ref, snm1_ref, smn1_ref, gm1_ref, gmt1_ref, rs1_ref, lsc1_hbm,
        # conv block 2 (banded weight + pool lane-select manually DMA'd from HBM)
        bw2_hbm, cb2_ref, snm2_ref, smn2_ref, gm2_ref, gmt2_ref, rs2_ref, lsc2_hbm,
        # conv block 3
        bw3_hbm, cb3_ref, snm3_ref, smn3_ref, gm3_ref, gmt3_ref, rs3_ref, lsf_hbm,
        # fc stack (weights manually DMA'd from HBM)
        w1_hbm, fb1_ref, fg1_ref, fgt1_ref,
        w2_hbm, fb2_ref, fg2_ref, fgt2_ref,
        w3_hbm, fb3_ref,
        # output
        out_ref,
        # scratch
        lsc1_buf, bw2_buf, lsc2_buf, bw3_buf, lsf_buf, w1_buf, w2_buf, w3_buf, dma_sem,
        *, rows, lanes, inv_cnts, pool_lps, final_hw, fpad, n_batch,
        fc_dims, fc_inv_gs, groups):
    f32 = jnp.float32

    # ---- start all late-stage constant DMAs now; they overlap with conv compute and are
    # waited on immediately before first use.
    copies = (
        pltpu.make_async_copy(lsc1_hbm, lsc1_buf, dma_sem.at[0]),
        pltpu.make_async_copy(bw2_hbm, bw2_buf, dma_sem.at[1]),
        pltpu.make_async_copy(lsc2_hbm, lsc2_buf, dma_sem.at[2]),
        pltpu.make_async_copy(bw3_hbm, bw3_buf, dma_sem.at[3]),
        pltpu.make_async_copy(lsf_hbm, lsf_buf, dma_sem.at[4]),
        pltpu.make_async_copy(w1_hbm, w1_buf, dma_sem.at[5]),
        pltpu.make_async_copy(w2_hbm, w2_buf, dma_sem.at[6]),
        pltpu.make_async_copy(w3_hbm, w3_buf, dma_sem.at[7]),
    )
    for cp in copies:
        cp.start()

    def conv_gn_relu(a, bw, bias, snm, smn, gm, gmt, r, l, inv_cnt):
        # 3x3 conv as 3 row-shifted banded matmuls accumulated into one f32 accumulator.
        acc = jnp.dot(a[0:r, :], bw[0], preferred_element_type=f32)
        acc = acc + jnp.dot(a[1:r + 1, :], bw[1], preferred_element_type=f32)
        acc = acc + jnp.dot(a[2:r + 2, :], bw[2], preferred_element_type=f32)
        y = acc + bias
        # GroupNorm(eps=0, no affine), one-pass stats with factored group indicators:
        #   [sum(y) | sum(y^2)] per sample via one dot; group sums via tiny (2L,2G) factor.
        yy = jnp.concatenate([y, y * y], axis=-1)                       # (r, 2L)
        s12 = jnp.dot(snm, yy, preferred_element_type=f32)              # (N, 2L)
        stat = jnp.dot(s12, gm, preferred_element_type=f32) * inv_cnt   # (N, 2G)
        mean = stat[:, :groups]
        ex2 = stat[:, groups:]
        inv = lax.rsqrt(jnp.maximum(ex2 - mean * mean, 0.0))
        mi = jnp.concatenate([mean, inv], axis=-1)                      # (N, 2G)
        mi_full = jnp.dot(mi, gmt, preferred_element_type=f32)          # (N, 2L)
        mi_rows = jnp.dot(smn, mi_full, preferred_element_type=f32)     # (r, 2L)
        return jnp.maximum((y - mi_rows[:, :l]) * mi_rows[:, l:], 0.0)

    def pool2x2(z, rs, lsc, lp):
        # 2x2 max-pool + re-pad for the next block; lane selects merged into one matmul,
        # max over dw folded early to keep live-vreg pressure low.
        t = jnp.dot(z, lsc, preferred_element_type=f32)                 # (r, 2*lp)
        tm = jnp.maximum(t[:, :lp], t[:, lp:])
        c0 = jnp.dot(rs[0], tm, preferred_element_type=f32)
        c1 = jnp.dot(rs[1], tm, preferred_element_type=f32)
        return jnp.maximum(c0, c1)

    # ---- conv block 1
    z = conv_gn_relu(a1_ref[...], bw1_ref, cb1_ref[...], snm1_ref[...], smn1_ref[...],
                     gm1_ref[...], gmt1_ref[...], rows[0], lanes[0], inv_cnts[0])
    copies[0].wait()
    a = pool2x2(z, rs1_ref, lsc1_buf[...], pool_lps[0])

    # ---- conv block 2
    copies[1].wait()
    z = conv_gn_relu(a, bw2_buf, cb2_ref[...], snm2_ref[...], smn2_ref[...],
                     gm2_ref[...], gmt2_ref[...], rows[1], lanes[1], inv_cnts[1])
    copies[2].wait()
    a = pool2x2(z, rs2_ref, lsc2_buf[...], pool_lps[1])

    # ---- conv block 3
    copies[3].wait()
    z = conv_gn_relu(a, bw3_buf, cb3_ref[...], snm3_ref[...], smn3_ref[...],
                     gm3_ref[...], gmt3_ref[...], rows[2], lanes[2], inv_cnts[2])

    # ---- final 2x2 max-pool fused with the NCHW flatten: 2 matmuls total.
    copies[4].wait()
    t = jnp.dot(jnp.dot(rs3_ref[...], z, preferred_element_type=f32),
                lsf_buf[...], preferred_element_type=f32)  # (2*hw*N, 2*hw*fpad)
    cand = []
    for dh in range(2):
        for dw in range(2):
            acc = None
            for ho in range(final_hw):
                kr, kc = 2 * ho + dh, 2 * ho + dw
                blk = t[kr * n_batch:(kr + 1) * n_batch, kc * fpad:(kc + 1) * fpad]
                acc = blk if acc is None else acc + blk
            cand.append(acc)
    feat = jnp.maximum(jnp.maximum(cand[0], cand[1]), jnp.maximum(cand[2], cand[3]))

    def fc_gn_relu(x, w, b, gm, gmt, f, inv_gs):
        y = jnp.dot(x, w, preferred_element_type=f32) + b
        yy = jnp.concatenate([y, y * y], axis=-1)
        stat = jnp.dot(yy, gm, preferred_element_type=f32) * inv_gs     # (N, 2G)
        mean = stat[:, :groups]
        ex2 = stat[:, groups:]
        inv = lax.rsqrt(jnp.maximum(ex2 - mean * mean, 0.0))
        mi = jnp.concatenate([mean, inv], axis=-1)
        mi_full = jnp.dot(mi, gmt, preferred_element_type=f32)          # (N, 2F)
        return jnp.maximum((y - mi_full[:, :f]) * mi_full[:, f:], 0.0)

    # ReverseLayerF (GRL) is an identity in the forward pass.
    copies[5].wait()
    h = fc_gn_relu(feat, w1_buf[...], fb1_ref[...], fg1_ref[...], fgt1_ref[...],
                   fc_dims[0], fc_inv_gs[0])
    copies[6].wait()
    h = fc_gn_relu(h, w2_buf[...], fb2_ref[...], fg2_ref[...], fgt2_ref[...],
                   fc_dims[1], fc_inv_gs[1])
    copies[7].wait()
    out_ref[...] = jnp.dot(h, w3_buf[...], preferred_element_type=f32) + fb3_ref[...]


# ----------------------------------------------------------------------------- host constants

def _full_spec(shape):
    n = len(shape)
    return pl.BlockSpec(shape, lambda i, n=n: (0,) * n)


def _sample_row_indicators(n_batch, hp, h):
    snm = np.zeros((n_batch, n_batch * hp), np.float32)   # interior rows -> sample
    smn = np.zeros((n_batch * hp, n_batch), np.float32)   # sample -> all rows (broadcast)
    for n in range(n_batch):
        smn[n * hp:(n + 1) * hp, n] = 1.0
        snm[n, n * hp + 1:n * hp + 1 + h] = 1.0
    return snm, smn


def _group_factor(group_id):
    """Block-diagonal one-hot factor (2L, 2G) and its transpose for GroupNorm stats on
    lane-concatenated [sum | sum_sq] / [mean | rsqrt(var)] values."""
    l = group_id.shape[0]
    m = np.zeros((l, GROUPS), np.float32)
    m[np.arange(l), group_id] = 1.0
    m2 = np.zeros((2 * l, 2 * GROUPS), np.float32)
    m2[:l, :GROUPS] = m
    m2[l:, GROUPS:] = m
    return m2, np.ascontiguousarray(m2.T)


def _conv_group_id(w, c):
    return ((np.arange(w * c) % c) // (c // GROUPS)).astype(np.int64)


def _fc_group_id(f):
    return (np.arange(f) // (f // GROUPS)).astype(np.int64)


def _pool_row_select(n_batch, hp_cur, hp_next, h_next):
    rs = np.zeros((2, n_batch * hp_next + 2, n_batch * hp_cur), np.float32)
    for dh in range(2):
        for n in range(n_batch):
            for ho in range(h_next):
                rs[dh, 1 + n * hp_next + 1 + ho, n * hp_cur + 1 + 2 * ho + dh] = 1.0
    return rs


def _pool_lane_select_cat(w_cur, w_next, c):
    """Lane-concatenated (dw=0 | dw=1) pool column-selection matrix."""
    lp = (w_next + 2) * c
    ls = np.zeros((w_cur * c, 2 * lp), np.float32)
    for dw in range(2):
        for wo in range(w_next):
            for ch in range(c):
                ls[(2 * wo + dw) * c + ch, dw * lp + (wo + 1) * c + ch] = 1.0
    return ls


def _final_selects_stacked(n_batch, hp, h_conv, c, fpad):
    """Row-stacked / lane-stacked selections for the final pool fused with the flatten."""
    hw = h_conv // 2
    k_planes = 2 * hw
    rs = np.zeros((k_planes * n_batch, n_batch * hp), np.float32)
    ls = np.zeros((h_conv * c, k_planes * fpad), np.float32)
    for k in range(k_planes):                   # k = 2*ho + d
        ho, d = k // 2, k % 2
        for n in range(n_batch):
            rs[k * n_batch + n, n * hp + 1 + 2 * ho + d] = 1.0
        for wo in range(hw):
            for ch in range(c):
                ls[(2 * wo + d) * c + ch, k * fpad + (ho * hw + wo) * c + ch] = 1.0
    return rs, ls


def _band_weights(w_oihw, w_in):
    """(Cout, Cin, 3, 3) PyTorch conv weight -> (3, (w_in+2)*Cin, w_in*Cout) banded form."""
    cout, cin = int(w_oihw.shape[0]), int(w_oihw.shape[1])
    w = jnp.transpose(w_oihw.astype(jnp.float32), (2, 3, 1, 0))   # (3, 3, Cin, Cout)
    wp = w_in + 2
    planes = []
    for di in range(3):
        acc = jnp.zeros((wp * cin, w_in * cout), jnp.float32)
        for dj in range(3):
            s = np.zeros((wp, w_in), np.float32)
            for wo in range(w_in):
                s[wo + dj, wo] = 1.0
            acc = acc + jnp.kron(jnp.asarray(s), w[di, dj])
        planes.append(acc)
    return jnp.stack(planes, axis=0)


def prepare_constants(params, input_channels, input_size, batch):
    """Build all kernel-format weights / indicator / selection matrices ONCE."""
    n = batch
    consts, is_any = [], []

    def add(x, any_space=False):
        consts.append(x)
        is_any.append(any_space)

    rows, lanes, inv_cnts, pool_lps = [], [], [], []
    h = input_size
    n_conv = len(params["conv"])
    final_hw = feat_dim = fpad = None
    for i, (w, b) in enumerate(params["conv"]):
        cout = int(w.shape[0])
        hp = h + 2
        # only block 1's banded weight is pipeline-prefetched; blocks 2/3 are DMA'd
        # manually inside the kernel (overlapped with earlier compute).
        add(_band_weights(w, h), any_space=(i > 0))
        add(jnp.tile(b.reshape(1, cout).astype(jnp.float32), (1, h)))
        snm, smn = _sample_row_indicators(n, hp, h)
        add(jnp.asarray(snm))
        add(jnp.asarray(smn))
        gm, gmt = _group_factor(_conv_group_id(h, cout))
        add(jnp.asarray(gm))
        add(jnp.asarray(gmt))
        rows.append(n * hp)
        lanes.append(h * cout)
        inv_cnts.append(1.0 / float(h * h * (cout // GROUPS)))
        hn = h // 2
        if i + 1 < n_conv:
            add(jnp.asarray(_pool_row_select(n, hp, hn + 2, hn)))
            add(jnp.asarray(_pool_lane_select_cat(h, hn, cout)), any_space=True)
            pool_lps.append((hn + 2) * cout)
        else:
            final_hw = hn
            feat_dim = cout * hn * hn
            fpad = ((feat_dim + 127) // 128) * 128
            rs3, lsf = _final_selects_stacked(n, hp, h, cout, fpad)
            add(jnp.asarray(rs3))
            add(jnp.asarray(lsf), any_space=True)
        h = hn

    (w1, b1), (w2, b2), (w3, b3) = params["fc"]
    f1, f2, f3 = FC_CHANNELS
    c_last = int(params["conv"][-1][0].shape[0])
    assert int(w1.shape[1]) == feat_dim
    # kernel feature order (ho, wo, c)  vs  PyTorch NCHW flatten order (c, ho, wo)
    perm = np.zeros((feat_dim,), np.int32)
    for ho in range(final_hw):
        for wo in range(final_hw):
            for c in range(c_last):
                perm[(ho * final_hw + wo) * c_last + c] = (
                    c * final_hw * final_hw + ho * final_hw + wo)
    w1k = jnp.zeros((fpad, f1), jnp.float32).at[:feat_dim, :].set(
        jnp.transpose(w1.astype(jnp.float32))[perm])
    add(w1k, any_space=True)
    add(b1.reshape(1, f1).astype(jnp.float32))
    g1m, g1t = _group_factor(_fc_group_id(f1))
    add(jnp.asarray(g1m))
    add(jnp.asarray(g1t))
    add(jnp.transpose(w2).astype(jnp.float32), any_space=True)
    add(b2.reshape(1, f2).astype(jnp.float32))
    g2m, g2t = _group_factor(_fc_group_id(f2))
    add(jnp.asarray(g2m))
    add(jnp.asarray(g2t))
    out_pad = ((f3 + 127) // 128) * 128          # lane-dense padded logits
    add(jnp.zeros((f2, out_pad), jnp.float32).at[:, :f3].set(
        jnp.transpose(w3).astype(jnp.float32)), any_space=True)
    add(jnp.zeros((1, out_pad), jnp.float32).at[:, :f3].set(
        b3.reshape(1, f3).astype(jnp.float32)))

    cfg = dict(rows=tuple(rows), lanes=tuple(lanes), inv_cnts=tuple(inv_cnts),
               pool_lps=tuple(pool_lps), final_hw=final_hw, fpad=fpad, n_batch=n,
               fc_dims=(f1, f2), fc_inv_gs=(1.0 / (f1 // GROUPS), 1.0 / (f2 // GROUPS)),
               groups=GROUPS, out_pad=out_pad, n_out=f3)
    return consts, is_any, cfg


def build_forward(params, input_channels, input_size, batch):
    consts, is_any, cfg = prepare_constants(params, input_channels, input_size, batch)
    kernel = functools.partial(
        fused_dann2_kernel,
        rows=cfg["rows"], lanes=cfg["lanes"], inv_cnts=cfg["inv_cnts"],
        pool_lps=cfg["pool_lps"], final_hw=cfg["final_hw"], fpad=cfg["fpad"],
        n_batch=cfg["n_batch"], fc_dims=cfg["fc_dims"], fc_inv_gs=cfg["fc_inv_gs"],
        groups=cfg["groups"])
    n, out_pad, n_out = batch, cfg["out_pad"], cfg["n_out"]
    hp1 = input_size + 2

    # VMEM buffers for the manually DMA'd constants (same order as the ANY inputs) + sems.
    any_consts = [c for c, a in zip(consts, is_any) if a]
    scratch = [pltpu.VMEM(c.shape, c.dtype) for c in any_consts]
    scratch.append(pltpu.SemaphoreType.DMA((len(any_consts),)))

    const_specs = [pl.BlockSpec(memory_space=pl.ANY) if a else _full_spec(c.shape)
                   for c, a in zip(consts, is_any)]

    @jax.jit
    def fwd(x, *cs):
        xt = jnp.transpose(x.astype(jnp.float32), (0, 2, 3, 1))           # NCHW -> NHWC
        xp = jnp.pad(xt, ((0, 0), (1, 1), (1, 1), (0, 0)))
        a1 = jnp.pad(xp.reshape(n * hp1, hp1 * input_channels), ((1, 1), (0, 0)))
        args = (a1,) + cs
        out = pl.pallas_call(
            kernel,
            grid=(1,),
            in_specs=[_full_spec(a1.shape)] + const_specs,
            out_specs=_full_spec((n, out_pad)),
            out_shape=jax.ShapeDtypeStruct((n, out_pad), jnp.float32),
            scratch_shapes=scratch,
            compiler_params=pltpu.CompilerParams(dimension_semantics=("arbitrary",)),
        )(*args)
        return out[:, :n_out]

    def forward(x, alpha):
        # ReverseLayerF is an identity in the forward pass (alpha only scales gradients).
        del alpha
        return fwd(x, *consts)

    return forward


# ----------------------------------------------------------------------------- params

def _uniform(key, shape, fan_in):
    bound = 1.0 / np.sqrt(fan_in)
    return jax.random.uniform(key, shape, jnp.float32, -bound, bound)


def init_params(key, input_channels, input_size):
    params = {"conv": [], "fc": []}
    keys = iter(jax.random.split(key, 2 * (len(CONV_CHANNELS) + len(FC_CHANNELS))))
    cin = input_channels
    data_size = input_size
    for cout in CONV_CHANNELS:
        fan_in = cin * 9
        w = _uniform(next(keys), (cout, cin, 3, 3), fan_in)     # PyTorch OIHW layout
        b = _uniform(next(keys), (cout,), fan_in)
        params["conv"].append((w, b))
        cin = cout
        data_size //= 2
    fin = CONV_CHANNELS[-1] * data_size * data_size
    for fout in FC_CHANNELS:
        w = _uniform(next(keys), (fout, fin), fin)              # PyTorch (out, in) layout
        b = _uniform(next(keys), (fout,), fin)
        params["fc"].append((w, b))
        fin = fout
    return params


# ----------------------------------------------------------------------------- reference

def ref_forward(params, x):
    """Pure-JAX (XLA) reference matching the PyTorch module's forward pass."""
    h = x.astype(jnp.float32)
    for (w, b) in params["conv"]:
        h = lax.conv_general_dilated(h, w, (1, 1), ((1, 1), (1, 1)),
                                     dimension_numbers=("NCHW", "OIHW", "NCHW"))
        h = h + b.reshape(1, -1, 1, 1)
        nb, c, hh, ww = h.shape
        g = h.reshape(nb, GROUPS, (c // GROUPS) * hh * ww)
        mean = g.mean(axis=-1, keepdims=True)
        var = ((g - mean) ** 2).mean(axis=-1, keepdims=True)
        h = jnp.maximum(((g - mean) / jnp.sqrt(var)).reshape(nb, c, hh, ww), 0.0)
        h = h.reshape(nb, c, hh // 2, 2, ww // 2, 2).max(axis=(3, 5))   # MaxPool2d(2)
    h = h.reshape(h.shape[0], -1)                                        # NCHW flatten
    for i, (w, b) in enumerate(params["fc"]):
        h = h @ w.T + b
        if i < len(params["fc"]) - 1:
            nb, f = h.shape
            g = h.reshape(nb, GROUPS, f // GROUPS)
            mean = g.mean(axis=-1, keepdims=True)
            var = ((g - mean) ** 2).mean(axis=-1, keepdims=True)
            h = jnp.maximum(((g - mean) / jnp.sqrt(var)).reshape(nb, f), 0.0)
    return h


# ----------------------------------------------------------------------------- main

if __name__ == "__main__":
    key = jax.random.PRNGKey(0)
    k_x, k_p = jax.random.split(key)

    N, Cin, S = 2, 4, 16                # batch=2, input_channels=4, input_size=16
    x = jax.random.normal(k_x, (N, Cin, S, S), jnp.float32)     # NCHW like PyTorch
    alpha = 0.5

    params = init_params(k_p, Cin, S)
    forward = build_forward(params, Cin, S, N)
    out = jax.block_until_ready(forward(x, alpha))

    assert out.shape == (N, FC_CHANNELS[-1]), out.shape
    assert bool(jnp.all(jnp.isfinite(out)))

    ref = jax.block_until_ready(ref_forward(params, x))
    np.testing.assert_allclose(np.asarray(out), np.asarray(ref), rtol=2e-2, atol=2e-2)
    print("KERNEL_OK")
</pallas_src>

<mosaic_0001>
module attributes {stable_mosaic.version = 11 : i64} {
  func.func @fused_dann2_kernel(%arg0: i32, %arg1: memref<38x72xf32, #tpu.memory_space<vmem>>, %arg2: memref<3x72x256xf32, #tpu.memory_space<vmem>>, %arg3: memref<1x256xf32, #tpu.memory_space<vmem>>, %arg4: memref<2x36xf32, #tpu.memory_space<vmem>>, %arg5: memref<36x2xf32, #tpu.memory_space<vmem>>, %arg6: memref<512x8xf32, #tpu.memory_space<vmem>>, %arg7: memref<8x512xf32, #tpu.memory_space<vmem>>, %arg8: memref<2x22x36xf32, #tpu.memory_space<vmem>>, %arg9: memref<256x320xf32, #tpu.memory_space<any>>, %arg10: memref<3x160x128xf32, #tpu.memory_space<any>>, %arg11: memref<1x128xf32, #tpu.memory_space<vmem>>, %arg12: memref<2x20xf32, #tpu.memory_space<vmem>>, %arg13: memref<20x2xf32, #tpu.memory_space<vmem>>, %arg14: memref<256x8xf32, #tpu.memory_space<vmem>>, %arg15: memref<8x256xf32, #tpu.memory_space<vmem>>, %arg16: memref<2x14x20xf32, #tpu.memory_space<vmem>>, %arg17: memref<128x192xf32, #tpu.memory_space<any>>, %arg18: memref<3x96x64xf32, #tpu.memory_space<any>>, %arg19: memref<1x64xf32, #tpu.memory_space<vmem>>, %arg20: memref<2x12xf32, #tpu.memory_space<vmem>>, %arg21: memref<12x2xf32, #tpu.memory_space<vmem>>, %arg22: memref<128x8xf32, #tpu.memory_space<vmem>>, %arg23: memref<8x128xf32, #tpu.memory_space<vmem>>, %arg24: memref<8x12xf32, #tpu.memory_space<vmem>>, %arg25: memref<64x512xf32, #tpu.memory_space<any>>, %arg26: memref<128x288xf32, #tpu.memory_space<any>>, %arg27: memref<1x288xf32, #tpu.memory_space<vmem>>, %arg28: memref<576x8xf32, #tpu.memory_space<vmem>>, %arg29: memref<8x576xf32, #tpu.memory_space<vmem>>, %arg30: memref<288x144xf32, #tpu.memory_space<any>>, %arg31: memref<1x144xf32, #tpu.memory_space<vmem>>, %arg32: memref<288x8xf32, #tpu.memory_space<vmem>>, %arg33: memref<8x288xf32, #tpu.memory_space<vmem>>, %arg34: memref<144x128xf32, #tpu.memory_space<any>>, %arg35: memref<1x128xf32, #tpu.memory_space<vmem>>, %arg36: memref<2x128xf32, #tpu.memory_space<vmem>>, %arg37: memref<256x320xf32, #tpu.memory_space<vmem>>, %arg38: memref<3x160x128xf32, #tpu.memory_space<vmem>>, %arg39: memref<128x192xf32, #tpu.memory_space<vmem>>, %arg40: memref<3x96x64xf32, #tpu.memory_space<vmem>>, %arg41: memref<64x512xf32, #tpu.memory_space<vmem>>, %arg42: memref<128x288xf32, #tpu.memory_space<vmem>>, %arg43: memref<288x144xf32, #tpu.memory_space<vmem>>, %arg44: memref<144x128xf32, #tpu.memory_space<vmem>>, %arg45: memref<8x!tpu.dma_semaphore, #tpu.memory_space<semaphore_mem>>) attributes {dimension_semantics = [#tpu.dimension_semantics<arbitrary>], iteration_bounds = array<i64: 1>, scalar_prefetch = 0 : i64, scratch_operands = 9 : i64, tpu.core_type = #tpu.core_type<tc>, window_params = [{pipeline_mode = #tpu.pipeline_mode<synchronous>, transform_indices = @transform_0, window_bounds = array<i64: 38, 72>}, {pipeline_mode = #tpu.pipeline_mode<synchronous>, transform_indices = @transform_1, window_bounds = array<i64: 3, 72, 256>}, {pipeline_mode = #tpu.pipeline_mode<synchronous>, transform_indices = @transform_2, window_bounds = array<i64: 1, 256>}, {pipeline_mode = #tpu.pipeline_mode<synchronous>, transform_indices = @transform_3, window_bounds = array<i64: 2, 36>}, {pipeline_mode = #tpu.pipeline_mode<synchronous>, transform_indices = @transform_4, window_bounds = array<i64: 36, 2>}, {pipeline_mode = #tpu.pipeline_mode<synchronous>, transform_indices = @transform_5, window_bounds = array<i64: 512, 8>}, {pipeline_mode = #tpu.pipeline_mode<synchronous>, transform_indices = @transform_6, window_bounds = array<i64: 8, 512>}, {pipeline_mode = #tpu.pipeline_mode<synchronous>, transform_indices = @transform_7, window_bounds = array<i64: 2, 22, 36>}, {}, {}, {pipeline_mode = #tpu.pipeline_mode<synchronous>, transform_indices = @transform_10, window_bounds = array<i64: 1, 128>}, {pipeline_mode = #tpu.pipeline_mode<synchronous>, transform_indices = @transform_11, window_bounds = array<i64: 2, 20>}, {pipeline_mode = #tpu.pipeline_mode<synchronous>, transform_indices = @transform_12, window_bounds = array<i64: 20, 2>}, {pipeline_mode = #tpu.pipeline_mode<synchronous>, transform_indices = @transform_13, window_bounds = array<i64: 256, 8>}, {pipeline_mode = #tpu.pipeline_mode<synchronous>, transform_indices = @transform_14, window_bounds = array<i64: 8, 256>}, {pipeline_mode = #tpu.pipeline_mode<synchronous>, transform_indices = @transform_15, window_bounds = array<i64: 2, 14, 20>}, {}, {}, {pipeline_mode = #tpu.pipeline_mode<synchronous>, transform_indices = @transform_18, window_bounds = array<i64: 1, 64>}, {pipeline_mode = #tpu.pipeline_mode<synchronous>, transform_indices = @transform_19, window_bounds = array<i64: 2, 12>}, {pipeline_mode = #tpu.pipeline_mode<synchronous>, transform_indices = @transform_20, window_bounds = array<i64: 12, 2>}, {pipeline_mode = #tpu.pipeline_mode<synchronous>, transform_indices = @transform_21, window_bounds = array<i64: 128, 8>}, {pipeline_mode = #tpu.pipeline_mode<synchronous>, transform_indices = @transform_22, window_bounds = array<i64: 8, 128>}, {pipeline_mode = #tpu.pipeline_mode<synchronous>, transform_indices = @transform_23, window_bounds = array<i64: 8, 12>}, {}, {}, {pipeline_mode = #tpu.pipeline_mode<synchronous>, transform_indices = @transform_26, window_bounds = array<i64: 1, 288>}, {pipeline_mode = #tpu.pipeline_mode<synchronous>, transform_indices = @transform_27, window_bounds = array<i64: 576, 8>}, {pipeline_mode = #tpu.pipeline_mode<synchronous>, transform_indices = @transform_28, window_bounds = array<i64: 8, 576>}, {}, {pipeline_mode = #tpu.pipeline_mode<synchronous>, transform_indices = @transform_30, window_bounds = array<i64: 1, 144>}, {pipeline_mode = #tpu.pipeline_mode<synchronous>, transform_indices = @transform_31, window_bounds = array<i64: 288, 8>}, {pipeline_mode = #tpu.pipeline_mode<synchronous>, transform_indices = @transform_32, window_bounds = array<i64: 8, 288>}, {}, {pipeline_mode = #tpu.pipeline_mode<synchronous>, transform_indices = @transform_34, window_bounds = array<i64: 1, 128>}, {pipeline_mode = #tpu.pipeline_mode<synchronous>, transform_indices = @transform_35, window_bounds = array<i64: 2, 128>}]} {
    %c0_i32 = arith.constant 0 : i32
    %0 = tpu.memref_slice %arg45[%c0_i32] : memref<8x!tpu.dma_semaphore, #tpu.memory_space<semaphore_mem>> -> memref<1x!tpu.dma_semaphore, #tpu.memory_space<semaphore_mem>>
    %1 = tpu.memref_squeeze %0 : memref<1x!tpu.dma_semaphore, #tpu.memory_space<semaphore_mem>> -> memref<!tpu.dma_semaphore, #tpu.memory_space<semaphore_mem>>
    tpu.enqueue_dma source(%arg9 : memref<256x320xf32, #tpu.memory_space<any>>) target(%arg37 : memref<256x320xf32, #tpu.memory_space<vmem>>) target_semaphore(%1 : memref<!tpu.dma_semaphore, #tpu.memory_space<semaphore_mem>>)
    %c1_i32 = arith.constant 1 : i32
    %2 = tpu.memref_slice %arg45[%c1_i32] : memref<8x!tpu.dma_semaphore, #tpu.memory_space<semaphore_mem>> -> memref<1x!tpu.dma_semaphore, #tpu.memory_space<semaphore_mem>>
    %3 = tpu.memref_squeeze %2 : memref<1x!tpu.dma_semaphore, #tpu.memory_space<semaphore_mem>> -> memref<!tpu.dma_semaphore, #tpu.memory_space<semaphore_mem>>
    tpu.enqueue_dma source(%arg10 : memref<3x160x128xf32, #tpu.memory_space<any>>) target(%arg38 : memref<3x160x128xf32, #tpu.memory_space<vmem>>) target_semaphore(%3 : memref<!tpu.dma_semaphore, #tpu.memory_space<semaphore_mem>>)
    %c2_i32 = arith.constant 2 : i32
    %4 = tpu.memref_slice %arg45[%c2_i32] : memref<8x!tpu.dma_semaphore, #tpu.memory_space<semaphore_mem>> -> memref<1x!tpu.dma_semaphore, #tpu.memory_space<semaphore_mem>>
    %5 = tpu.memref_squeeze %4 : memref<1x!tpu.dma_semaphore, #tpu.memory_space<semaphore_mem>> -> memref<!tpu.dma_semaphore, #tpu.memory_space<semaphore_mem>>
    tpu.enqueue_dma source(%arg17 : memref<128x192xf32, #tpu.memory_space<any>>) target(%arg39 : memref<128x192xf32, #tpu.memory_space<vmem>>) target_semaphore(%5 : memref<!tpu.dma_semaphore, #tpu.memory_space<semaphore_mem>>)
    %c3_i32 = arith.constant 3 : i32
    %6 = tpu.memref_slice %arg45[%c3_i32] : memref<8x!tpu.dma_semaphore, #tpu.memory_space<semaphore_mem>> -> memref<1x!tpu.dma_semaphore, #tpu.memory_space<semaphore_mem>>
    %7 = tpu.memref_squeeze %6 : memref<1x!tpu.dma_semaphore, #tpu.memory_space<semaphore_mem>> -> memref<!tpu.dma_semaphore, #tpu.memory_space<semaphore_mem>>
    tpu.enqueue_dma source(%arg18 : memref<3x96x64xf32, #tpu.memory_space<any>>) target(%arg40 : memref<3x96x64xf32, #tpu.memory_space<vmem>>) target_semaphore(%7 : memref<!tpu.dma_semaphore, #tpu.memory_space<semaphore_mem>>)
    %c4_i32 = arith.constant 4 : i32
    %8 = tpu.memref_slice %arg45[%c4_i32] : memref<8x!tpu.dma_semaphore, #tpu.memory_space<semaphore_mem>> -> memref<1x!tpu.dma_semaphore, #tpu.memory_space<semaphore_mem>>
    %9 = tpu.memref_squeeze %8 : memref<1x!tpu.dma_semaphore, #tpu.memory_space<semaphore_mem>> -> memref<!tpu.dma_semaphore, #tpu.memory_space<semaphore_mem>>
    tpu.enqueue_dma source(%arg25 : memref<64x512xf32, #tpu.memory_space<any>>) target(%arg41 : memref<64x512xf32, #tpu.memory_space<vmem>>) target_semaphore(%9 : memref<!tpu.dma_semaphore, #tpu.memory_space<semaphore_mem>>)
    %c5_i32 = arith.constant 5 : i32
    %10 = tpu.memref_slice %arg45[%c5_i32] : memref<8x!tpu.dma_semaphore, #tpu.memory_space<semaphore_mem>> -> memref<1x!tpu.dma_semaphore, #tpu.memory_space<semaphore_mem>>
    %11 = tpu.memref_squeeze %10 : memref<1x!tpu.dma_semaphore, #tpu.memory_space<semaphore_mem>> -> memref<!tpu.dma_semaphore, #tpu.memory_space<semaphore_mem>>
    tpu.enqueue_dma source(%arg26 : memref<128x288xf32, #tpu.memory_space<any>>) target(%arg42 : memref<128x288xf32, #tpu.memory_space<vmem>>) target_semaphore(%11 : memref<!tpu.dma_semaphore, #tpu.memory_space<semaphore_mem>>)
    %c6_i32 = arith.constant 6 : i32
    %12 = tpu.memref_slice %arg45[%c6_i32] : memref<8x!tpu.dma_semaphore, #tpu.memory_space<semaphore_mem>> -> memref<1x!tpu.dma_semaphore, #tpu.memory_space<semaphore_mem>>
    %13 = tpu.memref_squeeze %12 : memref<1x!tpu.dma_semaphore, #tpu.memory_space<semaphore_mem>> -> memref<!tpu.dma_semaphore, #tpu.memory_space<semaphore_mem>>
    tpu.enqueue_dma source(%arg30 : memref<288x144xf32, #tpu.memory_space<any>>) target(%arg43 : memref<288x144xf32, #tpu.memory_space<vmem>>) target_semaphore(%13 : memref<!tpu.dma_semaphore, #tpu.memory_space<semaphore_mem>>)
    %c7_i32 = arith.constant 7 : i32
    %14 = tpu.memref_slice %arg45[%c7_i32] : memref<8x!tpu.dma_semaphore, #tpu.memory_space<semaphore_mem>> -> memref<1x!tpu.dma_semaphore, #tpu.memory_space<semaphore_mem>>
    %15 = tpu.memref_squeeze %14 : memref<1x!tpu.dma_semaphore, #tpu.memory_space<semaphore_mem>> -> memref<!tpu.dma_semaphore, #tpu.memory_space<semaphore_mem>>
    tpu.enqueue_dma source(%arg34 : memref<144x128xf32, #tpu.memory_space<any>>) target(%arg44 : memref<144x128xf32, #tpu.memory_space<vmem>>) target_semaphore(%15 : memref<!tpu.dma_semaphore, #tpu.memory_space<semaphore_mem>>)
    %c0 = arith.constant 0 : index
    %c0_0 = arith.constant 0 : index
    %16 = vector.load %arg1[%c0, %c0_0] : memref<38x72xf32, #tpu.memory_space<vmem>>, vector<38x72xf32>
    %c0_1 = arith.constant 0 : index
    %c0_2 = arith.constant 0 : index
    %17 = vector.load %arg3[%c0_1, %c0_2] : memref<1x256xf32, #tpu.memory_space<vmem>>, vector<1x256xf32>
    %c0_3 = arith.constant 0 : index
    %c0_4 = arith.constant 0 : index
    %18 = vector.load %arg4[%c0_3, %c0_4] : memref<2x36xf32, #tpu.memory_space<vmem>>, vector<2x36xf32>
    %c0_5 = arith.constant 0 : index
    %c0_6 = arith.constant 0 : index
    %19 = vector.load %arg5[%c0_5, %c0_6] : memref<36x2xf32, #tpu.memory_space<vmem>>, vector<36x2xf32>
    %c0_7 = arith.constant 0 : index
    %c0_8 = arith.constant 0 : index
    %20 = vector.load %arg6[%c0_7, %c0_8] : memref<512x8xf32, #tpu.memory_space<vmem>>, vector<512x8xf32>
    %c0_9 = arith.constant 0 : index
    %c0_10 = arith.constant 0 : index
    %21 = vector.load %arg7[%c0_9, %c0_10] : memref<8x512xf32, #tpu.memory_space<vmem>>, vector<8x512xf32>
    %22 = vector.extract_strided_slice %16 {offsets = [0, 0], sizes = [36, 72], strides = [1, 1]} : vector<38x72xf32> to vector<36x72xf32>
    %c0_11 = arith.constant 0 : index
    %c0_12 = arith.constant 0 : index
    %c0_13 = arith.constant 0 : index
    %23 = vector.load %arg2[%c0_11, %c0_12, %c0_13] : memref<3x72x256xf32, #tpu.memory_space<vmem>>, vector<1x72x256xf32>
    %24 = vector.shape_cast %23 : vector<1x72x256xf32> to vector<72x256xf32>
    %cst = arith.constant dense<0.000000e+00> : vector<36x256xf32>
    %25 = tpu.matmul %22, %24, %cst {dimension_numbers = #tpu.dot_dimension_numbers<[1], [0], [0], [1], [0, 0, 1, 1], [], []>} : vector<36x72xf32>, vector<72x256xf32>, vector<36x256xf32> -> vector<36x256xf32>
    %26 = vector.extract_strided_slice %16 {offsets = [1, 0], sizes = [36, 72], strides = [1, 1]} : vector<38x72xf32> to vector<36x72xf32>
    %c1 = arith.constant 1 : index
    %c0_14 = arith.constant 0 : index
    %c0_15 = arith.constant 0 : index
    %27 = vector.load %arg2[%c1, %c0_14, %c0_15] : memref<3x72x256xf32, #tpu.memory_space<vmem>>, vector<1x72x256xf32>
    %28 = vector.shape_cast %27 : vector<1x72x256xf32> to vector<72x256xf32>
    %cst_16 = arith.constant dense<0.000000e+00> : vector<36x256xf32>
    %29 = tpu.matmul %26, %28, %cst_16 {dimension_numbers = #tpu.dot_dimension_numbers<[1], [0], [0], [1], [0, 0, 1, 1], [], []>} : vector<36x72xf32>, vector<72x256xf32>, vector<36x256xf32> -> vector<36x256xf32>
    %30 = arith.addf %25, %29 : vector<36x256xf32>
    %31 = vector.extract_strided_slice %16 {offsets = [2, 0], sizes = [36, 72], strides = [1, 1]} : vector<38x72xf32> to vector<36x72xf32>
    %c2 = arith.constant 2 : index
    %c0_17 = arith.constant 0 : index
    %c0_18 = arith.constant 0 : index
    %32 = vector.load %arg2[%c2, %c0_17, %c0_18] : memref<3x72x256xf32, #tpu.memory_space<vmem>>, vector<1x72x256xf32>
    %33 = vector.shape_cast %32 : vector<1x72x256xf32> to vector<72x256xf32>
    %cst_19 = arith.constant dense<0.000000e+00> : vector<36x256xf32>
    %34 = tpu.matmul %31, %33, %cst_19 {dimension_numbers = #tpu.dot_dimension_numbers<[1], [0], [0], [1], [0, 0, 1, 1], [], []>} : vector<36x72xf32>, vector<72x256xf32>, vector<36x256xf32> -> vector<36x256xf32>
    %35 = arith.addf %30, %34 : vector<36x256xf32>
    %36 = vector.broadcast %17 : vector<1x256xf32> to vector<36x256xf32>
    %37 = arith.addf %35, %36 : vector<36x256xf32>
    %38 = arith.mulf %37, %37 : vector<36x256xf32>
    %39 = tpu.concatenate %37, %38 in 1 : vector<36x256xf32>, vector<36x256xf32> -> vector<36x512xf32>
    %cst_20 = arith.constant dense<0.000000e+00> : vector<2x512xf32>
    %40 = tpu.matmul %18, %39, %cst_20 {dimension_numbers = #tpu.dot_dimension_numbers<[1], [0], [0], [1], [0, 0, 1, 1], [], []>} : vector<2x36xf32>, vector<36x512xf32>, vector<2x512xf32> -> vector<2x512xf32>
    %cst_21 = arith.constant dense<0.000000e+00> : vector<2x8xf32>
    %41 = tpu.matmul %40, %20, %cst_21 {dimension_numbers = #tpu.dot_dimension_numbers<[1], [0], [0], [1], [0, 0, 1, 1], [], []>} : vector<2x512xf32>, vector<512x8xf32>, vector<2x8xf32> -> vector<2x8xf32>
    %cst_22 = arith.constant 9.765625E-4 : f32
    %42 = vector.broadcast %cst_22 : f32 to vector<2x8xf32>
    %43 = arith.mulf %41, %42 : vector<2x8xf32>
    %44 = vector.extract_strided_slice %43 {offsets = [0, 0], sizes = [2, 4], strides = [1, 1]} : vector<2x8xf32> to vector<2x4xf32>
    %45 = vector.extract_strided_slice %43 {offsets = [0, 4], sizes = [2, 4], strides = [1, 1]} : vector<2x8xf32> to vector<2x4xf32>
    %46 = arith.mulf %44, %44 : vector<2x4xf32>
    %47 = arith.subf %45, %46 : vector<2x4xf32>
    %cst_23 = arith.constant 0.000000e+00 : f32
    %48 = vector.broadcast %cst_23 : f32 to vector<2x4xf32>
    %49 = arith.maximumf %47, %48 : vector<2x4xf32>
    %50 = math.rsqrt %49 : vector<2x4xf32>
    %51 = tpu.concatenate %44, %50 in 1 : vector<2x4xf32>, vector<2x4xf32> -> vector<2x8xf32>
    %cst_24 = arith.constant dense<0.000000e+00> : vector<2x512xf32>
    %52 = tpu.matmul %51, %21, %cst_24 {dimension_numbers = #tpu.dot_dimension_numbers<[1], [0], [0], [1], [0, 0, 1, 1], [], []>} : vector<2x8xf32>, vector<8x512xf32>, vector<2x512xf32> -> vector<2x512xf32>
    %cst_25 = arith.constant dense<0.000000e+00> : vector<36x512xf32>
    %53 = tpu.matmul %19, %52, %cst_25 {dimension_numbers = #tpu.dot_dimension_numbers<[1], [0], [0], [1], [0, 0, 1, 1], [], []>} : vector<36x2xf32>, vector<2x512xf32>, vector<36x512xf32> -> vector<36x512xf32>
    %54 = vector.extract_strided_slice %53 {offsets = [0, 0], sizes = [36, 256], strides = [1, 1]} : vector<36x512xf32> to vector<36x256xf32>
    %55 = arith.subf %37, %54 : vector<36x256xf32>
    %56 = vector.extract_strided_slice %53 {offsets = [0, 256], sizes = [36, 256], strides = [1, 1]} : vector<36x512xf32> to vector<36x256xf32>
    %57 = arith.mulf %55, %56 : vector<36x256xf32>
    %cst_26 = arith.constant 0.000000e+00 : f32
    %58 = vector.broadcast %cst_26 : f32 to vector<36x256xf32>
    %59 = arith.maximumf %57, %58 : vector<36x256xf32>
    %c0_i32_27 = arith.constant 0 : i32
    %60 = tpu.memref_slice %arg45[%c0_i32_27] : memref<8x!tpu.dma_semaphore, #tpu.memory_space<semaphore_mem>> -> memref<1x!tpu.dma_semaphore, #tpu.memory_space<semaphore_mem>>
    %61 = tpu.memref_squeeze %60 : memref<1x!tpu.dma_semaphore, #tpu.memory_space<semaphore_mem>> -> memref<!tpu.dma_semaphore, #tpu.memory_space<semaphore_mem>>
    tpu.wait_dma2 semaphore(%61 : memref<!tpu.dma_semaphore, #tpu.memory_space<semaphore_mem>>) src(%arg9 : memref<256x320xf32, #tpu.memory_space<any>>) dst(%arg37 : memref<256x320xf32, #tpu.memory_space<vmem>>)
    %c0_28 = arith.constant 0 : index
    %c0_29 = arith.constant 0 : index
    %62 = vector.load %arg37[%c0_28, %c0_29] : memref<256x320xf32, #tpu.memory_space<vmem>>, vector<256x320xf32>
    %cst_30 = arith.constant dense<0.000000e+00> : vector<36x320xf32>
    %63 = tpu.matmul %59, %62, %cst_30 {dimension_numbers = #tpu.dot_dimension_numbers<[1], [0], [0], [1], [0, 0, 1, 1], [], []>} : vector<36x256xf32>, vector<256x320xf32>, vector<36x320xf32> -> vector<36x320xf32>
    %64 = vector.extract_strided_slice %63 {offsets = [0, 0], sizes = [36, 160], strides = [1, 1]} : vector<36x320xf32> to vector<36x160xf32>
    %65 = vector.extract_strided_slice %63 {offsets = [0, 160], sizes = [36, 160], strides = [1, 1]} : vector<36x320xf32> to vector<36x160xf32>
    %66 = arith.maximumf %64, %65 : vector<36x160xf32>
    %c0_31 = arith.constant 0 : index
    %c0_32 = arith.constant 0 : index
    %c0_33 = arith.constant 0 : index
    %67 = vector.load %arg8[%c0_31, %c0_32, %c0_33] : memref<2x22x36xf32, #tpu.memory_space<vmem>>, vector<1x22x36xf32>
    %68 = vector.shape_cast %67 : vector<1x22x36xf32> to vector<22x36xf32>
    %cst_34 = arith.constant dense<0.000000e+00> : vector<22x160xf32>
    %69 = tpu.matmul %68, %66, %cst_34 {dimension_numbers = #tpu.dot_dimension_numbers<[1], [0], [0], [1], [0, 0, 1, 1], [], []>} : vector<22x36xf32>, vector<36x160xf32>, vector<22x160xf32> -> vector<22x160xf32>
    %c1_35 = arith.constant 1 : index
    %c0_36 = arith.constant 0 : index
    %c0_37 = arith.constant 0 : index
    %70 = vector.load %arg8[%c1_35, %c0_36, %c0_37] : memref<2x22x36xf32, #tpu.memory_space<vmem>>, vector<1x22x36xf32>
    %71 = vector.shape_cast %70 : vector<1x22x36xf32> to vector<22x36xf32>
    %cst_38 = arith.constant dense<0.000000e+00> : vector<22x160xf32>
    %72 = tpu.matmul %71, %66, %cst_38 {dimension_numbers = #tpu.dot_dimension_numbers<[1], [0], [0], [1], [0, 0, 1, 1], [], []>} : vector<22x36xf32>, vector<36x160xf32>, vector<22x160xf32> -> vector<22x160xf32>
    %73 = arith.maximumf %69, %72 : vector<22x160xf32>
    %c1_i32_39 = arith.constant 1 : i32
    %74 = tpu.memref_slice %arg45[%c1_i32_39] : memref<8x!tpu.dma_semaphore, #tpu.memory_space<semaphore_mem>> -> memref<1x!tpu.dma_semaphore, #tpu.memory_space<semaphore_mem>>
    %75 = tpu.memref_squeeze %74 : memref<1x!tpu.dma_semaphore, #tpu.memory_space<semaphore_mem>> -> memref<!tpu.dma_semaphore, #tpu.memory_space<semaphore_mem>>
    tpu.wait_dma2 semaphore(%75 : memref<!tpu.dma_semaphore, #tpu.memory_space<semaphore_mem>>) src(%arg10 : memref<3x160x128xf32, #tpu.memory_space<any>>) dst(%arg38 : memref<3x160x128xf32, #tpu.memory_space<vmem>>)
    %c0_40 = arith.constant 0 : index
    %c0_41 = arith.constant 0 : index
    %76 = vector.load %arg11[%c0_40, %c0_41] : memref<1x128xf32, #tpu.memory_space<vmem>>, vector<1x128xf32>
    %c0_42 = arith.constant 0 : index
    %c0_43 = arith.constant 0 : index
    %77 = vector.load %arg12[%c0_42, %c0_43] : memref<2x20xf32, #tpu.memory_space<vmem>>, vector<2x20xf32>
    %c0_44 = arith.constant 0 : index
    %c0_45 = arith.constant 0 : index
    %78 = vector.load %arg13[%c0_44, %c0_45] : memref<20x2xf32, #tpu.memory_space<vmem>>, vector<20x2xf32>
    %c0_46 = arith.constant 0 : index
    %c0_47 = arith.constant 0 : index
    %79 = vector.load %arg14[%c0_46, %c0_47] : memref<256x8xf32, #tpu.memory_space<vmem>>, vector<256x8xf32>
    %c0_48 = arith.constant 0 : index
    %c0_49 = arith.constant 0 : index
    %80 = vector.load %arg15[%c0_48, %c0_49] : memref<8x256xf32, #tpu.memory_space<vmem>>, vector<8x256xf32>
    %81 = vector.extract_strided_slice %73 {offsets = [0, 0], sizes = [20, 160], strides = [1, 1]} : vector<22x160xf32> to vector<20x160xf32>
    %c0_50 = arith.constant 0 : index
    %c0_51 = arith.constant 0 : index
    %c0_52 = arith.constant 0 : index
    %82 = vector.load %arg38[%c0_50, %c0_51, %c0_52] : memref<3x160x128xf32, #tpu.memory_space<vmem>>, vector<1x160x128xf32>
    %83 = vector.shape_cast %82 : vector<1x160x128xf32> to vector<160x128xf32>
    %cst_53 = arith.constant dense<0.000000e+00> : vector<20x128xf32>
    %84 = tpu.matmul %81, %83, %cst_53 {dimension_numbers = #tpu.dot_dimension_numbers<[1], [0], [0], [1], [0, 0, 1, 1], [], []>} : vector<20x160xf32>, vector<160x128xf32>, vector<20x128xf32> -> vector<20x128xf32>
    %85 = vector.extract_strided_slice %73 {offsets = [1, 0], sizes = [20, 160], strides = [1, 1]} : vector<22x160xf32> to vector<20x160xf32>
    %c1_54 = arith.constant 1 : index
    %c0_55 = arith.constant 0 : index
    %c0_56 = arith.constant 0 : index
    %86 = vector.load %arg38[%c1_54, %c0_55, %c0_56] : memref<3x160x128xf32, #tpu.memory_space<vmem>>, vector<1x160x128xf32>
    %87 = vector.shape_cast %86 : vector<1x160x128xf32> to vector<160x128xf32>
    %cst_57 = arith.constant dense<0.000000e+00> : vector<20x128xf32>
    %88 = tpu.matmul %85, %87, %cst_57 {dimension_numbers = #tpu.dot_dimension_numbers<[1], [0], [0], [1], [0, 0, 1, 1], [], []>} : vector<20x160xf32>, vector<160x128xf32>, vector<20x128xf32> -> vector<20x128xf32>
    %89 = arith.addf %84, %88 : vector<20x128xf32>
    %90 = vector.extract_strided_slice %73 {offsets = [2, 0], sizes = [20, 160], strides = [1, 1]} : vector<22x160xf32> to vector<20x160xf32>
    %c2_58 = arith.constant 2 : index
    %c0_59 = arith.constant 0 : index
    %c0_60 = arith.constant 0 : index
    %91 = vector.load %arg38[%c2_58, %c0_59, %c0_60] : memref<3x160x128xf32, #tpu.memory_space<vmem>>, vector<1x160x128xf32>
    %92 = vector.shape_cast %91 : vector<1x160x128xf32> to vector<160x128xf32>
    %cst_61 = arith.constant dense<0.000000e+00> : vector<20x128xf32>
    %93 = tpu.matmul %90, %92, %cst_61 {dimension_numbers = #tpu.dot_dimension_numbers<[1], [0], [0], [1], [0, 0, 1, 1], [], []>} : vector<20x160xf32>, vector<160x128xf32>, vector<20x128xf32> -> vector<20x128xf32>
    %94 = arith.addf %89, %93 : vector<20x128xf32>
    %95 = vector.broadcast %76 : vector<1x128xf32> to vector<20x128xf32>
    %96 = arith.addf %94, %95 : vector<20x128xf32>
    %97 = arith.mulf %96, %96 : vector<20x128xf32>
    %98 = tpu.concatenate %96, %97 in 1 : vector<20x128xf32>, vector<20x128xf32> -> vector<20x256xf32>
    %cst_62 = arith.constant dense<0.000000e+00> : vector<2x256xf32>
    %99 = tpu.matmul %77, %98, %cst_62 {dimension_numbers = #tpu.dot_dimension_numbers<[1], [0], [0], [1], [0, 0, 1, 1], [], []>} : vector<2x20xf32>, vector<20x256xf32>, vector<2x256xf32> -> vector<2x256xf32>
    %cst_63 = arith.constant dense<0.000000e+00> : vector<2x8xf32>
    %100 = tpu.matmul %99, %79, %cst_63 {dimension_numbers = #tpu.dot_dimension_numbers<[1], [0], [0], [1], [0, 0, 1, 1], [], []>} : vector<2x256xf32>, vector<256x8xf32>, vector<2x8xf32> -> vector<2x8xf32>
    %cst_64 = arith.constant 3.906250e-03 : f32
    %101 = vector.broadcast %cst_64 : f32 to vector<2x8xf32>
    %102 = arith.mulf %100, %101 : vector<2x8xf32>
    %103 = vector.extract_strided_slice %102 {offsets = [0, 0], sizes = [2, 4], strides = [1, 1]} : vector<2x8xf32> to vector<2x4xf32>
    %104 = vector.extract_strided_slice %102 {offsets = [0, 4], sizes = [2, 4], strides = [1, 1]} : vector<2x8xf32> to vector<2x4xf32>
    %105 = arith.mulf %103, %103 : vector<2x4xf32>
    %106 = arith.subf %104, %105 : vector<2x4xf32>
    %cst_65 = arith.constant 0.000000e+00 : f32
    %107 = vector.broadcast %cst_65 : f32 to vector<2x4xf32>
    %108 = arith.maximumf %106, %107 : vector<2x4xf32>
    %109 = math.rsqrt %108 : vector<2x4xf32>
    %110 = tpu.concatenate %103, %109 in 1 : vector<2x4xf32>, vector<2x4xf32> -> vector<2x8xf32>
    %cst_66 = arith.constant dense<0.000000e+00> : vector<2x256xf32>
    %111 = tpu.matmul %110, %80, %cst_66 {dimension_numbers = #tpu.dot_dimension_numbers<[1], [0], [0], [1], [0, 0, 1, 1], [], []>} : vector<2x8xf32>, vector<8x256xf32>, vector<2x256xf32> -> vector<2x256xf32>
    %cst_67 = arith.constant dense<0.000000e+00> : vector<20x256xf32>
    %112 = tpu.matmul %78, %111, %cst_67 {dimension_numbers = #tpu.dot_dimension_numbers<[1], [0], [0], [1], [0, 0, 1, 1], [], []>} : vector<20x2xf32>, vector<2x256xf32>, vector<20x256xf32> -> vector<20x256xf32>
    %113 = vector.extract_strided_slice %112 {offsets = [0, 0], sizes = [20, 128], strides = [1, 1]} : vector<20x256xf32> to vector<20x128xf32>
    %114 = arith.subf %96, %113 : vector<20x128xf32>
    %115 = vector.extract_strided_slice %112 {offsets = [0, 128], sizes = [20, 128], strides = [1, 1]} : vector<20x256xf32> to vector<20x128xf32>
    %116 = arith.mulf %114, %115 : vector<20x128xf32>
    %cst_68 = arith.constant 0.000000e+00 : f32
    %117 = vector.broadcast %cst_68 : f32 to vector<20x128xf32>
    %118 = arith.maximumf %116, %117 : vector<20x128xf32>
    %c2_i32_69 = arith.constant 2 : i32
    %119 = tpu.memref_slice %arg45[%c2_i32_69] : memref<8x!tpu.dma_semaphore, #tpu.memory_space<semaphore_mem>> -> memref<1x!tpu.dma_semaphore, #tpu.memory_space<semaphore_mem>>
    %120 = tpu.memref_squeeze %119 : memref<1x!tpu.dma_semaphore, #tpu.memory_space<semaphore_mem>> -> memref<!tpu.dma_semaphore, #tpu.memory_space<semaphore_mem>>
    tpu.wait_dma2 semaphore(%120 : memref<!tpu.dma_semaphore, #tpu.memory_space<semaphore_mem>>) src(%arg17 : memref<128x192xf32, #tpu.memory_space<any>>) dst(%arg39 : memref<128x192xf32, #tpu.memory_space<vmem>>)
    %c0_70 = arith.constant 0 : index
    %c0_71 = arith.constant 0 : index
    %121 = vector.load %arg39[%c0_70, %c0_71] : memref<128x192xf32, #tpu.memory_space<vmem>>, vector<128x192xf32>
    %cst_72 = arith.constant dense<0.000000e+00> : vector<20x192xf32>
    %122 = tpu.matmul %118, %121, %cst_72 {dimension_numbers = #tpu.dot_dimension_numbers<[1], [0], [0], [1], [0, 0, 1, 1], [], []>} : vector<20x128xf32>, vector<128x192xf32>, vector<20x192xf32> -> vector<20x192xf32>
    %123 = vector.extract_strided_slice %122 {offsets = [0, 0], sizes = [20, 96], strides = [1, 1]} : vector<20x192xf32> to vector<20x96xf32>
    %124 = vector.extract_strided_slice %122 {offsets = [0, 96], sizes = [20, 96], strides = [1, 1]} : vector<20x192xf32> to vector<20x96xf32>
    %125 = arith.maximumf %123, %124 : vector<20x96xf32>
    %c0_73 = arith.constant 0 : index
    %c0_74 = arith.constant 0 : index
    %c0_75 = arith.constant 0 : index
    %126 = vector.load %arg16[%c0_73, %c0_74, %c0_75] : memref<2x14x20xf32, #tpu.memory_space<vmem>>, vector<1x14x20xf32>
    %127 = vector.shape_cast %126 : vector<1x14x20xf32> to vector<14x20xf32>
    %cst_76 = arith.constant dense<0.000000e+00> : vector<14x96xf32>
    %128 = tpu.matmul %127, %125, %cst_76 {dimension_numbers = #tpu.dot_dimension_numbers<[1], [0], [0], [1], [0, 0, 1, 1], [], []>} : vector<14x20xf32>, vector<20x96xf32>, vector<14x96xf32> -> vector<14x96xf32>
    %c1_77 = arith.constant 1 : index
    %c0_78 = arith.constant 0 : index
    %c0_79 = arith.constant 0 : index
    %129 = vector.load %arg16[%c1_77, %c0_78, %c0_79] : memref<2x14x20xf32, #tpu.memory_space<vmem>>, vector<1x14x20xf32>
    %130 = vector.shape_cast %129 : vector<1x14x20xf32> to vector<14x20xf32>
    %cst_80 = arith.constant dense<0.000000e+00> : vector<14x96xf32>
    %131 = tpu.matmul %130, %125, %cst_80 {dimension_numbers = #tpu.dot_dimension_numbers<[1], [0], [0], [1], [0, 0, 1, 1], [], []>} : vector<14x20xf32>, vector<20x96xf32>, vector<14x96xf32> -> vector<14x96xf32>
    %132 = arith.maximumf %128, %131 : vector<14x96xf32>
    %c3_i32_81 = arith.constant 3 : i32
    %133 = tpu.memref_slice %arg45[%c3_i32_81] : memref<8x!tpu.dma_semaphore, #tpu.memory_space<semaphore_mem>> -> memref<1x!tpu.dma_semaphore, #tpu.memory_space<semaphore_mem>>
    %134 = tpu.memref_squeeze %133 : memref<1x!tpu.dma_semaphore, #tpu.memory_space<semaphore_mem>> -> memref<!tpu.dma_semaphore, #tpu.memory_space<semaphore_mem>>
    tpu.wait_dma2 semaphore(%134 : memref<!tpu.dma_semaphore, #tpu.memory_space<semaphore_mem>>) src(%arg18 : memref<3x96x64xf32, #tpu.memory_space<any>>) dst(%arg40 : memref<3x96x64xf32, #tpu.memory_space<vmem>>)
    %c0_82 = arith.constant 0 : index
    %c0_83 = arith.constant 0 : index
    %135 = vector.load %arg19[%c0_82, %c0_83] : memref<1x64xf32, #tpu.memory_space<vmem>>, vector<1x64xf32>
    %c0_84 = arith.constant 0 : index
    %c0_85 = arith.constant 0 : index
    %136 = vector.load %arg20[%c0_84, %c0_85] : memref<2x12xf32, #tpu.memory_space<vmem>>, vector<2x12xf32>
    %c0_86 = arith.constant 0 : index
    %c0_87 = arith.constant 0 : index
    %137 = vector.load %arg21[%c0_86, %c0_87] : memref<12x2xf32, #tpu.memory_space<vmem>>, vector<12x2xf32>
    %c0_88 = arith.constant 0 : index
    %c0_89 = arith.constant 0 : index
    %138 = vector.load %arg22[%c0_88, %c0_89] : memref<128x8xf32, #tpu.memory_space<vmem>>, vector<128x8xf32>
    %c0_90 = arith.constant 0 : index
    %c0_91 = arith.constant 0 : index
    %139 = vector.load %arg23[%c0_90, %c0_91] : memref<8x128xf32, #tpu.memory_space<vmem>>, vector<8x128xf32>
    %140 = vector.extract_strided_slice %132 {offsets = [0, 0], sizes = [12, 96], strides = [1, 1]} : vector<14x96xf32> to vector<12x96xf32>
    %c0_92 = arith.constant 0 : index
    %c0_93 = arith.constant 0 : index
    %c0_94 = arith.constant 0 : index
    %141 = vector.load %arg40[%c0_92, %c0_93, %c0_94] : memref<3x96x64xf32, #tpu.memory_space<vmem>>, vector<1x96x64xf32>
    %142 = vector.shape_cast %141 : vector<1x96x64xf32> to vector<96x64xf32>
    %cst_95 = arith.constant dense<0.000000e+00> : vector<12x64xf32>
    %143 = tpu.matmul %140, %142, %cst_95 {dimension_numbers = #tpu.dot_dimension_numbers<[1], [0], [0], [1], [0, 0, 1, 1], [], []>} : vector<12x96xf32>, vector<96x64xf32>, vector<12x64xf32> -> vector<12x64xf32>
    %144 = vector.extract_strided_slice %132 {offsets = [1, 0], sizes = [12, 96], strides = [1, 1]} : vector<14x96xf32> to vector<12x96xf32>
    %c1_96 = arith.constant 1 : index
    %c0_97 = arith.constant 0 : index
    %c0_98 = arith.constant 0 : index
    %145 = vector.load %arg40[%c1_96, %c0_97, %c0_98] : memref<3x96x64xf32, #tpu.memory_space<vmem>>, vector<1x96x64xf32>
    %146 = vector.shape_cast %145 : vector<1x96x64xf32> to vector<96x64xf32>
    %cst_99 = arith.constant dense<0.000000e+00> : vector<12x64xf32>
    %147 = tpu.matmul %144, %146, %cst_99 {dimension_numbers = #tpu.dot_dimension_numbers<[1], [0], [0], [1], [0, 0, 1, 1], [], []>} : vector<12x96xf32>, vector<96x64xf32>, vector<12x64xf32> -> vector<12x64xf32>
    %148 = arith.addf %143, %147 : vector<12x64xf32>
    %149 = vector.extract_strided_slice %132 {offsets = [2, 0], sizes = [12, 96], strides = [1, 1]} : vector<14x96xf32> to vector<12x96xf32>
    %c2_100 = arith.constant 2 : index
    %c0_101 = arith.constant 0 : index
    %c0_102 = arith.constant 0 : index
    %150 = vector.load %arg40[%c2_100, %c0_101, %c0_102] : memref<3x96x64xf32, #tpu.memory_space<vmem>>, vector<1x96x64xf32>
    %151 = vector.shape_cast %150 : vector<1x96x64xf32> to vector<96x64xf32>
    %cst_103 = arith.constant dense<0.000000e+00> : vector<12x64xf32>
    %152 = tpu.matmul %149, %151, %cst_103 {dimension_numbers = #tpu.dot_dimension_numbers<[1], [0], [0], [1], [0, 0, 1, 1], [], []>} : vector<12x96xf32>, vector<96x64xf32>, vector<12x64xf32> -> vector<12x64xf32>
    %153 = arith.addf %148, %152 : vector<12x64xf32>
    %154 = vector.broadcast %135 : vector<1x64xf32> to vector<12x64xf32>
    %155 = arith.addf %153, %154 : vector<12x64xf32>
    %156 = arith.mulf %155, %155 : vector<12x64xf32>
    %157 = tpu.concatenate %155, %156 in 1 : vector<12x64xf32>, vector<12x64xf32> -> vector<12x128xf32>
    %cst_104 = arith.constant dense<0.000000e+00> : vector<2x128xf32>
    %158 = tpu.matmul %136, %157, %cst_104 {dimension_numbers = #tpu.dot_dimension_numbers<[1], [0], [0], [1], [0, 0, 1, 1], [], []>} : vector<2x12xf32>, vector<12x128xf32>, vector<2x128xf32> -> vector<2x128xf32>
    %cst_105 = arith.constant dense<0.000000e+00> : vector<2x8xf32>
    %159 = tpu.matmul %158, %138, %cst_105 {dimension_numbers = #tpu.dot_dimension_numbers<[1], [0], [0], [1], [0, 0, 1, 1], [], []>} : vector<2x128xf32>, vector<128x8xf32>, vector<2x8xf32> -> vector<2x8xf32>
    %cst_106 = arith.constant 1.562500e-02 : f32
    %160 = vector.broadcast %cst_106 : f32 to vector<2x8xf32>
    %161 = arith.mulf %159, %160 : vector<2x8xf32>
    %162 = vector.extract_strided_slice %161 {offsets = [0, 0], sizes = [2, 4], strides = [1, 1]} : vector<2x8xf32> to vector<2x4xf32>
    %163 = vector.extract_strided_slice %161 {offsets = [0, 4], sizes = [2, 4], strides = [1, 1]} : vector<2x8xf32> to vector<2x4xf32>
    %164 = arith.mulf %162, %162 : vector<2x4xf32>
    %165 = arith.subf %163, %164 : vector<2x4xf32>
    %cst_107 = arith.constant 0.000000e+00 : f32
    %166 = vector.broadcast %cst_107 : f32 to vector<2x4xf32>
    %167 = arith.maximumf %165, %166 : vector<2x4xf32>
    %168 = math.rsqrt %167 : vector<2x4xf32>
    %169 = tpu.concatenate %162, %168 in 1 : vector<2x4xf32>, vector<2x4xf32> -> vector<2x8xf32>
    %cst_108 = arith.constant dense<0.000000e+00> : vector<2x128xf32>
    %170 = tpu.matmul %169, %139, %cst_108 {dimension_numbers = #tpu.dot_dimension_numbers<[1], [0], [0], [1], [0, 0, 1, 1], [], []>} : vector<2x8xf32>, vector<8x128xf32>, vector<2x128xf32> -> vector<2x128xf32>
    %cst_109 = arith.constant dense<0.000000e+00> : vector<12x128xf32>
    %171 = tpu.matmul %137, %170, %cst_109 {dimension_numbers = #tpu.dot_dimension_numbers<[1], [0], [0], [1], [0, 0, 1, 1], [], []>} : vector<12x2xf32>, vector<2x128xf32>, vector<12x128xf32> -> vector<12x128xf32>
    %172 = vector.extract_strided_slice %171 {offsets = [0, 0], sizes = [12, 64], strides = [1, 1]} : vector<12x128xf32> to vector<12x64xf32>
    %173 = arith.subf %155, %172 : vector<12x64xf32>
    %174 = vector.extract_strided_slice %171 {offsets = [0, 64], sizes = [12, 64], strides = [1, 1]} : vector<12x128xf32> to vector<12x64xf32>
    %175 = arith.mulf %173, %174 : vector<12x64xf32>
    %cst_110 = arith.constant 0.000000e+00 : f32
    %176 = vector.broadcast %cst_110 : f32 to vector<12x64xf32>
    %177 = arith.maximumf %175, %176 : vector<12x64xf32>
    %c4_i32_111 = arith.constant 4 : i32
    %178 = tpu.memref_slice %arg45[%c4_i32_111] : memref<8x!tpu.dma_semaphore, #tpu.memory_space<semaphore_mem>> -> memref<1x!tpu.dma_semaphore, #tpu.memory_space<semaphore_mem>>
    %179 = tpu.memref_squeeze %178 : memref<1x!tpu.dma_semaphore, #tpu.memory_space<semaphore_mem>> -> memref<!tpu.dma_semaphore, #tpu.memory_space<semaphore_mem>>
    tpu.wait_dma2 semaphore(%179 : memref<!tpu.dma_semaphore, #tpu.memory_space<semaphore_mem>>) src(%arg25 : memref<64x512xf32, #tpu.memory_space<any>>) dst(%arg41 : memref<64x512xf32, #tpu.memory_space<vmem>>)
    %c0_112 = arith.constant 0 : index
    %c0_113 = arith.constant 0 : index
    %180 = vector.load %arg24[%c0_112, %c0_113] : memref<8x12xf32, #tpu.memory_space<vmem>>, vector<8x12xf32>
    %cst_114 = arith.constant dense<0.000000e+00> : vector<8x64xf32>
    %181 = tpu.matmul %180, %177, %cst_114 {dimension_numbers = #tpu.dot_dimension_numbers<[1], [0], [0], [1], [0, 0, 1, 1], [], []>} : vector<8x12xf32>, vector<12x64xf32>, vector<8x64xf32> -> vector<8x64xf32>
    %c0_115 = arith.constant 0 : index
    %c0_116 = arith.constant 0 : index
    %182 = vector.load %arg41[%c0_115, %c0_116] : memref<64x512xf32, #tpu.memory_space<vmem>>, vector<64x512xf32>
    %cst_117 = arith.constant dense<0.000000e+00> : vector<8x512xf32>
    %183 = tpu.matmul %181, %182, %cst_117 {dimension_numbers = #tpu.dot_dimension_numbers<[1], [0], [0], [1], [0, 0, 1, 1], [], []>} : vector<8x64xf32>, vector<64x512xf32>, vector<8x512xf32> -> vector<8x512xf32>
    %184 = vector.extract_strided_slice %183 {offsets = [0, 0], sizes = [2, 128], strides = [1, 1]} : vector<8x512xf32> to vector<2x128xf32>
    %185 = vector.extract_strided_slice %183 {offsets = [4, 256], sizes = [2, 128], strides = [1, 1]} : vector<8x512xf32> to vector<2x128xf32>
    %186 = arith.addf %184, %185 : vector<2x128xf32>
    %187 = vector.extract_strided_slice %183 {offsets = [0, 128], sizes = [2, 128], strides = [1, 1]} : vector<8x512xf32> to vector<2x128xf32>
    %188 = vector.extract_strided_slice %183 {offsets = [4, 384], sizes = [2, 128], strides = [1, 1]} : vector<8x512xf32> to vector<2x128xf32>
    %189 = arith.addf %187, %188 : vector<2x128xf32>
    %190 = vector.extract_strided_slice %183 {offsets = [2, 0], sizes = [2, 128], strides = [1, 1]} : vector<8x512xf32> to vector<2x128xf32>
    %191 = vector.extract_strided_slice %183 {offsets = [6, 256], sizes = [2, 128], strides = [1, 1]} : vector<8x512xf32> to vector<2x128xf32>
    %192 = arith.addf %190, %191 : vector<2x128xf32>
    %193 = vector.extract_strided_slice %183 {offsets = [2, 128], sizes = [2, 128], strides = [1, 1]} : vector<8x512xf32> to vector<2x128xf32>
    %194 = vector.extract_strided_slice %183 {offsets = [6, 384], sizes = [2, 128], strides = [1, 1]} : vector<8x512xf32> to vector<2x128xf32>
    %195 = arith.addf %193, %194 : vector<2x128xf32>
    %196 = arith.maximumf %186, %189 : vector<2x128xf32>
    %197 = arith.maximumf %192, %195 : vector<2x128xf32>
    %198 = arith.maximumf %196, %197 : vector<2x128xf32>
    %c5_i32_118 = arith.constant 5 : i32
    %199 = tpu.memref_slice %arg45[%c5_i32_118] : memref<8x!tpu.dma_semaphore, #tpu.memory_space<semaphore_mem>> -> memref<1x!tpu.dma_semaphore, #tpu.memory_space<semaphore_mem>>
    %200 = tpu.memref_squeeze %199 : memref<1x!tpu.dma_semaphore, #tpu.memory_space<semaphore_mem>> -> memref<!tpu.dma_semaphore, #tpu.memory_space<semaphore_mem>>
    tpu.wait_dma2 semaphore(%200 : memref<!tpu.dma_semaphore, #tpu.memory_space<semaphore_mem>>) src(%arg26 : memref<128x288xf32, #tpu.memory_space<any>>) dst(%arg42 : memref<128x288xf32, #tpu.memory_space<vmem>>)
    %c0_119 = arith.constant 0 : index
    %c0_120 = arith.constant 0 : index
    %201 = vector.load %arg42[%c0_119, %c0_120] : memref<128x288xf32, #tpu.memory_space<vmem>>, vector<128x288xf32>
    %c0_121 = arith.constant 0 : index
    %c0_122 = arith.constant 0 : index
    %202 = vector.load %arg27[%c0_121, %c0_122] : memref<1x288xf32, #tpu.memory_space<vmem>>, vector<1x288xf32>
    %c0_123 = arith.constant 0 : index
    %c0_124 = arith.constant 0 : index
    %203 = vector.load %arg28[%c0_123, %c0_124] : memref<576x8xf32, #tpu.memory_space<vmem>>, vector<576x8xf32>
    %c0_125 = arith.constant 0 : index
    %c0_126 = arith.constant 0 : index
    %204 = vector.load %arg29[%c0_125, %c0_126] : memref<8x576xf32, #tpu.memory_space<vmem>>, vector<8x576xf32>
    %cst_127 = arith.constant dense<0.000000e+00> : vector<2x288xf32>
    %205 = tpu.matmul %198, %201, %cst_127 {dimension_numbers = #tpu.dot_dimension_numbers<[1], [0], [0], [1], [0, 0, 1, 1], [], []>} : vector<2x128xf32>, vector<128x288xf32>, vector<2x288xf32> -> vector<2x288xf32>
    %206 = vector.broadcast %202 : vector<1x288xf32> to vector<2x288xf32>
    %207 = arith.addf %205, %206 : vector<2x288xf32>
    %208 = arith.mulf %207, %207 : vector<2x288xf32>
    %209 = tpu.concatenate %207, %208 in 1 : vector<2x288xf32>, vector<2x288xf32> -> vector<2x576xf32>
    %cst_128 = arith.constant dense<0.000000e+00> : vector<2x8xf32>
    %210 = tpu.matmul %209, %203, %cst_128 {dimension_numbers = #tpu.dot_dimension_numbers<[1], [0], [0], [1], [0, 0, 1, 1], [], []>} : vector<2x576xf32>, vector<576x8xf32>, vector<2x8xf32> -> vector<2x8xf32>
    %cst_129 = arith.constant 0.013888889 : f32
    %211 = vector.broadcast %cst_129 : f32 to vector<2x8xf32>
    %212 = arith.mulf %210, %211 : vector<2x8xf32>
    %213 = vector.extract_strided_slice %212 {offsets = [0, 0], sizes = [2, 4], strides = [1, 1]} : vector<2x8xf32> to vector<2x4xf32>
    %214 = vector.extract_strided_slice %212 {offsets = [0, 4], sizes = [2, 4], strides = [1, 1]} : vector<2x8xf32> to vector<2x4xf32>
    %215 = arith.mulf %213, %213 : vector<2x4xf32>
    %216 = arith.subf %214, %215 : vector<2x4xf32>
    %cst_130 = arith.constant 0.000000e+00 : f32
    %217 = vector.broadcast %cst_130 : f32 to vector<2x4xf32>
    %218 = arith.maximumf %216, %217 : vector<2x4xf32>
    %219 = math.rsqrt %218 : vector<2x4xf32>
    %220 = tpu.concatenate %213, %219 in 1 : vector<2x4xf32>, vector<2x4xf32> -> vector<2x8xf32>
    %cst_131 = arith.constant dense<0.000000e+00> : vector<2x576xf32>
    %221 = tpu.matmul %220, %204, %cst_131 {dimension_numbers = #tpu.dot_dimension_numbers<[1], [0], [0], [1], [0, 0, 1, 1], [], []>} : vector<2x8xf32>, vector<8x576xf32>, vector<2x576xf32> -> vector<2x576xf32>
    %222 = vector.extract_strided_slice %221 {offsets = [0, 0], sizes = [2, 288], strides = [1, 1]} : vector<2x576xf32> to vector<2x288xf32>
    %223 = arith.subf %207, %222 : vector<2x288xf32>
    %224 = vector.extract_strided_slice %221 {offsets = [0, 288], sizes = [2, 288], strides = [1, 1]} : vector<2x576xf32> to vector<2x288xf32>
    %225 = arith.mulf %223, %224 : vector<2x288xf32>
    %cst_132 = arith.constant 0.000000e+00 : f32
    %226 = vector.broadcast %cst_132 : f32 to vector<2x288xf32>
    %227 = arith.maximumf %225, %226 : vector<2x288xf32>
    %c6_i32_133 = arith.constant 6 : i32
    %228 = tpu.memref_slice %arg45[%c6_i32_133] : memref<8x!tpu.dma_semaphore, #tpu.memory_space<semaphore_mem>> -> memref<1x!tpu.dma_semaphore, #tpu.memory_space<semaphore_mem>>
    %229 = tpu.memref_squeeze %228 : memref<1x!tpu.dma_semaphore, #tpu.memory_space<semaphore_mem>> -> memref<!tpu.dma_semaphore, #tpu.memory_space<semaphore_mem>>
    tpu.wait_dma2 semaphore(%229 : memref<!tpu.dma_semaphore, #tpu.memory_space<semaphore_mem>>) src(%arg30 : memref<288x144xf32, #tpu.memory_space<any>>) dst(%arg43 : memref<288x144xf32, #tpu.memory_space<vmem>>)
    %c0_134 = arith.constant 0 : index
    %c0_135 = arith.constant 0 : index
    %230 = vector.load %arg43[%c0_134, %c0_135] : memref<288x144xf32, #tpu.memory_space<vmem>>, vector<288x144xf32>
    %c0_136 = arith.constant 0 : index
    %c0_137 = arith.constant 0 : index
    %231 = vector.load %arg31[%c0_136, %c0_137] : memref<1x144xf32, #tpu.memory_space<vmem>>, vector<1x144xf32>
    %c0_138 = arith.constant 0 : index
    %c0_139 = arith.constant 0 : index
    %232 = vector.load %arg32[%c0_138, %c0_139] : memref<288x8xf32, #tpu.memory_space<vmem>>, vector<288x8xf32>
    %c0_140 = arith.constant 0 : index
    %c0_141 = arith.constant 0 : index
    %233 = vector.load %arg33[%c0_140, %c0_141] : memref<8x288xf32, #tpu.memory_space<vmem>>, vector<8x288xf32>
    %cst_142 = arith.constant dense<0.000000e+00> : vector<2x144xf32>
    %234 = tpu.matmul %227, %230, %cst_142 {dimension_numbers = #tpu.dot_dimension_numbers<[1], [0], [0], [1], [0, 0, 1, 1], [], []>} : vector<2x288xf32>, vector<288x144xf32>, vector<2x144xf32> -> vector<2x144xf32>
    %235 = vector.broadcast %231 : vector<1x144xf32> to vector<2x144xf32>
    %236 = arith.addf %234, %235 : vector<2x144xf32>
    %237 = arith.mulf %236, %236 : vector<2x144xf32>
    %238 = tpu.concatenate %236, %237 in 1 : vector<2x144xf32>, vector<2x144xf32> -> vector<2x288xf32>
    %cst_143 = arith.constant dense<0.000000e+00> : vector<2x8xf32>
    %239 = tpu.matmul %238, %232, %cst_143 {dimension_numbers = #tpu.dot_dimension_numbers<[1], [0], [0], [1], [0, 0, 1, 1], [], []>} : vector<2x288xf32>, vector<288x8xf32>, vector<2x8xf32> -> vector<2x8xf32>
    %cst_144 = arith.constant 0.027777778 : f32
    %240 = vector.broadcast %cst_144 : f32 to vector<2x8xf32>
    %241 = arith.mulf %239, %240 : vector<2x8xf32>
    %242 = vector.extract_strided_slice %241 {offsets = [0, 0], sizes = [2, 4], strides = [1, 1]} : vector<2x8xf32> to vector<2x4xf32>
    %243 = vector.extract_strided_slice %241 {offsets = [0, 4], sizes = [2, 4], strides = [1, 1]} : vector<2x8xf32> to vector<2x4xf32>
    %244 = arith.mulf %242, %242 : vector<2x4xf32>
    %245 = arith.subf %243, %244 : vector<2x4xf32>
    %cst_145 = arith.constant 0.000000e+00 : f32
    %246 = vector.broadcast %cst_145 : f32 to vector<2x4xf32>
    %247 = arith.maximumf %245, %246 : vector<2x4xf32>
    %248 = math.rsqrt %247 : vector<2x4xf32>
    %249 = tpu.concatenate %242, %248 in 1 : vector<2x4xf32>, vector<2x4xf32> -> vector<2x8xf32>
    %cst_146 = arith.constant dense<0.000000e+00> : vector<2x288xf32>
    %250 = tpu.matmul %249, %233, %cst_146 {dimension_numbers = #tpu.dot_dimension_numbers<[1], [0], [0], [1], [0, 0, 1, 1], [], []>} : vector<2x8xf32>, vector<8x288xf32>, vector<2x288xf32> -> vector<2x288xf32>
    %251 = vector.extract_strided_slice %250 {offsets = [0, 0], sizes = [2, 144], strides = [1, 1]} : vector<2x288xf32> to vector<2x144xf32>
    %252 = arith.subf %236, %251 : vector<2x144xf32>
    %253 = vector.extract_strided_slice %250 {offsets = [0, 144], sizes = [2, 144], strides = [1, 1]} : vector<2x288xf32> to vector<2x144xf32>
    %254 = arith.mulf %252, %253 : vector<2x144xf32>
    %cst_147 = arith.constant 0.000000e+00 : f32
    %255 = vector.broadcast %cst_147 : f32 to vector<2x144xf32>
    %256 = arith.maximumf %254, %255 : vector<2x144xf32>
    %c7_i32_148 = arith.constant 7 : i32
    %257 = tpu.memref_slice %arg45[%c7_i32_148] : memref<8x!tpu.dma_semaphore, #tpu.memory_space<semaphore_mem>> -> memref<1x!tpu.dma_semaphore, #tpu.memory_space<semaphore_mem>>
    %258 = tpu.memref_squeeze %257 : memref<1x!tpu.dma_semaphore, #tpu.memory_space<semaphore_mem>> -> memref<!tpu.dma_semaphore, #tpu.memory_space<semaphore_mem>>
    tpu.wait_dma2 semaphore(%258 : memref<!tpu.dma_semaphore, #tpu.memory_space<semaphore_mem>>) src(%arg34 : memref<144x128xf32, #tpu.memory_space<any>>) dst(%arg44 : memref<144x128xf32, #tpu.memory_space<vmem>>)
    %c0_149 = arith.constant 0 : index
    %c0_150 = arith.constant 0 : index
    %259 = vector.load %arg44[%c0_149, %c0_150] : memref<144x128xf32, #tpu.memory_space<vmem>>, vector<144x128xf32>
    %cst_151 = arith.constant dense<0.000000e+00> : vector<2x128xf32>
    %260 = tpu.matmul %256, %259, %cst_151 {dimension_numbers = #tpu.dot_dimension_numbers<[1], [0], [0], [1], [0, 0, 1, 1], [], []>} : vector<2x144xf32>, vector<144x128xf32>, vector<2x128xf32> -> vector<2x128xf32>
    %c0_152 = arith.constant 0 : index
    %c0_153 = arith.constant 0 : index
    %261 = vector.load %arg35[%c0_152, %c0_153] : memref<1x128xf32, #tpu.memory_space<vmem>>, vector<1x128xf32>
    %262 = vector.broadcast %261 : vector<1x128xf32> to vector<2x128xf32>
    %263 = arith.addf %260, %262 : vector<2x128xf32>
    %c0_154 = arith.constant 0 : index
    %c0_155 = arith.constant 0 : index
    %264 = vector.load %arg36[%c0_154, %c0_155] : memref<2x128xf32, #tpu.memory_space<vmem>>, vector<2x128xf32>
    tpu.vector_store %arg36[%c0_154, %c0_155], %263 {strides = array<i32>} : memref<2x128xf32, #tpu.memory_space<vmem>>, vector<2x128xf32>,
    return
  }
  func.func @transform_0(%arg0: i32) -> (i32, i32) {
    %c0_i32 = arith.constant 0 : i32
    %c0_i32_0 = arith.constant 0 : i32
    %c0_i32_1 = arith.constant 0 : i32
    return %c0_i32, %c0_i32_0 : i32, i32
  }
  func.func @transform_1(%arg0: i32) -> (i32, i32, i32) {
    %c0_i32 = arith.constant 0 : i32
    %c0_i32_0 = arith.constant 0 : i32
    %c0_i32_1 = arith.constant 0 : i32
    %c0_i32_2 = arith.constant 0 : i32
    return %c0_i32, %c0_i32_0, %c0_i32_1 : i32, i32, i32
  }
  func.func @transform_2(%arg0: i32) -> (i32, i32) {
    %c0_i32 = arith.constant 0 : i32
    %c0_i32_0 = arith.constant 0 : i32
    %c0_i32_1 = arith.constant 0 : i32
    return %c0_i32, %c0_i32_0 : i32, i32
  }
  func.func @transform_3(%arg0: i32) -> (i32, i32) {
    %c0_i32 = arith.constant 0 : i32
    %c0_i32_0 = arith.constant 0 : i32
    %c0_i32_1 = arith.constant 0 : i32
    return %c0_i32, %c0_i32_0 : i32, i32
  }
  func.func @transform_4(%arg0: i32) -> (i32, i32) {
    %c0_i32 = arith.constant 0 : i32
    %c0_i32_0 = arith.constant 0 : i32
    %c0_i32_1 = arith.constant 0 : i32
    return %c0_i32, %c0_i32_0 : i32, i32
  }
  func.func @transform_5(%arg0: i32) -> (i32, i32) {
    %c0_i32 = arith.constant 0 : i32
    %c0_i32_0 = arith.constant 0 : i32
    %c0_i32_1 = arith.constant 0 : i32
    return %c0_i32, %c0_i32_0 : i32, i32
  }
  func.func @transform_6(%arg0: i32) -> (i32, i32) {
    %c0_i32 = arith.constant 0 : i32
    %c0_i32_0 = arith.constant 0 : i32
    %c0_i32_1 = arith.constant 0 : i32
    return %c0_i32, %c0_i32_0 : i32, i32
  }
  func.func @transform_7(%arg0: i32) -> (i32, i32, i32) {
    %c0_i32 = arith.constant 0 : i32
    %c0_i32_0 = arith.constant 0 : i32
    %c0_i32_1 = arith.constant 0 : i32
    %c0_i32_2 = arith.constant 0 : i32
    return %c0_i32, %c0_i32_0, %c0_i32_1 : i32, i32, i32
  }
  func.func @transform_10(%arg0: i32) -> (i32, i32) {
    %c0_i32 = arith.constant 0 : i32
    %c0_i32_0 = arith.constant 0 : i32
    %c0_i32_1 = arith.constant 0 : i32
    return %c0_i32, %c0_i32_0 : i32, i32
  }
  func.func @transform_11(%arg0: i32) -> (i32, i32) {
    %c0_i32 = arith.constant 0 : i32
    %c0_i32_0 = arith.constant 0 : i32
    %c0_i32_1 = arith.constant 0 : i32
    return %c0_i32, %c0_i32_0 : i32, i32
  }
  func.func @transform_12(%arg0: i32) -> (i32, i32) {
    %c0_i32 = arith.constant 0 : i32
    %c0_i32_0 = arith.constant 0 : i32
    %c0_i32_1 = arith.constant 0 : i32
    return %c0_i32, %c0_i32_0 : i32, i32
  }
  func.func @transform_13(%arg0: i32) -> (i32, i32) {
    %c0_i32 = arith.constant 0 : i32
    %c0_i32_0 = arith.constant 0 : i32
    %c0_i32_1 = arith.constant 0 : i32
    return %c0_i32, %c0_i32_0 : i32, i32
  }
  func.func @transform_14(%arg0: i32) -> (i32, i32) {
    %c0_i32 = arith.constant 0 : i32
    %c0_i32_0 = arith.constant 0 : i32
    %c0_i32_1 = arith.constant 0 : i32
    return %c0_i32, %c0_i32_0 : i32, i32
  }
  func.func @transform_15(%arg0: i32) -> (i32, i32, i32) {
    %c0_i32 = arith.constant 0 : i32
    %c0_i32_0 = arith.constant 0 : i32
    %c0_i32_1 = arith.constant 0 : i32
    %c0_i32_2 = arith.constant 0 : i32
    return %c0_i32, %c0_i32_0, %c0_i32_1 : i32, i32, i32
  }
  func.func @transform_18(%arg0: i32) -> (i32, i32) {
    %c0_i32 = arith.constant 0 : i32
    %c0_i32_0 = arith.constant 0 : i32
    %c0_i32_1 = arith.constant 0 : i32
    return %c0_i32, %c0_i32_0 : i32, i32
  }
  func.func @transform_19(%arg0: i32) -> (i32, i32) {
    %c0_i32 = arith.constant 0 : i32
    %c0_i32_0 = arith.constant 0 : i32
    %c0_i32_1 = arith.constant 0 : i32
    return %c0_i32, %c0_i32_0 : i32, i32
  }
  func.func @transform_20(%arg0: i32) -> (i32, i32) {
    %c0_i32 = arith.constant 0 : i32
    %c0_i32_0 = arith.constant 0 : i32
    %c0_i32_1 = arith.constant 0 : i32
    return %c0_i32, %c0_i32_0 : i32, i32
  }
  func.func @transform_21(%arg0: i32) -> (i32, i32) {
    %c0_i32 = arith.constant 0 : i32
    %c0_i32_0 = arith.constant 0 : i32
    %c0_i32_1 = arith.constant 0 : i32
    return %c0_i32, %c0_i32_0 : i32, i32
  }
  func.func @transform_22(%arg0: i32) -> (i32, i32) {
    %c0_i32 = arith.constant 0 : i32
    %c0_i32_0 = arith.constant 0 : i32
    %c0_i32_1 = arith.constant 0 : i32
    return %c0_i32, %c0_i32_0 : i32, i32
  }
  func.func @transform_23(%arg0: i32) -> (i32, i32) {
    %c0_i32 = arith.constant 0 : i32
    %c0_i32_0 = arith.constant 0 : i32
    %c0_i32_1 = arith.constant 0 : i32
    return %c0_i32, %c0_i32_0 : i32, i32
  }
  func.func @transform_26(%arg0: i32) -> (i32, i32) {
    %c0_i32 = arith.constant 0 : i32
    %c0_i32_0 = arith.constant 0 : i32
    %c0_i32_1 = arith.constant 0 : i32
    return %c0_i32, %c0_i32_0 : i32, i32
  }
  func.func @transform_27(%arg0: i32) -> (i32, i32) {
    %c0_i32 = arith.constant 0 : i32
    %c0_i32_0 = arith.constant 0 : i32
    %c0_i32_1 = arith.constant 0 : i32
    return %c0_i32, %c0_i32_0 : i32, i32
  }
  func.func @transform_28(%arg0: i32) -> (i32, i32) {
    %c0_i32 = arith.constant 0 : i32
    %c0_i32_0 = arith.constant 0 : i32
    %c0_i32_1 = arith.constant 0 : i32
    return %c0_i32, %c0_i32_0 : i32, i32
  }
  func.func @transform_30(%arg0: i32) -> (i32, i32) {
    %c0_i32 = arith.constant 0 : i32
    %c0_i32_0 = arith.constant 0 : i32
    %c0_i32_1 = arith.constant 0 : i32
    return %c0_i32, %c0_i32_0 : i32, i32
  }
  func.func @transform_31(%arg0: i32) -> (i32, i32) {
    %c0_i32 = arith.constant 0 : i32
    %c0_i32_0 = arith.constant 0 : i32
    %c0_i32_1 = arith.constant 0 : i32
    return %c0_i32, %c0_i32_0 : i32, i32
  }
  func.func @transform_32(%arg0: i32) -> (i32, i32) {
    %c0_i32 = arith.constant 0 : i32
    %c0_i32_0 = arith.constant 0 : i32
    %c0_i32_1 = arith.constant 0 : i32
    return %c0_i32, %c0_i32_0 : i32, i32
  }
  func.func @transform_34(%arg0: i32) -> (i32, i32) {
    %c0_i32 = arith.constant 0 : i32
    %c0_i32_0 = arith.constant 0 : i32
    %c0_i32_1 = arith.constant 0 : i32
    return %c0_i32, %c0_i32_0 : i32, i32
  }
  func.func @transform_35(%arg0: i32) -> (i32, i32) {
    %c0_i32 = arith.constant 0 : i32
    %c0_i32_0 = arith.constant 0 : i32
    %c0_i32_1 = arith.constant 0 : i32
    return %c0_i32, %c0_i32_0 : i32, i32
  }
}

</mosaic_0001>

<bundles_post_ra>
// kernel: fwd.1
= control target key start
LH: loop header
LB: loop body
LE: loop exit
PB: predicated region body
PF: predicated region fallthrough
CT: control target
= control target key end

     0   :  { %s8366_s6 = smov 1   ;;  %s8367_s10 = smov 2   ;;  %s11081_s0 = inlined_call_operand.smem [shape: u32[36], index: -1, kind: input, shape index: {}] }
   0x1   :  { %s8420_s5 = sld [smem:[%s11081_s0]]   ;;  %s8368_s14 = smov 3  }
   0x2   :  { %s8425_s9 = sld [smem:[%s11081_s0 + %s8366_s6]]   ;;  %s8369_s18 = smov 4  }
   0x3   :  { %s8430_s13 = sld [smem:[%s11081_s0 + %s8367_s10]]   ;;  %s8370_s22 = smov 5  }
   0x4   :  { %s8435_s17 = sld [smem:[%s11081_s0 + %s8368_s14]]   ;;  %s8371_s26 = smov 6  }
   0x5   :  { %s8440_s21 = sld [smem:[%s11081_s0 + %s8369_s18]]   ;;  %s8372_s30 = smov 7  }
   0x6   :  { %s8445_s25 = sld [smem:[%s11081_s0 + %s8370_s22]]   ;;  %s8373_s4 = smov 8  }
   0x7   :  { %s8450_s29 = sld [smem:[%s11081_s0 + %s8371_s26]]   ;;  %s8374_s10 = smov 9  }
   0x8   :  { %s8455_s3 = sld [smem:[%s11081_s0 + %s8372_s30]]   ;;  %s8375_s15 = smov 10  }
   0x9   :  { %s8460_s8 = sld [smem:[%s11081_s0 + %s8373_s4]]   ;;  %s8376_s20 = smov 11  }
   0xa   :  { %s8465_s14 = sld [smem:[%s11081_s0 + %s8374_s10]]   ;;  %s8377_s26 = smov 12  }
   0xb   :  { %s8470_s19 = sld [smem:[%s11081_s0 + %s8375_s15]]   ;;  %s8378_s1 = smov 13  }
   0xc   :  { %s8475_s24 = sld [smem:[%s11081_s0 + %s8376_s20]]   ;;  %s8379_s7 = smov 14  }
   0xd   :  { %s8480_s30 = sld [smem:[%s11081_s0 + %s8377_s26]]   ;;  %s8380_s15 = smov 15  }
   0xe   :  { %11099 = sst [smem:[#allocation30_spill]] %s8455_s3  ;;  %s8381_s22 = smov 16  }
   0xf   :  { %s8485_s6 = sld [smem:[%s11081_s0 + %s8378_s1]]   ;;  %s8382_s28 = smov 17  }
  0x10   :  { %s8490_s12 = sld [smem:[%s11081_s0 + %s8379_s7]]   ;;  %s8383_s7 = smov 18  }
  0x11   :  { %11100 = sst [smem:[#allocation31_spill]] %s8470_s19 }
  0x12   :  { %11101 = sst [smem:[#allocation32_spill]] %s8475_s24 }
  0x13   :  { %11102 = sst [smem:[#allocation33_spill]] %s8480_s30 }
  0x14   :  { %s8495_s20 = sld [smem:[%s11081_s0 + %s8380_s15]]   ;;  %s8384_s15 = smov 19  }
  0x15   :  { %11103 = sst [smem:[#allocation34_spill]] %s8485_s6 }
  0x16   :  { %11104 = sst [smem:[#allocation35_spill]] %s8490_s12 }
  0x17   :  { %s8500_s27 = sld [smem:[%s11081_s0 + %s8381_s22]]   ;;  %s8385_s22 = smov 20  }
  0x18   :  { %s8505_s4 = sld [smem:[%s11081_s0 + %s8382_s28]]   ;;  %s8386_s28 = smov 21  }
  0x19   :  { %s8510_s30 = sld [smem:[%s11081_s0 + %s8383_s7]]   ;;  %s8387_s7 = smov 22  }
  0x1a   :  { %11105 = sst [smem:[#allocation36_spill]] %s8495_s20 }
  0x1b   :  { %s8515_s20 = sld [smem:[%s11081_s0 + %s8384_s15]]   ;;  %s8388_s15 = smov 23  }
  0x1c   :  { %s8520_s12 = sld [smem:[%s11081_s0 + %s8385_s22]]   ;;  %s8389_s22 = smov 24  }
  0x1d   :  { %s8525_s24 = sld [smem:[%s11081_s0 + %s8386_s28]]   ;;  %s8390_s28 = smov 25  }
  0x1f   :  { %11106 = sst [smem:[#allocation37_spill]] %s8510_s30 }
  0x20   :  { %s8530_s30 = sld [smem:[%s11081_s0 + %s8387_s7]]   ;;  %s8391_s7 = smov 26  }
  0x21   :  { %11107 = sst [smem:[#allocation38_spill]] %s8515_s20 }
  0x22   :  { %11108 = sst [smem:[#allocation39_spill]] %s8520_s12 }
  0x23   :  { %11109 = sst [smem:[#allocation40_spill]] %s8525_s24 }
  0x24   :  { %s8535_s20 = sld [smem:[%s11081_s0 + %s8388_s15]]   ;;  %s8392_s15 = smov 27  }
  0x25   :  { %s8540_s12 = sld [smem:[%s11081_s0 + %s8389_s22]]   ;;  %s8393_s22 = smov 28  }
  0x26   :  { %11110 = sst [smem:[#allocation41_spill]] %s8530_s30 }
  0x27   :  { %s8545_s24 = sld [smem:[%s11081_s0 + %s8390_s28]]   ;;  %s8394_s28 = smov 29  }
  0x28   :  { %s8550_s30 = sld [smem:[%s11081_s0 + %s8391_s7]]   ;;  %s8395_s7 = smov 30  }
  0x29   :  { %s8560_s6 = sld [smem:[%s11081_s0 + %s8393_s22]]   ;;  %s8397_s22 = smov 32  }
  0x2a   :  { %11111 = sst [smem:[#allocation42_spill]] %s8535_s20 }
  0x2b   :  { %s8555_s20 = sld [smem:[%s11081_s0 + %s8392_s15]]   ;;  %s8396_s15 = smov 31  }
  0x2c   :  { %s8565_s19 = sld [smem:[%s11081_s0 + %s8394_s28]]   ;;  %s8398_s28 = smov 33  }
  0x2d   :  { %s8585_s3 = sld [smem:[%s11081_s0 + %s8398_s28]]  }
  0x2e   :  { %11112 = sst [smem:[#allocation43_spill]] %s8550_s30 }
  0x2f   :  { %11114 = sst [smem:[#allocation45_spill]] %s8560_s6 }
  0x30   :  { %s8570_s30 = sld [smem:[%s11081_s0 + %s8395_s7]]   ;;  %s8399_s7 = smov 34  }
  0x31   :  { %11113 = sst [smem:[#allocation44_spill]] %s8555_s20 }
  0x32   :  { %s8575_s20 = sld [smem:[%s11081_s0 + %s8396_s15]]   ;;  %s8400_s15 = smov 35  }
  0x33   :  { %s8580_s6 = sld [smem:[%s11081_s0 + %s8397_s22]]  }
  0x36   :  { %11115 = sst [smem:[#allocation46_spill]] %s8570_s30 }
  0x37   :  { %s8590_s30 = sld [smem:[%s11081_s0 + %s8399_s7]]  }
  0x38   :  { %11116 = sst [smem:[#allocation47_spill]] %s8575_s20 }
  0x39   :  { %s8595_s20 = sld [smem:[%s11081_s0 + %s8400_s15]]  }
  0x3a   :  { %76 = vsyncpa [#allocation12], 0  ;;  %v8598_v0 = vld [vmem:[%s8460_s8] sm:$0xff]  ;;  %v8601_v1 = vld [vmem:[%s8460_s8 + $0x8] sm:$0xff] }
  0x3b   :  { %v8604_v2 = vld [vmem:[%s8460_s8 + $0x10] sm:$0xff]  ;;  %v8607_v3 = vld [vmem:[%s8460_s8 + $0x18] sm:$0xff]  ;;  %v8610_v4 = vld [vmem:[%s8460_s8 + $0x20] sm:$0xff] }
  0x3c   :  { %v8613_v5 = vld [vmem:[%s8460_s8 + $0x28] sm:$0xff]  ;;  %v8616_v6 = vld [vmem:[%s8460_s8 + $0x30] sm:$0xff]  ;;  %v8619_v7 = vld [vmem:[%s8460_s8 + $0x38] sm:$0xff] }
  0x3d   :  { %v8622_v8 = vld [vmem:[%s8460_s8 + $0x40] sm:$0xff]  ;;  %v8625_v9 = vld [vmem:[%s8460_s8 + $0x48] sm:$0xff]  ;;  %v8628_v10 = vld [vmem:[%s8460_s8 + $0x50] sm:$0xff] }
  0x3e   :  { %v8631_v11 = vld [vmem:[%s8460_s8 + $0x58] sm:$0xff]  ;;  %v8634_v12 = vld [vmem:[%s8460_s8 + $0x60] sm:$0xff]  ;;  %v8637_v13 = vld [vmem:[%s8460_s8 + $0x68] sm:$0xff] }
  0x3f   :  { %v8640_v14 = vld [vmem:[%s8460_s8 + $0x70] sm:$0xff]  ;;  %v8643_v15 = vld [vmem:[%s8460_s8 + $0x78] sm:$0xff]  ;;  %v8646_v16 = vld [vmem:[%s8460_s8 + $0x80] sm:$0xff] }
  0x40   :  { %v8649_v17 = vld [vmem:[%s8460_s8 + $0x88] sm:$0xff]  ;;  %v8652_v18 = vld [vmem:[%s8460_s8 + $0x90] sm:$0xff]  ;;  %v8655_v19 = vld [vmem:[%s8460_s8 + $0x98] sm:$0xff] }
  0x41   :  { %v8658_v20 = vld [vmem:[%s8460_s8 + $0xa0] sm:$0xff]  ;;  %v8661_v21 = vld [vmem:[%s8460_s8 + $0xa8] sm:$0xff]  ;;  %v8664_v22 = vld [vmem:[%s8460_s8 + $0xb0] sm:$0xff] }
  0x42   :  { %11117 = vst [vmem:[#allocation48_spill] sm:$0xff] %v8658_v20  ;;  %v8667_v23 = vld [vmem:[%s8460_s8 + $0xb8] sm:$0xff]  ;;  %v8670_v24 = vld [vmem:[%s8460_s8 + $0xc0] sm:$0xff]  ;;  %v8673_v25 = vld [vmem:[%s8460_s8 + $0xc8] sm:$0xff] }
  0x43   :  { %11118 = vst [vmem:[#allocation49_spill] sm:$0xff] %v8667_v23  ;;  %v8676_v26 = vld [vmem:[%s8460_s8 + $0xd0] sm:$0xff]  ;;  %v8679_v27 = vld [vmem:[%s8460_s8 + $0xd8] sm:$0xff]  ;;  %v8682_v28 = vld [vmem:[%s8460_s8 + $0xe0] sm:$0xff] }
  0x44   :  { %11119 = vst [vmem:[#allocation50_spill] sm:$0xff] %v8676_v26  ;;  %11120 = vst [vmem:[#allocation51_spill] sm:$0xff] %v8679_v27  ;;  %v8685_v29 = vld [vmem:[%s8460_s8 + $0xe8] sm:$0xff]  ;;  %v8688_v30 = vld [vmem:[%s8460_s8 + $0xf0] sm:$0xff] }
  0x45   :  { %11121 = vst [vmem:[#allocation52_spill] sm:$0xff] %v8685_v29  ;;  %11122 = vst [vmem:[#allocation53_spill] sm:$0xff] %v8688_v30  ;;  %v8691_v31 = vld [vmem:[%s8460_s8 + $0xf8] sm:$0xff]  ;;  %v8694_v32 = vld [vmem:[%s8460_s8 + $0x100] sm:$0xff] }
  0x46   :  { %11123 = vst [vmem:[#allocation54_spill] sm:$0xff] %v8691_v31  ;;  %11124 = vst [vmem:[#allocation55_spill] sm:$0xff] %v8694_v32  ;;  %v8697_v33 = vld [vmem:[%s8460_s8 + $0x108] sm:$0xff]  ;;  %v8700_v34 = vld [vmem:[%s8460_s8 + $0x110] sm:$0xff] }
  0x47   :  { %11125 = vst [vmem:[#allocation56_spill] sm:$0xff] %v8697_v33  ;;  %11126 = vst [vmem:[#allocation57_spill] sm:$0xff] %v8700_v34  ;;  %v8703_v35 = vld [vmem:[%s8460_s8 + $0x118] sm:$0xff]  ;;  %v8706_v36 = vld [vmem:[%s8460_s8 + $0x120] sm:$0xff] }
  0x48   :  { %11127 = vst [vmem:[#allocation58_spill] sm:$0xff] %v8703_v35  ;;  %11128 = vst [vmem:[#allocation59_spill] sm:$0xff] %v8706_v36  ;;  %v8709_v37 = vld [vmem:[%s8460_s8 + $0x128] sm:$0xff]  ;;  %v8712_v38 = vld [vmem:[%s8460_s8 + $0x130] sm:$0xff] }
  0x49   :  { %11129 = vst [vmem:[#allocation60_spill] sm:$0xff] %v8709_v37  ;;  %11130 = vst [vmem:[#allocation61_spill] sm:$0xff] %v8712_v38  ;;  %v8715_v39 = vld [vmem:[%s8460_s8 + $0x138] sm:$0xff]  ;;  %v8718_v40 = vld [vmem:[%s8460_s8 + $0x140] sm:$0xff] }
  0x4a   :  { %11131 = vst [vmem:[#allocation62_spill] sm:$0xff] %v8715_v39  ;;  %11132 = vst [vmem:[#allocation63_spill] sm:$0xff] %v8718_v40  ;;  %v8721_v41 = vld [vmem:[%s8460_s8 + $0x148] sm:$0xff]  ;;  %v8724_v42 = vld [vmem:[%s8460_s8 + $0x150] sm:$0xff] }
  0x4b   :  { %11133 = vst [vmem:[#allocation64_spill] sm:$0xff] %v8721_v41  ;;  %11134 = vst [vmem:[#allocation65_spill] sm:$0xff] %v8724_v42  ;;  %v8727_v43 = vld [vmem:[%s8460_s8 + $0x158] sm:$0xff]  ;;  %v8730_v44 = vld [vmem:[%s8460_s8 + $0x160] sm:$0xff] }
  0x4c   :  { %11135 = vst [vmem:[#allocation66_spill] sm:$0xff] %v8727_v43  ;;  %11136 = vst [vmem:[#allocation67_spill] sm:$0xff] %v8730_v44  ;;  %v8733_v45 = vld [vmem:[%s8460_s8 + $0x168] sm:$0xff]  ;;  %v8736_v46 = vld [vmem:[%s8460_s8 + $0x170] sm:$0xff] }
  0x4d   :  { %11137 = vst [vmem:[#allocation68_spill] sm:$0xff] %v8733_v45  ;;  %11138 = vst [vmem:[#allocation69_spill] sm:$0xff] %v8736_v46  ;;  %v8739_v47 = vld [vmem:[%s8460_s8 + $0x178] sm:$0xff]  ;;  %v8742_v48 = vld [vmem:[%s8460_s8 + $0x180] sm:$0xff] }
  0x4e   :  { %11139 = vst [vmem:[#allocation70_spill] sm:$0xff] %v8739_v47  ;;  %11140 = vst [vmem:[#allocation71_spill] sm:$0xff] %v8742_v48  ;;  %v8745_v49 = vld [vmem:[%s8460_s8 + $0x188] sm:$0xff]  ;;  %v8748_v50 = vld [vmem:[%s8460_s8 + $0x190] sm:$0xff] }
  0x4f   :  { %11141 = vst [vmem:[#allocation72_spill] sm:$0xff] %v8745_v49  ;;  %v8751_v51 = vld [vmem:[%s8460_s8 + $0x198] sm:$0xff]  ;;  %v8754_v52 = vld [vmem:[%s8460_s8 + $0x1a0] sm:$0xff]  ;;  %v8757_v53 = vld [vmem:[%s8460_s8 + $0x1a8] sm:$0xff] }
  0x50   :  { %11142 = vst [vmem:[#allocation73_spill] sm:$0xff] %v8751_v51  ;;  %11143 = vst [vmem:[#allocation74_spill] sm:$0xff] %v8754_v52  ;;  %v8760_v54 = vld [vmem:[%s8460_s8 + $0x1b0] sm:$0xff]  ;;  %v8763_v55 = vld [vmem:[%s8460_s8 + $0x1b8] sm:$0xff] }
  0x51   :  { %11144 = vst [vmem:[#allocation75_spill] sm:$0xff] %v8760_v54  ;;  %11145 = vst [vmem:[#allocation76_spill] sm:$0xff] %v8763_v55  ;;  %v8766_v56 = vld [vmem:[%s8460_s8 + $0x1c0] sm:$0xff]  ;;  %v8769_v57 = vld [vmem:[%s8460_s8 + $0x1c8] sm:$0xff] }
  0x52   :  { %11146 = vst [vmem:[#allocation77_spill] sm:$0xff] %v8769_v57  ;;  %v8772_v58 = vld [vmem:[%s8460_s8 + $0x1d0] sm:$0xff]  ;;  %v8775_v59 = vld [vmem:[%s8460_s8 + $0x1d8] sm:$0xff]  ;;  %v8778_v60 = vld [vmem:[%s8460_s8 + $0x1e0] sm:$0xff] }
  0x53   :  { %11147 = vst [vmem:[#allocation78_spill] sm:$0xff] %v8772_v58  ;;  %11148 = vst [vmem:[#allocation79_spill] sm:$0xff] %v8778_v60  ;;  %v8781_v61 = vld [vmem:[%s8460_s8 + $0x1e8] sm:$0xff]  ;;  %v8784_v62 = vld [vmem:[%s8460_s8 + $0x1f0] sm:$0xff] }
  0x54   :  { %11149 = vst [vmem:[#allocation80_spill] sm:$0xff] %v8781_v61  ;;  %v8787_v63 = vld [vmem:[%s8460_s8 + $0x1f8] sm:$0xff]  ;;  %v8790_v57 = vld [vmem:[%s8460_s8 + $0x200] sm:$0xff]  ;;  %v8793_v54 = vld [vmem:[%s8460_s8 + $0x208] sm:$0xff] }
  0x55   :  { %11150 = vst [vmem:[#allocation81_spill] sm:$0xff] %v8787_v63  ;;  %11151 = vst [vmem:[#allocation82_spill] sm:$0xff] %v8790_v57  ;;  %v8796_v58 = vld [vmem:[%s8460_s8 + $0x210] sm:$0xff]  ;;  %v8799_v60 = vld [vmem:[%s8460_s8 + $0x218] sm:$0xff] }
  0x56   :  { %11152 = vst [vmem:[#allocation83_spill] sm:$0xff] %v8796_v58  ;;  %11153 = vst [vmem:[#allocation84_spill] sm:$0xff] %v8799_v60  ;;  %v8802_v61 = vld [vmem:[%s8460_s8 + $0x220] sm:$0xff]  ;;  %v8805_v55 = vld [vmem:[%s8460_s8 + $0x228] sm:$0xff] }
  0x57   :  { %11154 = vst [vmem:[#allocation85_spill] sm:$0xff] %v8805_v55  ;;  %v8808_v63 = vld [vmem:[%s8460_s8 + $0x230] sm:$0xff]  ;;  %v8811_v57 = vld [vmem:[%s8460_s8 + $0x238] sm:$0xff]  ;;  %v8814_v47 = vld [vmem:[%s8460_s8 + $0x240] sm:$0xff] }
  0x58   :  { %11155 = vst [vmem:[#allocation86_spill] sm:$0xff] %v8808_v63  ;;  %11156 = vst [vmem:[#allocation87_spill] sm:$0xff] %v8814_v47  ;;  %v8817_v58 = vld [vmem:[%s8460_s8 + $0x248] sm:$0xff]  ;;  %v8820_v60 = vld [vmem:[%s8460_s8 + $0x250] sm:$0xff] }
  0x59   :  { %11157 = vst [vmem:[#allocation88_spill] sm:$0xff] %v8817_v58  ;;  %11158 = vst [vmem:[#allocation89_spill] sm:$0xff] %v8820_v60  ;;  %v8823_v44 = vld [vmem:[%s8460_s8 + $0x258] sm:$0xff]  ;;  %v8826_v55 = vld [vmem:[%s8460_s8 + $0x260] sm:$0xff] }
  0x5a   :  { %11159 = vst [vmem:[#allocation90_spill] sm:$0xff] %v8823_v44  ;;  %11160 = vst [vmem:[#allocation91_spill] sm:$0xff] %v8826_v55  ;;  %v8829_v63 = vld [vmem:[%s8460_s8 + $0x268] sm:$0xff]  ;;  %v8832_v51 = vld [vmem:[%s8460_s8 + $0x270] sm:$0xff] }
  0x5b   :  { %11161 = vst [vmem:[#allocation92_spill] sm:$0xff] %v8829_v63  ;;  %11162 = vst [vmem:[#allocation93_spill] sm:$0xff] %v8832_v51  ;;  %v8835_v47 = vld [vmem:[%s8460_s8 + $0x278] sm:$0xff]  ;;  %v8838_v58 = vld [vmem:[%s8460_s8 + $0x280] sm:$0xff] }
  0x5c   :  { %11163 = vst [vmem:[#allocation94_spill] sm:$0xff] %v8835_v47  ;;  %11164 = vst [vmem:[#allocation95_spill] sm:$0xff] %v8838_v58  ;;  %v8841_v48 = vld [vmem:[%s8460_s8 + $0x288] sm:$0xff]  ;;  %v8844_v52 = vld [vmem:[%s8460_s8 + $0x290] sm:$0xff] }
  0x5d   :  { %11165 = vst [vmem:[#allocation96_spill] sm:$0xff] %v8841_v48  ;;  %11166 = vst [vmem:[#allocation97_spill] sm:$0xff] %v8844_v52  ;;  %v8847_v44 = vld [vmem:[%s8460_s8 + $0x298] sm:$0xff]  ;;  %v8850_v49 = vld [vmem:[%s8460_s8 + $0x2a0] sm:$0xff] }
  0x5e   :  { %11167 = vst [vmem:[#allocation98_spill] sm:$0xff] %v8847_v44  ;;  %11168 = vst [vmem:[#allocation99_spill] sm:$0xff] %v8850_v49  ;;  %v8853_v55 = vld [vmem:[%s8460_s8 + $0x2a8] sm:$0xff]  ;;  %v8856_v41 = vld [vmem:[%s8460_s8 + $0x2b0] sm:$0xff] }
  0x5f   :  { %11169 = vst [vmem:[#allocation100_spill] sm:$0xff] %v8853_v55  ;;  %11170 = vst [vmem:[#allocation101_spill] sm:$0xff] %v8856_v41  ;;  %v8859_v38 = vld [vmem:[%s8460_s8 + $0x2b8] sm:$0xff]  ;;  %v8862_v51 = vld [vmem:[%s8460_s8 + $0x2c0] sm:$0xff] }
  0x60   :  { %11171 = vst [vmem:[#allocation102_spill] sm:$0xff] %v8859_v38  ;;  %11172 = vst [vmem:[#allocation103_spill] sm:$0xff] %v8862_v51  ;;  %v8865_v47 = vld [vmem:[%s8460_s8 + $0x2c8] sm:$0xff]  ;;  %v8868_v45 = vld [vmem:[%s8460_s8 + $0x2d0] sm:$0xff] }
  0x61   :  { %11173 = vst [vmem:[#allocation104_spill] sm:$0xff] %v8865_v47  ;;  %11174 = vst [vmem:[#allocation105_spill] sm:$0xff] %v8868_v45  ;;  %v8871_v42 = vld [vmem:[%s8460_s8 + $0x2d8] sm:$0xff]  ;;  %v8874_v48 = vld [vmem:[%s8460_s8 + $0x2e0] sm:$0xff] }
  0x62   :  { %11175 = vst [vmem:[#allocation106_spill] sm:$0xff] %v8871_v42  ;;  %11176 = vst [vmem:[#allocation107_spill] sm:$0xff] %v8874_v48  ;;  %v8877_v52 = vld [vmem:[%s8460_s8 + $0x2e8] sm:$0xff]  ;;  %v8880_v46 = vld [vmem:[%s8460_s8 + $0x2f0] sm:$0xff] }
  0x63   :  { %11177 = vst [vmem:[#allocation108_spill] sm:$0xff] %v8877_v52  ;;  %11178 = vst [vmem:[#allocation109_spill] sm:$0xff] %v8880_v46  ;;  %v8883_v49 = vld [vmem:[%s8460_s8 + $0x2f8] sm:$0xff] }
  0x64   :  { %11179 = vst [vmem:[#allocation110_spill] sm:$0xff] %v8883_v49 }
  0x65   :  { %362 = vsyncadd [#allocation10], 12288  ;;  %v8886_v52 = vld [vmem:[%s8465_s14] sm:$0xff]  ;;  %v8889_v45 = vld [vmem:[%s8465_s14 + $0x8] sm:$0xff] }
  0x66   :  { %11180 = vst [vmem:[#allocation111_spill] sm:$0xff] %v8886_v52  ;;  %11181 = vst [vmem:[#allocation112_spill] sm:$0xff] %v8889_v45  ;;  %v8892_v46 = vld [vmem:[%s8465_s14 + $0x10] sm:$0xff]  ;;  %v8895_v42 = vld [vmem:[%s8465_s14 + $0x18] sm:$0xff] }
  0x67   :  { %11182 = vst [vmem:[#allocation113_spill] sm:$0xff] %v8892_v46  ;;  %11183 = vst [vmem:[#allocation114_spill] sm:$0xff] %v8895_v42  ;;  %v8898_v38 = vld [vmem:[%s8465_s14 + $0x20] sm:$0xff]  ;;  %v8901_v51 = vld [vmem:[%s8465_s14 + $0x28] sm:$0xff] }
  0x68   :  { %11184 = vst [vmem:[#allocation115_spill] sm:$0xff] %v8898_v38  ;;  %11185 = vst [vmem:[#allocation116_spill] sm:$0xff] %v8901_v51  ;;  %v8904_v55 = vld [vmem:[%s8465_s14 + $0x30] sm:$0xff]  ;;  %v8907_v52 = vld [vmem:[%s8465_s14 + $0x38] sm:$0xff] }
  0x69   :  { %11186 = vst [vmem:[#allocation117_spill] sm:$0xff] %v8904_v55  ;;  %11187 = vst [vmem:[#allocation118_spill] sm:$0xff] %v8907_v52  ;;  %v8910_v45 = vld [vmem:[%s8465_s14 + $0x40] sm:$0xff]  ;;  %v8913_v46 = vld [vmem:[%s8465_s14 + $0x48] sm:$0xff] }
  0x6a   :  { %11188 = vst [vmem:[#allocation119_spill] sm:$0xff] %v8910_v45  ;;  %11189 = vst [vmem:[#allocation120_spill] sm:$0xff] %v8913_v46  ;;  %v8916_v42 = vld [vmem:[%s8465_s14 + $0x50] sm:$0xff]  ;;  %v8919_v38 = vld [vmem:[%s8465_s14 + $0x58] sm:$0xff] }
  0x6b   :  { %11190 = vst [vmem:[#allocation121_spill] sm:$0xff] %v8916_v42  ;;  %11191 = vst [vmem:[#allocation122_spill] sm:$0xff] %v8919_v38  ;;  %v8922_v51 = vld [vmem:[%s8465_s14 + $0x60] sm:$0xff]  ;;  %v8925_v55 = vld [vmem:[%s8465_s14 + $0x68] sm:$0xff] }
  0x6c   :  { %11192 = vst [vmem:[#allocation123_spill] sm:$0xff] %v8922_v51  ;;  %11193 = vst [vmem:[#allocation124_spill] sm:$0xff] %v8925_v55  ;;  %v8928_v52 = vld [vmem:[%s8465_s14 + $0x70] sm:$0xff]  ;;  %v8931_v45 = vld [vmem:[%s8465_s14 + $0x78] sm:$0xff] }
  0x6d   :  { %11194 = vst [vmem:[#allocation125_spill] sm:$0xff] %v8928_v52  ;;  %11195 = vst [vmem:[#allocation126_spill] sm:$0xff] %v8931_v45  ;;  %v8934_v46 = vld [vmem:[%s8465_s14 + $0x80] sm:$0xff]  ;;  %v8937_v42 = vld [vmem:[%s8465_s14 + $0x88] sm:$0xff] }
  0x6e   :  { %11196 = vst [vmem:[#allocation127_spill] sm:$0xff] %v8934_v46  ;;  %11197 = vst [vmem:[#allocation128_spill] sm:$0xff] %v8937_v42  ;;  %v8940_v38 = vld [vmem:[%s8465_s14 + $0x90] sm:$0xff]  ;;  %v8943_v51 = vld [vmem:[%s8465_s14 + $0x98] sm:$0xff] }
  0x6f   :  { %11198 = vst [vmem:[#allocation129_spill] sm:$0xff] %v8940_v38  ;;  %11199 = vst [vmem:[#allocation130_spill] sm:$0xff] %v8943_v51  ;;  %v8946_v55 = vld [vmem:[%s8465_s14 + $0xa0] sm:$0xff]  ;;  %v8949_v52 = vld [vmem:[%s8465_s14 + $0xa8] sm:$0xff] }
  0x70   :  { %11200 = vst [vmem:[#allocation131_spill] sm:$0xff] %v8946_v55  ;;  %11201 = vst [vmem:[#allocation132_spill] sm:$0xff] %v8949_v52  ;;  %v8952_v45 = vld [vmem:[%s8465_s14 + $0xb0] sm:$0xff]  ;;  %v8955_v46 = vld [vmem:[%s8465_s14 + $0xb8] sm:$0xff] }
  0x71   :  { %11202 = vst [vmem:[#allocation133_spill] sm:$0xff] %v8952_v45  ;;  %11203 = vst [vmem:[#allocation134_spill] sm:$0xff] %v8955_v46  ;;  %v8958_v42 = vld [vmem:[%s8465_s14 + $0xc0] sm:$0xff]  ;;  %v8961_v38 = vld [vmem:[%s8465_s14 + $0xc8] sm:$0xff] }
  0x72   :  { %11204 = vst [vmem:[#allocation135_spill] sm:$0xff] %v8958_v42  ;;  %11205 = vst [vmem:[#allocation136_spill] sm:$0xff] %v8961_v38  ;;  %v8964_v51 = vld [vmem:[%s8465_s14 + $0xd0] sm:$0xff]  ;;  %v8967_v55 = vld [vmem:[%s8465_s14 + $0xd8] sm:$0xff] }
  0x73   :  { %11206 = vst [vmem:[#allocation137_spill] sm:$0xff] %v8964_v51  ;;  %11207 = vst [vmem:[#allocation138_spill] sm:$0xff] %v8967_v55  ;;  %v8970_v52 = vld [vmem:[%s8465_s14 + $0xe0] sm:$0xff]  ;;  %v8973_v45 = vld [vmem:[%s8465_s14 + $0xe8] sm:$0xff] }
  0x74   :  { %11208 = vst [vmem:[#allocation139_spill] sm:$0xff] %v8970_v52  ;;  %11209 = vst [vmem:[#allocation140_spill] sm:$0xff] %v8973_v45  ;;  %v8976_v46 = vld [vmem:[%s8465_s14 + $0xf0] sm:$0xff]  ;;  %v8979_v42 = vld [vmem:[%s8465_s14 + $0xf8] sm:$0xff] }
  0x75   :  { %11210 = vst [vmem:[#allocation141_spill] sm:$0xff] %v8976_v46  ;;  %11211 = vst [vmem:[#allocation142_spill] sm:$0xff] %v8979_v42  ;;  %v8982_v38 = vld [vmem:[%s8465_s14 + $0x100] sm:$0xff]  ;;  %v8985_v51 = vld [vmem:[%s8465_s14 + $0x108] sm:$0xff] }
  0x76   :  { %11212 = vst [vmem:[#allocation143_spill] sm:$0xff] %v8982_v38  ;;  %11213 = vst [vmem:[#allocation144_spill] sm:$0xff] %v8985_v51  ;;  %v8988_v55 = vld [vmem:[%s8465_s14 + $0x110] sm:$0xff]  ;;  %v8991_v52 = vld [vmem:[%s8465_s14 + $0x118] sm:$0xff] }
  0x77   :  { %11214 = vst [vmem:[#allocation145_spill] sm:$0xff] %v8988_v55  ;;  %11215 = vst [vmem:[#allocation146_spill] sm:$0xff] %v8991_v52  ;;  %v8994_v45 = vld [vmem:[%s8465_s14 + $0x120] sm:$0xff]  ;;  %v8997_v46 = vld [vmem:[%s8465_s14 + $0x128] sm:$0xff] }
  0x78   :  { %11216 = vst [vmem:[#allocation147_spill] sm:$0xff] %v8994_v45  ;;  %11217 = vst [vmem:[#allocation148_spill] sm:$0xff] %v8997_v46  ;;  %v9000_v42 = vld [vmem:[%s8465_s14 + $0x130] sm:$0xff]  ;;  %v9003_v38 = vld [vmem:[%s8465_s14 + $0x138] sm:$0xff] }
  0x79   :  { %11218 = vst [vmem:[#allocation149_spill] sm:$0xff] %v9000_v42  ;;  %11219 = vst [vmem:[#allocation150_spill] sm:$0xff] %v9003_v38  ;;  %v9006_v51 = vld [vmem:[%s8465_s14 + $0x140] sm:$0xff]  ;;  %v9009_v55 = vld [vmem:[%s8465_s14 + $0x148] sm:$0xff] }
  0x7a   :  { %11220 = vst [vmem:[#allocation151_spill] sm:$0xff] %v9006_v51  ;;  %11221 = vst [vmem:[#allocation152_spill] sm:$0xff] %v9009_v55  ;;  %v9012_v52 = vld [vmem:[%s8465_s14 + $0x150] sm:$0xff]  ;;  %v9015_v45 = vld [vmem:[%s8465_s14 + $0x158] sm:$0xff] }
  0x7b   :  { %11222 = vst [vmem:[#allocation153_spill] sm:$0xff] %v9012_v52  ;;  %11223 = vst [vmem:[#allocation154_spill] sm:$0xff] %v9015_v45  ;;  %v9018_v46 = vld [vmem:[%s8465_s14 + $0x160] sm:$0xff]  ;;  %v9021_v49 = vld [vmem:[%s8465_s14 + $0x168] sm:$0xff] }
  0x7c   :  { %11224 = vst [vmem:[#allocation155_spill] sm:$0xff] %v9018_v46  ;;  %11225 = vst [vmem:[#allocation156_spill] sm:$0xff] %v9021_v49  ;;  %v9024_v42 = vld [vmem:[%s8465_s14 + $0x170] sm:$0xff]  ;;  %v9027_v38 = vld [vmem:[%s8465_s14 + $0x178] sm:$0xff] }
  0x7d   :  { %11226 = vst [vmem:[#allocation157_spill] sm:$0xff] %v9024_v42  ;;  %11227 = vst [vmem:[#allocation158_spill] sm:$0xff] %v9027_v38  ;;  %v9030_v48 = vld [vmem:[%s8465_s14 + $0x180] sm:$0xff]  ;;  %v9033_v51 = vld [vmem:[%s8465_s14 + $0x188] sm:$0xff] }
  0x7e   :  { %11228 = vst [vmem:[#allocation159_spill] sm:$0xff] %v9030_v48  ;;  %11229 = vst [vmem:[#allocation160_spill] sm:$0xff] %v9033_v51  ;;  %v9036_v55 = vld [vmem:[%s8465_s14 + $0x190] sm:$0xff]  ;;  %v9039_v47 = vld [vmem:[%s8465_s14 + $0x198] sm:$0xff] }
  0x7f   :  { %11230 = vst [vmem:[#allocation161_spill] sm:$0xff] %v9036_v55  ;;  %11231 = vst [vmem:[#allocation162_spill] sm:$0xff] %v9039_v47  ;;  %v9042_v52 = vld [vmem:[%s8465_s14 + $0x1a0] sm:$0xff]  ;;  %v9045_v45 = vld [vmem:[%s8465_s14 + $0x1a8] sm:$0xff] }
  0x80   :  { %11232 = vst [vmem:[#allocation163_spill] sm:$0xff] %v9042_v52  ;;  %11233 = vst [vmem:[#allocation164_spill] sm:$0xff] %v9045_v45  ;;  %v9048_v41 = vld [vmem:[%s8465_s14 + $0x1b0] sm:$0xff]  ;;  %v9051_v46 = vld [vmem:[%s8465_s14 + $0x1b8] sm:$0xff] }
  0x81   :  { %11234 = vst [vmem:[#allocation165_spill] sm:$0xff] %v9048_v41  ;;  %11235 = vst [vmem:[#allocation166_spill] sm:$0xff] %v9051_v46  ;;  %v9054_v49 = vld [vmem:[%s8465_s14 + $0x1c0] sm:$0xff]  ;;  %v9057_v42 = vld [vmem:[%s8465_s14 + $0x1c8] sm:$0xff] }
  0x82   :  { %11236 = vst [vmem:[#allocation167_spill] sm:$0xff] %v9054_v49  ;;  %11237 = vst [vmem:[#allocation168_spill] sm:$0xff] %v9057_v42  ;;  %v9060_v38 = vld [vmem:[%s8465_s14 + $0x1d0] sm:$0xff]  ;;  %v9063_v48 = vld [vmem:[%s8465_s14 + $0x1d8] sm:$0xff] }
  0x83   :  { %11238 = vst [vmem:[#allocation169_spill] sm:$0xff] %v9060_v38  ;;  %11239 = vst [vmem:[#allocation170_spill] sm:$0xff] %v9063_v48 }
  0x84   :  { %523 = vsyncadd [#allocation10 + $0x1], 7680  ;;  %v9066_v38 = vld [vmem:[%s8500_s27] sm:$0xff]  ;;  %v9069_v48 = vld [vmem:[%s8500_s27 + $0x8] sm:$0xff] }
  0x85   :  { %11240 = vst [vmem:[#allocation171_spill] sm:$0xff] %v9066_v38  ;;  %11241 = vst [vmem:[#allocation172_spill] sm:$0xff] %v9069_v48  ;;  %v9072_v42 = vld [vmem:[%s8500_s27 + $0x10] sm:$0xff]  ;;  %v9075_v49 = vld [vmem:[%s8500_s27 + $0x18] sm:$0xff] }
  0x86   :  { %11242 = vst [vmem:[#allocation173_spill] sm:$0xff] %v9072_v42  ;;  %11243 = vst [vmem:[#allocation174_spill] sm:$0xff] %v9075_v49  ;;  %v9078_v46 = vld [vmem:[%s8500_s27 + $0x20] sm:$0xff]  ;;  %v9081_v41 = vld [vmem:[%s8500_s27 + $0x28] sm:$0xff] }
  0x87   :  { %11244 = vst [vmem:[#allocation175_spill] sm:$0xff] %v9078_v46  ;;  %11245 = vst [vmem:[#allocation176_spill] sm:$0xff] %v9081_v41  ;;  %v9084_v45 = vld [vmem:[%s8500_s27 + $0x30] sm:$0xff]  ;;  %v9087_v38 = vld [vmem:[%s8500_s27 + $0x38] sm:$0xff] }
  0x88   :  { %11246 = vst [vmem:[#allocation177_spill] sm:$0xff] %v9084_v45  ;;  %11247 = vst [vmem:[#allocation178_spill] sm:$0xff] %v9087_v38  ;;  %v9090_v48 = vld [vmem:[%s8500_s27 + $0x40] sm:$0xff]  ;;  %v9093_v42 = vld [vmem:[%s8500_s27 + $0x48] sm:$0xff] }
  0x89   :  { %11248 = vst [vmem:[#allocation179_spill] sm:$0xff] %v9090_v48  ;;  %11249 = vst [vmem:[#allocation180_spill] sm:$0xff] %v9093_v42  ;;  %v9096_v49 = vld [vmem:[%s8500_s27 + $0x50] sm:$0xff]  ;;  %v9099_v46 = vld [vmem:[%s8500_s27 + $0x58] sm:$0xff] }
  0x8a   :  { %11250 = vst [vmem:[#allocation181_spill] sm:$0xff] %v9096_v49  ;;  %11251 = vst [vmem:[#allocation182_spill] sm:$0xff] %v9099_v46  ;;  %v9102_v41 = vld [vmem:[%s8500_s27 + $0x60] sm:$0xff]  ;;  %v9105_v45 = vld [vmem:[%s8500_s27 + $0x68] sm:$0xff] }
  0x8b   :  { %11252 = vst [vmem:[#allocation183_spill] sm:$0xff] %v9102_v41  ;;  %11253 = vst [vmem:[#allocation184_spill] sm:$0xff] %v9105_v45  ;;  %v9108_v38 = vld [vmem:[%s8500_s27 + $0x70] sm:$0xff]  ;;  %v9111_v48 = vld [vmem:[%s8500_s27 + $0x78] sm:$0xff] }
  0x8c   :  { %11254 = vst [vmem:[#allocation185_spill] sm:$0xff] %v9108_v38  ;;  %11255 = vst [vmem:[#allocation186_spill] sm:$0xff] %v9111_v48  ;;  %v9114_v42 = vld [vmem:[%s8500_s27 + $0x80] sm:$0xff]  ;;  %v9117_v52 = vld [vmem:[%s8500_s27 + $0x88] sm:$0xff] }
  0x8d   :  { %11256 = vst [vmem:[#allocation187_spill] sm:$0xff] %v9114_v42  ;;  %11257 = vst [vmem:[#allocation188_spill] sm:$0xff] %v9117_v52  ;;  %v9120_v49 = vld [vmem:[%s8500_s27 + $0x90] sm:$0xff]  ;;  %v9123_v46 = vld [vmem:[%s8500_s27 + $0x98] sm:$0xff] }
  0x8e   :  { %11258 = vst [vmem:[#allocation189_spill] sm:$0xff] %v9120_v49  ;;  %11259 = vst [vmem:[#allocation190_spill] sm:$0xff] %v9123_v46  ;;  %v9126_v47 = vld [vmem:[%s8500_s27 + $0xa0] sm:$0xff]  ;;  %v9129_v41 = vld [vmem:[%s8500_s27 + $0xa8] sm:$0xff] }
  0x8f   :  { %11260 = vst [vmem:[#allocation191_spill] sm:$0xff] %v9126_v47  ;;  %11261 = vst [vmem:[#allocation192_spill] sm:$0xff] %v9129_v41  ;;  %v9132_v45 = vld [vmem:[%s8500_s27 + $0xb0] sm:$0xff]  ;;  %v9135_v55 = vld [vmem:[%s8500_s27 + $0xb8] sm:$0xff] }
  0x90   :  { %11262 = vst [vmem:[#allocation193_spill] sm:$0xff] %v9132_v45  ;;  %11263 = vst [vmem:[#allocation194_spill] sm:$0xff] %v9135_v55  ;;  %v9138_v38 = vld [vmem:[%s8500_s27 + $0xc0] sm:$0xff]  ;;  %v9141_v48 = vld [vmem:[%s8500_s27 + $0xc8] sm:$0xff] }
  0x91   :  { %11264 = vst [vmem:[#allocation195_spill] sm:$0xff] %v9138_v38  ;;  %11265 = vst [vmem:[#allocation196_spill] sm:$0xff] %v9141_v48  ;;  %v9144_v51 = vld [vmem:[%s8500_s27 + $0xd0] sm:$0xff]  ;;  %v9147_v42 = vld [vmem:[%s8500_s27 + $0xd8] sm:$0xff] }
  0x92   :  { %11266 = vst [vmem:[#allocation197_spill] sm:$0xff] %v9144_v51  ;;  %11267 = vst [vmem:[#allocation198_spill] sm:$0xff] %v9147_v42  ;;  %v9150_v52 = vld [vmem:[%s8500_s27 + $0xe0] sm:$0xff]  ;;  %v9153_v49 = vld [vmem:[%s8500_s27 + $0xe8] sm:$0xff] }
  0x93   :  { %11268 = vst [vmem:[#allocation199_spill] sm:$0xff] %v9150_v52  ;;  %11269 = vst [vmem:[#allocation200_spill] sm:$0xff] %v9153_v49  ;;  %v9156_v46 = vld [vmem:[%s8500_s27 + $0xf0] sm:$0xff]  ;;  %v9159_v47 = vld [vmem:[%s8500_s27 + $0xf8] sm:$0xff] }
  0x94   :  { %11270 = vst [vmem:[#allocation201_spill] sm:$0xff] %v9156_v46  ;;  %11271 = vst [vmem:[#allocation202_spill] sm:$0xff] %v9159_v47 }
  0x95   :  { %628 = vsyncadd [#allocation10 + $0x2], 4096  ;;  %v9162_v46 = vld [vmem:[%s8505_s4] sm:$0xff]  ;;  %v9165_v52 = vld [vmem:[%s8505_s4 + $0x8] sm:$0xff] }
  0x96   :  { %11272 = vst [vmem:[#allocation203_spill] sm:$0xff] %v9162_v46  ;;  %11273 = vst [vmem:[#allocation204_spill] sm:$0xff] %v9165_v52  ;;  %v9168_v47 = vld [vmem:[%s8505_s4 + $0x10] sm:$0xff]  ;;  %v9171_v49 = vld [vmem:[%s8505_s4 + $0x18] sm:$0xff] }
  0x97   :  { %11274 = vst [vmem:[#allocation205_spill] sm:$0xff] %v9168_v47  ;;  %11275 = vst [vmem:[#allocation206_spill] sm:$0xff] %v9171_v49  ;;  %v9174_v51 = vld [vmem:[%s8505_s4 + $0x20] sm:$0xff]  ;;  %v9177_v38 = vld [vmem:[%s8505_s4 + $0x28] sm:$0xff] }
  0x98   :  { %11276 = vst [vmem:[#allocation207_spill] sm:$0xff] %v9174_v51  ;;  %11277 = vst [vmem:[#allocation208_spill] sm:$0xff] %v9177_v38  ;;  %v9180_v42 = vld [vmem:[%s8505_s4 + $0x30] sm:$0xff]  ;;  %v9183_v46 = vld [vmem:[%s8505_s4 + $0x38] sm:$0xff] }
  0x99   :  { %11278 = vst [vmem:[#allocation209_spill] sm:$0xff] %v9180_v42  ;;  %11279 = vst [vmem:[#allocation210_spill] sm:$0xff] %v9183_v46  ;;  %v9186_v52 = vld [vmem:[%s8505_s4 + $0x40] sm:$0xff]  ;;  %v9189_v47 = vld [vmem:[%s8505_s4 + $0x48] sm:$0xff] }
  0x9a   :  { %11280 = vst [vmem:[#allocation211_spill] sm:$0xff] %v9186_v52  ;;  %11281 = vst [vmem:[#allocation212_spill] sm:$0xff] %v9189_v47  ;;  %v9192_v49 = vld [vmem:[%s8505_s4 + $0x50] sm:$0xff]  ;;  %v9195_v51 = vld [vmem:[%s8505_s4 + $0x58] sm:$0xff] }
  0x9b   :  { %11282 = vst [vmem:[#allocation213_spill] sm:$0xff] %v9192_v49  ;;  %11283 = vst [vmem:[#allocation214_spill] sm:$0xff] %v9195_v51  ;;  %v9198_v38 = vld [vmem:[%s8505_s4 + $0x60] sm:$0xff]  ;;  %v9201_v42 = vld [vmem:[%s8505_s4 + $0x68] sm:$0xff] }
  0x9c   :  { %11284 = vst [vmem:[#allocation215_spill] sm:$0xff] %v9198_v38  ;;  %11285 = vst [vmem:[#allocation216_spill] sm:$0xff] %v9201_v42  ;;  %v9204_v46 = vld [vmem:[%s8505_s4 + $0x70] sm:$0xff]  ;;  %v9207_v52 = vld [vmem:[%s8505_s4 + $0x78] sm:$0xff] }
  0x9d   :  { %11286 = vst [vmem:[#allocation217_spill] sm:$0xff] %v9204_v46  ;;  %11287 = vst [vmem:[#allocation218_spill] sm:$0xff] %v9207_v52  ;;  %v9210_v47 = vld [vmem:[%s8505_s4 + $0x80] sm:$0xff]  ;;  %v9213_v49 = vld [vmem:[%s8505_s4 + $0x88] sm:$0xff] }
  0x9e   :  { %11288 = vst [vmem:[#allocation219_spill] sm:$0xff] %v9210_v47  ;;  %11289 = vst [vmem:[#allocation220_spill] sm:$0xff] %v9213_v49  ;;  %v9216_v51 = vld [vmem:[%s8505_s4 + $0x90] sm:$0xff]  ;;  %v9219_v38 = vld [vmem:[%s8505_s4 + $0x98] sm:$0xff] }
  0x9f   :  { %11290 = vst [vmem:[#allocation221_spill] sm:$0xff] %v9216_v51  ;;  %11291 = vst [vmem:[#allocation222_spill] sm:$0xff] %v9219_v38  ;;  %v9222_v42 = vld [vmem:[%s8505_s4 + $0xa0] sm:$0xff]  ;;  %v9225_v48 = vld [vmem:[%s8505_s4 + $0xa8] sm:$0xff] }
  0xa0   :  { %11292 = vst [vmem:[#allocation223_spill] sm:$0xff] %v9222_v42  ;;  %11293 = vst [vmem:[#allocation224_spill] sm:$0xff] %v9225_v48  ;;  %v9228_v46 = vld [vmem:[%s8505_s4 + $0xb0] sm:$0xff]  ;;  %v9231_v52 = vld [vmem:[%s8505_s4 + $0xb8] sm:$0xff] }
  0xa1   :  { %11294 = vst [vmem:[#allocation225_spill] sm:$0xff] %v9228_v46  ;;  %11295 = vst [vmem:[#allocation226_spill] sm:$0xff] %v9231_v52  ;;  %v9234_v45 = vld [vmem:[%s8505_s4 + $0xc0] sm:$0xff]  ;;  %v9237_v47 = vld [vmem:[%s8505_s4 + $0xc8] sm:$0xff] }
  0xa2   :  { %11296 = vst [vmem:[#allocation227_spill] sm:$0xff] %v9234_v45  ;;  %11297 = vst [vmem:[#allocation228_spill] sm:$0xff] %v9237_v47  ;;  %v9240_v49 = vld [vmem:[%s8505_s4 + $0xd0] sm:$0xff]  ;;  %v9243_v55 = vld [vmem:[%s8505_s4 + $0xd8] sm:$0xff] }
  0xa3   :  { %11298 = vst [vmem:[#allocation229_spill] sm:$0xff] %v9240_v49  ;;  %11299 = vst [vmem:[#allocation230_spill] sm:$0xff] %v9243_v55  ;;  %v9246_v51 = vld [vmem:[%s8505_s4 + $0xe0] sm:$0xff]  ;;  %v9249_v38 = vld [vmem:[%s8505_s4 + $0xe8] sm:$0xff] }
  0xa4   :  { %11300 = vst [vmem:[#allocation231_spill] sm:$0xff] %v9246_v51  ;;  %11301 = vst [vmem:[#allocation232_spill] sm:$0xff] %v9249_v38  ;;  %v9252_v41 = vld [vmem:[%s8505_s4 + $0xf0] sm:$0xff]  ;;  %v9255_v42 = vld [vmem:[%s8505_s4 + $0xf8] sm:$0xff] }
  0xa5   :  { %11302 = vst [vmem:[#allocation233_spill] sm:$0xff] %v9252_v41  ;;  %11303 = vst [vmem:[#allocation234_spill] sm:$0xff] %v9255_v42  ;;  %v9258_v48 = vld [vmem:[%s8505_s4 + $0x100] sm:$0xff]  ;;  %v9261_v46 = vld [vmem:[%s8505_s4 + $0x108] sm:$0xff] }
  0xa6   :  { %11304 = vst [vmem:[#allocation235_spill] sm:$0xff] %v9258_v48  ;;  %11305 = vst [vmem:[#allocation236_spill] sm:$0xff] %v9261_v46  ;;  %v9264_v52 = vld [vmem:[%s8505_s4 + $0x110] sm:$0xff]  ;;  %v9267_v45 = vld [vmem:[%s8505_s4 + $0x118] sm:$0xff] }
  0xa7   :  { %11306 = vst [vmem:[#allocation237_spill] sm:$0xff] %v9264_v52  ;;  %11307 = vst [vmem:[#allocation238_spill] sm:$0xff] %v9267_v45 }
  0xa8   :  { %741 = vsyncadd [#allocation10 + $0x3], 4608  ;;  %v9270_v52 = vld [vmem:[%s8540_s12] sm:$0xff]  ;;  %v9273_v45 = vld [vmem:[%s8540_s12 + $0x8] sm:$0xff] }
  0xa9   :  { %11308 = vst [vmem:[#allocation239_spill] sm:$0xff] %v9270_v52  ;;  %11309 = vst [vmem:[#allocation240_spill] sm:$0xff] %v9273_v45  ;;  %v9276_v46 = vld [vmem:[%s8540_s12 + $0x10] sm:$0xff]  ;;  %v9279_v48 = vld [vmem:[%s8540_s12 + $0x18] sm:$0xff] }
  0xaa   :  { %11310 = vst [vmem:[#allocation241_spill] sm:$0xff] %v9276_v46  ;;  %11311 = vst [vmem:[#allocation242_spill] sm:$0xff] %v9279_v48  ;;  %v9282_v42 = vld [vmem:[%s8540_s12 + $0x20] sm:$0xff]  ;;  %v9285_v41 = vld [vmem:[%s8540_s12 + $0x28] sm:$0xff] }
  0xab   :  { %11312 = vst [vmem:[#allocation243_spill] sm:$0xff] %v9282_v42  ;;  %11313 = vst [vmem:[#allocation244_spill] sm:$0xff] %v9285_v41  ;;  %v9288_v38 = vld [vmem:[%s8540_s12 + $0x30] sm:$0xff]  ;;  %v9291_v52 = vld [vmem:[%s8540_s12 + $0x38] sm:$0xff] }
  0xac   :  { %11314 = vst [vmem:[#allocation245_spill] sm:$0xff] %v9288_v38  ;;  %11315 = vst [vmem:[#allocation246_spill] sm:$0xff] %v9291_v52  ;;  %v9294_v45 = vld [vmem:[%s8540_s12 + $0x40] sm:$0xff]  ;;  %v9297_v46 = vld [vmem:[%s8540_s12 + $0x48] sm:$0xff] }
  0xad   :  { %11316 = vst [vmem:[#allocation247_spill] sm:$0xff] %v9294_v45  ;;  %11317 = vst [vmem:[#allocation248_spill] sm:$0xff] %v9297_v46  ;;  %v9300_v48 = vld [vmem:[%s8540_s12 + $0x50] sm:$0xff]  ;;  %v9303_v42 = vld [vmem:[%s8540_s12 + $0x58] sm:$0xff] }
  0xae   :  { %11318 = vst [vmem:[#allocation249_spill] sm:$0xff] %v9300_v48  ;;  %11319 = vst [vmem:[#allocation250_spill] sm:$0xff] %v9303_v42  ;;  %v9306_v41 = vld [vmem:[%s8540_s12 + $0x60] sm:$0xff]  ;;  %v9309_v38 = vld [vmem:[%s8540_s12 + $0x68] sm:$0xff] }
  0xaf   :  { %11320 = vst [vmem:[#allocation251_spill] sm:$0xff] %v9306_v41  ;;  %11321 = vst [vmem:[#allocation252_spill] sm:$0xff] %v9309_v38  ;;  %v9312_v52 = vld [vmem:[%s8540_s12 + $0x70] sm:$0xff]  ;;  %v9315_v45 = vld [vmem:[%s8540_s12 + $0x78] sm:$0xff] }
  0xb0   :  { %11322 = vst [vmem:[#allocation253_spill] sm:$0xff] %v9312_v52  ;;  %11323 = vst [vmem:[#allocation254_spill] sm:$0xff] %v9315_v45  ;;  %v9318_v46 = vld [vmem:[%s8540_s12 + $0x80] sm:$0xff]  ;;  %v9321_v51 = vld [vmem:[%s8540_s12 + $0x88] sm:$0xff] }
  0xb1   :  { %11324 = vst [vmem:[#allocation255_spill] sm:$0xff] %v9318_v46  ;;  %11325 = vst [vmem:[#allocation256_spill] sm:$0xff] %v9321_v51  ;;  %v9324_v48 = vld [vmem:[%s8540_s12 + $0x90] sm:$0xff]  ;;  %v9327_v42 = vld [vmem:[%s8540_s12 + $0x98] sm:$0xff] }
  0xb2   :  { %11326 = vst [vmem:[#allocation257_spill] sm:$0xff] %v9324_v48  ;;  %11327 = vst [vmem:[#allocation258_spill] sm:$0xff] %v9327_v42  ;;  %v9330_v55 = vld [vmem:[%s8540_s12 + $0xa0] sm:$0xff]  ;;  %v9333_v41 = vld [vmem:[%s8540_s12 + $0xa8] sm:$0xff] }
  0xb3   :  { %11328 = vst [vmem:[#allocation259_spill] sm:$0xff] %v9330_v55  ;;  %11329 = vst [vmem:[#allocation260_spill] sm:$0xff] %v9333_v41  ;;  %v9336_v38 = vld [vmem:[%s8540_s12 + $0xb0] sm:$0xff]  ;;  %v9339_v49 = vld [vmem:[%s8540_s12 + $0xb8] sm:$0xff] }
  0xb4   :  { %11330 = vst [vmem:[#allocation261_spill] sm:$0xff] %v9336_v38  ;;  %11331 = vst [vmem:[#allocation262_spill] sm:$0xff] %v9339_v49  ;;  %v9342_v52 = vld [vmem:[%s8540_s12 + $0xc0] sm:$0xff]  ;;  %v9345_v45 = vld [vmem:[%s8540_s12 + $0xc8] sm:$0xff] }
  0xb5   :  { %11332 = vst [vmem:[#allocation263_spill] sm:$0xff] %v9342_v52  ;;  %11333 = vst [vmem:[#allocation264_spill] sm:$0xff] %v9345_v45  ;;  %v9348_v47 = vld [vmem:[%s8540_s12 + $0xd0] sm:$0xff]  ;;  %v9351_v46 = vld [vmem:[%s8540_s12 + $0xd8] sm:$0xff] }
  0xb6   :  { %11334 = vst [vmem:[#allocation265_spill] sm:$0xff] %v9348_v47  ;;  %11335 = vst [vmem:[#allocation266_spill] sm:$0xff] %v9351_v46  ;;  %v9354_v51 = vld [vmem:[%s8540_s12 + $0xe0] sm:$0xff]  ;;  %v9357_v48 = vld [vmem:[%s8540_s12 + $0xe8] sm:$0xff] }
  0xb7   :  { %11336 = vst [vmem:[#allocation267_spill] sm:$0xff] %v9354_v51  ;;  %11337 = vst [vmem:[#allocation268_spill] sm:$0xff] %v9357_v48  ;;  %v9360_v42 = vld [vmem:[%s8540_s12 + $0xf0] sm:$0xff]  ;;  %v9363_v55 = vld [vmem:[%s8540_s12 + $0xf8] sm:$0xff] }
  0xb8   :  { %11338 = vst [vmem:[#allocation269_spill] sm:$0xff] %v9360_v42  ;;  %11339 = vst [vmem:[#allocation270_spill] sm:$0xff] %v9363_v55 }
  0xb9   :  { %846 = vsyncadd [#allocation10 + $0x4], 4096  ;;  %v9366_v51 = vld [vmem:[%s8545_s24] sm:$0xff]  ;;  %v9369_v52 = vld [vmem:[%s8545_s24 + $0x8] sm:$0xff] }
  0xba   :  { %11340 = vst [vmem:[#allocation271_spill] sm:$0xff] %v9366_v51  ;;  %11341 = vst [vmem:[#allocation272_spill] sm:$0xff] %v9369_v52  ;;  %v9372_v48 = vld [vmem:[%s8545_s24 + $0x10] sm:$0xff]  ;;  %v9375_v45 = vld [vmem:[%s8545_s24 + $0x18] sm:$0xff] }
  0xbb   :  { %11342 = vst [vmem:[#allocation273_spill] sm:$0xff] %v9372_v48  ;;  %11343 = vst [vmem:[#allocation274_spill] sm:$0xff] %v9375_v45  ;;  %v9378_v42 = vld [vmem:[%s8545_s24 + $0x20] sm:$0xff]  ;;  %v9381_v47 = vld [vmem:[%s8545_s24 + $0x28] sm:$0xff] }
  0xbc   :  { %11344 = vst [vmem:[#allocation275_spill] sm:$0xff] %v9378_v42  ;;  %11345 = vst [vmem:[#allocation276_spill] sm:$0xff] %v9381_v47  ;;  %v9384_v41 = vld [vmem:[%s8545_s24 + $0x30] sm:$0xff]  ;;  %v9387_v51 = vld [vmem:[%s8545_s24 + $0x38] sm:$0xff] }
  0xbd   :  { %11346 = vst [vmem:[#allocation277_spill] sm:$0xff] %v9384_v41  ;;  %11347 = vst [vmem:[#allocation278_spill] sm:$0xff] %v9387_v51  ;;  %v9390_v52 = vld [vmem:[%s8545_s24 + $0x40] sm:$0xff]  ;;  %v9393_v48 = vld [vmem:[%s8545_s24 + $0x48] sm:$0xff] }
  0xbe   :  { %11348 = vst [vmem:[#allocation279_spill] sm:$0xff] %v9390_v52  ;;  %11349 = vst [vmem:[#allocation280_spill] sm:$0xff] %v9393_v48  ;;  %v9396_v45 = vld [vmem:[%s8545_s24 + $0x50] sm:$0xff]  ;;  %v9399_v42 = vld [vmem:[%s8545_s24 + $0x58] sm:$0xff] }
  0xbf   :  { %11350 = vst [vmem:[#allocation281_spill] sm:$0xff] %v9396_v45  ;;  %11351 = vst [vmem:[#allocation282_spill] sm:$0xff] %v9399_v42  ;;  %v9402_v47 = vld [vmem:[%s8545_s24 + $0x60] sm:$0xff]  ;;  %v9405_v41 = vld [vmem:[%s8545_s24 + $0x68] sm:$0xff] }
  0xc0   :  { %11352 = vst [vmem:[#allocation283_spill] sm:$0xff] %v9402_v47  ;;  %11353 = vst [vmem:[#allocation284_spill] sm:$0xff] %v9405_v41  ;;  %v9408_v51 = vld [vmem:[%s8545_s24 + $0x70] sm:$0xff]  ;;  %v9411_v52 = vld [vmem:[%s8545_s24 + $0x78] sm:$0xff] }
  0xc1   :  { %11354 = vst [vmem:[#allocation285_spill] sm:$0xff] %v9408_v51  ;;  %11355 = vst [vmem:[#allocation286_spill] sm:$0xff] %v9411_v52  ;;  %v9414_v48 = vld [vmem:[%s8545_s24 + $0x80] sm:$0xff]  ;;  %v9417_v45 = vld [vmem:[%s8545_s24 + $0x88] sm:$0xff] }
  0xc2   :  { %11356 = vst [vmem:[#allocation287_spill] sm:$0xff] %v9414_v48  ;;  %11357 = vst [vmem:[#allocation288_spill] sm:$0xff] %v9417_v45  ;;  %v9420_v42 = vld [vmem:[%s8545_s24 + $0x90] sm:$0xff]  ;;  %v9423_v47 = vld [vmem:[%s8545_s24 + $0x98] sm:$0xff] }
  0xc3   :  { %11358 = vst [vmem:[#allocation289_spill] sm:$0xff] %v9420_v42  ;;  %11359 = vst [vmem:[#allocation290_spill] sm:$0xff] %v9423_v47  ;;  %v9426_v41 = vld [vmem:[%s8545_s24 + $0xa0] sm:$0xff]  ;;  %v9429_v51 = vld [vmem:[%s8545_s24 + $0xa8] sm:$0xff] }
  0xc4   :  { %11360 = vst [vmem:[#allocation291_spill] sm:$0xff] %v9426_v41  ;;  %11361 = vst [vmem:[#allocation292_spill] sm:$0xff] %v9429_v51  ;;  %v9432_v52 = vld [vmem:[%s8545_s24 + $0xb0] sm:$0xff]  ;;  %v9435_v48 = vld [vmem:[%s8545_s24 + $0xb8] sm:$0xff] }
  0xc5   :  { %11362 = vst [vmem:[#allocation293_spill] sm:$0xff] %v9432_v52  ;;  %11363 = vst [vmem:[#allocation294_spill] sm:$0xff] %v9435_v48  ;;  %v9438_v45 = vld [vmem:[%s8545_s24 + $0xc0] sm:$0xff]  ;;  %v9441_v42 = vld [vmem:[%s8545_s24 + $0xc8] sm:$0xff] }
  0xc6   :  { %11364 = vst [vmem:[#allocation295_spill] sm:$0xff] %v9438_v45  ;;  %11365 = vst [vmem:[#allocation296_spill] sm:$0xff] %v9441_v42  ;;  %v9444_v47 = vld [vmem:[%s8545_s24 + $0xd0] sm:$0xff]  ;;  %v9447_v41 = vld [vmem:[%s8545_s24 + $0xd8] sm:$0xff] }
  0xc7   :  { %11366 = vst [vmem:[#allocation297_spill] sm:$0xff] %v9444_v47  ;;  %11367 = vst [vmem:[#allocation298_spill] sm:$0xff] %v9447_v41  ;;  %v9450_v51 = vld [vmem:[%s8545_s24 + $0xe0] sm:$0xff]  ;;  %v9453_v52 = vld [vmem:[%s8545_s24 + $0xe8] sm:$0xff] }
  0xc8   :  { %11368 = vst [vmem:[#allocation299_spill] sm:$0xff] %v9450_v51  ;;  %11369 = vst [vmem:[#allocation300_spill] sm:$0xff] %v9453_v52  ;;  %v9456_v48 = vld [vmem:[%s8545_s24 + $0xf0] sm:$0xff]  ;;  %v9459_v45 = vld [vmem:[%s8545_s24 + $0xf8] sm:$0xff] }
  0xc9   :  { %11370 = vst [vmem:[#allocation301_spill] sm:$0xff] %v9456_v48  ;;  %11371 = vst [vmem:[#allocation302_spill] sm:$0xff] %v9459_v45  ;;  %v9462_v42 = vld [vmem:[%s8545_s24 + $0x100] sm:$0xff]  ;;  %v9465_v55 = vld [vmem:[%s8545_s24 + $0x108] sm:$0xff] }
  0xca   :  { %11372 = vst [vmem:[#allocation303_spill] sm:$0xff] %v9462_v42  ;;  %11373 = vst [vmem:[#allocation304_spill] sm:$0xff] %v9465_v55  ;;  %v9468_v47 = vld [vmem:[%s8545_s24 + $0x110] sm:$0xff]  ;;  %v9471_v41 = vld [vmem:[%s8545_s24 + $0x118] sm:$0xff] }
  0xcb   :  { %11374 = vst [vmem:[#allocation305_spill] sm:$0xff] %v9468_v47  ;;  %11375 = vst [vmem:[#allocation306_spill] sm:$0xff] %v9471_v41  ;;  %v9474_v46 = vld [vmem:[%s8545_s24 + $0x120] sm:$0xff]  ;;  %v9477_v51 = vld [vmem:[%s8545_s24 + $0x128] sm:$0xff] }
  0xcc   :  { %11376 = vst [vmem:[#allocation307_spill] sm:$0xff] %v9474_v46  ;;  %11377 = vst [vmem:[#allocation308_spill] sm:$0xff] %v9477_v51  ;;  %v9480_v52 = vld [vmem:[%s8545_s24 + $0x130] sm:$0xff]  ;;  %v9483_v38 = vld [vmem:[%s8545_s24 + $0x138] sm:$0xff] }
  0xcd   :  { %11378 = vst [vmem:[#allocation309_spill] sm:$0xff] %v9480_v52  ;;  %11379 = vst [vmem:[#allocation310_spill] sm:$0xff] %v9483_v38  ;;  %v9486_v48 = vld [vmem:[%s8545_s24 + $0x140] sm:$0xff]  ;;  %v9489_v45 = vld [vmem:[%s8545_s24 + $0x148] sm:$0xff] }
  0xce   :  { %11380 = vst [vmem:[#allocation311_spill] sm:$0xff] %v9486_v48  ;;  %11381 = vst [vmem:[#allocation312_spill] sm:$0xff] %v9489_v45  ;;  %v9492_v49 = vld [vmem:[%s8545_s24 + $0x150] sm:$0xff]  ;;  %v9495_v42 = vld [vmem:[%s8545_s24 + $0x158] sm:$0xff] }
  0xcf   :  { %11382 = vst [vmem:[#allocation313_spill] sm:$0xff] %v9492_v49  ;;  %11383 = vst [vmem:[#allocation314_spill] sm:$0xff] %v9495_v42  ;;  %v9498_v55 = vld [vmem:[%s8545_s24 + $0x160] sm:$0xff]  ;;  %v9501_v47 = vld [vmem:[%s8545_s24 + $0x168] sm:$0xff] }
  0xd0   :  { %11384 = vst [vmem:[#allocation315_spill] sm:$0xff] %v9498_v55  ;;  %11385 = vst [vmem:[#allocation316_spill] sm:$0xff] %v9501_v47  ;;  %v9504_v41 = vld [vmem:[%s8545_s24 + $0x170] sm:$0xff]  ;;  %v9507_v46 = vld [vmem:[%s8545_s24 + $0x178] sm:$0xff] }
  0xd1   :  { %11386 = vst [vmem:[#allocation317_spill] sm:$0xff] %v9504_v41  ;;  %11387 = vst [vmem:[#allocation318_spill] sm:$0xff] %v9507_v46 }
  0xd2   :  { %983 = vsyncadd [#allocation10 + $0x5], 6144  ;;  %v9510_v55 = vld [vmem:[%s8565_s19] sm:$0xff]  ;;  %v9513_v46 = vld [vmem:[%s8565_s19 + $0x8] sm:$0xff] }
  0xd3   :  { %11388 = vst [vmem:[#allocation319_spill] sm:$0xff] %v9510_v55  ;;  %11389 = vst [vmem:[#allocation320_spill] sm:$0xff] %v9513_v46  ;;  %v9516_v47 = vld [vmem:[%s8565_s19 + $0x10] sm:$0xff]  ;;  %v9519_v49 = vld [vmem:[%s8565_s19 + $0x18] sm:$0xff] }
  0xd4   :  { %11390 = vst [vmem:[#allocation321_spill] sm:$0xff] %v9516_v47  ;;  %11391 = vst [vmem:[#allocation322_spill] sm:$0xff] %v9519_v49  ;;  %v9522_v41 = vld [vmem:[%s8565_s19 + $0x20] sm:$0xff]  ;;  %v9525_v42 = vld [vmem:[%s8565_s19 + $0x28] sm:$0xff] }
  0xd5   :  { %11392 = vst [vmem:[#allocation323_spill] sm:$0xff] %v9522_v41  ;;  %11393 = vst [vmem:[#allocation324_spill] sm:$0xff] %v9525_v42  ;;  %v9528_v45 = vld [vmem:[%s8565_s19 + $0x30] sm:$0xff]  ;;  %v9531_v55 = vld [vmem:[%s8565_s19 + $0x38] sm:$0xff] }
  0xd6   :  { %11394 = vst [vmem:[#allocation325_spill] sm:$0xff] %v9528_v45  ;;  %11395 = vst [vmem:[#allocation326_spill] sm:$0xff] %v9531_v55  ;;  %v9534_v46 = vld [vmem:[%s8565_s19 + $0x40] sm:$0xff]  ;;  %v9537_v47 = vld [vmem:[%s8565_s19 + $0x48] sm:$0xff] }
  0xd7   :  { %11396 = vst [vmem:[#allocation327_spill] sm:$0xff] %v9534_v46  ;;  %11397 = vst [vmem:[#allocation328_spill] sm:$0xff] %v9537_v47  ;;  %v9540_v49 = vld [vmem:[%s8565_s19 + $0x50] sm:$0xff]  ;;  %v9543_v41 = vld [vmem:[%s8565_s19 + $0x58] sm:$0xff] }
  0xd8   :  { %11398 = vst [vmem:[#allocation329_spill] sm:$0xff] %v9540_v49  ;;  %11399 = vst [vmem:[#allocation330_spill] sm:$0xff] %v9543_v41  ;;  %v9546_v42 = vld [vmem:[%s8565_s19 + $0x60] sm:$0xff]  ;;  %v9549_v45 = vld [vmem:[%s8565_s19 + $0x68] sm:$0xff] }
  0xd9   :  { %11400 = vst [vmem:[#allocation331_spill] sm:$0xff] %v9546_v42  ;;  %11401 = vst [vmem:[#allocation332_spill] sm:$0xff] %v9549_v45  ;;  %v9552_v55 = vld [vmem:[%s8565_s19 + $0x70] sm:$0xff]  ;;  %v9555_v46 = vld [vmem:[%s8565_s19 + $0x78] sm:$0xff] }
  0xda   :  { %11402 = vst [vmem:[#allocation333_spill] sm:$0xff] %v9552_v55  ;;  %11403 = vst [vmem:[#allocation334_spill] sm:$0xff] %v9555_v46  ;;  %v9558_v47 = vld [vmem:[%s8565_s19 + $0x80] sm:$0xff]  ;;  %v9561_v49 = vld [vmem:[%s8565_s19 + $0x88] sm:$0xff] }
  0xdb   :  { %11404 = vst [vmem:[#allocation335_spill] sm:$0xff] %v9558_v47  ;;  %11405 = vst [vmem:[#allocation336_spill] sm:$0xff] %v9561_v49  ;;  %v9564_v41 = vld [vmem:[%s8565_s19 + $0x90] sm:$0xff]  ;;  %v9567_v42 = vld [vmem:[%s8565_s19 + $0x98] sm:$0xff] }
  0xdc   :  { %11406 = vst [vmem:[#allocation337_spill] sm:$0xff] %v9564_v41  ;;  %11407 = vst [vmem:[#allocation338_spill] sm:$0xff] %v9567_v42  ;;  %v9570_v45 = vld [vmem:[%s8565_s19 + $0xa0] sm:$0xff]  ;;  %v9573_v55 = vld [vmem:[%s8565_s19 + $0xa8] sm:$0xff] }
  0xdd   :  { %11408 = vst [vmem:[#allocation339_spill] sm:$0xff] %v9570_v45  ;;  %11409 = vst [vmem:[#allocation340_spill] sm:$0xff] %v9573_v55  ;;  %v9576_v46 = vld [vmem:[%s8565_s19 + $0xb0] sm:$0xff]  ;;  %v9579_v47 = vld [vmem:[%s8565_s19 + $0xb8] sm:$0xff] }
  0xde   :  { %11410 = vst [vmem:[#allocation341_spill] sm:$0xff] %v9576_v46  ;;  %11411 = vst [vmem:[#allocation342_spill] sm:$0xff] %v9579_v47  ;;  %v9582_v49 = vld [vmem:[%s8565_s19 + $0xc0] sm:$0xff]  ;;  %v9585_v41 = vld [vmem:[%s8565_s19 + $0xc8] sm:$0xff] }
  0xdf   :  { %11412 = vst [vmem:[#allocation343_spill] sm:$0xff] %v9582_v49  ;;  %11413 = vst [vmem:[#allocation344_spill] sm:$0xff] %v9585_v41  ;;  %v9588_v42 = vld [vmem:[%s8565_s19 + $0xd0] sm:$0xff]  ;;  %v9591_v45 = vld [vmem:[%s8565_s19 + $0xd8] sm:$0xff] }
  0xe0   :  { %11414 = vst [vmem:[#allocation345_spill] sm:$0xff] %v9588_v42  ;;  %11415 = vst [vmem:[#allocation346_spill] sm:$0xff] %v9591_v45  ;;  %v9594_v55 = vld [vmem:[%s8565_s19 + $0xe0] sm:$0xff]  ;;  %v9597_v46 = vld [vmem:[%s8565_s19 + $0xe8] sm:$0xff] }
  0xe1   :  { %11416 = vst [vmem:[#allocation347_spill] sm:$0xff] %v9594_v55  ;;  %11417 = vst [vmem:[#allocation348_spill] sm:$0xff] %v9597_v46  ;;  %v9600_v47 = vld [vmem:[%s8565_s19 + $0xf0] sm:$0xff]  ;;  %v9603_v49 = vld [vmem:[%s8565_s19 + $0xf8] sm:$0xff] }
  0xe2   :  { %11418 = vst [vmem:[#allocation349_spill] sm:$0xff] %v9600_v47  ;;  %11419 = vst [vmem:[#allocation350_spill] sm:$0xff] %v9603_v49  ;;  %v9606_v41 = vld [vmem:[%s8565_s19 + $0x100] sm:$0xff]  ;;  %v9609_v42 = vld [vmem:[%s8565_s19 + $0x108] sm:$0xff] }
  0xe3   :  { %11420 = vst [vmem:[#allocation351_spill] sm:$0xff] %v9606_v41  ;;  %11421 = vst [vmem:[#allocation352_spill] sm:$0xff] %v9609_v42  ;;  %v9612_v45 = vld [vmem:[%s8565_s19 + $0x110] sm:$0xff]  ;;  %v9615_v55 = vld [vmem:[%s8565_s19 + $0x118] sm:$0xff] }
  0xe4   :  { %11422 = vst [vmem:[#allocation353_spill] sm:$0xff] %v9612_v45  ;;  %11423 = vst [vmem:[#allocation354_spill] sm:$0xff] %v9615_v55  ;;  %v9618_v46 = vld [vmem:[%s8565_s19 + $0x120] sm:$0xff]  ;;  %v9621_v47 = vld [vmem:[%s8565_s19 + $0x128] sm:$0xff] }
  0xe5   :  { %11424 = vst [vmem:[#allocation355_spill] sm:$0xff] %v9618_v46  ;;  %11425 = vst [vmem:[#allocation356_spill] sm:$0xff] %v9621_v47  ;;  %v9624_v49 = vld [vmem:[%s8565_s19 + $0x130] sm:$0xff]  ;;  %v9627_v41 = vld [vmem:[%s8565_s19 + $0x138] sm:$0xff] }
  0xe6   :  { %11426 = vst [vmem:[#allocation357_spill] sm:$0xff] %v9624_v49  ;;  %11427 = vst [vmem:[#allocation358_spill] sm:$0xff] %v9627_v41  ;;  %v9630_v42 = vld [vmem:[%s8565_s19 + $0x140] sm:$0xff]  ;;  %v9633_v45 = vld [vmem:[%s8565_s19 + $0x148] sm:$0xff] }
  0xe7   :  { %11428 = vst [vmem:[#allocation359_spill] sm:$0xff] %v9630_v42  ;;  %11429 = vst [vmem:[#allocation360_spill] sm:$0xff] %v9633_v45  ;;  %v9636_v55 = vld [vmem:[%s8565_s19 + $0x150] sm:$0xff]  ;;  %v9639_v46 = vld [vmem:[%s8565_s19 + $0x158] sm:$0xff] }
  0xe8   :  { %11430 = vst [vmem:[#allocation361_spill] sm:$0xff] %v9636_v55  ;;  %11431 = vst [vmem:[#allocation362_spill] sm:$0xff] %v9639_v46  ;;  %v9642_v47 = vld [vmem:[%s8565_s19 + $0x160] sm:$0xff]  ;;  %v9645_v49 = vld [vmem:[%s8565_s19 + $0x168] sm:$0xff] }
  0xe9   :  { %11432 = vst [vmem:[#allocation363_spill] sm:$0xff] %v9642_v47  ;;  %11433 = vst [vmem:[#allocation364_spill] sm:$0xff] %v9645_v49  ;;  %v9648_v41 = vld [vmem:[%s8565_s19 + $0x170] sm:$0xff]  ;;  %v9651_v42 = vld [vmem:[%s8565_s19 + $0x178] sm:$0xff] }
  0xea   :  { %11434 = vst [vmem:[#allocation365_spill] sm:$0xff] %v9648_v41  ;;  %11435 = vst [vmem:[#allocation366_spill] sm:$0xff] %v9651_v42  ;;  %v9654_v45 = vld [vmem:[%s8565_s19 + $0x180] sm:$0xff]  ;;  %v9657_v55 = vld [vmem:[%s8565_s19 + $0x188] sm:$0xff] }
  0xeb   :  { %11436 = vst [vmem:[#allocation367_spill] sm:$0xff] %v9654_v45  ;;  %11437 = vst [vmem:[#allocation368_spill] sm:$0xff] %v9657_v55  ;;  %v9660_v46 = vld [vmem:[%s8565_s19 + $0x190] sm:$0xff]  ;;  %v9663_v47 = vld [vmem:[%s8565_s19 + $0x198] sm:$0xff] }
  0xec   :  { %11438 = vst [vmem:[#allocation369_spill] sm:$0xff] %v9660_v46  ;;  %11439 = vst [vmem:[#allocation370_spill] sm:$0xff] %v9663_v47  ;;  %v9666_v49 = vld [vmem:[%s8565_s19 + $0x1a0] sm:$0xff]  ;;  %v9669_v41 = vld [vmem:[%s8565_s19 + $0x1a8] sm:$0xff] }
  0xed   :  { %11440 = vst [vmem:[#allocation371_spill] sm:$0xff] %v9666_v49  ;;  %11441 = vst [vmem:[#allocation372_spill] sm:$0xff] %v9669_v41  ;;  %v9672_v42 = vld [vmem:[%s8565_s19 + $0x1b0] sm:$0xff]  ;;  %v9675_v45 = vld [vmem:[%s8565_s19 + $0x1b8] sm:$0xff] }
  0xee   :  { %11442 = vst [vmem:[#allocation373_spill] sm:$0xff] %v9672_v42  ;;  %11443 = vst [vmem:[#allocation374_spill] sm:$0xff] %v9675_v45  ;;  %v9678_v55 = vld [vmem:[%s8565_s19 + $0x1c0] sm:$0xff]  ;;  %v9681_v52 = vld [vmem:[%s8565_s19 + $0x1c8] sm:$0xff] }
  0xef   :  { %11444 = vst [vmem:[#allocation375_spill] sm:$0xff] %v9678_v55  ;;  %11445 = vst [vmem:[#allocation376_spill] sm:$0xff] %v9681_v52  ;;  %v9684_v46 = vld [vmem:[%s8565_s19 + $0x1d0] sm:$0xff]  ;;  %v9687_v47 = vld [vmem:[%s8565_s19 + $0x1d8] sm:$0xff] }
  0xf0   :  { %11446 = vst [vmem:[#allocation377_spill] sm:$0xff] %v9684_v46  ;;  %11447 = vst [vmem:[#allocation378_spill] sm:$0xff] %v9687_v47  ;;  %v9690_v38 = vld [vmem:[%s8565_s19 + $0x1e0] sm:$0xff]  ;;  %v9693_v49 = vld [vmem:[%s8565_s19 + $0x1e8] sm:$0xff] }
  0xf1   :  { %11448 = vst [vmem:[#allocation379_spill] sm:$0xff] %v9690_v38  ;;  %11449 = vst [vmem:[#allocation380_spill] sm:$0xff] %v9693_v49  ;;  %v9696_v41 = vld [vmem:[%s8565_s19 + $0x1f0] sm:$0xff]  ;;  %v9699_v48 = vld [vmem:[%s8565_s19 + $0x1f8] sm:$0xff] }
  0xf2   :  { %11450 = vst [vmem:[#allocation381_spill] sm:$0xff] %v9696_v41  ;;  %11451 = vst [vmem:[#allocation382_spill] sm:$0xff] %v9699_v48  ;;  %v9702_v42 = vld [vmem:[%s8565_s19 + $0x200] sm:$0xff]  ;;  %v9705_v45 = vld [vmem:[%s8565_s19 + $0x208] sm:$0xff] }
  0xf3   :  { %11452 = vst [vmem:[#allocation383_spill] sm:$0xff] %v9702_v42  ;;  %11453 = vst [vmem:[#allocation384_spill] sm:$0xff] %v9705_v45  ;;  %v9708_v51 = vld [vmem:[%s8565_s19 + $0x210] sm:$0xff]  ;;  %v9711_v55 = vld [vmem:[%s8565_s19 + $0x218] sm:$0xff] }
  0xf4   :  { %11454 = vst [vmem:[#allocation385_spill] sm:$0xff] %v9708_v51  ;;  %11455 = vst [vmem:[#allocation386_spill] sm:$0xff] %v9711_v55  ;;  %v9714_v52 = vld [vmem:[%s8565_s19 + $0x220] sm:$0xff]  ;;  %v9717_v46 = vld [vmem:[%s8565_s19 + $0x228] sm:$0xff] }
  0xf5   :  { %11456 = vst [vmem:[#allocation387_spill] sm:$0xff] %v9714_v52  ;;  %11457 = vst [vmem:[#allocation388_spill] sm:$0xff] %v9717_v46  ;;  %v9720_v47 = vld [vmem:[%s8565_s19 + $0x230] sm:$0xff]  ;;  %v9723_v38 = vld [vmem:[%s8565_s19 + $0x238] sm:$0xff] }
  0xf6   :  { %11458 = vst [vmem:[#allocation389_spill] sm:$0xff] %v9720_v47  ;;  %11459 = vst [vmem:[#allocation390_spill] sm:$0xff] %v9723_v38 }
  0xf7   :  { %1168 = vsyncadd [#allocation10 + $0x6], 9216  ;;  %v9726_v47 = vld [vmem:[%s8585_s3] sm:$0xff]  ;;  %v9729_v52 = vld [vmem:[%s8585_s3 + $0x8] sm:$0xff] }
  0xf8   :  { %11460 = vst [vmem:[#allocation391_spill] sm:$0xff] %v9726_v47  ;;  %11461 = vst [vmem:[#allocation392_spill] sm:$0xff] %v9729_v52  ;;  %v9732_v38 = vld [vmem:[%s8585_s3 + $0x10] sm:$0xff]  ;;  %v9735_v46 = vld [vmem:[%s8585_s3 + $0x18] sm:$0xff] }
  0xf9   :  { %11462 = vst [vmem:[#allocation393_spill] sm:$0xff] %v9732_v38  ;;  %11463 = vst [vmem:[#allocation394_spill] sm:$0xff] %v9735_v46  ;;  %v9738_v51 = vld [vmem:[%s8585_s3 + $0x20] sm:$0xff]  ;;  %v9741_v42 = vld [vmem:[%s8585_s3 + $0x28] sm:$0xff] }
  0xfa   :  { %11464 = vst [vmem:[#allocation395_spill] sm:$0xff] %v9738_v51  ;;  %11465 = vst [vmem:[#allocation396_spill] sm:$0xff] %v9741_v42  ;;  %v9744_v55 = vld [vmem:[%s8585_s3 + $0x30] sm:$0xff]  ;;  %v9747_v45 = vld [vmem:[%s8585_s3 + $0x38] sm:$0xff] }
  0xfb   :  { %11466 = vst [vmem:[#allocation397_spill] sm:$0xff] %v9744_v55  ;;  %11467 = vst [vmem:[#allocation398_spill] sm:$0xff] %v9747_v45  ;;  %v9750_v41 = vld [vmem:[%s8585_s3 + $0x40] sm:$0xff]  ;;  %v9753_v48 = vld [vmem:[%s8585_s3 + $0x48] sm:$0xff] }
  0xfc   :  { %11468 = vst [vmem:[#allocation399_spill] sm:$0xff] %v9750_v41  ;;  %11469 = vst [vmem:[#allocation400_spill] sm:$0xff] %v9753_v48  ;;  %v9756_v47 = vld [vmem:[%s8585_s3 + $0x50] sm:$0xff]  ;;  %v9759_v52 = vld [vmem:[%s8585_s3 + $0x58] sm:$0xff] }
  0xfd   :  { %11470 = vst [vmem:[#allocation401_spill] sm:$0xff] %v9756_v47  ;;  %11471 = vst [vmem:[#allocation402_spill] sm:$0xff] %v9759_v52  ;;  %v9762_v49 = vld [vmem:[%s8585_s3 + $0x60] sm:$0xff]  ;;  %v9765_v38 = vld [vmem:[%s8585_s3 + $0x68] sm:$0xff] }
  0xfe   :  { %11472 = vst [vmem:[#allocation403_spill] sm:$0xff] %v9762_v49  ;;  %11473 = vst [vmem:[#allocation404_spill] sm:$0xff] %v9765_v38  ;;  %v9768_v46 = vld [vmem:[%s8585_s3 + $0x70] sm:$0xff]  ;;  %v9771_v51 = vld [vmem:[%s8585_s3 + $0x78] sm:$0xff] }
  0xff   :  { %11474 = vst [vmem:[#allocation405_spill] sm:$0xff] %v9768_v46  ;;  %11475 = vst [vmem:[#allocation406_spill] sm:$0xff] %v9771_v51  ;;  %v9774_v42 = vld [vmem:[%s8585_s3 + $0x80] sm:$0xff]  ;;  %v9777_v55 = vld [vmem:[%s8585_s3 + $0x88] sm:$0xff] }
 0x100   :  { %11476 = vst [vmem:[#allocation407_spill] sm:$0xff] %v9774_v42  ;;  %11477 = vst [vmem:[#allocation408_spill] sm:$0xff] %v9777_v55 }
 0x101   :  { %1245 = vsyncadd [#allocation10 + $0x7], 2304  ;;  %v6644_v49 = vld [vmem:[%s8425_s9 + $0x98] sm:$0xff]  ;;  %v6646_v38 = vld [vmem:[%s8425_s9 + $0xa8] sm:$0xff]  ;;  %v11092_v42 = vmov 0.0   ;;  %vm1368_vm0 = vcmask 1046528  }
 0x102   :  { %v7396_v46 = vpack.c.bf16 %v6646_v38, %v6644_v49  ;;  %v6643_v52 = vld [vmem:[%s8425_s9 + $0x90] sm:$0xff]  ;;  %v6645_v51 = vld [vmem:[%s8425_s9 + $0xa0] sm:$0xff]  ;;  %v6648_v47 = vld [vmem:[%s8425_s9 + $0xb8] sm:$0xff]  ;;  %1453 = vmatprep.mubr.f32.mxu0 %v11092_v42  ;;  %1916 = vmatprep.mubr.f32.mxu1 %v11092_v42  ;;  %vm1378_vm1 = vcmask 588800   ;;  %vm1608_vm2 = vcmask 1045504   ;;  %vm1768_vm3 = vcmask 1043456  }
 0x103   :  { %v7398_v55 = vpack.c.bf16 %v6645_v51, %v6643_v52  ;;  %v6650_v48 = vld [vmem:[%s8425_s9 + $0xc8] sm:$0xff]  ;;  %v6647_v41 = vld [vmem:[%s8425_s9 + $0xb0] sm:$0xff]  ;;  %v6649_v45 = vld [vmem:[%s8425_s9 + $0xc0] sm:$0xff]  ;;  %vm1764_vm4 = vcmask 293888   ;;  %s8402_s0 = smov 4   ;;  %vm2072_vm5 = vcmask 31744  }
 0x104   :  { %7397 = vmatprep.subr.bf16.mxu0 %v7396_v46  ;;  %v7400_v43 = vpack.c.bf16 %v6650_v48, %v6648_v47  ;;  %v6652_v38 = vld [vmem:[%s8425_s9 + $0xd8] sm:$0xff]  ;;  %v6654_v49 = vld [vmem:[%s8425_s9 + $0xe8] sm:$0xff]  ;;  %v7402_v35 = vpack.c.bf16 %v6649_v45, %v6647_v41  ;;  %v6651_v39 = vld [vmem:[%s8425_s9 + $0xd0] sm:$0xff]  ;;  %vm2074_vm6 = vcmask 64512   ;;  %vm2236_vm7 = vcmask 1041408  }
 0x105   :  { %7399 = vmatpush1.bf16.msra.mxu0 %v7398_v55  ;;  %v7404_v32 = vpack.c.bf16 %v6654_v49, %v6652_v38  ;;  %v6653_v42 = vld [vmem:[%s8425_s9 + $0xe0] sm:$0xff]  ;;  %v6656_v36 = vld [vmem:[%s8425_s9 + $0xf8] sm:$0xff]  ;;  %v6658_v51 = vld [vmem:[%s8425_s9 + $0x108] sm:$0xff]  ;;  %vm2220_vm8 = vcmask 15360  }
 0x106   :  { %7401 = vmatprep.subr.bf16.mxu0 %v7400_v43  ;;  %v7406_v46 = vpack.c.bf16 %v6653_v42, %v6651_v39  ;;  %v7408_v47 = vpack.c.bf16 %v6658_v51, %v6656_v36  ;;  %v6655_v48 = vld [vmem:[%s8425_s9 + $0xf0] sm:$0xff]  ;;  %v6657_v52 = vld [vmem:[%s8425_s9 + $0x100] sm:$0xff]  ;;  %v9801_v43 = vld [vmem:[%s8420_s5 + $0x8] sm:$0xff] }
 0x107   :  { %v9798_v41 = vld [vmem:[%s8420_s5] sm:$0xff]  ;;  %v7410_v45 = vpack.c.bf16 %v6657_v52, %v6655_v48  ;;  %v6660_v55 = vld [vmem:[%s8425_s9 + $0x118] sm:$0xff]  ;;  %v1327_v39 = vld [vmem:[%s8425_s9 + $0x8] sm:$0xff] }
 0x108   :  { %v1329_v36 = vld [vmem:[%s8425_s9 + $0x18] sm:$0xff]  ;;  %v1326_v42 = vld [vmem:[%s8425_s9] sm:$0xff]  ;;  %v1328_v38 = vld [vmem:[%s8425_s9 + $0x10] sm:$0xff] }
 0x109   :  { %7403 = vmatpush1.bf16.msra.mxu0 %v7402_v35  ;;  %v1369_v35 = vrot.slane %v9798_v41, 1  ;;  %v9811_v49 = vld [vmem:[%s8420_s5 + $0x10] sm:$0xff]  ;;  %v1331_v51 = vld [vmem:[%s8425_s9 + $0x28] sm:$0xff]  ;;  %v7412_v48 = vpack.c.bf16 %v1329_v36, %v1327_v39  ;;  %v7414_v44 = vpack.c.bf16 %v1328_v38, %v1326_v42  ;;  %v1330_v37 = vld [vmem:[%s8425_s9 + $0x20] sm:$0xff] }
 0x10a   :  { %7405 = vmatprep.subr.bf16.mxu0 %v7404_v32  ;;  %v1370_v32 = vrot.slane %v9801_v43, 1  ;;  %v1372_v58 = vrot.slane %v9811_v49, 1  ;;  %v1332_v29 = vld [vmem:[%s8425_s9 + $0x30] sm:$0xff]  ;;  %v9821_v26 = vld [vmem:[%s8420_s5 + $0x18] sm:$0xff]  ;;  %v1339_v33 = vld [vmem:[%s8425_s9 + $0x68] sm:$0xff] }
 0x10b   :  { %v7418_v36 = vpack.c.bf16 %v1332_v29, %v1330_v37  ;;  %v1374_v42 = vrot.slane %v9821_v26, 1  ;;  %v1341_v30 = vld [vmem:[%s8425_s9 + $0x78] sm:$0xff]  ;;  %v1275_v63 = vld [vmem:[%s8445_s25 + $0x88] sm:$0xff]  ;;  %v1288_v31 = vld [vmem:[%s8445_s25 + $0xf0] sm:$0xff] }
 0x10c   :  { %v1371_v52 = vsel %vm1368_vm0, %v1369_v35, %v1370_v32  ;;  %v11478_v35 = vmov 0.0   ;;  %v1373_v39 = vsel %vm1368_vm0, %v1370_v32, %v1372_v58  ;;  %v1338_v32 = vld [vmem:[%s8425_s9 + $0x60] sm:$0xff]  ;;  %v1320_v23 = vld [vmem:[%s8445_s25 + $0x1f0] sm:$0xff]  ;;  %v1321_v20 = vld [vmem:[%s8445_s25 + $0x1f8] sm:$0xff] }
 0x10d   :  { %7407 = vmatpush1.bf16.msra.mxu0 %v7406_v46  ;;  %v1333_v46 = vld [vmem:[%s8425_s9 + $0x38] sm:$0xff]  ;;  %v1375_v29 = vsel %vm1368_vm0, %v1372_v58, %v1374_v42 }
 0x10e   :  { %7409 = vmatprep.subr.bf16.mxu0 %v7408_v47  ;;  %v6659_v47 = vld [vmem:[%s8425_s9 + $0x110] sm:$0xff]  ;;  %v7416_v40 = vpack.c.bf16 %v1333_v46, %v1331_v51  ;;  %v1334_v51 = vld [vmem:[%s8425_s9 + $0x40] sm:$0xff] }
 0x10f   :  { %v1336_v46 = vld [vmem:[%s8425_s9 + $0x50] sm:$0xff] }
 0x110   :  { %v7422_v37 = vpack.c.bf16 %v1336_v46, %v1334_v51  ;;  %v6678_v51 = vld [vmem:[%s8425_s9 + $0x158] sm:$0xff] }
 0x111   :  { %7411 = vmatpush1.bf16.msra.mxu0 %v7410_v45  ;;  %v1335_v45 = vld [vmem:[%s8425_s9 + $0x48] sm:$0xff] }
 0x112   :  { %1405 = vmatprep.subr.mxu0 %v6660_v55  ;;  %v1337_v55 = vld [vmem:[%s8425_s9 + $0x58] sm:$0xff] }
 0x113   :  { %v7420_v38 = vpack.c.bf16 %v1337_v55, %v1335_v45  ;;  %v1343_v45 = vld [vmem:[%s8425_s9 + $0x88] sm:$0xff] }
 0x114   :  { %v6672_v55 = vld [vmem:[%s8425_s9 + $0x128] sm:$0xff] }
 0x115   :  { %1406 = vmatpush1.msra.mxu0 %v6659_v47  ;;  %v9832_v47 = vld [vmem:[%s8420_s5 + $0x20] sm:$0x3f] }
 0x116   :  { %6661 = vmatmul.mubr.msk.f32.vlgmr.msra.gmra.mrb[0].mxu0 %vm1378_vm1, %v1371_v52  ;;  %7413 = vmatprep.subr.bf16.mxu0 %v7412_v48  ;;  %v1340_v48 = vld [vmem:[%s8425_s9 + $0x70] sm:$0xff] }
 0x117   :  { %1459 = vmatprep.mubr.f32.mxu0 %v11478_v35  ;;  %7415 = vmatpush1.bf16.msra.mxu0 %v7414_v44  ;;  %v7424_v44 = vpack.c.bf16 %v1341_v30, %v1339_v33  ;;  %v7426_v58 = vpack.c.bf16 %v1340_v48, %v1338_v32  ;;  %v1342_v30 = vld [vmem:[%s8425_s9 + $0x80] sm:$0xff]  ;;  %v6680_v32 = vld [vmem:[%s8425_s9 + $0x168] sm:$0xff]  ;;  %v6682_v48 = vld [vmem:[%s8425_s9 + $0x178] sm:$0xff] }
 0x118   :  { %7417 = vmatprep.subr.bf16.mxu0 %v7416_v40  ;;  %v1376_v40 = vrot.slane %v9832_v47, 1 }
 0x11a   :  { %6662 = vmatmul.mubr.msk.f32.gmra.mrb[2].mxu0 %vm1378_vm1, %v1373_v39  ;;  %v1377_v52 = vsel %vm1368_vm0, %v1374_v42, %v1376_v40  ;;  %v6674_v39 = vld [vmem:[%s8425_s9 + $0x138] sm:$0xff]  ;;  %v6676_v42 = vld [vmem:[%s8425_s9 + $0x148] sm:$0xff] }
 0x11b   :  { %1465 = vmatprep.mubr.f32.mxu0 %v11478_v35  ;;  %7419 = vmatpush1.bf16.msra.mxu0 %v7418_v36  ;;  %v7428_v33 = vpack.c.bf16 %v6674_v39, %v6672_v55  ;;  %v6671_v36 = vld [vmem:[%s8425_s9 + $0x120] sm:$0xff]  ;;  %v6684_v55 = vld [vmem:[%s8425_s9 + $0x188] sm:$0xff]  ;;  %v6686_v39 = vld [vmem:[%s8425_s9 + $0x198] sm:$0xff] }
 0x11c   :  { %7421 = vmatprep.subr.bf16.mxu0 %v7420_v38  ;;  %v6673_v38 = vld [vmem:[%s8425_s9 + $0x130] sm:$0xff] }
 0x11d   :  { %v7430_v46 = vpack.c.bf16 %v6673_v38, %v6671_v36  ;;  %v6683_v36 = vld [vmem:[%s8425_s9 + $0x180] sm:$0xff]  ;;  %v6685_v38 = vld [vmem:[%s8425_s9 + $0x190] sm:$0xff] }
 0x11e   :  { %6663 = vmatmul.mubr.msk.f32.gmra.mrb[4].mxu0 %vm1378_vm1, %v1375_v29  ;;  %v7432_v29 = vpack.c.bf16 %v6678_v51, %v6676_v42  ;;  %v7442_v42 = vpack.c.bf16 %v6685_v38, %v6683_v36  ;;  %v6688_v51 = vld [vmem:[%s8425_s9 + $0x1a8] sm:$0xff] }
 0x11f   :  { %1471 = vmatprep.mubr.f32.mxu0 %v11478_v35  ;;  %7423 = vmatpush1.bf16.msra.mxu0 %v7422_v37  ;;  %v6675_v37 = vld [vmem:[%s8425_s9 + $0x140] sm:$0xff] }
 0x120   :  { %7425 = vmatprep.subr.bf16.mxu0 %v7424_v44  ;;  %v6677_v44 = vld [vmem:[%s8425_s9 + $0x150] sm:$0xff] }
 0x122   :  { %6664 = vmatmul.mubr.msk.f32.gmra.mrb[6].mxu0 %vm1378_vm1, %v1377_v52  ;;  %v7436_v52 = vpack.c.bf16 %v6682_v48, %v6680_v32  ;;  %v1612_v32 = vrot.slane %v9811_v49, 2 }
 0x123   :  { %1477 = vmatprep.mubr.f32.mxu0 %v11478_v35  ;;  %7427 = vmatpush1.bf16.msra.mxu0 %v7426_v58  ;;  %v6679_v58 = vld [vmem:[%s8425_s9 + $0x160] sm:$0xff] }
 0x124   :  { %1510 = vmatprep.subr.mxu0 %v1343_v45  ;;  %v6681_v45 = vld [vmem:[%s8425_s9 + $0x170] sm:$0xff] }
 0x126   :  { %6665 = vmatmul.mubr.msk.f32.gmra.mrb[8].mxu0 %vm1378_vm1, %v1376_v40  ;;  %v7434_v40 = vpack.c.bf16 %v6677_v44, %v6675_v37  ;;  %v6687_v37 = vld [vmem:[%s8425_s9 + $0x1a0] sm:$0xff] }
 0x127   :  { %1511 = vmatpush1.msra.mxu0 %v1342_v30  ;;  %1558 = vmatprep.mubr.f32.mxu0 %v11478_v35  ;;  %v7438_v30 = vpack.c.bf16 %v6681_v45, %v6679_v58 }
 0x128   :  { %7429 = vmatprep.subr.bf16.mxu0 %v7428_v33  ;;  %v7440_v33 = vpack.c.bf16 %v6686_v39, %v6684_v55 }
 0x12a   :  { %6666 = vmatmul.mubr.msk.f32.vlgmr.msra.gmra.mrb[0].mxu0 %vm1378_vm1, %v9798_v41 }
 0x12b   :  { %1564 = vmatprep.mubr.f32.mxu0 %v11478_v35  ;;  %7431 = vmatpush1.bf16.msra.mxu0 %v7430_v46  ;;  %v1609_v46 = vrot.slane %v9798_v41, 2 }
 0x12c   :  { %7433 = vmatprep.subr.bf16.mxu0 %v7432_v29  ;;  %v1610_v29 = vrot.slane %v9801_v43, 2 }
 0x12e   :  { %6667 = vmatmul.mubr.msk.f32.gmra.mrb[2].mxu0 %vm1378_vm1, %v9801_v43  ;;  %v1611_v44 = vsel %vm1608_vm2, %v1609_v46, %v1610_v29  ;;  %v1613_v41 = vsel %vm1608_vm2, %v1610_v29, %v1612_v32  ;;  %v1614_v43 = vrot.slane %v9821_v26, 2 }
 0x12f   :  { %1570 = vmatprep.mubr.f32.mxu0 %v11478_v35  ;;  %7435 = vmatpush1.bf16.msra.mxu0 %v7434_v40  ;;  %v1616_v40 = vrot.slane %v9832_v47, 2 }
 0x130   :  { %7437 = vmatprep.subr.bf16.mxu0 %v7436_v52  ;;  %v1615_v48 = vsel %vm1608_vm2, %v1612_v32, %v1614_v43 }
 0x132   :  { %6668 = vmatmul.mubr.msk.f32.gmra.mrb[4].mxu0 %vm1378_vm1, %v9811_v49  ;;  %v1617_v49 = vsel %vm1608_vm2, %v1614_v43, %v1616_v40 }
 0x133   :  { %1576 = vmatprep.mubr.f32.mxu0 %v11478_v35  ;;  %7439 = vmatpush1.bf16.msra.mxu0 %v7438_v30 }
 0x134   :  { %7441 = vmatprep.subr.bf16.mxu0 %v7440_v33 }
 0x136   :  { %6669 = vmatmul.mubr.msk.f32.gmra.mrb[6].mxu0 %vm1378_vm1, %v9821_v26  ;;  %v1734_v26 = vlaneseq }
 0x137   :  { %1582 = vmatprep.mubr.f32.mxu0 %v11478_v35  ;;  %7443 = vmatpush1.bf16.msra.mxu0 %v7442_v42 }
 0x138   :  { %1644 = vmatprep.subr.mxu0 %v6688_v51  ;;  %v9903_v52 = vshrl.u32 %v1734_v26, 7 }
 0x13a   :  { %6670 = vmatmul.mubr.msk.f32.gmra.mrb[8].mxu0 %vm1378_vm1, %v9832_v47  ;;  %11479 = vst [vmem:[#allocation409_spill] sm:$0xff] %v9903_v52  ;;  %v9906_v58 = vsub.s32 1, %v9903_v52  ;;  %v1251_v47 = vld [vmem:[%s8430_s13] sm:$0x3]  ;;  %v9910_v45 = vsub.s32 0, %v9903_v52 }
 0x13b   :  { %1645 = vmatpush1.msra.mxu0 %v6687_v37  ;;  %1692 = vmatprep.mubr.f32.mxu0 %v11478_v35 }
 0x13c   :  { %11480 = vst [vmem:[#allocation410_spill] sm:$0xff] %v9906_v58  ;;  %11481 = vst [vmem:[#allocation411_spill] sm:$0xff] %v9910_v45  ;;  %v1741_v39 = vrot.slane %v1251_v47, %v9906_v58  ;;  %v1737_v30 = vrot.slane %v1251_v47, %v9910_v45 }
 0x13e   :  { %6689 = vmatmul.mubr.msk.f32.vlgmr.msra.gmra.mrb[0].mxu0 %vm1378_vm1, %v1611_v44 }
 0x13f   :  { %1698 = vmatprep.mubr.f32.mxu0 %v11478_v35 }
 0x142   :  { %6690 = vmatmul.mubr.msk.f32.gmra.mrb[2].mxu0 %vm1378_vm1, %v1613_v41 }
 0x143   :  { %1704 = vmatprep.mubr.f32.mxu0 %v11478_v35 }
 0x146   :  { %6691 = vmatmul.mubr.msk.f32.gmra.mrb[4].mxu0 %vm1378_vm1, %v1615_v48 }
 0x147   :  { %1710 = vmatprep.mubr.f32.mxu0 %v11478_v35 }
 0x14a   :  { %6692 = vmatmul.mubr.msk.f32.gmra.mrb[6].mxu0 %vm1378_vm1, %v1617_v49 }
 0x14b   :  { %1716 = vmatprep.mubr.f32.mxu0 %v11478_v35 }
 0x14e   :  { %6693 = vmatmul.mubr.msk.f32.gmra.mrb[8].mxu0 %vm1378_vm1, %v1616_v40 }
 0x14f   :  { %1845 = vmatprep.mubr.f32.mxu0 %v11478_v35 }
 0x211   :  { %v1694_v55 = vpop.f32.mrb[0].mxu0 }
 0x212   :  { %v1696_v33 = vpop.f32.mrb[1].mxu0  ;;  %v9916_v42 = vadd.f32 %v1737_v30, %v1694_v55 }
 0x213   :  { %v9914_v36 = vadd.f32 %v1741_v39, %v1696_v33 }
 0x214   :  { %v1754_v49 = vmul.f32 %v9916_v42, %v9916_v42 }
 0x215   :  { %v1700_v38 = vpop.f32.mrb[2].mxu0  ;;  %v1755_v41 = vmul.f32 %v9914_v36, %v9914_v36 }
 0x216   :  { %v9918_v51 = vadd.f32 %v1737_v30, %v1700_v38  ;;  %v1702_v46 = vpop.f32.mrb[3].mxu0 }
 0x217   :  { %v9920_v29 = vadd.f32 %v1741_v39, %v1702_v46 }
 0x218   :  { %v1756_v37 = vmul.f32 %v9918_v51, %v9918_v51  ;;  %v7446_v48 = vpack.c.bf16 %v9918_v51, %v9916_v42 }
 0x219   :  { %v1706_v44 = vpop.f32.mrb[4].mxu0  ;;  %v7444_v32 = vpack.c.bf16 %v9920_v29, %v9914_v36  ;;  %v1757_v43 = vmul.f32 %v9920_v29, %v9920_v29 }
 0x21a   :  { %v1708_v40 = vpop.f32.mrb[5].mxu0  ;;  %v7454_v47 = vpack.c.bf16 %v1756_v37, %v1754_v49  ;;  %v9936_v38 = vadd.f32 %v1737_v30, %v1706_v44 }
 0x21b   :  { %7445 = vmatprep.subr.bf16.mxu0 %v7444_v32  ;;  %v7452_v26 = vpack.c.bf16 %v1757_v43, %v1755_v41  ;;  %v9934_v55 = vadd.f32 %v1741_v39, %v1708_v40 }
 0x21c   :  { %7447 = vmatpush1.bf16.msra.mxu0 %v7446_v48 }
 0x21d   :  { %v1712_v33 = vpop.f32.mrb[6].mxu0  ;;  %7453 = vmatprep.subr.bf16.mxu1 %v7452_v26  ;;  %v1759_v37 = vmul.f32 %v9934_v55, %v9934_v55 }
 0x21e   :  { %v9938_v46 = vadd.f32 %v1737_v30, %v1712_v33  ;;  %v1714_v58 = vpop.f32.mrb[7].mxu0  ;;  %7455 = vmatpush1.bf16.msra.mxu1 %v7454_v47  ;;  %v1274_v33 = vld [vmem:[%s8445_s25 + $0x80] sm:$0xff] }
 0x21f   :  { %v9940_v45 = vadd.f32 %v1741_v39, %v1714_v58  ;;  %v1758_v58 = vmul.f32 %v9936_v38, %v9936_v38 }
 0x220   :  { %v1760_v52 = vmul.f32 %v9938_v46, %v9938_v46  ;;  %v7450_v43 = vpack.c.bf16 %v9938_v46, %v9936_v38 }
 0x221   :  { %v1761_v32 = vmul.f32 %v9940_v45, %v9940_v45  ;;  %v1718_v41 = vpop.f32.mrb[8].mxu0  ;;  %v7448_v44 = vpack.c.bf16 %v9940_v45, %v9934_v55 }
 0x222   :  { %v1720_v48 = vpop.f32.mrb[9].mxu0  ;;  %v9956_v26 = vadd.f32 %v1737_v30, %v1718_v41  ;;  %v7458_v47 = vpack.c.bf16 %v1760_v52, %v1758_v58  ;;  %v1252_v30 = vld [vmem:[%s8435_s17] sm:$0x3]  ;;  %v1277_v52 = vld [vmem:[%s8445_s25 + $0x98] sm:$0xff] }
 0x223   :  { %v9954_v40 = vadd.f32 %v1741_v39, %v1720_v48  ;;  %7449 = vmatprep.subr.bf16.mxu0 %v7448_v44  ;;  %v7456_v49 = vpack.c.bf16 %v1761_v32, %v1759_v37  ;;  %v1258_v39 = vld [vmem:[%s8445_s25] sm:$0xff]  ;;  %v1259_v48 = vld [vmem:[%s8445_s25 + $0x8] sm:$0xff]  ;;  %v1276_v37 = vld [vmem:[%s8445_s25 + $0x90] sm:$0xff]  ;;  %v7460_v32 = vpack.c.bf16 %v1275_v63, %v1274_v33 }
 0x224   :  { %7451 = vmatpush1.bf16.msra.mxu0 %v7450_v43  ;;  %v1762_v41 = vmul.f32 %v9956_v26, %v9956_v26  ;;  %v7462_v44 = vpack.c.bf16 %v1259_v48, %v1258_v39  ;;  %v7464_v58 = vpack.c.bf16 %v1277_v52, %v1276_v37  ;;  %v1260_v43 = vld [vmem:[%s8445_s25 + $0x10] sm:$0xff]  ;;  %v1279_v63 = vld [vmem:[%s8445_s25 + $0xa8] sm:$0xff]  ;;  %v1262_v39 = vld [vmem:[%s8445_s25 + $0x20] sm:$0xff] }
 0x225   :  { %v1763_v60 = vmul.f32 %v9954_v40, %v9954_v40  ;;  %6694 = vmatprep.subr.msk.mxu0 %vm1768_vm3, %v9954_v40  ;;  %7457 = vmatprep.subr.bf16.mxu1 %v7456_v49  ;;  %v1261_v49 = vld [vmem:[%s8445_s25 + $0x18] sm:$0xff]  ;;  %v1263_v48 = vld [vmem:[%s8445_s25 + $0x28] sm:$0xff]  ;;  %v1280_v37 = vld [vmem:[%s8445_s25 + $0xb0] sm:$0xff] }
 0x226   :  { %7459 = vmatpush1.bf16.msra.mxu1 %v7458_v47  ;;  %v7466_v47 = vpack.c.bf16 %v1261_v49, %v1260_v43  ;;  %v1281_v52 = vld [vmem:[%s8445_s25 + $0xb8] sm:$0xff] }
 0x227   :  { %6697 = vmatprep.subr.msk.mxu1 %vm1768_vm3, %v1763_v60  ;;  %v1278_v60 = vld [vmem:[%s8445_s25 + $0xa0] sm:$0xff]  ;;  %v7472_v34 = vpack.c.bf16 %v1281_v52, %v1280_v37  ;;  %v1268_v37 = vld [vmem:[%s8445_s25 + $0x50] sm:$0xff]  ;;  %v1269_v52 = vld [vmem:[%s8445_s25 + $0x58] sm:$0xff] }
 0x228   :  { %6695 = vmatpush1.msk.msra.mxu0 %vm1768_vm3, %v9956_v26  ;;  %v7468_v33 = vpack.c.bf16 %v1279_v63, %v1278_v60  ;;  %v1266_v60 = vld [vmem:[%s8445_s25 + $0x40] sm:$0xff]  ;;  %v1267_v63 = vld [vmem:[%s8445_s25 + $0x48] sm:$0xff] }
 0x229   :  { %6696 = vmatmul.mubr.msk.f32.vlgmr.msra.gmra.mrb[10].mxu0 %vm1764_vm4, %v1252_v30 }
 0x22a   :  { %6698 = vmatpush1.msk.msra.mxu1 %vm1768_vm3, %v1762_v41  ;;  %2142 = vmatprep.mubr.f32.mxu0 %v11478_v35  ;;  %v7470_v41 = vpack.c.bf16 %v1263_v48, %v1262_v39  ;;  %v7478_v39 = vpack.c.bf16 %v1267_v63, %v1266_v60  ;;  %v1272_v63 = vld [vmem:[%s8445_s25 + $0x70] sm:$0xff] }
 0x22b   :  { %6699 = vmatmul.mubr.msk.f32.vlgmr.msra.gmra.mrb[0].mxu1 %vm1764_vm4, %v1252_v30  ;;  %7461 = vmatprep.subr.bf16.mxu1 %v7460_v32  ;;  %v1264_v30 = vld [vmem:[%s8445_s25 + $0x30] sm:$0xff]  ;;  %v1265_v32 = vld [vmem:[%s8445_s25 + $0x38] sm:$0xff] }
 0x22c   :  { %7463 = vmatpush3.bf16.msra.mxu1 %v7462_v44  ;;  %v1282_v44 = vld [vmem:[%s8445_s25 + $0xc0] sm:$0xff]  ;;  %v7474_v43 = vpack.c.bf16 %v1265_v32, %v1264_v30  ;;  %v1287_v30 = vld [vmem:[%s8445_s25 + $0xe8] sm:$0xff] }
 0x22d   :  { %7465 = vmatprep.subr.bf16.mxu1 %v7464_v58  ;;  %v1283_v58 = vld [vmem:[%s8445_s25 + $0xc8] sm:$0xff] }
 0x22e   :  { %v7476_v49 = vpack.c.bf16 %v1283_v58, %v1282_v44  ;;  %v1270_v44 = vld [vmem:[%s8445_s25 + $0x60] sm:$0xff]  ;;  %v1271_v58 = vld [vmem:[%s8445_s25 + $0x68] sm:$0xff] }
 0x230   :  { %7467 = vmatpush3.bf16.msra.mxu1 %v7466_v47  ;;  %v1284_v47 = vld [vmem:[%s8445_s25 + $0xd0] sm:$0xff] }
 0x231   :  { %7469 = vmatprep.subr.bf16.mxu1 %v7468_v33  ;;  %v1285_v33 = vld [vmem:[%s8445_s25 + $0xd8] sm:$0xff] }
 0x232   :  { %v7480_v48 = vpack.c.bf16 %v1285_v33, %v1284_v47  ;;  %v1273_v47 = vld [vmem:[%s8445_s25 + $0x78] sm:$0xff] }
 0x233   :  { %v7490_v33 = vpack.c.bf16 %v1273_v47, %v1272_v63  ;;  %v1311_v63 = vld [vmem:[%s8445_s25 + $0x1a8] sm:$0xff] }
 0x234   :  { %7471 = vmatpush3.bf16.msra.mxu1 %v7470_v41  ;;  %v1286_v41 = vld [vmem:[%s8445_s25 + $0xe0] sm:$0xff] }
 0x235   :  { %7473 = vmatprep.subr.bf16.mxu1 %v7472_v34  ;;  %v7482_v34 = vpack.c.bf16 %v1269_v52, %v1268_v37  ;;  %v7484_v32 = vpack.c.bf16 %v1287_v30, %v1286_v41  ;;  %v1290_v52 = vld [vmem:[%s8445_s25 + $0x100] sm:$0xff]  ;;  %v1291_v41 = vld [vmem:[%s8445_s25 + $0x108] sm:$0xff]  ;;  %v1308_v30 = vld [vmem:[%s8445_s25 + $0x190] sm:$0xff] }
 0x238   :  { %7475 = vmatpush3.bf16.msra.mxu1 %v7474_v43  ;;  %v1289_v43 = vld [vmem:[%s8445_s25 + $0xf8] sm:$0xff] }
 0x239   :  { %7477 = vmatprep.subr.bf16.mxu1 %v7476_v49  ;;  %v7486_v49 = vpack.c.bf16 %v1271_v58, %v1270_v44  ;;  %v7488_v60 = vpack.c.bf16 %v1289_v43, %v1288_v31  ;;  %v7494_v31 = vpack.c.bf16 %v1291_v41, %v1290_v52  ;;  %v1292_v43 = vld [vmem:[%s8445_s25 + $0x110] sm:$0xff]  ;;  %v1295_v52 = vld [vmem:[%s8445_s25 + $0x128] sm:$0xff] }
 0x23a   :  { %v1312_v41 = vld [vmem:[%s8445_s25 + $0x1b0] sm:$0xff] }
 0x23c   :  { %7479 = vmatpush3.bf16.msra.mxu1 %v7478_v39  ;;  %v1306_v39 = vld [vmem:[%s8445_s25 + $0x180] sm:$0xff] }
 0x23d   :  { %7481 = vmatprep.subr.bf16.mxu1 %v7480_v48  ;;  %v1307_v48 = vld [vmem:[%s8445_s25 + $0x188] sm:$0xff] }
 0x23e   :  { %v7492_v37 = vpack.c.bf16 %v1307_v48, %v1306_v39 }
 0x240   :  { %7483 = vmatpush3.bf16.msra.mxu1 %v7482_v34  ;;  %v1309_v34 = vld [vmem:[%s8445_s25 + $0x198] sm:$0xff] }
 0x241   :  { %7485 = vmatprep.subr.bf16.mxu1 %v7484_v32  ;;  %v7496_v58 = vpack.c.bf16 %v1309_v34, %v1308_v30  ;;  %v1313_v30 = vld [vmem:[%s8445_s25 + $0x1b8] sm:$0xff] }
 0x244   :  { %7487 = vmatpush3.bf16.msra.mxu1 %v7486_v49  ;;  %v1293_v49 = vld [vmem:[%s8445_s25 + $0x118] sm:$0xff] }
 0x245   :  { %7489 = vmatprep.subr.bf16.mxu1 %v7488_v60  ;;  %v1310_v60 = vld [vmem:[%s8445_s25 + $0x1a0] sm:$0xff]  ;;  %v7498_v39 = vpack.c.bf16 %v1293_v49, %v1292_v43 }
 0x246   :  { %v7500_v48 = vpack.c.bf16 %v1311_v63, %v1310_v60  ;;  %v1314_v43 = vld [vmem:[%s8445_s25 + $0x1c0] sm:$0xff] }
 0x247   :  { %v1298_v63 = vld [vmem:[%s8445_s25 + $0x140] sm:$0xff] }
 0x248   :  { %7491 = vmatpush3.bf16.msra.mxu1 %v7490_v33 }
 0x249   :  { %7493 = vmatprep.subr.bf16.mxu1 %v7492_v37  ;;  %v1294_v37 = vld [vmem:[%s8445_s25 + $0x120] sm:$0xff] }
 0x24a   :  { %v7502_v34 = vpack.c.bf16 %v1295_v52, %v1294_v37 }
 0x2fc   :  { %v1847_v32 = vpop.f32.mrb[10].mxu0 }
 0x2fd   :  { %v1849_v44 = vpop.f32.mrb[11].mxu0 }
 0x2fe   :  { %1987 = vmatprep.mubr.f32.mxu1 %v1849_v44  ;;  %v1918_v47 = vpop.f32.mrb[0].mxu1  ;;  %v1296_v44 = vld [vmem:[%s8445_s25 + $0x130] sm:$0xff] }
 0x2ff   :  { %1988 = vmatmul.mubr.f32.vlgmr.msra.gmra.mrb[2].mxu1 %v1847_v32  ;;  %v1920_v33 = vpop.f32.mrb[1].mxu1  ;;  %v7504_v32 = vpack.c.bf16 %v1313_v30, %v1312_v41  ;;  %v1300_v41 = vld [vmem:[%s8445_s25 + $0x150] sm:$0xff]  ;;  %v1301_v30 = vld [vmem:[%s8445_s25 + $0x158] sm:$0xff] }
 0x300   :  { %7495 = vmatpush3.bf16.msra.mxu1 %v7494_v31  ;;  %2057 = vmatprep.mubr.f32.mxu1 %v1920_v33  ;;  %v1297_v31 = vld [vmem:[%s8445_s25 + $0x138] sm:$0xff]  ;;  %v1299_v33 = vld [vmem:[%s8445_s25 + $0x148] sm:$0xff] }
 0x301   :  { %7497 = vmatprep.subr.bf16.mxu1 %v7496_v58  ;;  %v1315_v58 = vld [vmem:[%s8445_s25 + $0x1c8] sm:$0xff]  ;;  %v7506_v49 = vpack.c.bf16 %v1297_v31, %v1296_v44  ;;  %v7510_v37 = vpack.c.bf16 %v1299_v33, %v1298_v63  ;;  %v1305_v63 = vld [vmem:[%s8445_s25 + $0x178] sm:$0xff] }
 0x302   :  { %v7508_v60 = vpack.c.bf16 %v1315_v58, %v1314_v43  ;;  %v1319_v44 = vld [vmem:[%s8445_s25 + $0x1e8] sm:$0xff]  ;;  %v1302_v43 = vld [vmem:[%s8445_s25 + $0x160] sm:$0xff] }
 0x303   :  { %v1303_v58 = vld [vmem:[%s8445_s25 + $0x168] sm:$0xff] }
 0x304   :  { %7499 = vmatpush3.bf16.msra.mxu1 %v7498_v39  ;;  %v1316_v39 = vld [vmem:[%s8445_s25 + $0x1d0] sm:$0xff]  ;;  %v7518_v27 = vpack.c.bf16 %v1303_v58, %v1302_v43 }
 0x305   :  { %7501 = vmatprep.subr.bf16.mxu1 %v7500_v48  ;;  %v1317_v48 = vld [vmem:[%s8445_s25 + $0x1d8] sm:$0xff] }
 0x306   :  { %v7512_v52 = vpack.c.bf16 %v1317_v48, %v1316_v39 }
 0x308   :  { %7503 = vmatpush3.bf16.msra.mxu1 %v7502_v34  ;;  %v1318_v34 = vld [vmem:[%s8445_s25 + $0x1e0] sm:$0xff] }
 0x309   :  { %7505 = vmatprep.subr.bf16.mxu1 %v7504_v32  ;;  %v7514_v32 = vpack.c.bf16 %v1301_v30, %v1300_v41  ;;  %v7516_v31 = vpack.c.bf16 %v1319_v44, %v1318_v34  ;;  %v1323_v30 = vld [vmem:[%s8450_s29 + $0x8] sm:$0xff]  ;;  %v1322_v34 = vld [vmem:[%s8450_s29] sm:$0xff] }
 0x30a   :  { %2078 = vmatprep.subr.mxu0 %v1323_v30  ;;  %v1256_v30 = vld [vmem:[%s8440_s21 + $0x18] sm:$0xff] }
 0x30b   :  { %2079 = vmatpush1.msra.mxu0 %v1322_v34  ;;  %v1257_v34 = vld [vmem:[%s8440_s21 + $0x20] sm:$0xf] }
 0x30c   :  { %7507 = vmatpush3.bf16.msra.mxu1 %v7506_v49  ;;  %v7520_v49 = vpack.c.bf16 %v1321_v20, %v1320_v23 }
 0x30d   :  { %7509 = vmatprep.subr.bf16.mxu1 %v7508_v60  ;;  %v1304_v60 = vld [vmem:[%s8445_s25 + $0x170] sm:$0xff] }
 0x30e   :  { %v7522_v33 = vpack.c.bf16 %v1305_v63, %v1304_v60 }
 0x310   :  { %7511 = vmatpush3.bf16.msra.mxu1 %v7510_v37 }
 0x311   :  { %7513 = vmatprep.subr.bf16.mxu1 %v7512_v52 }
 0x314   :  { %7515 = vmatpush3.bf16.msra.mxu1 %v7514_v32 }
 0x315   :  { %7517 = vmatprep.subr.bf16.mxu1 %v7516_v31 }
 0x318   :  { %7519 = vmatpush3.bf16.msra.mxu1 %v7518_v27 }
 0x319   :  { %7521 = vmatprep.subr.bf16.mxu1 %v7520_v49  ;;  %v1324_v49 = vld [vmem:[%s8450_s29 + $0x10] sm:$0xff] }
 0x31c   :  { %7523 = vmatpush3.bf16.msra.mxu1 %v7522_v33 }
 0x31f   :  { %2058 = vmatmul.mubr.f32.vlgmr.msra.gmra.mrb[4].mxu1 %v1918_v47  ;;  %v1325_v47 = vld [vmem:[%s8450_s29 + $0x18] sm:$0xff] }
 0x320   :  { %2408 = vmatprep.mubr.f32.mxu1 %v11478_v35  ;;  %2149 = vmatprep.subr.mxu0 %v1325_v47 }
 0x3d2   :  { %v6823_v39 = vpop.f32.mrb[2].mxu1 }
 0x3d3   :  { %v6824_v48 = vpop.f32.mrb[3].mxu1 }
 0x3d4   :  { %v6825_v37 = vadd.f32 %v6824_v48, %v6823_v39  ;;  %v1253_v39 = vld [vmem:[%s8440_s21] sm:$0xff] }
 0x3f2   :  { %v6858_v52 = vpop.f32.mrb[4].mxu1 }
 0x3f3   :  { %v6859_v41 = vpop.f32.mrb[5].mxu1 }
 0x3f4   :  { %v6860_v44 = vadd.f32 %v6859_v41, %v6858_v52  ;;  %v1254_v52 = vld [vmem:[%s8440_s21 + $0x8] sm:$0xff]  ;;  %v1255_v41 = vld [vmem:[%s8440_s21 + $0x10] sm:$0xff] }
 0x3f6   :  { %v2060_v20 = vadd.f32 %v6860_v44, %v6825_v37 }
 0x3f8   :  { %v2063_v23 = vmul.f32 0.0009765625, %v2060_v20 }
 0x3fa   :  { %v2064_v27 = vmul.f32 %v2063_v23, %v2063_v23 }
 0x3fc   :  { %2066 = vrot.lane.b32.xlu0 %v2064_v27, %s8402_s0 }
 0x46e   :  { %v2067_v32 = vpop.permute.xlu0 %2066 }
 0x46f   :  { %v2069_v31 = vsub.f32 %v2063_v23, %v2067_v32 }
 0x471   :  { %v2070_v43 = vmax.f32 %v2069_v31, 0.0 }
 0x473   :  { %8281 = vrsqrt.f32 %v2070_v43 }
 0x47d   :  { %v8282_v58 = vpop.eup %8281 }
 0x47e   :  { %v2073_v60 = vsel %vm2072_vm5, %v2063_v23, %v8282_v58 }
 0x47f   :  { %6700 = vmatmul.mubr.msk.f32.vlgmr.msra.gmra.mrb[12].mxu0 %vm2074_vm6, %v2073_v60 }
 0x480   :  { %2150 = vmatpush1.msra.mxu0 %v1324_v49  ;;  %2213 = vmatprep.mubr.f32.mxu0 %v11478_v35 }
 0x483   :  { %6701 = vmatmul.mubr.msk.f32.vlgmr.msra.gmra.mrb[14].mxu0 %vm2074_vm6, %v2073_v60 }
 0x484   :  { %2313 = vmatprep.mubr.f32.mxu0 %v11478_v35 }
 0x552   :  { %v2144_v63 = vpop.f32.mrb[12].mxu0 }
 0x553   :  { %v2146_v33 = vpop.f32.mrb[13].mxu0 }
 0x554   :  { %6702 = vmatprep.subr.msk.mxu0 %vm2236_vm7, %v2146_v33 }
 0x555   :  { %6703 = vmatpush1.msk.msra.mxu0 %vm2236_vm7, %v2144_v63 }
 0x556   :  { %v2215_v48 = vpop.f32.mrb[14].mxu0  ;;  %6704 = vmatmul.mubr.msk.f32.vlgmr.msra.gmra.mrb[16].mxu0 %vm2220_vm8, %v1253_v39 }
 0x557   :  { %v2217_v37 = vpop.f32.mrb[15].mxu0  ;;  %2319 = vmatprep.mubr.f32.mxu0 %v11478_v35 }
 0x558   :  { %6709 = vmatprep.subr.msk.mxu1 %vm2236_vm7, %v2217_v37 }
 0x559   :  { %6710 = vmatpush1.msk.msra.mxu1 %vm2236_vm7, %v2215_v48 }
 0x55a   :  { %6705 = vmatmul.mubr.msk.f32.gmra.mrb[18].mxu0 %vm2220_vm8, %v1254_v52  ;;  %6711 = vmatmul.mubr.msk.f32.vlgmr.msra.gmra.mrb[6].mxu1 %vm2220_vm8, %v1253_v39 }
 0x55b   :  { %2325 = vmatprep.mubr.f32.mxu0 %v11478_v35  ;;  %2414 = vmatprep.mubr.f32.mxu1 %v11478_v35 }
 0x55e   :  { %6706 = vmatmul.mubr.msk.f32.gmra.mrb[20].mxu0 %vm2220_vm8, %v1255_v41  ;;  %6712 = vmatmul.mubr.msk.f32.gmra.mrb[8].mxu1 %vm2220_vm8, %v1254_v52 }
 0x55f   :  { %2331 = vmatprep.mubr.f32.mxu0 %v11478_v35  ;;  %2420 = vmatprep.mubr.f32.mxu1 %v11478_v35 }
 0x562   :  { %6707 = vmatmul.mubr.msk.f32.gmra.mrb[22].mxu0 %vm2220_vm8, %v1256_v30  ;;  %6713 = vmatmul.mubr.msk.f32.gmra.mrb[10].mxu1 %vm2220_vm8, %v1255_v41 }
 0x563   :  { %2337 = vmatprep.mubr.f32.mxu0 %v11478_v35  ;;  %2426 = vmatprep.mubr.f32.mxu1 %v11478_v35 }
 0x566   :  { %6708 = vmatmul.mubr.msk.f32.gmra.mrb[24].mxu0 %vm2220_vm8, %v1257_v34  ;;  %6714 = vmatmul.mubr.msk.f32.gmra.mrb[12].mxu1 %vm2220_vm8, %v1256_v30 }
 0x567   :  { %2432 = vmatprep.mubr.f32.mxu1 %v11478_v35 }
 0x56a   :  { %6715 = vmatmul.mubr.msk.f32.gmra.mrb[14].mxu1 %vm2220_vm8, %v1257_v34 }
 0x629   :  { %v2315_v44 = vpop.f32.mrb[16].mxu0 }
 0x62a   :  { %v2317_v20 = vpop.f32.mrb[17].mxu0  ;;  %v2439_v23 = vsub.f32 %v9916_v42, %v2315_v44 }
 0x62b   :  { %v2440_v27 = vsub.f32 %v9914_v36, %v2317_v20 }
 0x62d   :  { %v2321_v47 = vpop.f32.mrb[18].mxu0  ;;  %v2410_v32 = vpop.f32.mrb[6].mxu1 }
 0x62e   :  { %v10076_v31 = vmul.f32 %v2439_v23, %v2410_v32  ;;  %v2323_v43 = vpop.f32.mrb[19].mxu0  ;;  %v2412_v58 = vpop.f32.mrb[7].mxu1  ;;  %v2441_v60 = vsub.f32 %v9918_v51, %v2321_v47 }
 0x62f   :  { %v2450_v49 = vmul.f32 %v2440_v27, %v2412_v58  ;;  %v2442_v33 = vsub.f32 %v9920_v29, %v2323_v43 }
 0x630   :  { %v2459_v63 = vmax.f32 %v10076_v31, 0.0 }
 0x631   :  { %v2460_v39 = vmax.f32 %v2450_v49, 0.0  ;;  %v2327_v48 = vpop.f32.mrb[20].mxu0  ;;  %v2416_v37 = vpop.f32.mrb[8].mxu1 }
 0x632   :  { %v10081_v52 = vmul.f32 %v2441_v60, %v2416_v37  ;;  %v2329_v42 = vpop.f32.mrb[21].mxu0  ;;  %v2418_v36 = vpop.f32.mrb[9].mxu1  ;;  %v2443_v30 = vsub.f32 %v9936_v38, %v2327_v48 }
 0x633   :  { %v10083_v41 = vmul.f32 %v2442_v33, %v2418_v36  ;;  %v2444_v44 = vsub.f32 %v9934_v55, %v2329_v42  ;;  %2728 = vmatprep.mubr.f32.mxu1 %v2460_v39 }
 0x634   :  { %v2461_v34 = vmax.f32 %v10081_v52, 0.0 }
 0x635   :  { %v2462_v51 = vmax.f32 %v10083_v41, 0.0  ;;  %v2333_v20 = vpop.f32.mrb[22].mxu0  ;;  %v2422_v23 = vpop.f32.mrb[10].mxu1 }
 0x636   :  { %v10089_v29 = vmul.f32 %v2443_v30, %v2422_v23  ;;  %v2335_v27 = vpop.f32.mrb[23].mxu0  ;;  %v2424_v47 = vpop.f32.mrb[11].mxu1  ;;  %v2445_v43 = vsub.f32 %v9938_v46, %v2333_v20 }
 0x637   :  { %v10091_v32 = vmul.f32 %v2444_v44, %v2424_v47  ;;  %v2446_v38 = vsub.f32 %v9940_v45, %v2335_v27 }
 0x638   :  { %v2463_v58 = vmax.f32 %v10089_v29, 0.0 }
 0x639   :  { %v2464_v49 = vmax.f32 %v10091_v32, 0.0  ;;  %v2339_v60 = vpop.f32.mrb[24].mxu0  ;;  %v2428_v55 = vpop.f32.mrb[12].mxu1 }
 0x63a   :  { %v10097_v33 = vmul.f32 %v2445_v43, %v2428_v55  ;;  %v2341_v48 = vpop.f32.mrb[25].mxu0  ;;  %v2430_v37 = vpop.f32.mrb[13].mxu1  ;;  %v2447_v36 = vsub.f32 %v9956_v26, %v2339_v60  ;;  %v7526_v26 = vpack.c.bf16 %v8607_v3, %v8598_v0 }
 0x63b   :  { %v10099_v42 = vmul.f32 %v2446_v38, %v2430_v37  ;;  %v2448_v46 = vsub.f32 %v9954_v40, %v2341_v48  ;;  %v7524_v38 = vpack.c.bf16 %v8610_v4, %v8601_v1  ;;  %v7528_v40 = vpack.c.bf16 %v8628_v10, %v8619_v7 }
 0x63c   :  { %v2465_v30 = vmax.f32 %v10097_v33, 0.0 }
 0x63d   :  { %v2466_v44 = vmax.f32 %v10099_v42, 0.0  ;;  %v2434_v20 = vpop.f32.mrb[14].mxu1 }
 0x63e   :  { %v10105_v45 = vmul.f32 %v2447_v36, %v2434_v20  ;;  %v2436_v23 = vpop.f32.mrb[15].mxu1 }
 0x63f   :  { %v10107_v27 = vmul.f32 %v2448_v46, %v2436_v23 }
 0x640   :  { %v2467_v47 = vmax.f32 %v10105_v45, 0.0 }
 0x641   :  { %v2468_v43 = vmax.f32 %v10107_v27, 0.0 }
 0x642   :  { %8348 = dma.done.wait [#allocation10], 12288 }
 0x643   :  { %8349 = vsyncadd [#allocation10], 4294955008  ;;  %2633 = vmatprep.mubr.f32.mxu0 %v2460_v39  ;;  %7525 = vmatprep.subr.bf16.mxu0 %v7524_v38  ;;  %v7530_v60 = vpack.c.bf16 %v8625_v9, %v8616_v6  ;;  %v7532_v55 = vpack.c.bf16 %v8646_v16, %v8637_v13  ;;  %v7588_v1 = vpack.c.bf16 %v8757_v53, %v8748_v50  ;;  %v11483_v13 = vld [vmem:[#allocation48_spill] sm:$0xff]  ;;  %v11491_v53 = vld [vmem:[#allocation50_spill] sm:$0xff]  ;;  %s8403_s5 = smov 96   ;;  %vm2784_vm9 = vcmask 785408  }
 0x644   :  { %7527 = vmatpush1.bf16.msra.mxu0 %v7526_v26  ;;  %v7590_v0 = vpack.c.bf16 %v8613_v5, %v8604_v2  ;;  %v7592_v3 = vpack.c.bf16 %v8775_v59, %v8766_v56  ;;  %v7534_v4 = vpack.c.bf16 %v8643_v15, %v8634_v12  ;;  %v7594_v6 = vpack.c.bf16 %v8631_v11, %v8622_v8  ;;  %v11482_v11 = vld [vmem:[#allocation51_spill] sm:$0xff]  ;;  %v11484_v15 = vld [vmem:[#allocation49_spill] sm:$0xff]  ;;  %v11493_v56 = vld [vmem:[#allocation60_spill] sm:$0xff]  ;;  %s11545_s9 = sld [smem:[#allocation30_spill]] }
 0x645   :  { %7529 = vmatprep.subr.bf16.mxu0 %v7528_v40  ;;  %7589 = vmatprep.subr.bf16.mxu1 %v7588_v1  ;;  %v7536_v7 = vpack.c.bf16 %v8664_v22, %v8655_v19  ;;  %v7596_v2 = vpack.c.bf16 %v8793_v54, %v8784_v62  ;;  %v7538_v5 = vpack.c.bf16 %v8661_v21, %v8652_v18  ;;  %v11485_v18 = vld [vmem:[#allocation54_spill] sm:$0xff]  ;;  %v11486_v19 = vld [vmem:[#allocation57_spill] sm:$0xff]  ;;  %v11488_v21 = vld [vmem:[#allocation92_spill] sm:$0xff] }
 0x646   :  { %7591 = vmatpush3.bf16.msra.mxu1 %v7590_v0  ;;  %v7598_v9 = vpack.c.bf16 %v8649_v17, %v8640_v14  ;;  %v7540_v8 = vpack.c.bf16 %v8682_v28, %v8673_v25  ;;  %v7600_v10 = vpack.c.bf16 %v8811_v57, %v8802_v61  ;;  %v7542_v12 = vpack.c.bf16 %v11482_v11, %v8670_v24  ;;  %v11487_v17 = vld [vmem:[#allocation89_spill] sm:$0xff]  ;;  %v11490_v28 = vld [vmem:[#allocation56_spill] sm:$0xff]  ;;  %v11494_v57 = vld [vmem:[#allocation63_spill] sm:$0xff] }
 0x647   :  { %7593 = vmatprep.subr.bf16.mxu1 %v7592_v3  ;;  %v7602_v16 = vpack.c.bf16 %v11484_v15, %v11483_v13  ;;  %v7544_v14 = vpack.c.bf16 %v11486_v19, %v11485_v18  ;;  %v7604_v22 = vpack.c.bf16 %v11488_v21, %v11487_v17  ;;  %v11489_v25 = vld [vmem:[#allocation53_spill] sm:$0xff]  ;;  %v11492_v54 = vld [vmem:[#allocation52_spill] sm:$0xff]  ;;  %v7548_v59 = vpack.c.bf16 %v11494_v57, %v11493_v56  ;;  %v11495_v61 = vld [vmem:[#allocation95_spill] sm:$0xff] }
 0x648   :  { %7531 = vmatpush1.bf16.msra.mxu0 %v7530_v60  ;;  %v7546_v50 = vpack.c.bf16 %v11490_v28, %v11489_v25  ;;  %v7606_v24 = vpack.c.bf16 %v11492_v54, %v11491_v53  ;;  %v11496_v62 = vld [vmem:[#allocation98_spill] sm:$0xff]  ;;  %v11497_v48 = vld [vmem:[#allocation59_spill] sm:$0xff]  ;;  %v11502_v26 = vld [vmem:[#allocation69_spill] sm:$0xff] }
 0x649   :  { %7533 = vmatprep.subr.bf16.mxu0 %v7532_v55  ;;  %v7608_v39 = vpack.c.bf16 %v11496_v62, %v11495_v61  ;;  %v11498_v37 = vld [vmem:[#allocation62_spill] sm:$0xff]  ;;  %v11499_v46 = vld [vmem:[#allocation55_spill] sm:$0xff]  ;;  %v11503_v60 = vld [vmem:[#allocation101_spill] sm:$0xff] }
 0x64a   :  { %7595 = vmatpush3.bf16.msra.mxu1 %v7594_v6  ;;  %v7550_v36 = vpack.c.bf16 %v11498_v37, %v11497_v48  ;;  %v11500_v20 = vld [vmem:[#allocation58_spill] sm:$0xff]  ;;  %v11504_v55 = vld [vmem:[#allocation104_spill] sm:$0xff]  ;;  %v11505_v0 = vld [vmem:[#allocation65_spill] sm:$0xff] }
 0x64b   :  { %7597 = vmatprep.subr.bf16.mxu1 %v7596_v2  ;;  %v7610_v23 = vpack.c.bf16 %v11500_v20, %v11499_v46  ;;  %v11501_v38 = vld [vmem:[#allocation66_spill] sm:$0xff]  ;;  %v7612_v1 = vpack.c.bf16 %v11504_v55, %v11503_v60  ;;  %v11506_v3 = vld [vmem:[#allocation68_spill] sm:$0xff]  ;;  %v11507_v6 = vld [vmem:[#allocation61_spill] sm:$0xff] }
 0x64c   :  { %7535 = vmatpush1.bf16.msra.mxu0 %v7534_v4  ;;  %v7552_v40 = vpack.c.bf16 %v11502_v26, %v11501_v38  ;;  %v7554_v4 = vpack.c.bf16 %v11506_v3, %v11505_v0  ;;  %v11512_v11 = vld [vmem:[#allocation110_spill] sm:$0xff]  ;;  %v11513_v13 = vld [vmem:[#allocation71_spill] sm:$0xff]  ;;  %v11514_v15 = vld [vmem:[#allocation73_spill] sm:$0xff] }
 0x64d   :  { %7537 = vmatprep.subr.bf16.mxu0 %v7536_v7  ;;  %v11508_v7 = vld [vmem:[#allocation64_spill] sm:$0xff]  ;;  %v11515_v18 = vld [vmem:[#allocation67_spill] sm:$0xff]  ;;  %v11516_v19 = vld [vmem:[#allocation70_spill] sm:$0xff] }
 0x64e   :  { %7599 = vmatpush3.bf16.msra.mxu1 %v7598_v9  ;;  %v7614_v2 = vpack.c.bf16 %v11508_v7, %v11507_v6  ;;  %v11510_v9 = vld [vmem:[#allocation74_spill] sm:$0xff]  ;;  %v11517_v17 = vld [vmem:[#allocation76_spill] sm:$0xff]  ;;  %v11519_v25 = vld [vmem:[#allocation75_spill] sm:$0xff] }
 0x64f   :  { %7601 = vmatprep.subr.bf16.mxu1 %v7600_v10  ;;  %v11511_v10 = vld [vmem:[#allocation107_spill] sm:$0xff]  ;;  %v11518_v21 = vld [vmem:[#allocation78_spill] sm:$0xff]  ;;  %v11520_v28 = vld [vmem:[#allocation77_spill] sm:$0xff] }
 0x650   :  { %7539 = vmatpush1.bf16.msra.mxu0 %v7538_v5  ;;  %v11509_v5 = vld [vmem:[#allocation72_spill] sm:$0xff]  ;;  %v11522_v54 = vld [vmem:[#allocation82_spill] sm:$0xff]  ;;  %v11523_v56 = vld [vmem:[#allocation79_spill] sm:$0xff] }
 0x651   :  { %7541 = vmatprep.subr.bf16.mxu0 %v7540_v8  ;;  %v7556_v8 = vpack.c.bf16 %v11510_v9, %v11509_v5  ;;  %v11521_v53 = vld [vmem:[#allocation80_spill] sm:$0xff]  ;;  %v11524_v57 = vld [vmem:[#allocation81_spill] sm:$0xff]  ;;  %v11526_v62 = vld [vmem:[#allocation86_spill] sm:$0xff] }
 0x652   :  { %7603 = vmatpush3.bf16.msra.mxu1 %v7602_v16  ;;  %v7558_v16 = vpack.c.bf16 %v11514_v15, %v11513_v13  ;;  %v11525_v61 = vld [vmem:[#allocation84_spill] sm:$0xff]  ;;  %v11527_v48 = vld [vmem:[#allocation83_spill] sm:$0xff]  ;;  %v11528_v37 = vld [vmem:[#allocation85_spill] sm:$0xff] }
 0x653   :  { %7605 = vmatprep.subr.bf16.mxu1 %v7604_v22  ;;  %v7560_v22 = vpack.c.bf16 %v11518_v21, %v11517_v17  ;;  %v11529_v46 = vld [vmem:[#allocation88_spill] sm:$0xff]  ;;  %v11530_v20 = vld [vmem:[#allocation91_spill] sm:$0xff]  ;;  %v11532_v26 = vld [vmem:[#allocation90_spill] sm:$0xff] }
 0x654   :  { %7543 = vmatpush1.bf16.msra.mxu0 %v7542_v12  ;;  %v7616_v12 = vpack.c.bf16 %v11512_v11, %v11511_v10  ;;  %v11531_v38 = vld [vmem:[#allocation87_spill] sm:$0xff]  ;;  %v11533_v60 = vld [vmem:[#allocation94_spill] sm:$0xff]  ;;  %v11534_v55 = vld [vmem:[#allocation97_spill] sm:$0xff] }
 0x655   :  { %7545 = vmatprep.subr.bf16.mxu0 %v7544_v14  ;;  %v7618_v14 = vpack.c.bf16 %v11516_v19, %v11515_v18  ;;  %v11535_v0 = vld [vmem:[#allocation93_spill] sm:$0xff]  ;;  %v11536_v3 = vld [vmem:[#allocation96_spill] sm:$0xff]  ;;  %v11538_v7 = vld [vmem:[#allocation103_spill] sm:$0xff] }
 0x656   :  { %7607 = vmatpush3.bf16.msra.mxu1 %v7606_v24  ;;  %v7564_v24 = vpack.c.bf16 %v11522_v54, %v11521_v53  ;;  %v11537_v6 = vld [vmem:[#allocation100_spill] sm:$0xff]  ;;  %v11539_v5 = vld [vmem:[#allocation99_spill] sm:$0xff]  ;;  %v11540_v9 = vld [vmem:[#allocation102_spill] sm:$0xff] }
 0x657   :  { %7609 = vmatprep.subr.bf16.mxu1 %v7608_v39  ;;  %v7568_v39 = vpack.c.bf16 %v11526_v62, %v11525_v61  ;;  %v11541_v10 = vld [vmem:[#allocation106_spill] sm:$0xff]  ;;  %v11542_v11 = vld [vmem:[#allocation109_spill] sm:$0xff]  ;;  %v11544_v15 = vld [vmem:[#allocation108_spill] sm:$0xff] }
 0x658   :  { %7547 = vmatpush1.bf16.msra.mxu0 %v7546_v50  ;;  %v7562_v50 = vpack.c.bf16 %v11520_v28, %v11519_v25  ;;  %v11543_v13 = vld [vmem:[#allocation105_spill] sm:$0xff] }
 0x659   :  { %7549 = vmatprep.subr.bf16.mxu0 %v7548_v59  ;;  %v7566_v59 = vpack.c.bf16 %v11524_v57, %v11523_v56 }
 0x65a   :  { %7611 = vmatpush3.bf16.msra.mxu1 %v7610_v23  ;;  %v7572_v23 = vpack.c.bf16 %v11530_v20, %v11529_v46 }
 0x65b   :  { %7613 = vmatprep.subr.bf16.mxu1 %v7612_v1  ;;  %v7576_v1 = vpack.c.bf16 %v11534_v55, %v11533_v60 }
 0x65c   :  { %7551 = vmatpush1.bf16.msra.mxu0 %v7550_v36  ;;  %v7570_v36 = vpack.c.bf16 %v11528_v37, %v11527_v48 }
 0x65d   :  { %7553 = vmatprep.subr.bf16.mxu0 %v7552_v40  ;;  %v7574_v40 = vpack.c.bf16 %v11532_v26, %v11531_v38 }
 0x65e   :  { %7615 = vmatpush3.bf16.msra.mxu1 %v7614_v2  ;;  %v7580_v2 = vpack.c.bf16 %v11538_v7, %v11537_v6 }
 0x65f   :  { %7617 = vmatprep.subr.bf16.mxu1 %v7616_v12  ;;  %v7584_v12 = vpack.c.bf16 %v11542_v11, %v11541_v10 }
 0x660   :  { %7555 = vmatpush1.bf16.msra.mxu0 %v7554_v4  ;;  %v7578_v4 = vpack.c.bf16 %v11536_v3, %v11535_v0 }
 0x661   :  { %7557 = vmatprep.subr.bf16.mxu0 %v7556_v8  ;;  %v7582_v8 = vpack.c.bf16 %v11540_v9, %v11539_v5 }
 0x662   :  { %7619 = vmatpush3.bf16.msra.mxu1 %v7618_v14 }
 0x664   :  { %7559 = vmatpush1.bf16.msra.mxu0 %v7558_v16  ;;  %v7586_v16 = vpack.c.bf16 %v11544_v15, %v11543_v13 }
 0x665   :  { %7561 = vmatprep.subr.bf16.mxu0 %v7560_v22  ;;  %2729 = vmatmul.mubr.f32.vlgmr.msra.gmra.mrb[16].mxu1 %v2459_v63 }
 0x666   :  { %2733 = vmatprep.mubr.f32.mxu1 %v2462_v51 }
 0x668   :  { %7563 = vmatpush1.bf16.msra.mxu0 %v7562_v50 }
 0x669   :  { %7565 = vmatprep.subr.bf16.mxu0 %v7564_v24  ;;  %2734 = vmatmul.mubr.f32.gmra.mrb[18].mxu1 %v2461_v34 }
 0x66a   :  { %2738 = vmatprep.mubr.f32.mxu1 %v2464_v49 }
 0x66c   :  { %7567 = vmatpush1.bf16.msra.mxu0 %v7566_v59 }
 0x66d   :  { %7569 = vmatprep.subr.bf16.mxu0 %v7568_v39  ;;  %2739 = vmatmul.mubr.f32.gmra.mrb[20].mxu1 %v2463_v58 }
 0x66e   :  { %2743 = vmatprep.mubr.f32.mxu1 %v2466_v44 }
 0x670   :  { %7571 = vmatpush1.bf16.msra.mxu0 %v7570_v36 }
 0x671   :  { %7573 = vmatprep.subr.bf16.mxu0 %v7572_v23  ;;  %2744 = vmatmul.mubr.f32.gmra.mrb[22].mxu1 %v2465_v30 }
 0x672   :  { %2748 = vmatprep.mubr.f32.mxu1 %v2468_v43 }
 0x674   :  { %7575 = vmatpush1.bf16.msra.mxu0 %v7574_v40 }
 0x675   :  { %7577 = vmatprep.subr.bf16.mxu0 %v7576_v1  ;;  %2749 = vmatmul.mubr.f32.gmra.mrb[24].mxu1 %v2467_v47 }
 0x676   :  { %2892 = vmatprep.mubr.f32.mxu1 %v11478_v35 }
 0x678   :  { %7579 = vmatpush1.bf16.msra.mxu0 %v7578_v4 }
 0x679   :  { %7581 = vmatprep.subr.bf16.mxu0 %v7580_v2 }
 0x67c   :  { %7583 = vmatpush1.bf16.msra.mxu0 %v7582_v8 }
 0x67d   :  { %7585 = vmatprep.subr.bf16.mxu0 %v7584_v12 }
 0x680   :  { %7587 = vmatpush1.bf16.msra.mxu0 %v7586_v16  ;;  %v2810_v16 = vld [vmem:[%s11545_s9] sm:$0xff] }
 0x683   :  { %2634 = vmatmul.mubr.f32.vlgmr.msra.gmra.mrb[26].mxu0 %v2459_v63 }
 0x684   :  { %2639 = vmatprep.mubr.f32.mxu0 %v2462_v51 }
 0x687   :  { %2640 = vmatmul.mubr.f32.gmra.mrb[28].mxu0 %v2461_v34 }
 0x688   :  { %2645 = vmatprep.mubr.f32.mxu0 %v2464_v49 }
 0x68b   :  { %2646 = vmatmul.mubr.f32.gmra.mrb[30].mxu0 %v2463_v58 }
 0x68c   :  { %2651 = vmatprep.mubr.f32.mxu0 %v2466_v44 }
 0x68f   :  { %2652 = vmatmul.mubr.f32.gmra.mrb[32].mxu0 %v2465_v30 }
 0x690   :  { %2657 = vmatprep.mubr.f32.mxu0 %v2468_v43 }
 0x693   :  { %2658 = vmatmul.mubr.f32.gmra.mrb[34].mxu0 %v2467_v47 }
 0x738   :  { %v6893_v31 = vpop.f32.mrb[16].mxu1 }
 0x739   :  { %v6894_v63 = vpop.f32.mrb[17].mxu1 }
 0x73a   :  { %v6895_v52 = vadd.f32 %v6894_v63, %v6893_v31  ;;  %v2811_v31 = vld [vmem:[%s11545_s9 + $0x8] sm:$0xff]  ;;  %v2812_v63 = vld [vmem:[%s11545_s9 + $0x10] sm:$0x3f] }
 0x73c   :  { %v6896_v41 = vpop.f32.mrb[18].mxu1 }
 0x73d   :  { %v6897_v34 = vpop.f32.mrb[19].mxu1 }
 0x73e   :  { %v6898_v51 = vadd.f32 %v6897_v34, %v6896_v41  ;;  %v6722_v41 = vld [vmem:[%s11545_s9 + $0x20] sm:$0xff]  ;;  %v6723_v34 = vld [vmem:[%s11545_s9 + $0x28] sm:$0x3f] }
 0x740   :  { %v6899_v29 = vpop.f32.mrb[20].mxu1 }
 0x741   :  { %v6900_v32 = vpop.f32.mrb[21].mxu1 }
 0x742   :  { %v6901_v58 = vadd.f32 %v6900_v32, %v6899_v29 }
 0x744   :  { %v6902_v49 = vpop.f32.mrb[22].mxu1 }
 0x745   :  { %v6903_v42 = vpop.f32.mrb[23].mxu1 }
 0x746   :  { %v6904_v44 = vadd.f32 %v6903_v42, %v6902_v49 }
 0x748   :  { %v6905_v33 = vpop.f32.mrb[24].mxu1 }
 0x749   :  { %v6906_v30 = vpop.f32.mrb[25].mxu1 }
 0x74a   :  { %v6907_v18 = vadd.f32 %v6906_v30, %v6905_v33 }
 0x756   :  { %v2635_v27 = vpop.f32.mrb[26].mxu0 }
 0x757   :  { %v2637_v43 = vpop.f32.mrb[27].mxu0 }
 0x758   :  { %v8283_v19 = vpack.i.bf16 %v6895_v52, %v2637_v43  ;;  %v6721_v52 = vld [vmem:[%s11545_s9 + $0x18] sm:$0xff] }
 0x75a   :  { %8284 = vrot.lane.b32.xlu0 %v8283_v19, %s8403_s5  ;;  %v2641_v45 = vpop.f32.mrb[28].mxu0 }
 0x75b   :  { %v2643_v47 = vpop.f32.mrb[29].mxu0 }
 0x75c   :  { %v8288_v14 = vpack.i.bf16 %v6898_v51, %v2643_v47 }
 0x75e   :  { %8289 = vrot.lane.b32.xlu0 %v8288_v14, %s8403_s5  ;;  %v2647_v17 = vpop.f32.mrb[30].mxu0 }
 0x75f   :  { %v2649_v21 = vpop.f32.mrb[31].mxu0 }
 0x760   :  { %v8293_v22 = vpack.i.bf16 %v6901_v58, %v2649_v21 }
 0x762   :  { %8294 = vrot.lane.b32.xlu1 %v8293_v22, %s8403_s5  ;;  %v2653_v25 = vpop.f32.mrb[32].mxu0  ;;  %v11546_v22 = vld [vmem:[#allocation131_spill] sm:$0xff] }
 0x763   :  { %v2655_v28 = vpop.f32.mrb[33].mxu0 }
 0x764   :  { %v8298_v50 = vpack.i.bf16 %v6904_v44, %v2655_v28 }
 0x766   :  { %8299 = vrot.lane.b32.xlu1 %v8298_v50, %s8403_s5  ;;  %v2659_v53 = vpop.f32.mrb[34].mxu0  ;;  %v11548_v50 = vld [vmem:[#allocation111_spill] sm:$0xff] }
 0x767   :  { %v2661_v54 = vpop.f32.mrb[35].mxu0 }
 0x768   :  { %2780 = vrot.lane.b32.xlu0 %v2661_v54, %s8403_s5 }
 0x76a   :  { %2782 = vrot.lane.b32.xlu1 %v6907_v18, %s8403_s5 }
 0x7cc   :  { %v8285_v24 = vpop.permute.xlu0 %8284 }
 0x7cd   :  { %v8287_v56 = vunpack.i.h.bf16 %v8285_v24  ;;  %v8286_v57 = vunpack.i.l.bf16 %v8285_v24 }
 0x7cf   :  { %v2785_v61 = vsel %vm2784_vm9, %v8286_v57, %v8287_v56  ;;  %v2801_v48 = vmax.f32 %v2637_v43, %v8287_v56 }
 0x7d0   :  { %v8290_v59 = vpop.permute.xlu0 %8289  ;;  %v2800_v46 = vmax.f32 %v2635_v27, %v2785_v61 }
 0x7d1   :  { %v8292_v62 = vunpack.i.h.bf16 %v8290_v59  ;;  %v8291_v39 = vunpack.i.l.bf16 %v8290_v59 }
 0x7d3   :  { %v2803_v37 = vmax.f32 %v2643_v47, %v8292_v62  ;;  %v2786_v36 = vsel %vm2784_vm9, %v8291_v39, %v8292_v62 }
 0x7d4   :  { %v2802_v20 = vmax.f32 %v2641_v45, %v2786_v36  ;;  %v8295_v23 = vpop.permute.xlu1 %8294 }
 0x7d5   :  { %v8297_v38 = vunpack.i.h.bf16 %v8295_v23  ;;  %v8296_v26 = vunpack.i.l.bf16 %v8295_v23  ;;  %v7620_v40 = vpack.c.bf16 %v2803_v37, %v2801_v48 }
 0x7d6   :  { %v7622_v60 = vpack.c.bf16 %v2802_v20, %v2800_v46 }
 0x7d7   :  { %7621 = vmatprep.subr.bf16.mxu1 %v7620_v40  ;;  %v2787_v1 = vsel %vm2784_vm9, %v8296_v26, %v8297_v38  ;;  %v2805_v4 = vmax.f32 %v2649_v21, %v8297_v38 }
 0x7d8   :  { %7623 = vmatpush1.bf16.msra.mxu1 %v7622_v60  ;;  %v8300_v55 = vpop.permute.xlu1 %8299  ;;  %v2804_v2 = vmax.f32 %v2647_v17, %v2787_v1 }
 0x7d9   :  { %v8302_v0 = vunpack.i.h.bf16 %v8300_v55  ;;  %v8301_v3 = vunpack.i.l.bf16 %v8300_v55 }
 0x7da   :  { %v2781_v8 = vpop.permute.xlu0 %2780 }
 0x7db   :  { %v2807_v6 = vmax.f32 %v2655_v28, %v8302_v0  ;;  %v2788_v7 = vsel %vm2784_vm9, %v8301_v3, %v8302_v0 }
 0x7dc   :  { %v2806_v5 = vmax.f32 %v2653_v25, %v2788_v7  ;;  %v2783_v9 = vpop.permute.xlu1 %2782  ;;  %v11547_v25 = vld [vmem:[#allocation132_spill] sm:$0xff] }
 0x7dd   :  { %v7624_v10 = vpack.c.bf16 %v2807_v6, %v2805_v4  ;;  %v2809_v12 = vmax.f32 %v2661_v54, %v2783_v9  ;;  %v2789_v13 = vsel %vm2784_vm9, %v2781_v8, %v2783_v9  ;;  %v7637_v28 = vpack.c.bf16 %v11547_v25, %v11546_v22 }
 0x7de   :  { %v7626_v11 = vpack.c.bf16 %v2806_v5, %v2804_v2  ;;  %v2808_v15 = vmax.f32 %v2659_v53, %v2789_v13  ;;  %v11549_v53 = vld [vmem:[#allocation112_spill] sm:$0xff] }
 0x7df   :  { %7625 = vmatprep.subr.bf16.mxu1 %v7624_v10  ;;  %v7667_v54 = vpack.c.bf16 %v11549_v53, %v11548_v50 }
 0x7e0   :  { %7627 = vmatpush1.bf16.msra.mxu1 %v7626_v11 }
 0x7e1   :  { %6716 = vmatprep.subr.msk.mxu1 %vm1768_vm3, %v2809_v12 }
 0x7e4   :  { %6717 = vmatpush1.msk.msra.mxu1 %vm1768_vm3, %v2808_v15 }
 0x7e5   :  { %6718 = vmatmul.mubr.msk.f32.vlgmr.msra.gmra.mrb[26].mxu1 %vm1764_vm4, %v2810_v16  ;;  %7629 = vmatprep.subr.bf16.mxu1 %v7620_v40 }
 0x7e6   :  { %7631 = vmatpush1.bf16.msra.mxu1 %v7622_v60  ;;  %2898 = vmatprep.mubr.f32.mxu1 %v11478_v35 }
 0x7e7   :  { %7633 = vmatprep.subr.bf16.mxu1 %v7624_v10 }
 0x7e9   :  { %6719 = vmatmul.mubr.msk.f32.gmra.mrb[28].mxu1 %vm1764_vm4, %v2811_v31 }
 0x7ea   :  { %7635 = vmatpush1.bf16.msra.mxu1 %v7626_v11  ;;  %2904 = vmatprep.mubr.f32.mxu1 %v11478_v35 }
 0x7eb   :  { %6724 = vmatprep.subr.msk.mxu1 %vm1768_vm3, %v2809_v12 }
 0x7ed   :  { %6720 = vmatmul.mubr.msk.f32.gmra.mrb[30].mxu1 %vm1764_vm4, %v2812_v63 }
 0x7ee   :  { %6725 = vmatpush1.msk.msra.mxu1 %vm1768_vm3, %v2808_v15  ;;  %2988 = vmatprep.mubr.f32.mxu1 %v11478_v35 }
 0x7f1   :  { %6726 = vmatmul.mubr.msk.f32.vlgmr.msra.gmra.mrb[32].mxu1 %vm1764_vm4, %v6721_v52 }
 0x7f2   :  { %2994 = vmatprep.mubr.f32.mxu1 %v11478_v35 }
 0x7f5   :  { %6727 = vmatmul.mubr.msk.f32.gmra.mrb[34].mxu1 %vm1764_vm4, %v6722_v41 }
 0x7f6   :  { %3000 = vmatprep.mubr.f32.mxu1 %v11478_v35 }
 0x7f9   :  { %6728 = vmatmul.mubr.msk.f32.gmra.mrb[36].mxu1 %vm1764_vm4, %v6723_v34 }
 0x8b8   :  { %v2894_v51 = vpop.f32.mrb[26].mxu1 }
 0x8b9   :  { %v2896_v29 = vpop.f32.mrb[27].mxu1 }
 0x8bc   :  { %v2900_v32 = vpop.f32.mrb[28].mxu1 }
 0x8bd   :  { %v2902_v58 = vpop.f32.mrb[29].mxu1 }
 0x8c0   :  { %v2906_v49 = vpop.f32.mrb[30].mxu1 }
 0x8c1   :  { %v2908_v42 = vpop.f32.mrb[31].mxu1 }
 0x8c4   :  { %v2990_v44 = vpop.f32.mrb[32].mxu1 }
 0x8c5   :  { %v10276_v33 = vmax.f32 %v2894_v51, %v2990_v44  ;;  %v2992_v30 = vpop.f32.mrb[33].mxu1 }
 0x8c6   :  { %v10278_v18 = vmax.f32 %v2896_v29, %v2992_v30 }
 0x8c8   :  { %v2996_v27 = vpop.f32.mrb[34].mxu1 }
 0x8c9   :  { %v10280_v43 = vmax.f32 %v2900_v32, %v2996_v27  ;;  %v2998_v19 = vpop.f32.mrb[35].mxu1 }
 0x8ca   :  { %v10282_v45 = vmax.f32 %v2902_v58, %v2998_v19 }
 0x8cc   :  { %v3002_v47 = vpop.f32.mrb[36].mxu1 }
 0x8cd   :  { %v10284_v14 = vmax.f32 %v2906_v49, %v3002_v47  ;;  %v3004_v17 = vpop.f32.mrb[37].mxu1 }
 0x8ce   :  { %v10286_v21 = vmax.f32 %v2908_v42, %v3004_v17 }
 0x8cf   :  { %8350 = dma.done.wait [#allocation10 + $0x1], 7680 }
 0x8d0   :  { %8351 = vsyncadd [#allocation10 + $0x1], 4294959616  ;;  %v8404_v24 = vmov 0.0|0.0   ;;  %v11550_v56 = vld [vmem:[#allocation133_spill] sm:$0xff]  ;;  %v11551_v57 = vld [vmem:[#allocation134_spill] sm:$0xff]  ;;  %v3106_v48 = vrot.slane %v10278_v18, 1 }
 0x8d1   :  { %7636 = vmatprep.subr.bf16.mxu0 %v8404_v24  ;;  %7666 = vmatprep.subr.bf16.mxu1 %v8404_v24  ;;  %v7640_v59 = vpack.c.bf16 %v11551_v57, %v11550_v56  ;;  %v11552_v61 = vld [vmem:[#allocation113_spill] sm:$0xff]  ;;  %v11553_v62 = vld [vmem:[#allocation114_spill] sm:$0xff]  ;;  %v3107_v37 = vrot.slane %v10282_v45, 1  ;;  %vm3116_vm10 = vcmask 261120   ;;  %v11554_v36 = vld [vmem:[#allocation135_spill] sm:$0xff]  ;;  %v3103_v57 = vrot.slane %v10276_v33, 1 }
 0x8d2   :  { %7638 = vmatpush1.bf16.msra.mxu0 %v7637_v28  ;;  %7668 = vmatpush1.bf16.msra.mxu1 %v7667_v54  ;;  %v7670_v39 = vpack.c.bf16 %v11553_v62, %v11552_v61  ;;  %v11555_v46 = vld [vmem:[#allocation136_spill] sm:$0xff]  ;;  %v11556_v23 = vld [vmem:[#allocation115_spill] sm:$0xff]  ;;  %v11558_v60 = vld [vmem:[#allocation137_spill] sm:$0xff]  ;;  %v3111_v61 = vrot.slane %v10286_v21, 1  ;;  %s11606_s13 = sld [smem:[#allocation31_spill]]  ;;  %s11607_s17 = sld [smem:[#allocation34_spill]] }
 0x8d3   :  { %7639 = vmatprep.subr.bf16.mxu0 %v8404_v24  ;;  %7669 = vmatprep.subr.bf16.mxu1 %v8404_v24  ;;  %v7643_v20 = vpack.c.bf16 %v11555_v46, %v11554_v36  ;;  %v11557_v38 = vld [vmem:[#allocation116_spill] sm:$0xff]  ;;  %v3108_v40 = vsel %vm1368_vm0, %v3106_v48, %v3107_v37  ;;  %v11559_v55 = vld [vmem:[#allocation138_spill] sm:$0xff]  ;;  %v11560_v0 = vld [vmem:[#allocation117_spill] sm:$0xff]  ;;  %v3109_v46 = vrot.slane %v10284_v14, 1  ;;  %s11608_s21 = sld [smem:[#allocation32_spill]]  ;;  %vm3424_vm11 = vcmask 162816  }
 0x8d4   :  { %6732 = vmatprep.mubr.msk.f32.mxu1 %vm3116_vm10, %v10278_v18  ;;  %v7673_v26 = vpack.c.bf16 %v11557_v38, %v11556_v23  ;;  %6729 = vmatprep.mubr.msk.f32.mxu0 %vm3116_vm10, %v3108_v40  ;;  %v7646_v1 = vpack.c.bf16 %v11559_v55, %v11558_v60  ;;  %v11561_v3 = vld [vmem:[#allocation118_spill] sm:$0xff]  ;;  %v11562_v6 = vld [vmem:[#allocation139_spill] sm:$0xff]  ;;  %v11563_v7 = vld [vmem:[#allocation140_spill] sm:$0xff]  ;;  %v3313_v60 = vrot.slane %v10278_v18, 2  ;;  %s11609_s25 = sld [smem:[#allocation35_spill]]  ;;  %s11610_s29 = sld [smem:[#allocation33_spill]] }
 0x8d5   :  { %v7676_v4 = vpack.c.bf16 %v11561_v3, %v11560_v0  ;;  %v7649_v2 = vpack.c.bf16 %v11563_v7, %v11562_v6  ;;  %v11564_v5 = vld [vmem:[#allocation119_spill] sm:$0xff]  ;;  %v11565_v9 = vld [vmem:[#allocation120_spill] sm:$0xff]  ;;  %v11566_v10 = vld [vmem:[#allocation141_spill] sm:$0xff] }
 0x8d6   :  { %7641 = vmatpush1.bf16.msra.mxu0 %v7640_v59  ;;  %7671 = vmatpush1.bf16.msra.mxu1 %v7670_v39  ;;  %v7679_v8 = vpack.c.bf16 %v11565_v9, %v11564_v5  ;;  %v11567_v11 = vld [vmem:[#allocation142_spill] sm:$0xff]  ;;  %v11568_v13 = vld [vmem:[#allocation121_spill] sm:$0xff]  ;;  %v11570_v31 = vld [vmem:[#allocation143_spill] sm:$0xff]  ;;  %v3104_v59 = vrot.slane %v10280_v43, 1 }
 0x8d7   :  { %7642 = vmatprep.subr.bf16.mxu0 %v8404_v24  ;;  %7672 = vmatprep.subr.bf16.mxu1 %v8404_v24  ;;  %v7652_v12 = vpack.c.bf16 %v11567_v11, %v11566_v10  ;;  %v11569_v15 = vld [vmem:[#allocation122_spill] sm:$0xff]  ;;  %v11571_v63 = vld [vmem:[#allocation144_spill] sm:$0xff]  ;;  %v11572_v41 = vld [vmem:[#allocation123_spill] sm:$0xff] }
 0x8d8   :  { %v7682_v16 = vpack.c.bf16 %v11569_v15, %v11568_v13  ;;  %v7655_v52 = vpack.c.bf16 %v11571_v63, %v11570_v31  ;;  %v11573_v34 = vld [vmem:[#allocation124_spill] sm:$0xff]  ;;  %v11574_v29 = vld [vmem:[#allocation145_spill] sm:$0xff]  ;;  %v11575_v32 = vld [vmem:[#allocation146_spill] sm:$0xff]  ;;  %v3105_v62 = vsel %vm1368_vm0, %v3103_v57, %v3104_v59  ;;  %v3110_v40 = vsel %vm1368_vm0, %v3104_v59, %v3109_v46 }
 0x8d9   :  { %v7685_v51 = vpack.c.bf16 %v11573_v34, %v11572_v41  ;;  %v7658_v58 = vpack.c.bf16 %v11575_v32, %v11574_v29  ;;  %v11576_v49 = vld [vmem:[#allocation125_spill] sm:$0xff]  ;;  %v11577_v42 = vld [vmem:[#allocation126_spill] sm:$0xff]  ;;  %v11578_v30 = vld [vmem:[#allocation147_spill] sm:$0xff]  ;;  %v3310_v29 = vrot.slane %v10276_v33, 2  ;;  %v3311_v32 = vrot.slane %v10280_v43, 2 }
 0x8da   :  { %7644 = vmatpush1.bf16.msra.mxu0 %v7643_v20  ;;  %7674 = vmatpush1.bf16.msra.mxu1 %v7673_v26  ;;  %v7688_v44 = vpack.c.bf16 %v11577_v42, %v11576_v49  ;;  %v11579_v27 = vld [vmem:[#allocation148_spill] sm:$0xff]  ;;  %v11580_v47 = vld [vmem:[#allocation127_spill] sm:$0xff]  ;;  %v11582_v25 = vld [vmem:[#allocation149_spill] sm:$0xff]  ;;  %v3112_v20 = vsel %vm1368_vm0, %v3107_v37, %v3111_v61  ;;  %v3314_v37 = vrot.slane %v10282_v45, 2  ;;  %v3316_v42 = vrot.slane %v10284_v14, 2 }
 0x8db   :  { %7645 = vmatprep.subr.bf16.mxu0 %v8404_v24  ;;  %7675 = vmatprep.subr.bf16.mxu1 %v8404_v24  ;;  %v7661_v19 = vpack.c.bf16 %v11579_v27, %v11578_v30  ;;  %v11581_v17 = vld [vmem:[#allocation128_spill] sm:$0xff]  ;;  %v11583_v28 = vld [vmem:[#allocation150_spill] sm:$0xff]  ;;  %v11584_v53 = vld [vmem:[#allocation129_spill] sm:$0xff]  ;;  %v3312_v49 = vsel %vm1608_vm2, %v3310_v29, %v3311_v32 }
 0x8dc   :  { %v7691_v22 = vpack.c.bf16 %v11581_v17, %v11580_v47  ;;  %v7664_v50 = vpack.c.bf16 %v11583_v28, %v11582_v25  ;;  %v11585_v54 = vld [vmem:[#allocation130_spill] sm:$0xff]  ;;  %v11586_v39 = vld [vmem:[#allocation151_spill] sm:$0xff]  ;;  %v11587_v48 = vld [vmem:[#allocation152_spill] sm:$0xff]  ;;  %v3315_v3 = vsel %vm1608_vm2, %v3313_v60, %v3314_v37  ;;  %v3317_v30 = vsel %vm1608_vm2, %v3311_v32, %v3316_v42 }
 0x8dd   :  { %v7694_v56 = vpack.c.bf16 %v11585_v54, %v11584_v53  ;;  %v7697_v36 = vpack.c.bf16 %v11587_v48, %v11586_v39  ;;  %v11588_v23 = vld [vmem:[#allocation153_spill] sm:$0xff]  ;;  %v11589_v38 = vld [vmem:[#allocation154_spill] sm:$0xff]  ;;  %v11590_v55 = vld [vmem:[#allocation155_spill] sm:$0xff] }
 0x8de   :  { %7647 = vmatpush1.bf16.msra.mxu0 %v7646_v1  ;;  %7677 = vmatpush1.bf16.msra.mxu1 %v7676_v4  ;;  %v7700_v26 = vpack.c.bf16 %v11589_v38, %v11588_v23  ;;  %v11591_v1 = vld [vmem:[#allocation156_spill] sm:$0xff]  ;;  %v11592_v18 = vld [vmem:[#allocation157_spill] sm:$0xff]  ;;  %v11594_v6 = vld [vmem:[#allocation159_spill] sm:$0xff] }
 0x8df   :  { %7648 = vmatprep.subr.bf16.mxu0 %v8404_v24  ;;  %7678 = vmatprep.subr.bf16.mxu1 %v8404_v24  ;;  %v7703_v0 = vpack.c.bf16 %v11591_v1, %v11590_v55  ;;  %v11595_v7 = vld [vmem:[#allocation160_spill] sm:$0xff]  ;;  %v11596_v5 = vld [vmem:[#allocation161_spill] sm:$0xff]  ;;  %v11597_v9 = vld [vmem:[#allocation162_spill] sm:$0xff] }
 0x8e0   :  { %v11598_v10 = vld [vmem:[#allocation163_spill] sm:$0xff]  ;;  %v11599_v11 = vld [vmem:[#allocation164_spill] sm:$0xff]  ;;  %v11600_v13 = vld [vmem:[#allocation165_spill] sm:$0xff] }
 0x8e1   :  { %v11601_v15 = vld [vmem:[#allocation166_spill] sm:$0xff]  ;;  %v11602_v31 = vld [vmem:[#allocation167_spill] sm:$0xff]  ;;  %v11603_v63 = vld [vmem:[#allocation168_spill] sm:$0xff] }
 0x8e2   :  { %7650 = vmatpush1.bf16.msra.mxu0 %v7649_v2  ;;  %7680 = vmatpush1.bf16.msra.mxu1 %v7679_v8  ;;  %v7709_v2 = vpack.c.bf16 %v11595_v7, %v11594_v6  ;;  %v7712_v8 = vpack.c.bf16 %v11597_v9, %v11596_v5  ;;  %v11604_v41 = vld [vmem:[#allocation169_spill] sm:$0xff]  ;;  %v11605_v34 = vld [vmem:[#allocation170_spill] sm:$0xff]  ;;  %v3018_v5 = vld [vmem:[%s11608_s21] sm:$0x3] }
 0x8e3   :  { %7651 = vmatprep.subr.bf16.mxu0 %v8404_v24  ;;  %7681 = vmatprep.subr.bf16.mxu1 %v8404_v24  ;;  %v3040_v6 = vld [vmem:[%s11607_s17 + $0x90] sm:$0xff]  ;;  %v3041_v7 = vld [vmem:[%s11607_s17 + $0x98] sm:$0xff] }
 0x8e4   :  { %v3028_v29 = vld [vmem:[%s11607_s17 + $0x30] sm:$0xff]  ;;  %v3029_v32 = vld [vmem:[%s11607_s17 + $0x38] sm:$0xff] }
 0x8e6   :  { %7653 = vmatpush1.bf16.msra.mxu0 %v7652_v12  ;;  %7683 = vmatpush1.bf16.msra.mxu1 %v7682_v16  ;;  %v7715_v12 = vpack.c.bf16 %v11599_v11, %v11598_v10  ;;  %v7718_v16 = vpack.c.bf16 %v11601_v15, %v11600_v13  ;;  %v3024_v10 = vld [vmem:[%s11607_s17 + $0x10] sm:$0xff]  ;;  %v3025_v11 = vld [vmem:[%s11607_s17 + $0x18] sm:$0xff]  ;;  %v3043_v13 = vld [vmem:[%s11607_s17 + $0xa8] sm:$0xff] }
 0x8e7   :  { %7654 = vmatprep.subr.bf16.mxu0 %v8404_v24  ;;  %7684 = vmatprep.subr.bf16.mxu1 %v8404_v24  ;;  %v7736_v15 = vpack.c.bf16 %v3025_v11, %v3024_v10 }
 0x8ea   :  { %7656 = vmatpush1.bf16.msra.mxu0 %v7655_v52  ;;  %7686 = vmatpush1.bf16.msra.mxu1 %v7685_v51  ;;  %v7721_v52 = vpack.c.bf16 %v11603_v63, %v11602_v31  ;;  %v7724_v51 = vpack.c.bf16 %v11605_v34, %v11604_v41  ;;  %v3026_v31 = vld [vmem:[%s11607_s17 + $0x20] sm:$0xff]  ;;  %v3027_v63 = vld [vmem:[%s11607_s17 + $0x28] sm:$0xff]  ;;  %v3045_v41 = vld [vmem:[%s11607_s17 + $0xb8] sm:$0xff] }
 0x8eb   :  { %7657 = vmatprep.subr.bf16.mxu0 %v8404_v24  ;;  %7687 = vmatprep.subr.bf16.mxu1 %v8404_v24  ;;  %v7740_v34 = vpack.c.bf16 %v3027_v63, %v3026_v31 }
 0x8ee   :  { %7659 = vmatpush1.bf16.msra.mxu0 %v7658_v58  ;;  %7689 = vmatpush1.bf16.msra.mxu1 %v7688_v44  ;;  %v3318_v58 = vrot.slane %v10286_v21, 2 }
 0x8ef   :  { %7660 = vmatprep.subr.bf16.mxu0 %v8404_v24  ;;  %7690 = vmatprep.subr.bf16.mxu1 %v8404_v24 }
 0x8f0   :  { %v3319_v44 = vsel %vm1608_vm2, %v3314_v37, %v3318_v58 }
 0x8f2   :  { %7662 = vmatpush1.bf16.msra.mxu0 %v7661_v19  ;;  %7692 = vmatpush1.bf16.msra.mxu1 %v7691_v22 }
 0x8f3   :  { %7663 = vmatprep.subr.bf16.mxu0 %v8404_v24  ;;  %7693 = vmatprep.subr.bf16.mxu1 %v8404_v24 }
 0x8f6   :  { %7665 = vmatpush1.bf16.msra.mxu0 %v7664_v50  ;;  %7695 = vmatpush1.bf16.msra.mxu1 %v7694_v56 }
 0x8f7   :  { %7696 = vmatprep.subr.bf16.mxu0 %v8404_v24 }
 0x8f9   :  { %3188 = vmatmul.mubr.f32.vlgmr.msra.gmra.mrb[36].mxu0 %v3105_v62  ;;  %3274 = vmatmul.mubr.f32.vlgmr.msra.gmra.mrb[38].mxu1 %v10276_v33  ;;  %v6738_v62 = vld [vmem:[%s11606_s13] ss:$0 sm:$0xff] }
 0x8fa   :  { %7698 = vmatpush1.bf16.msra.mxu0 %v7697_v36  ;;  %6730 = vmatprep.mubr.msk.f32.mxu0 %vm3116_vm10, %v3112_v20 }
 0x8fb   :  { %7699 = vmatprep.subr.bf16.mxu0 %v8404_v24  ;;  %6733 = vmatprep.mubr.msk.f32.mxu1 %vm3116_vm10, %v10282_v45  ;;  %v11593_v45 = vld [vmem:[#allocation158_spill] sm:$0xff] }
 0x8fc   :  { %v7706_v4 = vpack.c.bf16 %v11593_v45, %v11592_v18  ;;  %v3022_v45 = vld [vmem:[%s11607_s17] sm:$0xff] }
 0x8fd   :  { %3193 = vmatmul.mubr.f32.gmra.mrb[38].mxu0 %v3110_v40  ;;  %3279 = vmatmul.mubr.f32.gmra.mrb[40].mxu1 %v10280_v43 }
 0x8fe   :  { %7701 = vmatpush1.bf16.msra.mxu0 %v7700_v26  ;;  %6731 = vmatprep.mubr.msk.f32.mxu0 %vm3116_vm10, %v3111_v61 }
 0x8ff   :  { %7702 = vmatprep.subr.bf16.mxu0 %v8404_v24  ;;  %6734 = vmatprep.mubr.msk.f32.mxu1 %vm3116_vm10, %v10286_v21 }
 0x901   :  { %3198 = vmatmul.mubr.f32.gmra.mrb[40].mxu0 %v3109_v46  ;;  %3284 = vmatmul.mubr.f32.gmra.mrb[42].mxu1 %v10284_v14 }
 0x902   :  { %7704 = vmatpush1.bf16.msra.mxu0 %v7703_v0  ;;  %6735 = vmatprep.mubr.msk.f32.mxu0 %vm3116_vm10, %v3315_v3  ;;  %v3038_v0 = vld [vmem:[%s11607_s17 + $0x80] sm:$0xff]  ;;  %v3039_v3 = vld [vmem:[%s11607_s17 + $0x88] sm:$0xff] }
 0x903   :  { %7705 = vmatprep.subr.bf16.mxu0 %v8404_v24  ;;  %3498 = vmatprep.mubr.f32.mxu1 %v11478_v35 }
 0x906   :  { %7707 = vmatpush1.bf16.msra.mxu0 %v7706_v4  ;;  %v3023_v4 = vld [vmem:[%s11607_s17 + $0x8] sm:$0xff] }
 0x907   :  { %7708 = vmatprep.subr.bf16.mxu0 %v8404_v24  ;;  %v7732_v9 = vpack.c.bf16 %v3023_v4, %v3022_v45 }
 0x90a   :  { %7710 = vmatpush1.bf16.msra.mxu0 %v7709_v2  ;;  %v7730_v2 = vpack.c.bf16 %v3039_v3, %v3038_v0 }
 0x90b   :  { %7711 = vmatprep.subr.bf16.mxu0 %v8404_v24 }
 0x90e   :  { %7713 = vmatpush1.bf16.msra.mxu0 %v7712_v8  ;;  %v7734_v8 = vpack.c.bf16 %v3041_v7, %v3040_v6 }
 0x90f   :  { %7714 = vmatprep.subr.bf16.mxu0 %v8404_v24 }
 0x912   :  { %7716 = vmatpush1.bf16.msra.mxu0 %v7715_v12  ;;  %v3042_v12 = vld [vmem:[%s11607_s17 + $0xa0] sm:$0xff] }
 0x913   :  { %7717 = vmatprep.subr.bf16.mxu0 %v8404_v24 }
 0x916   :  { %7719 = vmatpush1.bf16.msra.mxu0 %v7718_v16  ;;  %v7738_v16 = vpack.c.bf16 %v3043_v13, %v3042_v12 }
 0x917   :  { %7720 = vmatprep.subr.bf16.mxu0 %v8404_v24 }
 0x91a   :  { %7722 = vmatpush1.bf16.msra.mxu0 %v7721_v52  ;;  %v3044_v52 = vld [vmem:[%s11607_s17 + $0xb0] sm:$0xff] }
 0x91b   :  { %7723 = vmatprep.subr.bf16.mxu0 %v8404_v24 }
 0x91e   :  { %7725 = vmatpush1.bf16.msra.mxu0 %v7724_v51  ;;  %v7742_v51 = vpack.c.bf16 %v3045_v41, %v3044_v52 }
 0x921   :  { %3394 = vmatmul.mubr.f32.vlgmr.msra.gmra.mrb[42].mxu0 %v3312_v49  ;;  %v3047_v49 = vld [vmem:[%s11607_s17 + $0xc8] sm:$0xff] }
 0x922   :  { %6736 = vmatprep.mubr.msk.f32.mxu0 %vm3116_vm10, %v3319_v44 }
 0x925   :  { %3399 = vmatmul.mubr.f32.gmra.mrb[44].mxu0 %v3317_v30  ;;  %v3030_v30 = vld [vmem:[%s11607_s17 + $0x40] sm:$0xff] }
 0x926   :  { %6737 = vmatprep.mubr.msk.f32.mxu0 %vm3116_vm10, %v3318_v58  ;;  %v3046_v58 = vld [vmem:[%s11607_s17 + $0xc0] sm:$0xff] }
 0x927   :  { %v7746_v44 = vpack.c.bf16 %v3047_v49, %v3046_v58  ;;  %v11611_v58 = vld [vmem:[#allocation172_spill] sm:$0xff]  ;;  %v11612_v49 = vld [vmem:[#allocation174_spill] sm:$0xff] }
 0x929   :  { %3404 = vmatmul.mubr.f32.gmra.mrb[46].mxu0 %v3316_v42  ;;  %v7744_v42 = vpack.c.bf16 %v3029_v32, %v3028_v29 }
 0x92a   :  { %3738 = vmatprep.mubr.f32.mxu0 %v11478_v35 }
 0x9cc   :  { %v3189_v33 = vpop.f32.mrb[36].mxu0  ;;  %v3275_v43 = vpop.f32.mrb[38].mxu1 }
 0x9cd   :  { %v3191_v21 = vpop.f32.mrb[37].mxu0  ;;  %v3276_v27 = vadd.f32 %v3275_v43, %v3189_v33  ;;  %v3277_v19 = vpop.f32.mrb[39].mxu1  ;;  %v3031_v33 = vld [vmem:[%s11607_s17 + $0x48] sm:$0xff]  ;;  %v3048_v43 = vld [vmem:[%s11607_s17 + $0xd0] sm:$0xff] }
 0x9ce   :  { %v3049_v21 = vld [vmem:[%s11607_s17 + $0xd8] sm:$0xff] }
 0x9cf   :  { %v7750_v19 = vpack.c.bf16 %v3049_v21, %v3048_v43  ;;  %v11616_v43 = vld [vmem:[#allocation178_spill] sm:$0xff] }
 0x9d0   :  { %v3194_v14 = vpop.f32.mrb[38].mxu0  ;;  %v3280_v47 = vpop.f32.mrb[40].mxu1 }
 0x9d1   :  { %v3196_v17 = vpop.f32.mrb[39].mxu0  ;;  %v3281_v22 = vadd.f32 %v3280_v47, %v3194_v14  ;;  %v3282_v25 = vpop.f32.mrb[41].mxu1  ;;  %v3032_v14 = vld [vmem:[%s11607_s17 + $0x50] sm:$0xff]  ;;  %v3033_v47 = vld [vmem:[%s11607_s17 + $0x58] sm:$0xff] }
 0x9d2   :  { %v3050_v17 = vld [vmem:[%s11607_s17 + $0xe0] sm:$0xff]  ;;  %v7752_v25 = vpack.c.bf16 %v3033_v47, %v3032_v14 }
 0x9d4   :  { %v3199_v28 = vpop.f32.mrb[40].mxu0  ;;  %v3285_v50 = vpop.f32.mrb[42].mxu1 }
 0x9d5   :  { %v3201_v53 = vpop.f32.mrb[41].mxu0  ;;  %v3286_v54 = vadd.f32 %v3285_v50, %v3199_v28  ;;  %v3287_v56 = vpop.f32.mrb[43].mxu1  ;;  %v3034_v50 = vld [vmem:[%s11607_s17 + $0x60] sm:$0xff] }
 0x9d6   :  { %v3035_v53 = vld [vmem:[%s11607_s17 + $0x68] sm:$0xff]  ;;  %v3053_v56 = vld [vmem:[%s11607_s17 + $0xf8] sm:$0xff] }
 0x9f4   :  { %v3395_v57 = vpop.f32.mrb[42].mxu0 }
 0x9f5   :  { %v3409_v59 = vadd.f32 %v3395_v57, %v3276_v27  ;;  %v3397_v61 = vpop.f32.mrb[43].mxu0  ;;  %v7748_v27 = vpack.c.bf16 %v3031_v33, %v3030_v30  ;;  %v7756_v57 = vpack.c.bf16 %v3035_v53, %v3034_v50  ;;  %v11615_v33 = vld [vmem:[#allocation176_spill] sm:$0xff] }
 0x9f6   :  { %v3036_v61 = vld [vmem:[%s11607_s17 + $0x70] sm:$0xff]  ;;  %v7766_v21 = vpack.c.bf16 %v11616_v43, %v11615_v33 }
 0x9f7   :  { %v10420_v48 = vadd.f32 %v6738_v62, %v3409_v59 }
 0x9f8   :  { %v3400_v39 = vpop.f32.mrb[44].mxu0 }
 0x9f9   :  { %v3410_v36 = vadd.f32 %v3400_v39, %v3281_v22  ;;  %v3402_v46 = vpop.f32.mrb[45].mxu0  ;;  %v3421_v40 = vmul.f32 %v10420_v48, %v10420_v48  ;;  %v3051_v22 = vld [vmem:[%s11607_s17 + $0xe8] sm:$0xff] }
 0x9fa   :  { %v7754_v28 = vpack.c.bf16 %v3051_v22, %v3050_v17 }
 0x9fb   :  { %v10422_v20 = vadd.f32 %v6738_v62, %v3410_v36 }
 0x9fc   :  { %v3405_v23 = vpop.f32.mrb[46].mxu0 }
 0x9fd   :  { %v3411_v38 = vadd.f32 %v3405_v23, %v3286_v54  ;;  %v3407_v26 = vpop.f32.mrb[47].mxu0  ;;  %v3422_v60 = vmul.f32 %v10422_v20, %v10422_v20  ;;  %v7728_v1 = vpack.c.bf16 %v10422_v20, %v10420_v48  ;;  %v3052_v54 = vld [vmem:[%s11607_s17 + $0xf0] sm:$0xff]  ;;  %v3055_v23 = vld [vmem:[%s11609_s25 + $0x8] sm:$0xff] }
 0x9fe   :  { %v7758_v59 = vpack.c.bf16 %v3053_v56, %v3052_v54 }
 0x9ff   :  { %v10428_v37 = vadd.f32 %v6738_v62, %v3411_v38  ;;  %v7726_v55 = vpack.c.bf16 %v3422_v60, %v3421_v40  ;;  %v3037_v62 = vld [vmem:[%s11607_s17 + $0x78] sm:$0xff]  ;;  %v3054_v38 = vld [vmem:[%s11609_s25] sm:$0xff] }
 0xa00   :  { %v7760_v39 = vpack.c.bf16 %v3037_v62, %v3036_v61 }
 0xa01   :  { %7727 = vmatprep.subr.bf16.mxu1 %v7726_v55  ;;  %v3423_v18 = vmul.f32 %v10428_v37, %v10428_v37 }
 0xa02   :  { %7729 = vmatpush1.bf16.msra.mxu1 %v7728_v1 }
 0xa03   :  { %6739 = vmatprep.subr.msk.mxu1 %vm1768_vm3, %v3423_v18 }
 0xa06   :  { %6740 = vmatpush1.msk.msra.mxu1 %vm1768_vm3, %v10428_v37 }
 0xa07   :  { %6741 = vmatmul.mubr.msk.f32.vlgmr.msra.gmra.mrb[44].mxu1 %vm3424_vm11, %v3018_v5  ;;  %7731 = vmatprep.subr.bf16.mxu1 %v7730_v2  ;;  %v3019_v2 = vld [vmem:[%s11610_s29] sm:$0xff]  ;;  %v3020_v5 = vld [vmem:[%s11610_s29 + $0x8] sm:$0xff] }
 0xa08   :  { %7733 = vmatpush3.bf16.msra.mxu1 %v7732_v9  ;;  %v3021_v9 = vld [vmem:[%s11610_s29 + $0x10] sm:$0xf] }
 0xa09   :  { %7735 = vmatprep.subr.bf16.mxu1 %v7734_v8 }
 0xa0c   :  { %7737 = vmatpush3.bf16.msra.mxu1 %v7736_v15 }
 0xa0d   :  { %7739 = vmatprep.subr.bf16.mxu1 %v7738_v16 }
 0xa10   :  { %7741 = vmatpush3.bf16.msra.mxu1 %v7740_v34 }
 0xa11   :  { %7743 = vmatprep.subr.bf16.mxu1 %v7742_v51 }
 0xa14   :  { %7745 = vmatpush3.bf16.msra.mxu1 %v7744_v42  ;;  %v7762_v42 = vpack.c.bf16 %v11612_v49, %v11611_v58 }
 0xa15   :  { %7747 = vmatprep.subr.bf16.mxu1 %v7746_v44  ;;  %v11613_v44 = vld [vmem:[#allocation171_spill] sm:$0xff] }
 0xa18   :  { %7749 = vmatpush3.bf16.msra.mxu1 %v7748_v27 }
 0xa19   :  { %7751 = vmatprep.subr.bf16.mxu1 %v7750_v19 }
 0xa1c   :  { %7753 = vmatpush3.bf16.msra.mxu1 %v7752_v25 }
 0xa1d   :  { %7755 = vmatprep.subr.bf16.mxu1 %v7754_v28 }
 0xa20   :  { %7757 = vmatpush3.bf16.msra.mxu1 %v7756_v57 }
 0xa21   :  { %7759 = vmatprep.subr.bf16.mxu1 %v7758_v59 }
 0xa24   :  { %7761 = vmatpush3.bf16.msra.mxu1 %v7760_v39 }
 0xa25   :  { %3588 = vmatprep.subr.mxu1 %v3055_v23 }
 0xada   :  { %v3500_v36 = vpop.f32.mrb[44].mxu1 }
 0xadb   :  { %v3502_v46 = vpop.f32.mrb[45].mxu1 }
 0xadc   :  { %3569 = vmatprep.mubr.f32.mxu1 %v3502_v46 }
 0xadd   :  { %3570 = vmatmul.mubr.f32.vlgmr.msra.gmra.mrb[46].mxu1 %v3500_v36 }
 0xade   :  { %3652 = vmatprep.mubr.f32.mxu1 %v11478_v35  ;;  %3589 = vmatpush1.msra.mxu1 %v3054_v38 }
 0xbb0   :  { %v6940_v26 = vpop.f32.mrb[46].mxu1 }
 0xbb1   :  { %v6941_v40 = vpop.f32.mrb[47].mxu1 }
 0xbb2   :  { %v6942_v60 = vadd.f32 %v6941_v40, %v6940_v26 }
 0xbb4   :  { %v3575_v55 = vmul.f32 0.00390625, %v6942_v60 }
 0xbb6   :  { %v3576_v1 = vmul.f32 %v3575_v55, %v3575_v55 }
 0xbb8   :  { %3578 = vrot.lane.b32.xlu0 %v3576_v1, %s8402_s0 }
 0xc2a   :  { %v3579_v0 = vpop.permute.xlu0 %3578 }
 0xc2b   :  { %v3581_v3 = vsub.f32 %v3575_v55, %v3579_v0 }
 0xc2d   :  { %v3582_v18 = vmax.f32 %v3581_v3, 0.0 }
 0xc2f   :  { %8303 = vrsqrt.f32 %v3582_v18 }
 0xc39   :  { %v8304_v45 = vpop.eup %8303 }
 0xc3a   :  { %v3584_v4 = vsel %vm2072_vm5, %v3575_v55, %v8304_v45 }
 0xc3b   :  { %6742 = vmatmul.mubr.msk.f32.vlgmr.msra.gmra.mrb[48].mxu1 %vm2074_vm6, %v3584_v4 }
 0xc3c   :  { %3866 = vmatprep.mubr.f32.mxu1 %v11478_v35 }
 0xd0e   :  { %v3654_v6 = vpop.f32.mrb[48].mxu1 }
 0xd0f   :  { %v3656_v7 = vpop.f32.mrb[49].mxu1 }
 0xd10   :  { %6743 = vmatprep.subr.msk.mxu0 %vm2236_vm7, %v3656_v7 }
 0xd11   :  { %6744 = vmatpush1.msk.msra.mxu0 %vm2236_vm7, %v3654_v6 }
 0xd12   :  { %6745 = vmatmul.mubr.msk.f32.vlgmr.msra.gmra.mrb[48].mxu0 %vm2220_vm8, %v3019_v2 }
 0xd13   :  { %3744 = vmatprep.mubr.f32.mxu0 %v11478_v35 }
 0xd16   :  { %6746 = vmatmul.mubr.msk.f32.gmra.mrb[50].mxu0 %vm2220_vm8, %v3020_v5 }
 0xd17   :  { %3750 = vmatprep.mubr.f32.mxu0 %v11478_v35 }
 0xd1a   :  { %6747 = vmatmul.mubr.msk.f32.gmra.mrb[52].mxu0 %vm2220_vm8, %v3021_v9 }
 0xde5   :  { %v3740_v8 = vpop.f32.mrb[48].mxu0 }
 0xde6   :  { %v3757_v10 = vsub.f32 %v10420_v48, %v3740_v8  ;;  %v3742_v11 = vpop.f32.mrb[49].mxu0  ;;  %v11614_v48 = vld [vmem:[#allocation173_spill] sm:$0xff] }
 0xde7   :  { %v7764_v30 = vpack.c.bf16 %v11614_v48, %v11613_v44 }
 0xde8   :  { %v3760_v12 = vmul.f32 %v3757_v10, %v3742_v11 }
 0xde9   :  { %v3746_v13 = vpop.f32.mrb[50].mxu0 }
 0xdea   :  { %v3763_v15 = vmax.f32 %v3760_v12, 0.0  ;;  %v3758_v16 = vsub.f32 %v10422_v20, %v3746_v13  ;;  %v3748_v31 = vpop.f32.mrb[51].mxu0 }
 0xdec   :  { %v3761_v63 = vmul.f32 %v3758_v16, %v3748_v31 }
 0xded   :  { %v3752_v52 = vpop.f32.mrb[52].mxu0 }
 0xdee   :  { %v3764_v41 = vmax.f32 %v3761_v63, 0.0  ;;  %v3759_v34 = vsub.f32 %v10428_v37, %v3752_v52  ;;  %v3754_v51 = vpop.f32.mrb[53].mxu0 }
 0xdf0   :  { %v3762_v29 = vmul.f32 %v3759_v34, %v3754_v51 }
 0xdf2   :  { %v3765_v32 = vmax.f32 %v3762_v29, 0.0 }
 0xdf3   :  { %8352 = dma.done.wait [#allocation10 + $0x2], 4096 }
 0xdf4   :  { %8353 = vsyncadd [#allocation10 + $0x2], 4294963200  ;;  %7763 = vmatprep.subr.bf16.mxu1 %v7762_v42  ;;  %v11617_v20 = vld [vmem:[#allocation175_spill] sm:$0xff]  ;;  %v11618_v37 = vld [vmem:[#allocation177_spill] sm:$0xff]  ;;  %s11643_s3 = sld [smem:[#allocation36_spill]]  ;;  %s8405_s8 = smov 32  }
 0xdf5   :  { %7765 = vmatpush1.bf16.msra.mxu1 %v7764_v30  ;;  %v7768_v27 = vpack.c.bf16 %v11618_v37, %v11617_v20  ;;  %v11619_v19 = vld [vmem:[#allocation180_spill] sm:$0xff]  ;;  %v11620_v14 = vld [vmem:[#allocation182_spill] sm:$0xff]  ;;  %v11621_v17 = vld [vmem:[#allocation179_spill] sm:$0xff] }
 0xdf6   :  { %7767 = vmatprep.subr.bf16.mxu1 %v7766_v21  ;;  %v7770_v47 = vpack.c.bf16 %v11620_v14, %v11619_v19  ;;  %v11622_v22 = vld [vmem:[#allocation181_spill] sm:$0xff]  ;;  %v11623_v28 = vld [vmem:[#allocation184_spill] sm:$0xff]  ;;  %v11624_v50 = vld [vmem:[#allocation186_spill] sm:$0xff] }
 0xdf7   :  { %v7772_v25 = vpack.c.bf16 %v11622_v22, %v11621_v17  ;;  %v7774_v53 = vpack.c.bf16 %v11624_v50, %v11623_v28  ;;  %v11625_v54 = vld [vmem:[#allocation183_spill] sm:$0xff]  ;;  %v11626_v56 = vld [vmem:[#allocation185_spill] sm:$0xff]  ;;  %v11627_v59 = vld [vmem:[#allocation188_spill] sm:$0xff] }
 0xdf8   :  { %v7776_v57 = vpack.c.bf16 %v11626_v56, %v11625_v54  ;;  %v11628_v61 = vld [vmem:[#allocation190_spill] sm:$0xff]  ;;  %v11629_v39 = vld [vmem:[#allocation187_spill] sm:$0xff]  ;;  %v11630_v36 = vld [vmem:[#allocation189_spill] sm:$0xff] }
 0xdf9   :  { %7769 = vmatpush1.bf16.msra.mxu1 %v7768_v27  ;;  %v7778_v62 = vpack.c.bf16 %v11628_v61, %v11627_v59  ;;  %v7780_v46 = vpack.c.bf16 %v11630_v36, %v11629_v39  ;;  %v11631_v23 = vld [vmem:[#allocation192_spill] sm:$0xff]  ;;  %v11632_v38 = vld [vmem:[#allocation194_spill] sm:$0xff]  ;;  %v11633_v40 = vld [vmem:[#allocation191_spill] sm:$0xff] }
 0xdfa   :  { %7771 = vmatprep.subr.bf16.mxu1 %v7770_v47  ;;  %v7782_v26 = vpack.c.bf16 %v11632_v38, %v11631_v23  ;;  %v11634_v60 = vld [vmem:[#allocation193_spill] sm:$0xff]  ;;  %v11635_v1 = vld [vmem:[#allocation196_spill] sm:$0xff]  ;;  %v11636_v0 = vld [vmem:[#allocation198_spill] sm:$0xff] }
 0xdfb   :  { %v7784_v55 = vpack.c.bf16 %v11634_v60, %v11633_v40  ;;  %v7786_v3 = vpack.c.bf16 %v11636_v0, %v11635_v1  ;;  %v11637_v18 = vld [vmem:[#allocation195_spill] sm:$0xff]  ;;  %v11638_v45 = vld [vmem:[#allocation197_spill] sm:$0xff]  ;;  %v11639_v6 = vld [vmem:[#allocation200_spill] sm:$0xff] }
 0xdfc   :  { %v7788_v4 = vpack.c.bf16 %v11638_v45, %v11637_v18  ;;  %v11640_v7 = vld [vmem:[#allocation202_spill] sm:$0xff]  ;;  %v11641_v5 = vld [vmem:[#allocation199_spill] sm:$0xff]  ;;  %v11642_v9 = vld [vmem:[#allocation201_spill] sm:$0xff] }
 0xdfd   :  { %7773 = vmatpush1.bf16.msra.mxu1 %v7772_v25  ;;  %v7790_v2 = vpack.c.bf16 %v11640_v7, %v11639_v6  ;;  %v7792_v8 = vpack.c.bf16 %v11642_v9, %v11641_v5  ;;  %v3912_v63 = vld [vmem:[%s11643_s3] sm:$0xff]  ;;  %v3913_v37 = vld [vmem:[%s11643_s3 + $0x8] sm:$0x3f]  ;;  %v6751_v27 = vld [vmem:[%s11643_s3 + $0x10] sm:$0xff] }
 0xdfe   :  { %7775 = vmatprep.subr.bf16.mxu1 %v7774_v53  ;;  %7169 = vmatprep.mubr.msk.f32.mxu0 %vm3424_vm11, %v3912_v63  ;;  %v6752_v19 = vld [vmem:[%s11643_s3 + $0x18] sm:$0x3f]  ;;  %v11645_v53 = vld [vmem:[#allocation216_spill] sm:$0xff]  ;;  %v11646_v56 = vld [vmem:[#allocation217_spill] sm:$0xff] }
 0xdff   :  { %v11644_v50 = vld [vmem:[#allocation215_spill] sm:$0xff] }
 0xe00   :  { %v7802_v54 = vpack.c.bf16 %v11645_v53, %v11644_v50 }
 0xe01   :  { %7777 = vmatpush1.bf16.msra.mxu1 %v7776_v57  ;;  %v11647_v57 = vld [vmem:[#allocation218_spill] sm:$0xff] }
 0xe02   :  { %7779 = vmatprep.subr.bf16.mxu1 %v7778_v62  ;;  %v7806_v59 = vpack.c.bf16 %v11647_v57, %v11646_v56 }
 0xe05   :  { %7781 = vmatpush1.bf16.msra.mxu1 %v7780_v46 }
 0xe06   :  { %7783 = vmatprep.subr.bf16.mxu1 %v7782_v26 }
 0xe09   :  { %7785 = vmatpush1.bf16.msra.mxu1 %v7784_v55 }
 0xe0a   :  { %7787 = vmatprep.subr.bf16.mxu1 %v7786_v3 }
 0xe0d   :  { %7789 = vmatpush1.bf16.msra.mxu1 %v7788_v4 }
 0xe0e   :  { %7791 = vmatprep.subr.bf16.mxu1 %v7790_v2 }
 0xe11   :  { %7793 = vmatpush1.bf16.msra.mxu1 %v7792_v8 }
 0xe14   :  { %3867 = vmatmul.mubr.f32.vlgmr.msra.gmra.mrb[50].mxu1 %v3763_v15 }
 0xe15   :  { %3872 = vmatprep.mubr.f32.mxu1 %v11478_v35 }
 0xe18   :  { %3873 = vmatmul.mubr.f32.gmra.mrb[52].mxu1 %v3764_v41 }
 0xe19   :  { %3878 = vmatprep.mubr.f32.mxu1 %v11478_v35 }
 0xe1c   :  { %3879 = vmatmul.mubr.f32.gmra.mrb[54].mxu1 %v3765_v32 }
 0xee7   :  { %v3868_v10 = vpop.f32.mrb[50].mxu1 }
 0xee8   :  { %v3870_v11 = vpop.f32.mrb[51].mxu1 }
 0xee9   :  { %v8305_v12 = vpack.i.bf16 %v3870_v11, %v3868_v10 }
 0xeeb   :  { %8306 = vrot.lane.b32.xlu0 %v8305_v12, %s8405_s8  ;;  %v3874_v13 = vpop.f32.mrb[52].mxu1 }
 0xeec   :  { %v3876_v16 = vpop.f32.mrb[53].mxu1 }
 0xeed   :  { %v8310_v31 = vpack.i.bf16 %v3876_v16, %v3874_v13 }
 0xeef   :  { %8311 = vrot.lane.b32.xlu0 %v8310_v31, %s8405_s8  ;;  %v3880_v15 = vpop.f32.mrb[54].mxu1 }
 0xef0   :  { %3899 = vrot.lane.b32.xlu1 %v3880_v15, %s8405_s8  ;;  %v3882_v52 = vpop.f32.mrb[55].mxu1 }
 0xef4   :  { %3901 = vrot.lane.b32.xlu1 %v3882_v52, %s8405_s8 }
 0xf5d   :  { %v8307_v41 = vpop.permute.xlu0 %8306 }
 0xf5e   :  { %v8309_v34 = vunpack.i.h.bf16 %v8307_v41  ;;  %v8308_v51 = vunpack.i.l.bf16 %v8307_v41 }
 0xf60   :  { %v3903_v32 = vsel %vm3116_vm10, %v8308_v51, %v8309_v34 }
 0xf61   :  { %v8312_v29 = vpop.permute.xlu0 %8311  ;;  %v3909_v48 = vmax.f32 %v3868_v10, %v3903_v32 }
 0xf62   :  { %v8314_v58 = vunpack.i.h.bf16 %v8312_v29  ;;  %v8313_v49 = vunpack.i.l.bf16 %v8312_v29  ;;  %v3900_v42 = vpop.permute.xlu1 %3899 }
 0xf64   :  { %v3904_v44 = vsel %vm3116_vm10, %v8313_v49, %v8314_v58 }
 0xf65   :  { %v3910_v30 = vmax.f32 %v3874_v13, %v3904_v44 }
 0xf66   :  { %v3902_v33 = vpop.permute.xlu1 %3901 }
 0xf67   :  { %v7794_v43 = vpack.c.bf16 %v3910_v30, %v3909_v48  ;;  %v3905_v21 = vsel %vm3116_vm10, %v3900_v42, %v3902_v33 }
 0xf68   :  { %v3911_v20 = vmax.f32 %v3880_v15, %v3905_v21 }
 0xf69   :  { %7795 = vmatprep.subr.bf16.mxu0 %v7794_v43 }
 0xf6a   :  { %7797 = vmatpush3.bf16.msra.mxu0 %v7794_v43 }
 0xf6b   :  { %7167 = vmatprep.subr.msk.mxu0 %vm1768_vm3, %v3911_v20 }
 0xf6e   :  { %7168 = vmatpush3.msk.msra.mxu0 %vm1768_vm3, %v3911_v20 }
 0xf6f   :  { %7170 = vmatmul.mubr.msk.f32.vlgmr.msra.gmra.mrb[54].mxu0 %vm3424_vm11, %v3913_v37  ;;  %7799 = vmatprep.subr.bf16.mxu0 %v7794_v43 }
 0xf70   :  { %7801 = vmatpush3.bf16.msra.mxu0 %v7794_v43  ;;  %7178 = vmatprep.mubr.msk.f32.mxu0 %vm3424_vm11, %v6751_v27 }
 0xf71   :  { %7176 = vmatprep.subr.msk.mxu0 %vm1768_vm3, %v3911_v20 }
 0xf74   :  { %7177 = vmatpush3.msk.msra.mxu0 %vm1768_vm3, %v3911_v20 }
 0xf75   :  { %7179 = vmatmul.mubr.msk.f32.vlgmr.msra.gmra.mrb[56].mxu0 %vm3424_vm11, %v6752_v19 }
0x1042   :  { %v7171_v14 = vpop.f32.mrb[54].mxu0 }
0x1043   :  { %v3989_v47 = vpop.f32.mrb[55].mxu0 }
0x1048   :  { %v7180_v17 = vpop.f32.mrb[56].mxu0 }
0x1049   :  { %v10544_v22 = vmax.f32 %v7171_v14, %v7180_v17  ;;  %v4073_v25 = vpop.f32.mrb[57].mxu0 }
0x104a   :  { %v4082_v28 = vmax.f32 %v3989_v47, %v4073_v25 }
0x104b   :  { %8354 = dma.done.wait [#allocation10 + $0x3], 4608 }
0x104c   :  { %8355 = vsyncadd [#allocation10 + $0x3], 4294962688  ;;  %7874 = vmatprep.subr.bf16.mxu1 %v8404_v24  ;;  %v4136_v61 = vrot.slane %v4082_v28, 1  ;;  %v4137_v62 = vrot.slane %v10544_v22, 1  ;;  %7803 = vmatprep.subr.bf16.mxu0 %v7802_v54  ;;  %v11648_v36 = vld [vmem:[#allocation219_spill] sm:$0xff]  ;;  %v11649_v46 = vld [vmem:[#allocation220_spill] sm:$0xff] }
0x104d   :  { %7805 = vmatpush3.bf16.msra.mxu0 %v7802_v54  ;;  %v7810_v23 = vpack.c.bf16 %v11649_v46, %v11648_v36  ;;  %v11650_v38 = vld [vmem:[#allocation221_spill] sm:$0xff]  ;;  %v11651_v26 = vld [vmem:[#allocation222_spill] sm:$0xff]  ;;  %v11652_v60 = vld [vmem:[#allocation223_spill] sm:$0xff]  ;;  %v4310_v32 = vrot.slane %v4082_v28, 2  ;;  %v4311_v58 = vrot.slane %v10544_v22, 2  ;;  %s11672_s14 = sld [smem:[#allocation37_spill]] }
0x104e   :  { %v4138_v39 = vsel %vm1368_vm0, %v4136_v61, %v4137_v62  ;;  %7807 = vmatprep.subr.bf16.mxu0 %v7806_v59  ;;  %v7814_v40 = vpack.c.bf16 %v11651_v26, %v11650_v38  ;;  %v11653_v55 = vld [vmem:[#allocation224_spill] sm:$0xff]  ;;  %v11654_v0 = vld [vmem:[#allocation225_spill] sm:$0xff]  ;;  %v11655_v3 = vld [vmem:[#allocation226_spill] sm:$0xff]  ;;  %vm8406_vm12 = vmmov 0   ;;  %s11681_s19 = sld [smem:[#allocation40_spill]]  ;;  %s11682_s24 = sld [smem:[#allocation38_spill]] }
0x104f   :  { %7205 = vmatprep.mubr.msk.f32.mxu0 %vm2784_vm9, %v4138_v39  ;;  %v7818_v1 = vpack.c.bf16 %v11653_v55, %v11652_v60  ;;  %v7822_v18 = vpack.c.bf16 %v11655_v3, %v11654_v0  ;;  %v11656_v45 = vld [vmem:[#allocation203_spill] sm:$0xff]  ;;  %v11657_v4 = vld [vmem:[#allocation204_spill] sm:$0xff]  ;;  %v11658_v7 = vld [vmem:[#allocation205_spill] sm:$0xff]  ;;  %v4312_v48 = vsel %vm1608_vm2, %v4310_v32, %v4311_v58  ;;  %7266 = vmatprep.mubr.msk.f32.mxu1 %vm8406_vm12, %v11478_v35  ;;  %s8407_s12 = smov 64   ;;  %vm4412_vm13 = vcmask 523264   ;;  %s11685_s27 = sld [smem:[#allocation41_spill]] }
0x1050   :  { %v7826_v6 = vpack.c.bf16 %v11657_v4, %v11656_v45  ;;  %v11659_v2 = vld [vmem:[#allocation206_spill] sm:$0xff]  ;;  %v11660_v9 = vld [vmem:[#allocation207_spill] sm:$0xff]  ;;  %v11661_v8 = vld [vmem:[#allocation208_spill] sm:$0xff]  ;;  %vm8408_vm14 = vmmov 1   ;;  %vm4415_vm0 = vcmask 97280   ;;  %s11686_s4 = sld [smem:[#allocation39_spill]] }
0x1051   :  { %7809 = vmatpush3.bf16.msra.mxu0 %v7806_v59  ;;  %v7830_v5 = vpack.c.bf16 %v11659_v2, %v11658_v7  ;;  %v7834_v10 = vpack.c.bf16 %v11661_v8, %v11660_v9  ;;  %v11662_v11 = vld [vmem:[#allocation209_spill] sm:$0xff]  ;;  %v11663_v12 = vld [vmem:[#allocation210_spill] sm:$0xff]  ;;  %v11664_v16 = vld [vmem:[#allocation211_spill] sm:$0xff] }
0x1052   :  { %7811 = vmatprep.subr.bf16.mxu0 %v7810_v23  ;;  %v7838_v13 = vpack.c.bf16 %v11663_v12, %v11662_v11  ;;  %v11665_v31 = vld [vmem:[#allocation212_spill] sm:$0xff]  ;;  %v11666_v15 = vld [vmem:[#allocation213_spill] sm:$0xff]  ;;  %v11667_v52 = vld [vmem:[#allocation214_spill] sm:$0xff] }
0x1053   :  { %v7842_v63 = vpack.c.bf16 %v11665_v31, %v11664_v16  ;;  %v7846_v41 = vpack.c.bf16 %v11667_v52, %v11666_v15  ;;  %v11668_v34 = vld [vmem:[#allocation227_spill] sm:$0xff]  ;;  %v11669_v51 = vld [vmem:[#allocation228_spill] sm:$0xff]  ;;  %v11670_v49 = vld [vmem:[#allocation229_spill] sm:$0xff] }
0x1054   :  { %v7850_v29 = vpack.c.bf16 %v11669_v51, %v11668_v34  ;;  %v11671_v42 = vld [vmem:[#allocation230_spill] sm:$0xff]  ;;  %v11673_v30 = vld [vmem:[#allocation231_spill] sm:$0xff]  ;;  %v11674_v33 = vld [vmem:[#allocation232_spill] sm:$0xff] }
0x1055   :  { %7813 = vmatpush3.bf16.msra.mxu0 %v7810_v23  ;;  %v7854_v44 = vpack.c.bf16 %v11671_v42, %v11670_v49  ;;  %v7858_v43 = vpack.c.bf16 %v11674_v33, %v11673_v30  ;;  %v11675_v21 = vld [vmem:[#allocation233_spill] sm:$0xff]  ;;  %v11676_v20 = vld [vmem:[#allocation234_spill] sm:$0xff]  ;;  %v11677_v27 = vld [vmem:[#allocation235_spill] sm:$0xff] }
0x1056   :  { %7815 = vmatprep.subr.bf16.mxu0 %v7814_v40  ;;  %v7862_v37 = vpack.c.bf16 %v11676_v20, %v11675_v21  ;;  %v11678_v19 = vld [vmem:[#allocation236_spill] sm:$0xff]  ;;  %v11679_v47 = vld [vmem:[#allocation237_spill] sm:$0xff]  ;;  %v11680_v17 = vld [vmem:[#allocation238_spill] sm:$0xff] }
0x1057   :  { %v7866_v14 = vpack.c.bf16 %v11678_v19, %v11677_v27  ;;  %v6762_v25 = vld [vmem:[%s11672_s14] ss:$0 sm:$0xff]  ;;  %vm10611_vm15 = vmpackc.low %vm1768_vm3, %vm8408_vm14  ;;  %v4093_v26 = vld [vmem:[%s11681_s19 + $0x8] sm:$0xff] }
0x1058   :  { %v4092_v38 = vld [vmem:[%s11681_s19] sm:$0xff]  ;;  %v4095_v0 = vld [vmem:[%s11681_s19 + $0x18] sm:$0xff]  ;;  %v4097_v45 = vld [vmem:[%s11681_s19 + $0x28] sm:$0xff] }
0x1059   :  { %7817 = vmatpush3.bf16.msra.mxu0 %v7814_v40  ;;  %v4089_v60 = vld [vmem:[%s11682_s24] sm:$0x3]  ;;  %v7879_v55 = vpack.c.bf16 %v4093_v26, %v4092_v38  ;;  %v4099_v7 = vld [vmem:[%s11681_s19 + $0x38] sm:$0xff]  ;;  %v4101_v9 = vld [vmem:[%s11681_s19 + $0x48] sm:$0xff] }
0x105a   :  { %7819 = vmatprep.subr.bf16.mxu0 %v7818_v1  ;;  %v4103_v11 = vld [vmem:[%s11681_s19 + $0x58] sm:$0xff]  ;;  %v4105_v16 = vld [vmem:[%s11681_s19 + $0x68] sm:$0xff]  ;;  %v4108_v51 = vld [vmem:[%s11685_s27] sm:$0xff] }
0x105b   :  { %v4107_v15 = vld [vmem:[%s11681_s19 + $0x78] sm:$0xff]  ;;  %v4091_v20 = vld [vmem:[%s11686_s4 + $0x8] sm:$0xf] }
0x105d   :  { %7821 = vmatpush3.bf16.msra.mxu0 %v7818_v1  ;;  %v4094_v1 = vld [vmem:[%s11681_s19 + $0x10] sm:$0xff] }
0x105e   :  { %7823 = vmatprep.subr.bf16.mxu0 %v7822_v18  ;;  %v7882_v3 = vpack.c.bf16 %v4095_v0, %v4094_v1 }
0x1061   :  { %7825 = vmatpush3.bf16.msra.mxu0 %v7822_v18  ;;  %v4096_v18 = vld [vmem:[%s11681_s19 + $0x20] sm:$0xff] }
0x1062   :  { %7827 = vmatprep.subr.bf16.mxu0 %v7826_v6  ;;  %v7885_v4 = vpack.c.bf16 %v4097_v45, %v4096_v18 }
0x1064   :  { %7206 = vmatmul.mubr.msk.f32.vlgmr.msra.gmra.mrb[58].mxu0 %vm2784_vm9, %v4137_v62 }
0x1065   :  { %7829 = vmatpush3.bf16.msra.mxu0 %v7826_v6  ;;  %7232 = vmatprep.mubr.msk.f32.mxu0 %vm2784_vm9, %v4082_v28  ;;  %v4098_v6 = vld [vmem:[%s11681_s19 + $0x30] sm:$0xff] }
0x1066   :  { %7831 = vmatprep.subr.bf16.mxu0 %v7830_v5  ;;  %v7888_v2 = vpack.c.bf16 %v4099_v7, %v4098_v6 }
0x1069   :  { %7833 = vmatpush3.bf16.msra.mxu0 %v7830_v5  ;;  %v4100_v5 = vld [vmem:[%s11681_s19 + $0x40] sm:$0xff] }
0x106a   :  { %7835 = vmatprep.subr.bf16.mxu0 %v7834_v10  ;;  %v7891_v8 = vpack.c.bf16 %v4101_v9, %v4100_v5 }
0x106d   :  { %7837 = vmatpush3.bf16.msra.mxu0 %v7834_v10  ;;  %v4102_v10 = vld [vmem:[%s11681_s19 + $0x50] sm:$0xff] }
0x106e   :  { %7839 = vmatprep.subr.bf16.mxu0 %v7838_v13  ;;  %v7894_v12 = vpack.c.bf16 %v4103_v11, %v4102_v10 }
0x1071   :  { %7841 = vmatpush3.bf16.msra.mxu0 %v7838_v13  ;;  %v4104_v13 = vld [vmem:[%s11681_s19 + $0x60] sm:$0xff] }
0x1072   :  { %7843 = vmatprep.subr.bf16.mxu0 %v7842_v63  ;;  %v7897_v31 = vpack.c.bf16 %v4105_v16, %v4104_v13 }
0x1075   :  { %7845 = vmatpush3.bf16.msra.mxu0 %v7842_v63  ;;  %v4106_v63 = vld [vmem:[%s11681_s19 + $0x70] sm:$0xff] }
0x1076   :  { %7847 = vmatprep.subr.bf16.mxu0 %v7846_v41  ;;  %v7900_v52 = vpack.c.bf16 %v4107_v15, %v4106_v63 }
0x1079   :  { %7849 = vmatpush3.bf16.msra.mxu0 %v7846_v41 }
0x107a   :  { %7851 = vmatprep.subr.bf16.mxu0 %v7850_v29 }
0x107c   :  { %7233 = vmatmul.mubr.msk.f32.vlgmr.msra.gmra.mrb[58].mxu0 %vm2784_vm9, %v10544_v22  ;;  %v7870_v22 = vpack.c.bf16 %v11680_v17, %v11679_v47 }
0x107d   :  { %7853 = vmatpush3.bf16.msra.mxu0 %v7850_v29  ;;  %7259 = vmatprep.mubr.msk.f32.mxu0 %vm2784_vm9, %v4312_v48 }
0x107e   :  { %7855 = vmatprep.subr.bf16.mxu0 %v7854_v44 }
0x1081   :  { %7857 = vmatpush3.bf16.msra.mxu0 %v7854_v44 }
0x1082   :  { %7859 = vmatprep.subr.bf16.mxu0 %v7858_v43 }
0x1085   :  { %7861 = vmatpush3.bf16.msra.mxu0 %v7858_v43  ;;  %v4090_v43 = vld [vmem:[%s11686_s4] sm:$0xff] }
0x1086   :  { %7863 = vmatprep.subr.bf16.mxu0 %v7862_v37 }
0x1089   :  { %7865 = vmatpush3.bf16.msra.mxu0 %v7862_v37 }
0x108a   :  { %7867 = vmatprep.subr.bf16.mxu0 %v7866_v14 }
0x108d   :  { %7869 = vmatpush3.bf16.msra.mxu0 %v7866_v14 }
0x108e   :  { %7871 = vmatprep.subr.bf16.mxu0 %v7870_v22 }
0x1091   :  { %7873 = vmatpush3.bf16.msra.mxu0 %v7870_v22 }
0x1094   :  { %7260 = vmatmul.mubr.msk.f32.vlgmr.msra.gmra.mrb[58].mxu0 %vm2784_vm9, %v4311_v58 }
0x1167   :  { %v7261_v28 = vpop.f32.mrb[58].mxu0 }
0x1168   :  { %v10595_v50 = vadd.f32 %v7261_v28, %v6762_v25  ;;  %v4383_v53 = vpop.f32.mrb[59].mxu0 }
0x1169   :  { %v10599_v54 = vadd.f32 %v6762_v25, %v4383_v53 }
0x116a   :  { %v4403_v56 = vmul.f32 %v10595_v50, %v10595_v50 }
0x116b   :  { %v4402_v57 = vmul.f32 %v10599_v54, %v10599_v54 }
0x116d   :  { %v8315_v59 = vpack.i.bf16 %v4403_v56, %v4402_v57 }
0x116f   :  { %8316 = vrot.lane.b32.xlu0 %v8315_v59, %s8407_s12 }
0x11e1   :  { %v8317_v61 = vpop.permute.xlu0 %8316 }
0x11e2   :  { %v8319_v62 = vunpack.i.h.bf16 %v8317_v61  ;;  %v8318_v39 = vunpack.i.l.bf16 %v8317_v61 }
0x11e4   :  { %v4413_v36 = vsel %vm4412_vm13, %v10599_v54, %v8318_v39  ;;  %v4414_v46 = vsel %vm4412_vm13, %v10595_v50, %v8319_v62 }
0x11e5   :  { %v7875_v40 = vpack.c.bf16 %v4414_v46, %v4413_v36 }
0x11e7   :  { %7877 = vmatpush3.bf16.msk.msra.mxu1 %vm10611_vm15, %v7875_v40 }
0x11e8   :  { %7878 = vmatprep.subr.bf16.mxu1 %v8404_v24 }
0x11ea   :  { %7267 = vmatmul.mubr.msk.f32.vlgmr.msra.gmra.mrb[56].mxu1 %vm4415_vm0, %v4089_v60 }
0x11eb   :  { %7880 = vmatpush3.bf16.msra.mxu1 %v7879_v55  ;;  %7301 = vmatprep.mubr.msk.f32.mxu1 %vm8406_vm12, %v11478_v35 }
0x11ec   :  { %7881 = vmatprep.subr.bf16.mxu1 %v8404_v24 }
0x11ef   :  { %7883 = vmatpush3.bf16.msra.mxu1 %v7882_v3 }
0x11f0   :  { %7884 = vmatprep.subr.bf16.mxu1 %v8404_v24 }
0x11f3   :  { %7886 = vmatpush3.bf16.msra.mxu1 %v7885_v4 }
0x11f4   :  { %7887 = vmatprep.subr.bf16.mxu1 %v8404_v24 }
0x11f7   :  { %7889 = vmatpush3.bf16.msra.mxu1 %v7888_v2 }
0x11f8   :  { %7890 = vmatprep.subr.bf16.mxu1 %v8404_v24 }
0x11fb   :  { %7892 = vmatpush3.bf16.msra.mxu1 %v7891_v8 }
0x11fc   :  { %7893 = vmatprep.subr.bf16.mxu1 %v8404_v24 }
0x11ff   :  { %7895 = vmatpush3.bf16.msra.mxu1 %v7894_v12 }
0x1200   :  { %7896 = vmatprep.subr.bf16.mxu1 %v8404_v24 }
0x1203   :  { %7898 = vmatpush3.bf16.msra.mxu1 %v7897_v31 }
0x1204   :  { %7899 = vmatprep.subr.bf16.mxu1 %v8404_v24 }
0x1207   :  { %7901 = vmatpush3.bf16.msra.mxu1 %v7900_v52 }
0x1208   :  { %7304 = vmatprep.subr.mxu1 %v11478_v35 }
0x12bd   :  { %v4488_v41 = vpop.f32.mrb[56].mxu1 }
0x12be   :  { %v7268_v34 = vpop.f32.mrb[57].mxu1  ;;  %7302 = vmatmul.mubr.f32.vlgmr.msra.gmra.mrb[58].mxu1 %v4488_v41 }
0x12bf   :  { %7306 = vmatprep.mubr.msk.f32.mxu1 %vm8406_vm12, %v11478_v35  ;;  %7305 = vmatpush3.msra.mxu1 %v4108_v51 }
0x1391   :  { %v4558_v29 = vpop.f32.mrb[58].mxu1 }
0x1392   :  { %v4562_v32 = vmul.f32 0.015625, %v4558_v29  ;;  %v7303_v58 = vpop.f32.mrb[59].mxu1 }
0x1394   :  { %v4563_v49 = vmul.f32 %v4562_v32, %v4562_v32 }
0x1396   :  { %4565 = vrot.lane.b32.xlu0 %v4563_v49, %s8402_s0 }
0x1408   :  { %v4566_v42 = vpop.permute.xlu0 %4565 }
0x1409   :  { %v4568_v44 = vsub.f32 %v4562_v32, %v4566_v42 }
0x140b   :  { %v4569_v48 = vmax.f32 %v4568_v44, 0.0 }
0x140d   :  { %8320 = vrsqrt.f32 %v4569_v48 }
0x1417   :  { %v8321_v30 = vpop.eup %8320 }
0x1418   :  { %v4571_v33 = vsel %vm2072_vm5, %v4562_v32, %v8321_v30 }
0x1419   :  { %7307 = vmatmul.mubr.msk.f32.vlgmr.msra.gmra.mrb[60].mxu1 %vm2074_vm6, %v4571_v33 }
0x141a   :  { %7311 = vmatprep.mubr.msk.f32.mxu1 %vm2220_vm8, %v4090_v43 }
0x14ec   :  { %v4641_v21 = vpop.f32.mrb[60].mxu1 }
0x14ed   :  { %v7308_v37 = vpop.f32.mrb[61].mxu1  ;;  %7309 = vmatprep.subr.msk.mxu1 %vm2236_vm7, %v4641_v21 }
0x14ee   :  { %7310 = vmatpush3.msk.msra.mxu1 %vm2236_vm7, %v4641_v21 }
0x14ef   :  { %7312 = vmatmul.mubr.msk.f32.vlgmr.msra.gmra.mrb[62].mxu1 %vm2220_vm8, %v4091_v20 }
0x15c2   :  { %v7313_v27 = vpop.f32.mrb[62].mxu1 }
0x15c3   :  { %v4720_v19 = vpop.f32.mrb[63].mxu1  ;;  %v4730_v22 = vsub.f32 %v10595_v50, %v7313_v27 }
0x15c4   :  { %4733 = vrot.lane.b32.xlu1 %v4720_v19, %s8407_s12  ;;  %v4729_v14 = vsub.f32 %v10599_v54, %v4720_v19 }
0x15c8   :  { %4735 = vrot.lane.b32.xlu1 %v7313_v27, %s8407_s12 }
0x1636   :  { %v4734_v47 = vpop.permute.xlu1 %4733 }
0x1637   :  { %v4739_v17 = vmul.f32 %v4734_v47, %v4729_v14 }
0x1639   :  { %v4741_v25 = vmax.f32 %v4739_v17, 0.0 }
0x163a   :  { %v4736_v28 = vpop.permute.xlu1 %4735 }
0x163b   :  { %v4740_v53 = vmul.f32 %v4736_v28, %v4730_v22 }
0x163d   :  { %v4742_v56 = vmax.f32 %v4740_v53, 0.0 }
0x163e   :  { %8356 = dma.done.wait [#allocation10 + $0x4], 4096 }
0x163f   :  { %8357 = vsyncadd [#allocation10 + $0x4], 4294963200  ;;  %7902 = vmatprep.subr.bf16.mxu1 %v8404_v24  ;;  %v7903_v57 = vpack.c.bf16 %v4742_v56, %v4741_v25  ;;  %s11687_s22 = sld [smem:[#allocation42_spill]]  ;;  %7318 = vmatprep.mubr.msk.f32.mxu1 %vm8406_vm12, %v11478_v35  ;;  %v11688_v59 = vld [vmem:[#allocation240_spill] sm:$0xff]  ;;  %v11690_v62 = vld [vmem:[#allocation242_spill] sm:$0xff] }
0x1640   :  { %v11689_v61 = vld [vmem:[#allocation244_spill] sm:$0xff]  ;;  %v11691_v39 = vld [vmem:[#allocation246_spill] sm:$0xff]  ;;  %v11692_v50 = vld [vmem:[#allocation241_spill] sm:$0xff]  ;;  %4994 = vmatprep.mubr.f32.mxu0 %v11478_v35 }
0x1641   :  { %v7906_v54 = vpack.c.bf16 %v11689_v61, %v11688_v59  ;;  %v7922_v36 = vpack.c.bf16 %v11691_v39, %v11690_v62  ;;  %v11693_v46 = vld [vmem:[#allocation245_spill] sm:$0xff]  ;;  %v11694_v26 = vld [vmem:[#allocation250_spill] sm:$0xff]  ;;  %7905 = vmatpush3.bf16.msk.msra.mxu1 %vm10611_vm15, %v7903_v57  ;;  %v11700_v4 = vld [vmem:[#allocation239_spill] sm:$0xff] }
0x1642   :  { %v7924_v38 = vpack.c.bf16 %v11693_v46, %v11692_v50  ;;  %v11695_v40 = vld [vmem:[#allocation254_spill] sm:$0xff]  ;;  %v11696_v55 = vld [vmem:[#allocation249_spill] sm:$0xff]  ;;  %v11701_v6 = vld [vmem:[#allocation243_spill] sm:$0xff] }
0x1643   :  { %v7926_v60 = vpack.c.bf16 %v11695_v40, %v11694_v26  ;;  %7923 = vmatprep.subr.bf16.mxu0 %v7922_v36  ;;  %7907 = vmatprep.subr.bf16.mxu1 %v7906_v54  ;;  %v11697_v1 = vld [vmem:[#allocation253_spill] sm:$0xff]  ;;  %v11698_v3 = vld [vmem:[#allocation258_spill] sm:$0xff]  ;;  %v7908_v7 = vpack.c.bf16 %v11701_v6, %v11700_v4  ;;  %v11702_v2 = vld [vmem:[#allocation248_spill] sm:$0xff] }
0x1644   :  { %7925 = vmatpush1.bf16.msra.mxu0 %v7924_v38  ;;  %v7928_v0 = vpack.c.bf16 %v11697_v1, %v11696_v55  ;;  %v11699_v18 = vld [vmem:[#allocation262_spill] sm:$0xff]  ;;  %v11703_v5 = vld [vmem:[#allocation252_spill] sm:$0xff]  ;;  %v11704_v23 = vld [vmem:[#allocation257_spill] sm:$0xff] }
0x1645   :  { %7927 = vmatprep.subr.bf16.mxu0 %v7926_v60  ;;  %v7930_v45 = vpack.c.bf16 %v11699_v18, %v11698_v3  ;;  %v7910_v9 = vpack.c.bf16 %v11703_v5, %v11702_v2  ;;  %v4747_v8 = vld [vmem:[%s11687_s22] sm:$0xff]  ;;  %v11705_v10 = vld [vmem:[#allocation261_spill] sm:$0xff]  ;;  %v11706_v12 = vld [vmem:[#allocation266_spill] sm:$0xff] }
0x1646   :  { %v7932_v11 = vpack.c.bf16 %v11705_v10, %v11704_v23  ;;  %7319 = vmatmul.mubr.msk.f32.vlgmr.msra.gmra.mrb[64].mxu1 %vm4415_vm0, %v4747_v8  ;;  %v11707_v13 = vld [vmem:[#allocation270_spill] sm:$0xff]  ;;  %v11708_v31 = vld [vmem:[#allocation247_spill] sm:$0xff]  ;;  %v11710_v52 = vld [vmem:[#allocation256_spill] sm:$0xff] }
0x1647   :  { %v7934_v16 = vpack.c.bf16 %v11707_v13, %v11706_v12  ;;  %7909 = vmatpush1.bf16.msra.mxu1 %v7908_v7  ;;  %v11709_v63 = vld [vmem:[#allocation251_spill] sm:$0xff]  ;;  %4923 = vmatprep.mubr.f32.mxu1 %v11478_v35  ;;  %v11711_v41 = vld [vmem:[#allocation260_spill] sm:$0xff]  ;;  %v11712_v51 = vld [vmem:[#allocation265_spill] sm:$0xff] }
0x1648   :  { %7929 = vmatpush1.bf16.msra.mxu0 %v7928_v0  ;;  %v7912_v15 = vpack.c.bf16 %v11709_v63, %v11708_v31  ;;  %7911 = vmatprep.subr.bf16.mxu1 %v7910_v9  ;;  %v7914_v34 = vpack.c.bf16 %v11711_v41, %v11710_v52  ;;  %v11713_v29 = vld [vmem:[#allocation269_spill] sm:$0xff]  ;;  %v11714_v58 = vld [vmem:[#allocation255_spill] sm:$0xff]  ;;  %v11716_v44 = vld [vmem:[#allocation264_spill] sm:$0xff] }
0x1649   :  { %7931 = vmatprep.subr.bf16.mxu0 %v7930_v45  ;;  %v7936_v32 = vpack.c.bf16 %v11713_v29, %v11712_v51  ;;  %v11715_v49 = vld [vmem:[#allocation259_spill] sm:$0xff]  ;;  %v11717_v48 = vld [vmem:[#allocation268_spill] sm:$0xff]  ;;  %v11723_v39 = vld [vmem:[#allocation274_spill] sm:$0xff] }
0x164a   :  { %v7916_v42 = vpack.c.bf16 %v11715_v49, %v11714_v58  ;;  %v7918_v30 = vpack.c.bf16 %v11717_v48, %v11716_v44  ;;  %v11718_v33 = vld [vmem:[#allocation263_spill] sm:$0xff]  ;;  %v11720_v59 = vld [vmem:[#allocation272_spill] sm:$0xff]  ;;  %v11724_v50 = vld [vmem:[#allocation278_spill] sm:$0xff] }
0x164b   :  { %7913 = vmatpush1.bf16.msra.mxu1 %v7912_v15  ;;  %v11719_v43 = vld [vmem:[#allocation267_spill] sm:$0xff]  ;;  %v11725_v46 = vld [vmem:[#allocation281_spill] sm:$0xff] }
0x164c   :  { %7933 = vmatpush1.bf16.msra.mxu0 %v7932_v11  ;;  %7915 = vmatprep.subr.bf16.mxu1 %v7914_v34  ;;  %v7920_v21 = vpack.c.bf16 %v11719_v43, %v11718_v33  ;;  %v11721_v61 = vld [vmem:[#allocation275_spill] sm:$0xff]  ;;  %v7942_v38 = vpack.c.bf16 %v11725_v46, %v11724_v50 }
0x164d   :  { %7935 = vmatprep.subr.bf16.mxu0 %v7934_v16  ;;  %v7938_v54 = vpack.c.bf16 %v11721_v61, %v11720_v59  ;;  %v11722_v62 = vld [vmem:[#allocation271_spill] sm:$0xff] }
0x164e   :  { %v7940_v36 = vpack.c.bf16 %v11723_v39, %v11722_v62 }
0x164f   :  { %7917 = vmatpush1.bf16.msra.mxu1 %v7916_v42 }
0x1650   :  { %7937 = vmatpush1.bf16.msra.mxu0 %v7936_v32  ;;  %7919 = vmatprep.subr.bf16.mxu1 %v7918_v30 }
0x1651   :  { %7970 = vmatprep.subr.bf16.mxu0 %v8404_v24 }
0x1653   :  { %7921 = vmatpush1.bf16.msra.mxu1 %v7920_v21 }
0x1719   :  { %v4820_v20 = vpop.f32.mrb[64].mxu1 }
0x171a   :  { %v7320_v37 = vpop.f32.mrb[65].mxu1  ;;  %6771 = vmatmul.mubr.msk.f32.vlgmr.msra.gmra.mrb[66].mxu1 %vm4412_vm13, %v4820_v20  ;;  %6772 = vmatmul.mubr.msk.f32.vlgmr.msra.gmra.mrb[60].mxu0 %vm4412_vm13, %v4820_v20 }
0x17ed   :  { %v4925_v27 = vpop.f32.mrb[66].mxu1  ;;  %v4996_v19 = vpop.f32.mrb[60].mxu0 }
0x17ee   :  { %v5002_v14 = vrot.slane %v4996_v19, 4  ;;  %v4927_v47 = vpop.f32.mrb[67].mxu1  ;;  %v4998_v17 = vpop.f32.mrb[61].mxu0 }
0x17ef   :  { %v5006_v22 = vrot.slane %v4998_v17, 4 }
0x17f0   :  { %v5004_v25 = vadd.f32 %v5002_v14, %v4925_v27 }
0x17f1   :  { %v5008_v28 = vadd.f32 %v5006_v22, %v4927_v47 }
0x17f3   :  { %v5009_v53 = vmax.f32 %v5004_v25, %v5008_v28 }
0x17f5   :  { %v5011_v56 = vrot.slane %v5009_v53, 2 }
0x17f7   :  { %v10705_v57 = vmax.f32 %v5009_v53, %v5011_v56 }
0x17f8   :  { %8358 = dma.done.wait [#allocation10 + $0x5], 6144 }
0x17f9   :  { %8359 = vsyncadd [#allocation10 + $0x5], 4294961152  ;;  %v11726_v26 = vld [vmem:[#allocation273_spill] sm:$0xff]  ;;  %v11727_v40 = vld [vmem:[#allocation276_spill] sm:$0xff]  ;;  %5223 = vmatprep.mubr.f32.mxu1 %v11478_v35  ;;  %7939 = vmatprep.subr.bf16.mxu1 %v7938_v54  ;;  %s11752_s23 = sld [smem:[#allocation44_spill]]  ;;  %s11769_s26 = sld [smem:[#allocation43_spill]] }
0x17fa   :  { %v7971_v60 = vpack.c.bf16 %v11727_v40, %v11726_v26  ;;  %7941 = vmatpush1.bf16.msra.mxu1 %v7940_v36  ;;  %v11728_v55 = vld [vmem:[#allocation277_spill] sm:$0xff]  ;;  %v11729_v1 = vld [vmem:[#allocation280_spill] sm:$0xff]  ;;  %v11730_v3 = vld [vmem:[#allocation279_spill] sm:$0xff]  ;;  %7353 = vmatprep.mubr.msk.f32.mxu0 %vm8406_vm12, %v11478_v35  ;;  %s11773_s28 = sld [smem:[#allocation45_spill]] }
0x17fb   :  { %v7944_v0 = vpack.c.bf16 %v11729_v1, %v11728_v55  ;;  %v11731_v18 = vld [vmem:[#allocation282_spill] sm:$0xff]  ;;  %7943 = vmatprep.subr.bf16.mxu1 %v7942_v38  ;;  %v11732_v4 = vld [vmem:[#allocation284_spill] sm:$0xff]  ;;  %v11733_v6 = vld [vmem:[#allocation287_spill] sm:$0xff] }
0x17fc   :  { %7972 = vmatpush3.bf16.msra.mxu0 %v7971_v60  ;;  %v7974_v45 = vpack.c.bf16 %v11731_v18, %v11730_v3  ;;  %v7946_v7 = vpack.c.bf16 %v11733_v6, %v11732_v4  ;;  %v11734_v2 = vld [vmem:[#allocation283_spill] sm:$0xff]  ;;  %v11735_v5 = vld [vmem:[#allocation286_spill] sm:$0xff]  ;;  %v11736_v8 = vld [vmem:[#allocation285_spill] sm:$0xff] }
0x17fd   :  { %7973 = vmatprep.subr.bf16.mxu0 %v8404_v24  ;;  %v7948_v9 = vpack.c.bf16 %v11735_v5, %v11734_v2  ;;  %v11737_v23 = vld [vmem:[#allocation288_spill] sm:$0xff]  ;;  %v11738_v11 = vld [vmem:[#allocation290_spill] sm:$0xff]  ;;  %v11739_v12 = vld [vmem:[#allocation293_spill] sm:$0xff] }
0x17fe   :  { %7945 = vmatpush1.bf16.msra.mxu1 %v7944_v0  ;;  %v7977_v10 = vpack.c.bf16 %v11737_v23, %v11736_v8  ;;  %v7950_v13 = vpack.c.bf16 %v11739_v12, %v11738_v11  ;;  %v11740_v16 = vld [vmem:[#allocation289_spill] sm:$0xff]  ;;  %v11741_v31 = vld [vmem:[#allocation292_spill] sm:$0xff]  ;;  %v11742_v15 = vld [vmem:[#allocation291_spill] sm:$0xff] }
0x17ff   :  { %7947 = vmatprep.subr.bf16.mxu1 %v7946_v7  ;;  %v7952_v63 = vpack.c.bf16 %v11741_v31, %v11740_v16  ;;  %v11743_v52 = vld [vmem:[#allocation294_spill] sm:$0xff]  ;;  %v11744_v34 = vld [vmem:[#allocation296_spill] sm:$0xff]  ;;  %v11745_v51 = vld [vmem:[#allocation299_spill] sm:$0xff] }
0x1800   :  { %7975 = vmatpush3.bf16.msra.mxu0 %v7974_v45  ;;  %v7980_v41 = vpack.c.bf16 %v11743_v52, %v11742_v15  ;;  %v7954_v29 = vpack.c.bf16 %v11745_v51, %v11744_v34  ;;  %v11746_v32 = vld [vmem:[#allocation295_spill] sm:$0xff]  ;;  %v11747_v58 = vld [vmem:[#allocation298_spill] sm:$0xff]  ;;  %v11748_v42 = vld [vmem:[#allocation297_spill] sm:$0xff] }
0x1801   :  { %7976 = vmatprep.subr.bf16.mxu0 %v8404_v24  ;;  %v7956_v49 = vpack.c.bf16 %v11747_v58, %v11746_v32  ;;  %v11749_v44 = vld [vmem:[#allocation300_spill] sm:$0xff]  ;;  %v11750_v30 = vld [vmem:[#allocation302_spill] sm:$0xff]  ;;  %v11751_v33 = vld [vmem:[#allocation305_spill] sm:$0xff] }
0x1802   :  { %7949 = vmatpush1.bf16.msra.mxu1 %v7948_v9  ;;  %v7983_v48 = vpack.c.bf16 %v11749_v44, %v11748_v42  ;;  %v7958_v43 = vpack.c.bf16 %v11751_v33, %v11750_v30  ;;  %v11753_v21 = vld [vmem:[#allocation301_spill] sm:$0xff]  ;;  %v11754_v20 = vld [vmem:[#allocation304_spill] sm:$0xff]  ;;  %v11755_v27 = vld [vmem:[#allocation303_spill] sm:$0xff] }
0x1803   :  { %7951 = vmatprep.subr.bf16.mxu1 %v7950_v13  ;;  %v7960_v37 = vpack.c.bf16 %v11754_v20, %v11753_v21  ;;  %v11756_v19 = vld [vmem:[#allocation306_spill] sm:$0xff]  ;;  %v11757_v47 = vld [vmem:[#allocation308_spill] sm:$0xff]  ;;  %v11758_v17 = vld [vmem:[#allocation311_spill] sm:$0xff] }
0x1804   :  { %7978 = vmatpush3.bf16.msra.mxu0 %v7977_v10  ;;  %v7986_v14 = vpack.c.bf16 %v11756_v19, %v11755_v27  ;;  %v7962_v22 = vpack.c.bf16 %v11758_v17, %v11757_v47  ;;  %v11759_v25 = vld [vmem:[#allocation307_spill] sm:$0xff]  ;;  %v11760_v28 = vld [vmem:[#allocation310_spill] sm:$0xff]  ;;  %v11761_v56 = vld [vmem:[#allocation309_spill] sm:$0xff] }
0x1805   :  { %7979 = vmatprep.subr.bf16.mxu0 %v8404_v24  ;;  %v7964_v53 = vpack.c.bf16 %v11760_v28, %v11759_v25  ;;  %v11762_v59 = vld [vmem:[#allocation312_spill] sm:$0xff]  ;;  %v11763_v54 = vld [vmem:[#allocation314_spill] sm:$0xff]  ;;  %v11764_v62 = vld [vmem:[#allocation317_spill] sm:$0xff] }
0x1806   :  { %7953 = vmatpush1.bf16.msra.mxu1 %v7952_v63  ;;  %v7989_v61 = vpack.c.bf16 %v11762_v59, %v11761_v56  ;;  %v7966_v39 = vpack.c.bf16 %v11764_v62, %v11763_v54  ;;  %v5082_v36 = vld [vmem:[%s11752_s23 + $0x80] sm:$0xff]  ;;  %v5083_v50 = vld [vmem:[%s11752_s23 + $0x88] sm:$0xff]  ;;  %v11768_v60 = vld [vmem:[#allocation318_spill] sm:$0xff] }
0x1807   :  { %7955 = vmatprep.subr.bf16.mxu1 %v7954_v29  ;;  %v11765_v46 = vld [vmem:[#allocation313_spill] sm:$0xff]  ;;  %v11766_v38 = vld [vmem:[#allocation316_spill] sm:$0xff]  ;;  %v11767_v40 = vld [vmem:[#allocation315_spill] sm:$0xff]  ;;  %v7994_v1 = vpack.c.bf16 %v5083_v50, %v5082_v36 }
0x1808   :  { %7981 = vmatpush3.bf16.msra.mxu0 %v7980_v41  ;;  %v7968_v26 = vpack.c.bf16 %v11766_v38, %v11765_v46  ;;  %v7992_v55 = vpack.c.bf16 %v11768_v60, %v11767_v40  ;;  %v5066_v0 = vld [vmem:[%s11752_s23] sm:$0xff]  ;;  %v5067_v3 = vld [vmem:[%s11752_s23 + $0x8] sm:$0xff]  ;;  %v5084_v18 = vld [vmem:[%s11752_s23 + $0x90] sm:$0xff] }
0x1809   :  { %7982 = vmatprep.subr.bf16.mxu0 %v8404_v24  ;;  %v5085_v45 = vld [vmem:[%s11752_s23 + $0x98] sm:$0xff]  ;;  %v7996_v4 = vpack.c.bf16 %v5067_v3, %v5066_v0  ;;  %v5068_v7 = vld [vmem:[%s11752_s23 + $0x10] sm:$0xff]  ;;  %v5086_v5 = vld [vmem:[%s11752_s23 + $0xa0] sm:$0xff] }
0x180a   :  { %7957 = vmatpush1.bf16.msra.mxu1 %v7956_v49  ;;  %v7998_v6 = vpack.c.bf16 %v5085_v45, %v5084_v18  ;;  %v5069_v2 = vld [vmem:[%s11752_s23 + $0x18] sm:$0xff]  ;;  %v5087_v9 = vld [vmem:[%s11752_s23 + $0xa8] sm:$0xff]  ;;  %v5070_v10 = vld [vmem:[%s11752_s23 + $0x20] sm:$0xff] }
0x180b   :  { %7959 = vmatprep.subr.bf16.mxu1 %v7958_v43  ;;  %v8000_v8 = vpack.c.bf16 %v5069_v2, %v5068_v7  ;;  %v8002_v23 = vpack.c.bf16 %v5087_v9, %v5086_v5  ;;  %v5071_v11 = vld [vmem:[%s11752_s23 + $0x28] sm:$0xff]  ;;  %v5088_v12 = vld [vmem:[%s11752_s23 + $0xb0] sm:$0xff]  ;;  %v5089_v13 = vld [vmem:[%s11752_s23 + $0xb8] sm:$0xff] }
0x180c   :  { %7984 = vmatpush3.bf16.msra.mxu0 %v7983_v48  ;;  %v8004_v16 = vpack.c.bf16 %v5071_v11, %v5070_v10  ;;  %v8006_v31 = vpack.c.bf16 %v5089_v13, %v5088_v12  ;;  %v5072_v63 = vld [vmem:[%s11752_s23 + $0x30] sm:$0xff]  ;;  %v5090_v15 = vld [vmem:[%s11752_s23 + $0xc0] sm:$0xff]  ;;  %v5091_v52 = vld [vmem:[%s11752_s23 + $0xc8] sm:$0xff] }
0x180d   :  { %7985 = vmatprep.subr.bf16.mxu0 %v8404_v24  ;;  %v8010_v34 = vpack.c.bf16 %v5091_v52, %v5090_v15  ;;  %v5074_v51 = vld [vmem:[%s11752_s23 + $0x40] sm:$0xff]  ;;  %v5075_v29 = vld [vmem:[%s11752_s23 + $0x48] sm:$0xff]  ;;  %v5092_v32 = vld [vmem:[%s11752_s23 + $0xd0] sm:$0xff] }
0x180e   :  { %7961 = vmatpush1.bf16.msra.mxu1 %v7960_v37  ;;  %v5093_v58 = vld [vmem:[%s11752_s23 + $0xd8] sm:$0xff]  ;;  %v8012_v49 = vpack.c.bf16 %v5075_v29, %v5074_v51  ;;  %v5076_v44 = vld [vmem:[%s11752_s23 + $0x50] sm:$0xff]  ;;  %v5094_v30 = vld [vmem:[%s11752_s23 + $0xe0] sm:$0xff] }
0x180f   :  { %7963 = vmatprep.subr.bf16.mxu1 %v7962_v22  ;;  %v8014_v42 = vpack.c.bf16 %v5093_v58, %v5092_v32  ;;  %v5077_v48 = vld [vmem:[%s11752_s23 + $0x58] sm:$0xff]  ;;  %v5095_v33 = vld [vmem:[%s11752_s23 + $0xe8] sm:$0xff]  ;;  %v5078_v20 = vld [vmem:[%s11752_s23 + $0x60] sm:$0xff] }
0x1810   :  { %7987 = vmatpush3.bf16.msra.mxu0 %v7986_v14  ;;  %v8016_v43 = vpack.c.bf16 %v5077_v48, %v5076_v44  ;;  %v8018_v21 = vpack.c.bf16 %v5095_v33, %v5094_v30  ;;  %v5079_v37 = vld [vmem:[%s11752_s23 + $0x68] sm:$0xff]  ;;  %v5096_v19 = vld [vmem:[%s11752_s23 + $0xf0] sm:$0xff]  ;;  %v5097_v14 = vld [vmem:[%s11752_s23 + $0xf8] sm:$0xff] }
0x1811   :  { %7988 = vmatprep.subr.bf16.mxu0 %v8404_v24  ;;  %v8020_v27 = vpack.c.bf16 %v5079_v37, %v5078_v20  ;;  %v8022_v47 = vpack.c.bf16 %v5097_v14, %v5096_v19  ;;  %v5080_v17 = vld [vmem:[%s11752_s23 + $0x70] sm:$0xff]  ;;  %v5081_v22 = vld [vmem:[%s11752_s23 + $0x78] sm:$0xff]  ;;  %v5114_v28 = vld [vmem:[%s11752_s23 + $0x180] sm:$0xff] }
0x1812   :  { %7965 = vmatpush1.bf16.msra.mxu1 %v7964_v53  ;;  %v8024_v25 = vpack.c.bf16 %v5081_v22, %v5080_v17  ;;  %v5115_v53 = vld [vmem:[%s11752_s23 + $0x188] sm:$0xff]  ;;  %v5098_v56 = vld [vmem:[%s11752_s23 + $0x100] sm:$0xff]  ;;  %v5116_v54 = vld [vmem:[%s11752_s23 + $0x190] sm:$0xff] }
0x1813   :  { %7967 = vmatprep.subr.bf16.mxu1 %v7966_v39  ;;  %v8026_v59 = vpack.c.bf16 %v5115_v53, %v5114_v28  ;;  %v5117_v62 = vld [vmem:[%s11752_s23 + $0x198] sm:$0xff]  ;;  %v5100_v50 = vld [vmem:[%s11752_s23 + $0x110] sm:$0xff]  ;;  %v5118_v38 = vld [vmem:[%s11752_s23 + $0x1a0] sm:$0xff] }
0x1814   :  { %7990 = vmatpush3.bf16.msra.mxu0 %v7989_v61  ;;  %v5099_v61 = vld [vmem:[%s11752_s23 + $0x108] sm:$0xff]  ;;  %v8030_v36 = vpack.c.bf16 %v5117_v62, %v5116_v54  ;;  %v5101_v46 = vld [vmem:[%s11752_s23 + $0x118] sm:$0xff]  ;;  %v5120_v0 = vld [vmem:[%s11752_s23 + $0x1b0] sm:$0xff] }
0x1815   :  { %7991 = vmatprep.subr.bf16.mxu0 %v8404_v24  ;;  %v8028_v39 = vpack.c.bf16 %v5099_v61, %v5098_v56  ;;  %v8032_v40 = vpack.c.bf16 %v5101_v46, %v5100_v50  ;;  %v5121_v3 = vld [vmem:[%s11752_s23 + $0x1b8] sm:$0xff]  ;;  %v5122_v7 = vld [vmem:[%s11752_s23 + $0x1c0] sm:$0xff]  ;;  %v5123_v2 = vld [vmem:[%s11752_s23 + $0x1c8] sm:$0xff] }
0x1816   :  { %7969 = vmatpush1.bf16.msra.mxu1 %v7968_v26  ;;  %v5119_v26 = vld [vmem:[%s11752_s23 + $0x1a8] sm:$0xff]  ;;  %v8038_v45 = vpack.c.bf16 %v5121_v3, %v5120_v0  ;;  %v8042_v9 = vpack.c.bf16 %v5123_v2, %v5122_v7  ;;  %v5124_v10 = vld [vmem:[%s11752_s23 + $0x1d0] sm:$0xff]  ;;  %v5125_v11 = vld [vmem:[%s11752_s23 + $0x1d8] sm:$0xff] }
0x1817   :  { %7995 = vmatprep.subr.bf16.mxu1 %v7994_v1  ;;  %v8034_v60 = vpack.c.bf16 %v5119_v26, %v5118_v38  ;;  %v5103_v1 = vld [vmem:[%s11752_s23 + $0x128] sm:$0xff]  ;;  %v8046_v13 = vpack.c.bf16 %v5125_v11, %v5124_v10  ;;  %v5128_v29 = vld [vmem:[%s11752_s23 + $0x1f0] sm:$0xff]  ;;  %v5129_v32 = vld [vmem:[%s11752_s23 + $0x1f8] sm:$0xff] }
0x1818   :  { %7993 = vmatpush3.bf16.msra.mxu0 %v7992_v55  ;;  %v5102_v55 = vld [vmem:[%s11752_s23 + $0x120] sm:$0xff]  ;;  %v8054_v58 = vpack.c.bf16 %v5129_v32, %v5128_v29  ;;  %v11770_v44 = vld [vmem:[#allocation409_spill] sm:$0xff]  ;;  %v11772_v37 = vld [vmem:[#allocation410_spill] sm:$0xff] }
0x1819   :  { %5224 = vmatmul.mubr.f32.vlgmr.msra.gmra.mrb[68].mxu1 %v10705_v57  ;;  %8027 = vmatprep.subr.bf16.mxu0 %v8026_v59  ;;  %v8036_v18 = vpack.c.bf16 %v5103_v1, %v5102_v55  ;;  %v5154_v48 = vsub.s32 2, %v11770_v44  ;;  %v5065_v33 = vld [vmem:[%s11769_s26] sm:$0x7]  ;;  %v5131_v14 = vld [vmem:[%s11752_s23 + $0x208] sm:$0xff]  ;;  %v5132_v62 = vld [vmem:[%s11752_s23 + $0x210] sm:$0xff] }
0x181a   :  { %7997 = vmatpush3.bf16.msra.mxu1 %v7996_v4  ;;  %v5104_v4 = vld [vmem:[%s11752_s23 + $0x130] sm:$0xff]  ;;  %v5130_v19 = vld [vmem:[%s11752_s23 + $0x200] sm:$0xff]  ;;  %v5135_v38 = vld [vmem:[%s11752_s23 + $0x228] sm:$0xff] }
0x181b   :  { %7354 = vmatmul.mubr.f32.vlgmr.msra.gmra.mrb[62].mxu0 %v10705_v57  ;;  %7999 = vmatprep.subr.bf16.mxu1 %v7998_v6  ;;  %v5073_v57 = vld [vmem:[%s11752_s23 + $0x38] sm:$0xff]  ;;  %v5155_v20 = vrot.slane %v5065_v33, %v5154_v48  ;;  %v8059_v59 = vpack.c.bf16 %v5131_v14, %v5130_v19  ;;  %v5134_v46 = vld [vmem:[%s11752_s23 + $0x220] sm:$0xff]  ;;  %v5139_v11 = vld [vmem:[%s11773_s28 + $0x8] sm:$0xff] }
0x181c   :  { %v8008_v41 = vpack.c.bf16 %v5073_v57, %v5072_v63  ;;  %8029 = vmatpush3.bf16.msra.mxu0 %v8028_v39  ;;  %v5105_v6 = vld [vmem:[%s11752_s23 + $0x138] sm:$0xff]  ;;  %v5126_v63 = vld [vmem:[%s11752_s23 + $0x1e0] sm:$0xff]  ;;  %v5127_v57 = vld [vmem:[%s11752_s23 + $0x1e8] sm:$0xff]  ;;  %v8065_v26 = vpack.c.bf16 %v5135_v38, %v5134_v46 }
0x181d   :  { %8031 = vmatprep.subr.bf16.mxu0 %v8030_v36  ;;  %v8040_v5 = vpack.c.bf16 %v5105_v6, %v5104_v4  ;;  %v8050_v52 = vpack.c.bf16 %v5127_v57, %v5126_v63  ;;  %v5133_v39 = vld [vmem:[%s11752_s23 + $0x218] sm:$0xff]  ;;  %v5142_v32 = vld [vmem:[%s11773_s28 + $0x20] sm:$0xff] }
0x181e   :  { %8001 = vmatpush3.bf16.msra.mxu1 %v8000_v8  ;;  %v5106_v8 = vld [vmem:[%s11752_s23 + $0x140] sm:$0xff]  ;;  %v8062_v36 = vpack.c.bf16 %v5133_v39, %v5132_v62  ;;  %v11775_v39 = vld [vmem:[#allocation322_spill] sm:$0xff] }
0x181f   :  { %8003 = vmatprep.subr.bf16.mxu1 %v8002_v23  ;;  %v5107_v23 = vld [vmem:[%s11752_s23 + $0x148] sm:$0xff] }
0x1820   :  { %8033 = vmatpush3.bf16.msra.mxu0 %v8032_v40  ;;  %v8044_v12 = vpack.c.bf16 %v5107_v23, %v5106_v8  ;;  %v5136_v40 = vld [vmem:[%s11752_s23 + $0x230] sm:$0xff]  ;;  %v11774_v62 = vld [vmem:[#allocation320_spill] sm:$0xff] }
0x1821   :  { %8035 = vmatprep.subr.bf16.mxu0 %v8034_v60  ;;  %v5137_v60 = vld [vmem:[%s11752_s23 + $0x238] sm:$0xff]  ;;  %v11778_v38 = vld [vmem:[#allocation324_spill] sm:$0xff] }
0x1822   :  { %8005 = vmatpush3.bf16.msra.mxu1 %v8004_v16  ;;  %v5108_v16 = vld [vmem:[%s11752_s23 + $0x150] sm:$0xff]  ;;  %v8068_v55 = vpack.c.bf16 %v5137_v60, %v5136_v40 }
0x1823   :  { %8007 = vmatprep.subr.bf16.mxu1 %v8006_v31  ;;  %v5109_v31 = vld [vmem:[%s11752_s23 + $0x158] sm:$0xff] }
0x1824   :  { %8037 = vmatpush3.bf16.msra.mxu0 %v8036_v18  ;;  %v8048_v15 = vpack.c.bf16 %v5109_v31, %v5108_v16 }
0x1825   :  { %8039 = vmatprep.subr.bf16.mxu0 %v8038_v45 }
0x1826   :  { %8009 = vmatpush3.bf16.msra.mxu1 %v8008_v41  ;;  %v5110_v41 = vld [vmem:[%s11752_s23 + $0x160] sm:$0xff] }
0x1827   :  { %8011 = vmatprep.subr.bf16.mxu1 %v8010_v34  ;;  %v5111_v34 = vld [vmem:[%s11752_s23 + $0x168] sm:$0xff] }
0x1828   :  { %8041 = vmatpush3.bf16.msra.mxu0 %v8040_v5  ;;  %v8052_v51 = vpack.c.bf16 %v5111_v34, %v5110_v41 }
0x1829   :  { %8043 = vmatprep.subr.bf16.mxu0 %v8042_v9 }
0x182a   :  { %8013 = vmatpush3.bf16.msra.mxu1 %v8012_v49  ;;  %v5112_v49 = vld [vmem:[%s11752_s23 + $0x170] sm:$0xff] }
0x182b   :  { %8015 = vmatprep.subr.bf16.mxu1 %v8014_v42  ;;  %v5113_v42 = vld [vmem:[%s11752_s23 + $0x178] sm:$0xff] }
0x182c   :  { %8045 = vmatpush3.bf16.msra.mxu0 %v8044_v12  ;;  %v8056_v30 = vpack.c.bf16 %v5113_v42, %v5112_v49  ;;  %v5138_v12 = vld [vmem:[%s11773_s28] sm:$0xff] }
0x182d   :  { %8047 = vmatprep.subr.bf16.mxu0 %v8046_v13  ;;  %v5141_v13 = vld [vmem:[%s11773_s28 + $0x18] sm:$0xff] }
0x182e   :  { %8017 = vmatpush3.bf16.msra.mxu1 %v8016_v43  ;;  %v11771_v43 = vld [vmem:[#allocation411_spill] sm:$0xff] }
0x182f   :  { %8019 = vmatprep.subr.bf16.mxu1 %v8018_v21  ;;  %v5147_v21 = vrot.slane %v5065_v33, %v11771_v43 }
0x1830   :  { %8049 = vmatpush3.bf16.msra.mxu0 %v8048_v15 }
0x1831   :  { %8051 = vmatprep.subr.bf16.mxu0 %v8050_v52 }
0x1832   :  { %8021 = vmatpush3.bf16.msra.mxu1 %v8020_v27  ;;  %v5151_v27 = vrot.slane %v5065_v33, %v11772_v37 }
0x1833   :  { %8023 = vmatprep.subr.bf16.mxu1 %v8022_v47 }
0x1834   :  { %8053 = vmatpush3.bf16.msra.mxu0 %v8052_v51  ;;  %v5140_v51 = vld [vmem:[%s11773_s28 + $0x10] sm:$0xff] }
0x1835   :  { %8055 = vmatprep.subr.bf16.mxu0 %v8054_v58 }
0x1836   :  { %8025 = vmatpush3.bf16.msra.mxu1 %v8024_v25 }
0x1837   :  { %8058 = vmatprep.subr.bf16.mxu1 %v8404_v24 }
0x1838   :  { %8057 = vmatpush3.bf16.msra.mxu0 %v8056_v30 }
0x1839   :  { %5542 = vmatprep.subr.mxu0 %v5139_v11 }
0x18ec   :  { %v5225_v47 = vpop.f32.mrb[68].mxu1 }
0x18ed   :  { %v10839_v22 = vadd.f32 %v5225_v47, %v5147_v21  ;;  %v5227_v25 = vpop.f32.mrb[69].mxu1 }
0x18ee   :  { %v5296_v17 = vpop.f32.mrb[62].mxu0  ;;  %v10843_v56 = vadd.f32 %v5227_v25, %v5151_v27 }
0x18ef   :  { %v10841_v28 = vadd.f32 %v5296_v17, %v5155_v20  ;;  %v7355_v53 = vpop.f32.mrb[63].mxu0  ;;  %v5300_v61 = vmul.f32 %v10839_v22, %v10839_v22 }
0x18f0   :  { %5383 = vmatprep.mubr.f32.mxu1 %v10843_v56  ;;  %v5301_v50 = vmul.f32 %v10843_v56, %v10843_v56 }
0x18f1   :  { %v5302_v54 = vmul.f32 %v10841_v28, %v10841_v28  ;;  %5384 = vmatmul.mubr.f32.vlgmr.msra.gmra.mrb[70].mxu1 %v10839_v22  ;;  %5306 = vrot.lane.b32.xlu0 %v5300_v61, %s8405_s8 }
0x18f2   :  { %8060 = vmatpush3.bf16.msra.mxu1 %v8059_v59  ;;  %7372 = vmatprep.mubr.msk.f32.mxu1 %vm8406_vm12, %v11478_v35 }
0x18f3   :  { %5310 = vrot.lane.b32.xlu1 %v5302_v54, %s8405_s8  ;;  %8061 = vmatprep.subr.bf16.mxu1 %v8404_v24 }
0x18f5   :  { %5308 = vrot.lane.b32.xlu0 %v5301_v50, %s8405_s8  ;;  %v11776_v50 = vld [vmem:[#allocation319_spill] sm:$0xff] }
0x18f6   :  { %8063 = vmatpush3.bf16.msra.mxu1 %v8062_v36  ;;  %v8070_v36 = vpack.c.bf16 %v11775_v39, %v11774_v62 }
0x18f7   :  { %8064 = vmatprep.subr.bf16.mxu1 %v8404_v24 }
0x18fa   :  { %8066 = vmatpush3.bf16.msra.mxu1 %v8065_v26  ;;  %v11779_v26 = vld [vmem:[#allocation326_spill] sm:$0xff] }
0x18fb   :  { %8067 = vmatprep.subr.bf16.mxu1 %v8404_v24 }
0x18fe   :  { %8069 = vmatpush3.bf16.msra.mxu1 %v8068_v55 }
0x1963   :  { %v5307_v1 = vpop.permute.xlu0 %5306 }
0x1964   :  { %v5316_v4 = vsel %vm3116_vm10, %v10841_v28, %v5307_v1 }
0x1965   :  { %v5311_v0 = vpop.permute.xlu1 %5310 }
0x1967   :  { %v5309_v3 = vpop.permute.xlu0 %5308 }
0x1968   :  { %v5313_v18 = vsel %vm3116_vm10, %v5309_v3, %v5311_v0  ;;  %v5312_v45 = vsel %vm3116_vm10, %v5307_v1, %v5309_v3 }
0x1969   :  { %5453 = vmatprep.mubr.f32.mxu0 %v5312_v45  ;;  %7373 = vmatmul.mubr.msk.f32.vlgmr.msra.gmra.mrb[72].mxu1 %vm4412_vm13, %v5313_v18 }
0x196a   :  { %5454 = vmatmul.mubr.f32.vlgmr.msra.gmra.mrb[64].mxu0 %v5316_v4 }
0x196b   :  { %5606 = vmatprep.mubr.f32.mxu0 %v11478_v35  ;;  %5543 = vmatpush1.msra.mxu0 %v5138_v12 }
0x196c   :  { %5613 = vmatprep.subr.mxu0 %v5141_v13 }
0x19c4   :  { %v7072_v6 = vpop.f32.mrb[70].mxu1 }
0x19c5   :  { %v7073_v7 = vpop.f32.mrb[71].mxu1 }
0x19c6   :  { %v7074_v2 = vadd.f32 %v7073_v7, %v7072_v6 }
0x1a3c   :  { %v5525_v5 = vpop.f32.mrb[72].mxu1 }
0x1a3d   :  { %v7107_v9 = vpop.f32.mrb[64].mxu0  ;;  %v7374_v8 = vpop.f32.mrb[73].mxu1 }
0x1a3e   :  { %v7108_v23 = vpop.f32.mrb[65].mxu0 }
0x1a3f   :  { %v7109_v10 = vadd.f32 %v7108_v23, %v7107_v9 }
0x1a41   :  { %v5456_v16 = vadd.f32 %v7109_v10, %v7074_v2 }
0x1a43   :  { %v5526_v31 = vadd.f32 %v5525_v5, %v5456_v16 }
0x1a45   :  { %v5529_v63 = vmul.f32 0.013888889, %v5526_v31 }
0x1a47   :  { %v5530_v57 = vmul.f32 %v5529_v63, %v5529_v63 }
0x1a49   :  { %5532 = vrot.lane.b32.xlu1 %v5530_v57, %s8402_s0 }
0x1abb   :  { %v5533_v15 = vpop.permute.xlu1 %5532 }
0x1abc   :  { %v5535_v52 = vsub.f32 %v5529_v63, %v5533_v15 }
0x1abe   :  { %v5536_v41 = vmax.f32 %v5535_v52, 0.0 }
0x1ac0   :  { %8322 = vrsqrt.f32 %v5536_v41 }
0x1aca   :  { %v8323_v34 = vpop.eup %8322 }
0x1acb   :  { %v5538_v29 = vsel %vm2072_vm5, %v5529_v63, %v8323_v34 }
0x1acc   :  { %6774 = vmatmul.mubr.msk.f32.vlgmr.msra.gmra.mrb[66].mxu0 %vm2074_vm6, %v5538_v29 }
0x1acd   :  { %5614 = vmatpush1.msra.mxu0 %v5140_v51  ;;  %5677 = vmatprep.mubr.f32.mxu0 %v11478_v35 }
0x1ace   :  { %7375 = vmatprep.subr.mxu0 %v11478_v35 }
0x1ad0   :  { %6775 = vmatmul.mubr.msk.f32.vlgmr.msra.gmra.mrb[68].mxu0 %vm2074_vm6, %v5538_v29 }
0x1ad1   :  { %7376 = vmatpush3.msra.mxu0 %v5142_v32  ;;  %7377 = vmatprep.mubr.msk.f32.mxu0 %vm8406_vm12, %v11478_v35 }
0x1ad4   :  { %7378 = vmatmul.mubr.msk.f32.vlgmr.msra.gmra.mrb[70].mxu0 %vm2074_vm6, %v5538_v29 }
0x1b9f   :  { %v5608_v58 = vpop.f32.mrb[66].mxu0 }
0x1ba0   :  { %v5610_v49 = vpop.f32.mrb[67].mxu0  ;;  %v5754_v21 = vsub.f32 %v10839_v22, %v5608_v58 }
0x1ba1   :  { %v5755_v47 = vsub.f32 %v10843_v56, %v5610_v49  ;;  %v8074_v56 = vpack.c.bf16 %v11779_v26, %v11778_v38 }
0x1ba3   :  { %v5679_v42 = vpop.f32.mrb[68].mxu0 }
0x1ba4   :  { %5760 = vrot.lane.b32.xlu0 %v5679_v42, %s8403_s5  ;;  %v5681_v44 = vpop.f32.mrb[69].mxu0  ;;  %v5756_v19 = vsub.f32 %v10841_v28, %v5679_v42  ;;  %v11777_v28 = vld [vmem:[#allocation321_spill] sm:$0xff] }
0x1ba5   :  { %5762 = vrot.lane.b32.xlu1 %v5681_v44, %s8403_s5  ;;  %v8072_v46 = vpack.c.bf16 %v11777_v28, %v11776_v50 }
0x1ba7   :  { %v5750_v48 = vpop.f32.mrb[70].mxu0 }
0x1ba8   :  { %5764 = vrot.lane.b32.xlu0 %v5750_v48, %s8403_s5  ;;  %v7379_v30 = vpop.f32.mrb[71].mxu0 }
0x1c16   :  { %v5761_v33 = vpop.permute.xlu0 %5760 }
0x1c17   :  { %v5763_v20 = vpop.permute.xlu1 %5762 }
0x1c18   :  { %v5766_v27 = vsel %vm2784_vm9, %v5761_v33, %v5763_v20 }
0x1c19   :  { %v10893_v14 = vmul.f32 %v5766_v27, %v5754_v21 }
0x1c1a   :  { %v5765_v17 = vpop.permute.xlu0 %5764 }
0x1c1b   :  { %v5774_v25 = vmax.f32 %v10893_v14, 0.0  ;;  %v5767_v53 = vsel %vm2784_vm9, %v5763_v20, %v5765_v17  ;;  %v10898_v59 = vmul.f32 %v5765_v17, %v5756_v19 }
0x1c1c   :  { %v5772_v61 = vmul.f32 %v5767_v53, %v5755_v47 }
0x1c1d   :  { %v5776_v54 = vmax.f32 %v10898_v59, 0.0 }
0x1c1e   :  { %v5775_v22 = vmax.f32 %v5772_v61, 0.0 }
0x1c20   :  { %5971 = vmatprep.mubr.f32.mxu0 %v5775_v22 }
0x1c21   :  { %8360 = dma.done.wait [#allocation10 + $0x6], 9216 }
0x1c22   :  { %8361 = vsyncadd [#allocation10 + $0x6], 4294958080  ;;  %8071 = vmatprep.subr.bf16.mxu0 %v8070_v36  ;;  %v11780_v40 = vld [vmem:[#allocation323_spill] sm:$0xff]  ;;  %v11781_v60 = vld [vmem:[#allocation325_spill] sm:$0xff]  ;;  %s11836_s1 = sld [smem:[#allocation47_spill]]  ;;  %s11847_s2 = sld [smem:[#allocation46_spill]] }
0x1c23   :  { %8073 = vmatpush1.bf16.msra.mxu0 %v8072_v46  ;;  %v8076_v55 = vpack.c.bf16 %v11781_v60, %v11780_v40  ;;  %v11782_v1 = vld [vmem:[#allocation328_spill] sm:$0xff]  ;;  %v11783_v0 = vld [vmem:[#allocation330_spill] sm:$0xff]  ;;  %v11784_v18 = vld [vmem:[#allocation327_spill] sm:$0xff]  ;;  %s8409_s7 = smov 16   ;;  %vm6057_vm1 = vcmask 130048   ;;  %s8410_s10 = smov 112  }
0x1c24   :  { %8075 = vmatprep.subr.bf16.mxu0 %v8074_v56  ;;  %v8078_v3 = vpack.c.bf16 %v11783_v0, %v11782_v1  ;;  %v11785_v45 = vld [vmem:[#allocation329_spill] sm:$0xff]  ;;  %v11786_v6 = vld [vmem:[#allocation332_spill] sm:$0xff]  ;;  %v11787_v7 = vld [vmem:[#allocation334_spill] sm:$0xff]  ;;  %vm6365_vm2 = vcmask 916480  }
0x1c25   :  { %v8080_v4 = vpack.c.bf16 %v11785_v45, %v11784_v18  ;;  %v8082_v2 = vpack.c.bf16 %v11787_v7, %v11786_v6  ;;  %v11788_v5 = vld [vmem:[#allocation331_spill] sm:$0xff]  ;;  %v11789_v9 = vld [vmem:[#allocation333_spill] sm:$0xff]  ;;  %v11790_v23 = vld [vmem:[#allocation336_spill] sm:$0xff] }
0x1c26   :  { %v8084_v8 = vpack.c.bf16 %v11789_v9, %v11788_v5  ;;  %v11791_v10 = vld [vmem:[#allocation338_spill] sm:$0xff]  ;;  %v11792_v12 = vld [vmem:[#allocation335_spill] sm:$0xff]  ;;  %v11793_v13 = vld [vmem:[#allocation337_spill] sm:$0xff] }
0x1c27   :  { %8077 = vmatpush1.bf16.msra.mxu0 %v8076_v55  ;;  %v8086_v11 = vpack.c.bf16 %v11791_v10, %v11790_v23  ;;  %v8088_v16 = vpack.c.bf16 %v11793_v13, %v11792_v12  ;;  %v11794_v31 = vld [vmem:[#allocation340_spill] sm:$0xff]  ;;  %v11795_v63 = vld [vmem:[#allocation342_spill] sm:$0xff]  ;;  %v11796_v15 = vld [vmem:[#allocation339_spill] sm:$0xff] }
0x1c28   :  { %8079 = vmatprep.subr.bf16.mxu0 %v8078_v3  ;;  %v8090_v57 = vpack.c.bf16 %v11795_v63, %v11794_v31  ;;  %v11797_v52 = vld [vmem:[#allocation341_spill] sm:$0xff]  ;;  %v11798_v34 = vld [vmem:[#allocation344_spill] sm:$0xff]  ;;  %v11799_v51 = vld [vmem:[#allocation346_spill] sm:$0xff] }
0x1c29   :  { %v8092_v41 = vpack.c.bf16 %v11797_v52, %v11796_v15  ;;  %v8094_v29 = vpack.c.bf16 %v11799_v51, %v11798_v34  ;;  %v11800_v32 = vld [vmem:[#allocation343_spill] sm:$0xff]  ;;  %v11801_v58 = vld [vmem:[#allocation345_spill] sm:$0xff]  ;;  %v11802_v42 = vld [vmem:[#allocation348_spill] sm:$0xff] }
0x1c2a   :  { %v8096_v49 = vpack.c.bf16 %v11801_v58, %v11800_v32  ;;  %v11803_v44 = vld [vmem:[#allocation350_spill] sm:$0xff]  ;;  %v11804_v30 = vld [vmem:[#allocation347_spill] sm:$0xff]  ;;  %v11805_v33 = vld [vmem:[#allocation349_spill] sm:$0xff] }
0x1c2b   :  { %8081 = vmatpush1.bf16.msra.mxu0 %v8080_v4  ;;  %v8098_v48 = vpack.c.bf16 %v11803_v44, %v11802_v42  ;;  %v8100_v21 = vpack.c.bf16 %v11805_v33, %v11804_v30  ;;  %v11806_v20 = vld [vmem:[#allocation352_spill] sm:$0xff]  ;;  %v11807_v27 = vld [vmem:[#allocation354_spill] sm:$0xff]  ;;  %v11808_v47 = vld [vmem:[#allocation351_spill] sm:$0xff] }
0x1c2c   :  { %8083 = vmatprep.subr.bf16.mxu0 %v8082_v2  ;;  %v8102_v19 = vpack.c.bf16 %v11807_v27, %v11806_v20  ;;  %v11809_v17 = vld [vmem:[#allocation353_spill] sm:$0xff]  ;;  %v11810_v61 = vld [vmem:[#allocation356_spill] sm:$0xff]  ;;  %v11811_v22 = vld [vmem:[#allocation358_spill] sm:$0xff] }
0x1c2d   :  { %v8104_v53 = vpack.c.bf16 %v11809_v17, %v11808_v47  ;;  %v8106_v62 = vpack.c.bf16 %v11811_v22, %v11810_v61  ;;  %v11812_v39 = vld [vmem:[#allocation355_spill] sm:$0xff]  ;;  %v11813_v36 = vld [vmem:[#allocation357_spill] sm:$0xff]  ;;  %v11814_v28 = vld [vmem:[#allocation360_spill] sm:$0xff] }
0x1c2e   :  { %v8108_v50 = vpack.c.bf16 %v11813_v36, %v11812_v39  ;;  %v11815_v46 = vld [vmem:[#allocation362_spill] sm:$0xff]  ;;  %v11816_v26 = vld [vmem:[#allocation359_spill] sm:$0xff]  ;;  %v11817_v56 = vld [vmem:[#allocation361_spill] sm:$0xff] }
0x1c2f   :  { %8085 = vmatpush1.bf16.msra.mxu0 %v8084_v8  ;;  %v8110_v38 = vpack.c.bf16 %v11815_v46, %v11814_v28  ;;  %v8112_v40 = vpack.c.bf16 %v11817_v56, %v11816_v26  ;;  %v11818_v60 = vld [vmem:[#allocation364_spill] sm:$0xff]  ;;  %v11819_v55 = vld [vmem:[#allocation366_spill] sm:$0xff]  ;;  %v11820_v0 = vld [vmem:[#allocation363_spill] sm:$0xff] }
0x1c30   :  { %8087 = vmatprep.subr.bf16.mxu0 %v8086_v11  ;;  %v8114_v1 = vpack.c.bf16 %v11819_v55, %v11818_v60  ;;  %v11821_v3 = vld [vmem:[#allocation365_spill] sm:$0xff]  ;;  %v11822_v45 = vld [vmem:[#allocation368_spill] sm:$0xff]  ;;  %v11823_v4 = vld [vmem:[#allocation370_spill] sm:$0xff] }
0x1c31   :  { %v8116_v18 = vpack.c.bf16 %v11821_v3, %v11820_v0  ;;  %v8118_v6 = vpack.c.bf16 %v11823_v4, %v11822_v45  ;;  %v11824_v7 = vld [vmem:[#allocation367_spill] sm:$0xff]  ;;  %v11825_v2 = vld [vmem:[#allocation369_spill] sm:$0xff]  ;;  %v11826_v9 = vld [vmem:[#allocation372_spill] sm:$0xff] }
0x1c32   :  { %v8120_v5 = vpack.c.bf16 %v11825_v2, %v11824_v7  ;;  %v11827_v8 = vld [vmem:[#allocation374_spill] sm:$0xff]  ;;  %v11828_v10 = vld [vmem:[#allocation371_spill] sm:$0xff]  ;;  %v11829_v11 = vld [vmem:[#allocation373_spill] sm:$0xff] }
0x1c33   :  { %8089 = vmatpush1.bf16.msra.mxu0 %v8088_v16  ;;  %v8122_v23 = vpack.c.bf16 %v11827_v8, %v11826_v9  ;;  %v8124_v12 = vpack.c.bf16 %v11829_v11, %v11828_v10  ;;  %v11830_v13 = vld [vmem:[#allocation376_spill] sm:$0xff]  ;;  %v11831_v16 = vld [vmem:[#allocation378_spill] sm:$0xff]  ;;  %v11832_v63 = vld [vmem:[#allocation375_spill] sm:$0xff] }
0x1c34   :  { %8091 = vmatprep.subr.bf16.mxu0 %v8090_v57  ;;  %v8126_v31 = vpack.c.bf16 %v11831_v16, %v11830_v13  ;;  %v11833_v57 = vld [vmem:[#allocation377_spill] sm:$0xff]  ;;  %v11834_v52 = vld [vmem:[#allocation380_spill] sm:$0xff]  ;;  %v11837_v51 = vld [vmem:[#allocation379_spill] sm:$0xff] }
0x1c35   :  { %v8128_v15 = vpack.c.bf16 %v11833_v57, %v11832_v63  ;;  %v11839_v58 = vld [vmem:[#allocation384_spill] sm:$0xff]  ;;  %v11841_v44 = vld [vmem:[#allocation383_spill] sm:$0xff]  ;;  %v5872_v22 = vld [vmem:[%s11836_s1 + $0x90] sm:$0xff] }
0x1c36   :  { %v11843_v33 = vld [vmem:[#allocation388_spill] sm:$0xff]  ;;  %v11845_v27 = vld [vmem:[#allocation387_spill] sm:$0xff]  ;;  %v5860_v0 = vld [vmem:[%s11836_s1 + $0x30] sm:$0xff] }
0x1c37   :  { %8093 = vmatpush1.bf16.msra.mxu0 %v8092_v41  ;;  %v11835_v41 = vld [vmem:[#allocation382_spill] sm:$0xff]  ;;  %v5870_v17 = vld [vmem:[%s11836_s1 + $0x80] sm:$0xff]  ;;  %v5855_v61 = vld [vmem:[%s11836_s1 + $0x8] sm:$0xff] }
0x1c38   :  { %8095 = vmatprep.subr.bf16.mxu0 %v8094_v29  ;;  %v8130_v34 = vpack.c.bf16 %v11835_v41, %v11834_v52  ;;  %v11838_v29 = vld [vmem:[#allocation381_spill] sm:$0xff]  ;;  %v5854_v14 = vld [vmem:[%s11836_s1] sm:$0xff]  ;;  %v5857_v28 = vld [vmem:[%s11836_s1 + $0x18] sm:$0xff] }
0x1c39   :  { %v8132_v32 = vpack.c.bf16 %v11838_v29, %v11837_v51  ;;  %v8144_v39 = vpack.c.bf16 %v5855_v61, %v5854_v14  ;;  %v5874_v46 = vld [vmem:[%s11836_s1 + $0xa0] sm:$0xff]  ;;  %v5875_v59 = vld [vmem:[%s11836_s1 + $0xa8] sm:$0xff]  ;;  %v5877_v60 = vld [vmem:[%s11836_s1 + $0xb8] sm:$0xff] }
0x1c3a   :  { %v5858_v26 = vld [vmem:[%s11836_s1 + $0x20] sm:$0xff]  ;;  %v5859_v56 = vld [vmem:[%s11836_s1 + $0x28] sm:$0xff]  ;;  %v5861_v3 = vld [vmem:[%s11836_s1 + $0x38] sm:$0xff] }
0x1c3b   :  { %8097 = vmatpush1.bf16.msra.mxu0 %v8096_v49  ;;  %v11840_v49 = vld [vmem:[#allocation386_spill] sm:$0xff]  ;;  %v8152_v55 = vpack.c.bf16 %v5859_v56, %v5858_v26  ;;  %v5879_v45 = vld [vmem:[%s11836_s1 + $0xc8] sm:$0xff]  ;;  %v8156_v4 = vpack.c.bf16 %v5861_v3, %v5860_v0  ;;  %v5862_v7 = vld [vmem:[%s11836_s1 + $0x40] sm:$0xff] }
0x1c3c   :  { %8099 = vmatprep.subr.bf16.mxu0 %v8098_v48  ;;  %v8134_v42 = vpack.c.bf16 %v11840_v49, %v11839_v58  ;;  %v11842_v48 = vld [vmem:[#allocation385_spill] sm:$0xff]  ;;  %v5881_v9 = vld [vmem:[%s11836_s1 + $0xd8] sm:$0xff]  ;;  %v5866_v63 = vld [vmem:[%s11836_s1 + $0x60] sm:$0xff] }
0x1c3d   :  { %v8136_v30 = vpack.c.bf16 %v11842_v48, %v11841_v44  ;;  %v5863_v2 = vld [vmem:[%s11836_s1 + $0x48] sm:$0xff]  ;;  %v5864_v10 = vld [vmem:[%s11836_s1 + $0x50] sm:$0xff]  ;;  %v5865_v11 = vld [vmem:[%s11836_s1 + $0x58] sm:$0xff] }
0x1c3e   :  { %v8160_v8 = vpack.c.bf16 %v5863_v2, %v5862_v7  ;;  %v5883_v13 = vld [vmem:[%s11836_s1 + $0xe8] sm:$0xff]  ;;  %v8164_v16 = vpack.c.bf16 %v5865_v11, %v5864_v10  ;;  %v5885_v52 = vld [vmem:[%s11836_s1 + $0xf8] sm:$0xff]  ;;  %v5868_v51 = vld [vmem:[%s11836_s1 + $0x70] sm:$0xff] }
0x1c3f   :  { %8101 = vmatpush1.bf16.msra.mxu0 %v8100_v21  ;;  %v11844_v21 = vld [vmem:[#allocation390_spill] sm:$0xff]  ;;  %v5867_v57 = vld [vmem:[%s11836_s1 + $0x68] sm:$0xff]  ;;  %v5853_v58 = vld [vmem:[%s11847_s2] sm:$0x3] }
0x1c40   :  { %8103 = vmatprep.subr.bf16.mxu0 %v8102_v19  ;;  %v8138_v20 = vpack.c.bf16 %v11844_v21, %v11843_v33  ;;  %v11846_v19 = vld [vmem:[#allocation389_spill] sm:$0xff]  ;;  %v8168_v41 = vpack.c.bf16 %v5867_v57, %v5866_v63  ;;  %v5869_v29 = vld [vmem:[%s11836_s1 + $0x78] sm:$0xff]  ;;  %v5897_v49 = vrot.slane %v5853_v58, %v11771_v43  ;;  %v5886_v43 = vld [vmem:[%s11836_s1 + $0x100] sm:$0xff] }
0x1c41   :  { %v8140_v47 = vpack.c.bf16 %v11846_v19, %v11845_v27  ;;  %v5887_v27 = vld [vmem:[%s11836_s1 + $0x108] sm:$0xff]  ;;  %v11848_v10 = vld [vmem:[#allocation391_spill] sm:$0xff] }
0x1c42   :  { %v8175_v19 = vpack.c.bf16 %v5887_v27, %v5886_v43  ;;  %v11849_v11 = vld [vmem:[#allocation392_spill] sm:$0xff] }
0x1c43   :  { %8105 = vmatpush1.bf16.msra.mxu0 %v8104_v53  ;;  %v5871_v53 = vld [vmem:[%s11836_s1 + $0x88] sm:$0xff] }
0x1c44   :  { %8107 = vmatprep.subr.bf16.mxu0 %v8106_v62  ;;  %v5873_v62 = vld [vmem:[%s11836_s1 + $0x98] sm:$0xff] }
0x1c45   :  { %v8146_v36 = vpack.c.bf16 %v5873_v62, %v5872_v22 }
0x1c47   :  { %8109 = vmatpush1.bf16.msra.mxu0 %v8108_v50  ;;  %v5856_v50 = vld [vmem:[%s11836_s1 + $0x10] sm:$0xff] }
0x1c48   :  { %8111 = vmatprep.subr.bf16.mxu0 %v8110_v38  ;;  %v8150_v38 = vpack.c.bf16 %v5875_v59, %v5874_v46 }
0x1c4b   :  { %8113 = vmatpush1.bf16.msra.mxu0 %v8112_v40  ;;  %v5876_v40 = vld [vmem:[%s11836_s1 + $0xb0] sm:$0xff] }
0x1c4c   :  { %8115 = vmatprep.subr.bf16.mxu0 %v8114_v1  ;;  %v8154_v1 = vpack.c.bf16 %v5877_v60, %v5876_v40 }
0x1c4f   :  { %8117 = vmatpush1.bf16.msra.mxu0 %v8116_v18  ;;  %v5878_v18 = vld [vmem:[%s11836_s1 + $0xc0] sm:$0xff] }
0x1c50   :  { %8119 = vmatprep.subr.bf16.mxu0 %v8118_v6  ;;  %v8158_v6 = vpack.c.bf16 %v5879_v45, %v5878_v18 }
0x1c53   :  { %8121 = vmatpush1.bf16.msra.mxu0 %v8120_v5  ;;  %v5880_v5 = vld [vmem:[%s11836_s1 + $0xd0] sm:$0xff] }
0x1c54   :  { %8123 = vmatprep.subr.bf16.mxu0 %v8122_v23  ;;  %v8162_v23 = vpack.c.bf16 %v5881_v9, %v5880_v5 }
0x1c57   :  { %8125 = vmatpush1.bf16.msra.mxu0 %v8124_v12  ;;  %v5882_v12 = vld [vmem:[%s11836_s1 + $0xe0] sm:$0xff] }
0x1c58   :  { %8127 = vmatprep.subr.bf16.mxu0 %v8126_v31  ;;  %v8166_v31 = vpack.c.bf16 %v5883_v13, %v5882_v12  ;;  %v8181_v12 = vpack.c.bf16 %v11849_v11, %v11848_v10 }
0x1c5b   :  { %8129 = vmatpush1.bf16.msra.mxu0 %v8128_v15  ;;  %v5884_v15 = vld [vmem:[%s11836_s1 + $0xf0] sm:$0xff] }
0x1c5c   :  { %8131 = vmatprep.subr.bf16.mxu0 %v8130_v34  ;;  %v8170_v34 = vpack.c.bf16 %v5885_v52, %v5884_v15 }
0x1c5f   :  { %8133 = vmatpush1.bf16.msra.mxu0 %v8132_v32  ;;  %v8172_v32 = vpack.c.bf16 %v5869_v29, %v5868_v51 }
0x1c60   :  { %8135 = vmatprep.subr.bf16.mxu0 %v8134_v42  ;;  %v5901_v42 = vrot.slane %v5853_v58, %v11772_v37 }
0x1c62   :  { %5972 = vmatmul.mubr.f32.vlgmr.msra.gmra.mrb[72].mxu0 %v5774_v25  ;;  %v8142_v25 = vpack.c.bf16 %v5871_v53, %v5870_v17  ;;  %v5888_v17 = vld [vmem:[%s11836_s1 + $0x110] sm:$0xff]  ;;  %v5889_v53 = vld [vmem:[%s11836_s1 + $0x118] sm:$0xff] }
0x1c63   :  { %8137 = vmatpush1.bf16.msra.mxu0 %v8136_v30  ;;  %6042 = vmatprep.mubr.f32.mxu0 %v11478_v35  ;;  %v8178_v14 = vpack.c.bf16 %v5889_v53, %v5888_v17 }
0x1c64   :  { %8139 = vmatprep.subr.bf16.mxu0 %v8138_v20  ;;  %8143 = vmatprep.subr.bf16.mxu1 %v8142_v25 }
0x1c65   :  { %8145 = vmatpush3.bf16.msra.mxu1 %v8144_v39 }
0x1c66   :  { %8147 = vmatprep.subr.bf16.mxu1 %v8146_v36  ;;  %v5891_v36 = vld [vmem:[%s8580_s6 + $0x8] sm:$0xff] }
0x1c67   :  { %8141 = vmatpush1.bf16.msra.mxu0 %v8140_v47 }
0x1c6a   :  { %6777 = vmatmul.mubr.msk.f32.vlgmr.msra.gmra.mrb[72].mxu0 %vm3116_vm10, %v5776_v54  ;;  %v8148_v54 = vpack.c.bf16 %v5857_v28, %v5856_v50  ;;  %v5890_v50 = vld [vmem:[%s8580_s6] sm:$0xff] }
0x1c6c   :  { %8149 = vmatpush3.bf16.msra.mxu1 %v8148_v54 }
0x1c6d   :  { %8151 = vmatprep.subr.bf16.mxu1 %v8150_v38 }
0x1c70   :  { %8153 = vmatpush3.bf16.msra.mxu1 %v8152_v55  ;;  %v5892_v55 = vld [vmem:[%s8580_s6 + $0x10] sm:$0xff] }
0x1c71   :  { %8155 = vmatprep.subr.bf16.mxu1 %v8154_v1 }
0x1c74   :  { %8157 = vmatpush3.bf16.msra.mxu1 %v8156_v4 }
0x1c75   :  { %8159 = vmatprep.subr.bf16.mxu1 %v8158_v6 }
0x1c78   :  { %8161 = vmatpush3.bf16.msra.mxu1 %v8160_v8 }
0x1c79   :  { %8163 = vmatprep.subr.bf16.mxu1 %v8162_v23 }
0x1c7c   :  { %8165 = vmatpush3.bf16.msra.mxu1 %v8164_v16 }
0x1c7d   :  { %8167 = vmatprep.subr.bf16.mxu1 %v8166_v31 }
0x1c80   :  { %8169 = vmatpush3.bf16.msra.mxu1 %v8168_v41 }
0x1c81   :  { %8171 = vmatprep.subr.bf16.mxu1 %v8170_v34 }
0x1c84   :  { %8173 = vmatpush3.bf16.msra.mxu1 %v8172_v32 }
0x1c85   :  { %8174 = vmatprep.subr.bf16.mxu1 %v8404_v24 }
0x1d3d   :  { %v6044_v44 = vpop.f32.mrb[72].mxu0 }
0x1d3e   :  { %v11015_v48 = vadd.f32 %v6044_v44, %v5897_v49  ;;  %v6046_v30 = vpop.f32.mrb[73].mxu0 }
0x1d3f   :  { %v11017_v33 = vadd.f32 %v6046_v30, %v5901_v42 }
0x1d40   :  { %v6049_v21 = vmul.f32 %v11015_v48, %v11015_v48 }
0x1d41   :  { %v6050_v20 = vmul.f32 %v11017_v33, %v11017_v33 }
0x1d42   :  { %6053 = vrot.lane.b32.xlu0 %v6049_v21, %s8409_s7 }
0x1d46   :  { %6055 = vrot.lane.b32.xlu0 %v6050_v20, %s8409_s7 }
0x1db4   :  { %v6054_v37 = vpop.permute.xlu0 %6053 }
0x1db5   :  { %v6060_v47 = vsel %vm6057_vm1, %v11017_v33, %v6054_v37 }
0x1db6   :  { %6127 = vmatprep.mubr.f32.mxu1 %v6060_v47 }
0x1db7   :  { %6128 = vmatmul.mubr.f32.vlgmr.msra.gmra.mrb[74].mxu1 %v11015_v48 }
0x1db8   :  { %8176 = vmatpush3.bf16.msra.mxu1 %v8175_v19  ;;  %7388 = vmatprep.mubr.msk.f32.mxu1 %vm8406_vm12, %v11478_v35  ;;  %v6056_v25 = vpop.permute.xlu0 %6055 }
0x1db9   :  { %8177 = vmatprep.subr.bf16.mxu1 %v8404_v24  ;;  %v6058_v61 = vsel %vm6057_vm1, %v6054_v37, %v6056_v25 }
0x1dbc   :  { %8179 = vmatpush3.bf16.msra.mxu1 %v8178_v14 }
0x1dbd   :  { %6216 = vmatprep.subr.mxu1 %v5891_v36 }
0x1dbf   :  { %7389 = vmatmul.mubr.msk.f32.vlgmr.msra.gmra.mrb[76].mxu1 %vm3116_vm10, %v6058_v61 }
0x1dc0   :  { %6280 = vmatprep.mubr.f32.mxu1 %v11478_v35  ;;  %6217 = vmatpush1.msra.mxu1 %v5890_v50 }
0x1dc1   :  { %7391 = vmatprep.subr.mxu1 %v11478_v35 }
0x1e8a   :  { %v7153_v22 = vpop.f32.mrb[74].mxu1 }
0x1e8b   :  { %v7154_v62 = vpop.f32.mrb[75].mxu1 }
0x1e8c   :  { %v7155_v39 = vadd.f32 %v7154_v62, %v7153_v22 }
0x1e92   :  { %v6199_v28 = vpop.f32.mrb[76].mxu1 }
0x1e93   :  { %v6200_v46 = vadd.f32 %v7155_v39, %v6199_v28  ;;  %v7390_v59 = vpop.f32.mrb[77].mxu1 }
0x1e95   :  { %v6203_v54 = vmul.f32 0.027777778, %v6200_v46 }
0x1e97   :  { %v6204_v38 = vmul.f32 %v6203_v54, %v6203_v54 }
0x1e99   :  { %6206 = vrot.lane.b32.xlu1 %v6204_v38, %s8402_s0 }
0x1f0b   :  { %v6207_v26 = vpop.permute.xlu1 %6206 }
0x1f0c   :  { %v6209_v56 = vsub.f32 %v6203_v54, %v6207_v26 }
0x1f0e   :  { %v6210_v40 = vmax.f32 %v6209_v56, 0.0 }
0x1f10   :  { %8324 = vrsqrt.f32 %v6210_v40 }
0x1f1a   :  { %v8325_v60 = vpop.eup %8324 }
0x1f1b   :  { %v6212_v1 = vsel %vm2072_vm5, %v6203_v54, %v8325_v60 }
0x1f1c   :  { %6779 = vmatmul.mubr.msk.f32.vlgmr.msra.gmra.mrb[78].mxu1 %vm2074_vm6, %v6212_v1 }
0x1f1d   :  { %7392 = vmatpush3.msra.mxu1 %v5892_v55  ;;  %7393 = vmatprep.mubr.msk.f32.mxu1 %vm8406_vm12, %v11478_v35 }
0x1f1e   :  { %8180 = vmatprep.subr.bf16.mxu1 %v8404_v24 }
0x1f20   :  { %7394 = vmatmul.mubr.msk.f32.vlgmr.msra.gmra.mrb[80].mxu1 %vm2074_vm6, %v6212_v1 }
0x1fef   :  { %v6282_v0 = vpop.f32.mrb[78].mxu1 }
0x1ff0   :  { %v6284_v3 = vpop.f32.mrb[79].mxu1  ;;  %v6357_v6 = vsub.f32 %v11015_v48, %v6282_v0 }
0x1ff1   :  { %6361 = vrot.lane.b32.xlu1 %v6284_v3, %s8410_s10  ;;  %v6358_v4 = vsub.f32 %v11017_v33, %v6284_v3 }
0x1ff3   :  { %v6353_v18 = vpop.f32.mrb[80].mxu1 }
0x1ff4   :  { %6363 = vrot.lane.b32.xlu0 %v6353_v18, %s8410_s10  ;;  %v7395_v45 = vpop.f32.mrb[81].mxu1 }
0x2063   :  { %v6362_v7 = vpop.permute.xlu1 %6361 }
0x2066   :  { %v6364_v2 = vpop.permute.xlu0 %6363 }
0x2067   :  { %v6366_v5 = vsel %vm6365_vm2, %v6362_v7, %v6364_v2  ;;  %v6370_v9 = vmul.f32 %v6364_v2, %v6358_v4 }
0x2068   :  { %v6369_v8 = vmul.f32 %v6366_v5, %v6357_v6 }
0x2069   :  { %v6372_v35 = vmax.f32 %v6370_v9, 0.0 }
0x206a   :  { %v6371_v23 = vmax.f32 %v6369_v8, 0.0 }
0x206b   :  { %8362 = dma.done.wait [#allocation10 + $0x7], 2304 }
0x206c   :  { %8363 = vsyncadd [#allocation10 + $0x7], 4294964992  ;;  %6782 = vmatprep.mubr.msk.f32.mxu1 %vm6057_vm1, %v6372_v35  ;;  %8182 = vmatpush1.bf16.msra.mxu1 %v8181_v12  ;;  %v11850_v13 = vld [vmem:[#allocation393_spill] sm:$0xff]  ;;  %v11851_v16 = vld [vmem:[#allocation394_spill] sm:$0xff]  ;;  %s8411_s6 = smov [#allocation11]  }
0x206d   :  { %v8184_v31 = vpack.c.bf16 %v11851_v16, %v11850_v13  ;;  %8183 = vmatprep.subr.bf16.mxu1 %v8404_v24  ;;  %v11852_v63 = vld [vmem:[#allocation395_spill] sm:$0xff]  ;;  %v11853_v57 = vld [vmem:[#allocation396_spill] sm:$0xff]  ;;  %v11854_v52 = vld [vmem:[#allocation397_spill] sm:$0xff]  ;;  %s6481_s11 = sshll.u32 %s8411_s6, 4  ;;  %s6482_s11 = int_to_ptr.vmem [resolvable:$true] %s6481_s11 }
0x206e   :  { %v8187_v15 = vpack.c.bf16 %v11853_v57, %v11852_v63  ;;  %v11855_v41 = vld [vmem:[#allocation398_spill] sm:$0xff]  ;;  %v11856_v51 = vld [vmem:[#allocation399_spill] sm:$0xff]  ;;  %v11857_v29 = vld [vmem:[#allocation400_spill] sm:$0xff]  ;;  %s8326_s15 = scalar_lea.vmem %s6482_s11, 32  ;;  %p8331_p1 = scmp.lt.s32.totalorder %s6482_s11, %s6482_s11 }
0x206f   :  { %v8190_v34 = vpack.c.bf16 %v11855_v41, %v11854_v52  ;;  %v8193_v32 = vpack.c.bf16 %v11857_v29, %v11856_v51  ;;  %v11858_v58 = vld [vmem:[#allocation401_spill] sm:$0xff]  ;;  %v11859_v49 = vld [vmem:[#allocation402_spill] sm:$0xff]  ;;  %v11860_v44 = vld [vmem:[#allocation403_spill] sm:$0xff]  ;;  %p8327_p0 = scmp.ne.s32.totalorder %s6482_s11, %s8326_s15  ;;  %p8332_p2 = scmp.lt.s32.totalorder %s8326_s15, %s8326_s15 }
0x2070   :  { %8185 = vmatpush1.bf16.msra.mxu1 %v8184_v31  ;;  %v8196_v42 = vpack.c.bf16 %v11859_v49, %v11858_v58  ;;  %v11861_v48 = vld [vmem:[#allocation404_spill] sm:$0xff]  ;;  %v11862_v33 = vld [vmem:[#allocation405_spill] sm:$0xff]  ;;  %v11863_v21 = vld [vmem:[#allocation406_spill] sm:$0xff] }
0x2071   :  { %8186 = vmatprep.subr.bf16.mxu1 %v8404_v24  ;;  %v8199_v30 = vpack.c.bf16 %v11861_v48, %v11860_v44  ;;  %v8202_v20 = vpack.c.bf16 %v11863_v21, %v11862_v33  ;;  %v11864_v43 = vld [vmem:[#allocation407_spill] sm:$0xff]  ;;  %v11865_v27 = vld [vmem:[#allocation408_spill] sm:$0xff]  ;;  %p8333_p3 = por %p8332_p2, %p8331_p1 }
0x2072   :  { %v8205_v37 = vpack.c.bf16 %v11865_v27, %v11864_v43  ;;  %v6781_v19 = vld [vmem:[%s8590_s30] ss:$0 sm:$0xff] }
0x2073   :  { %p8334_p4 = pnand %p8333_p3, %p8327_p0 }
0x2074   :  { %8188 = vmatpush1.bf16.msra.mxu1 %v8187_v15 }
0x2075   :  { %8189 = vmatprep.subr.bf16.mxu1 %v8404_v24 }
0x2078   :  { %8191 = vmatpush1.bf16.msra.mxu1 %v8190_v34 }
0x2079   :  { %8192 = vmatprep.subr.bf16.mxu1 %v8404_v24 }
0x207c   :  { %8194 = vmatpush1.bf16.msra.mxu1 %v8193_v32 }
0x207d   :  { %8195 = vmatprep.subr.bf16.mxu1 %v8404_v24 }
0x2080   :  { %8197 = vmatpush1.bf16.msra.mxu1 %v8196_v42 }
0x2081   :  { %8198 = vmatprep.subr.bf16.mxu1 %v8404_v24 }
0x2084   :  { %8200 = vmatpush1.bf16.msra.mxu1 %v8199_v30 }
0x2085   :  { %8201 = vmatprep.subr.bf16.mxu1 %v8404_v24 }
0x2088   :  { %8203 = vmatpush1.bf16.msra.mxu1 %v8202_v20 }
0x2089   :  { %8204 = vmatprep.subr.bf16.mxu1 %v8404_v24 }
0x208c   :  { %8206 = vmatpush1.bf16.msra.mxu1 %v8205_v37 }
0x208f   :  { %6469 = vmatmul.mubr.f32.vlgmr.msra.gmra.mrb[82].mxu1 %v6371_v23 }
0x2162   :  { %v6470_v47 = vpop.f32.mrb[82].mxu1 }
0x2163   :  { %v6471_v17 = vadd.f32 %v6781_v19, %v6470_v47  ;;  %v6472_v53 = vpop.f32.mrb[83].mxu1 }
0x2165   :  { %6474 = vst [vmem:[#allocation11] sm:$0x3] %v6471_v17 }
0x2166   :  { %8337 = shalt.err (!%p8334_p4)
}
0x2167   :  { %s8338_s16 = scalar_lea.hbm %s8595_s20, 32 }
0x2168   :  { %p8339_p5 = scmp.ne.s32.totalorder %s8595_s20, %s8338_s16  ;;  %p8342_p6 = scmp.lt.u32.totalorder %s8338_s16, %s8595_s20 }
0x216a   :  { %p8344_p7 = pnand %p8342_p6, %p8339_p5 }
0x216c   :  { %8347 = shalt.err (!%p8344_p7)
}
0x216d   :  { %6484 = dma.vmem_to_hbm [thread:$0]  %s6482_s11, 32, %s8595_s20, [#allocation12]  }
0x216e   :  { %8364 = dma.done.wait [#allocation12], 32  }
0x216f   :  { %8365 = vsyncadd [#allocation12], 4294967264 }
0x2170   :  { %6488 = vsyncpa [#allocation12], 1 }
0x2171   :  { %6489 = vsyncmov [#allocation10] }
0x2174   :  { %s6490_s30 = vpop.sfrf %6489 }
0x2175   :  { %p6783_p8 = scmp.ne.s32.totalorder %s6490_s30, 0 }
0x2177   :  { %6494 = shalt.err (%p6783_p8)  }
0x2178   :  { %6496 = vsyncmov [#allocation10 + $0x1] }
0x217b   :  { %s6497_s18 = vpop.sfrf %6496 }
0x217c   :  { %p6784_p9 = scmp.ne.s32.totalorder %s6497_s18, 0 }
0x217e   :  { %6501 = shalt.err (%p6784_p9)  }
0x217f   :  { %6503 = vsyncmov [#allocation10 + $0x2] }
0x2182   :  { %s6504_s0 = vpop.sfrf %6503 }
0x2183   :  { %p6785_p10 = scmp.ne.s32.totalorder %s6504_s0, 0 }
0x2185   :  { %6508 = shalt.err (%p6785_p10)  }
0x2186   :  { %6510 = vsyncmov [#allocation10 + $0x3] }
0x2189   :  { %s6511_s5 = vpop.sfrf %6510 }
0x218a   :  { %p6786_p11 = scmp.ne.s32.totalorder %s6511_s5, 0 }
0x218c   :  { %6515 = shalt.err (%p6786_p11)  }
0x218d   :  { %6517 = vsyncmov [#allocation10 + $0x4] }
0x2190   :  { %s6518_s20 = vpop.sfrf %6517 }
0x2191   :  { %p6787_p12 = scmp.ne.s32.totalorder %s6518_s20, 0 }
0x2193   :  { %6522 = shalt.err (%p6787_p12)  }
0x2194   :  { %6524 = vsyncmov [#allocation10 + $0x5] }
0x2197   :  { %s6525_s9 = vpop.sfrf %6524 }
0x2198   :  { %p6788_p13 = scmp.ne.s32.totalorder %s6525_s9, 0 }
0x219a   :  { %6529 = shalt.err (%p6788_p13)  }
0x219b   :  { %6531 = vsyncmov [#allocation10 + $0x6] }
0x219e   :  { %s6532_s13 = vpop.sfrf %6531 }
0x219f   :  { %p6789_p0 = scmp.ne.s32.totalorder %s6532_s13, 0 }
0x21a1   :  { %6536 = shalt.err (%p6789_p0)  }
0x21a2   :  { %6538 = vsyncmov [#allocation10 + $0x7] }
0x21a5   :  { %s6539_s17 = vpop.sfrf %6538 }
0x21a6   :  { %p6790_p1 = scmp.ne.s32.totalorder %s6539_s17, 0 }
0x21a8   :  { %6543 = shalt.err (%p6790_p1)  }

</bundles_post_ra>
